<compile_context>
chip_gen: v7x
topology: tpu7x:2x2x1
jax: 0.10.0
libtpu: 0.0.40
codegen_flags: <defaults>
</compile_context>

<pallas_src>
import math

import numpy as np
import jax
import jax.numpy as jnp
from jax.experimental import pallas as pl
from jax.experimental.pallas import tpu as pltpu

_LANE = 128


def _round_up(x, m):
    return ((x + m - 1) // m) * m


# ----------------------------------------------------------------------------
# Fused UNETBlock kernel:  [conv3x3 valid + ReLU] x 2  (+ optional 2x2 maxpool)
# ----------------------------------------------------------------------------
def _unet_block_body(x_ref, w1_ref, b1_ref, w2_ref, b2_ref, *rest, with_pool):
    """Per-batch-element fused UNETBlock (all channel dims padded to 128 lanes).

    x_ref   : (1, H0, W0, CPin)            bf16 VMEM (zero-padded channels)
    w1_ref  : (9*CPin, CPout)              bf16 VMEM (rows ordered (dy, dx, ci))
    b1_ref  : (1, CPout)                   f32  VMEM
    w2_ref  : (9*CPout, CPout)             bf16 VMEM
    b2_ref  : (1, CPout)                   f32  VMEM
    feat_ref: (1, H0-4, W0-4, CPout)       f32  VMEM (block feature, pre-pool)
    pool_ref: (1, (H0-4)//2, (W0-4)//2, CPout) bf16 VMEM (only if with_pool)
    a1_scr  : (M1, 9*CPin)   bf16 scratch  (im2col matrix for conv1)
    y1_scr  : (H1, W1, CPout) bf16 scratch (staged conv1 activation)
    a2_scr  : (M2, 9*CPout)  bf16 scratch  (im2col matrix for conv2)
    """
    if with_pool:
        feat_ref, pool_ref, a1_scr, y1_scr, a2_scr = rest
    else:
        feat_ref, a1_scr, y1_scr, a2_scr = rest
        pool_ref = None

    _, H0, W0, CPin = x_ref.shape
    CPout = b1_ref.shape[1]
    H1, W1 = H0 - 2, W0 - 2
    H2, W2 = H1 - 2, W1 - 2
    M1, M2 = H1 * W1, H2 * W2

    # ---- conv1: assemble (M1, 9*CPin) im2col matrix; every store targets a
    #      full 128-lane-aligned column slot (CPin % 128 == 0) -> unmasked vst.
    for dy in range(3):
        for dx in range(3):
            k = dy * 3 + dx
            tap = x_ref[0, dy:dy + H1, dx:dx + W1, :]           # (H1,W1,CPin) bf16
            a1_scr[:, k * CPin:(k + 1) * CPin] = tap.reshape(M1, CPin)

    y1 = jnp.dot(a1_scr[...], w1_ref[...],
                 preferred_element_type=jnp.float32)            # (M1, CPout) f32
    y1 = jnp.maximum(y1 + b1_ref[...], 0.0)

    # Stage the intermediate activation in VMEM (bf16 = next MXU operand dtype);
    # conv2 taps are read back from this Ref as plain strided loads.
    y1_scr[...] = y1.reshape(H1, W1, CPout).astype(jnp.bfloat16)

    # ---- conv2: same scheme, taps come from the VMEM ref (not a live value) --
    for dy in range(3):
        for dx in range(3):
            k = dy * 3 + dx
            tap = y1_scr[dy:dy + H2, dx:dx + W2, :]             # (H2,W2,CPout) bf16
            a2_scr[:, k * CPout:(k + 1) * CPout] = tap.reshape(M2, CPout)

    y2 = jnp.dot(a2_scr[...], w2_ref[...],
                 preferred_element_type=jnp.float32)            # (M2, CPout) f32
    y2 = jnp.maximum(y2 + b2_ref[...], 0.0)

    # Lane-dense (128-wide) f32 writeback of the block feature.
    feat_ref[...] = y2.reshape(1, H2, W2, CPout).astype(feat_ref.dtype)

    # ---- fused 2x2 / stride-2 max-pool: elementwise maximum only (VPU) ------
    if with_pool:
        Hp, Wp = H2 // 2, W2 // 2
        v = y2.reshape(H2, W2, CPout)[:2 * Hp, :2 * Wp, :]
        v = v.reshape(Hp, 2, Wp, 2, CPout)
        pooled = jnp.maximum(
            jnp.maximum(v[:, 0, :, 0, :], v[:, 0, :, 1, :]),
            jnp.maximum(v[:, 1, :, 0, :], v[:, 1, :, 1, :]))
        # bf16, padded lanes: consumed directly by the next block's MXU.
        pool_ref[...] = pooled.reshape(1, Hp, Wp, CPout).astype(pool_ref.dtype)


def _unet_block_kernel_pool(*refs):
    _unet_block_body(*refs, with_pool=True)


def _unet_block_kernel_nopool(*refs):
    _unet_block_body(*refs, with_pool=False)


# ----------------------------------------------------------------------------
# Wrapper: one fused pallas_call per UNETBlock
# ----------------------------------------------------------------------------
def unet_block(x_pad_bf16, w1, b1, w2, b2, *, with_pool):
    """x_pad_bf16: (N, H0, W0, CPin) bf16 with channels zero-padded to 128*k.
    w1/w2 HWIO f32 (unpadded), b1/b2 f32 (unpadded).
    Returns (feat_padded (N,H2,W2,CPout) f32, pooled_padded bf16 or None)."""
    N, H0, W0, CPin = x_pad_bf16.shape
    Cin, Cout = w1.shape[2], w1.shape[3]
    assert CPin == _round_up(Cin, _LANE)
    CPout = _round_up(Cout, _LANE)

    H1, W1 = H0 - 2, W0 - 2
    H2, W2 = H1 - 2, W1 - 2
    Hp, Wp = H2 // 2, W2 // 2
    M1, M2 = H1 * W1, H2 * W2

    # Lane-padded, (dy,dx,ci)-major bf16 weight slabs; zero rows for padded
    # input channels and zero cols (+ zero bias) for padded output channels, so
    # the matmul result on the real channels is unchanged.
    def pad_w(w, cpi, cpo):
        wp = jnp.zeros((3, 3, cpi, cpo), jnp.float32)
        wp = wp.at[:, :, :w.shape[2], :w.shape[3]].set(w)
        return wp.reshape(9 * cpi, cpo).astype(jnp.bfloat16)

    def pad_b(b, cpo):
        return jnp.zeros((1, cpo), jnp.float32).at[0, :b.shape[0]].set(b)

    w1f = pad_w(w1, CPin, CPout)
    w2f = pad_w(w2, CPout, CPout)
    b1f = pad_b(b1, CPout)
    b2f = pad_b(b2, CPout)

    out_shape = [jax.ShapeDtypeStruct((N, H2, W2, CPout), jnp.float32)]
    out_specs = [pl.BlockSpec((1, H2, W2, CPout), lambda n: (n, 0, 0, 0))]
    kernel = _unet_block_kernel_nopool
    if with_pool:
        out_shape.append(jax.ShapeDtypeStruct((N, Hp, Wp, CPout), jnp.bfloat16))
        out_specs.append(pl.BlockSpec((1, Hp, Wp, CPout), lambda n: (n, 0, 0, 0)))
        kernel = _unet_block_kernel_pool

    # Advisory cost estimate so XLA schedules the surrounding transposes / pads
    # around the kernel instead of serializing on it.
    flops = 2 * N * (M1 * 9 * CPin * CPout + M2 * 9 * CPout * CPout)
    bytes_accessed = (x_pad_bf16.size * 2 + w1f.size * 2 + w2f.size * 2
                      + b1f.size * 4 + b2f.size * 4
                      + N * H2 * W2 * CPout * 4
                      + (N * Hp * Wp * CPout * 2 if with_pool else 0))
    cost = pl.CostEstimate(flops=int(flops), transcendentals=0,
                           bytes_accessed=int(bytes_accessed))

    # Explicit scoped-VMEM sizing (double-buffered blocks + scratch + margin);
    # v5e's default scoped limit is only 16 MiB, so size it from the buffers.
    blk_in = (H0 * W0 * CPin * 2 + 9 * CPin * CPout * 2
              + 9 * CPout * CPout * 2 + 2 * CPout * 4)
    blk_out = H2 * W2 * CPout * 4 + (Hp * Wp * CPout * 2 if with_pool else 0)
    scratch_b = (M1 * 9 * CPin + H1 * W1 * CPout + M2 * 9 * CPout) * 2
    need = 2 * (blk_in + blk_out) + scratch_b
    vmem_bytes = min(max(2 * need + (4 << 20), 32 << 20), 64 << 20)

    outs = pl.pallas_call(
        kernel,
        out_shape=tuple(out_shape),
        grid=(N,),
        in_specs=[
            pl.BlockSpec((1, H0, W0, CPin), lambda n: (n, 0, 0, 0)),
            pl.BlockSpec((9 * CPin, CPout), lambda n: (0, 0)),
            pl.BlockSpec((1, CPout), lambda n: (0, 0)),
            pl.BlockSpec((9 * CPout, CPout), lambda n: (0, 0)),
            pl.BlockSpec((1, CPout), lambda n: (0, 0)),
        ],
        out_specs=tuple(out_specs),
        scratch_shapes=[
            pltpu.VMEM((M1, 9 * CPin), jnp.bfloat16),     # conv1 im2col
            pltpu.VMEM((H1, W1, CPout), jnp.bfloat16),    # staged conv1 act
            pltpu.VMEM((M2, 9 * CPout), jnp.bfloat16),    # conv2 im2col
        ],
        compiler_params=pltpu.CompilerParams(
            dimension_semantics=("parallel",),
            vmem_limit_bytes=int(vmem_bytes)),
        cost_estimate=cost,
    )(x_pad_bf16, w1f, b1f, w2f, b2f)

    feat = outs[0]
    pooled = outs[1] if with_pool else None
    return feat, pooled


# ----------------------------------------------------------------------------
# UNETEncoder forward (Pallas-backed)
# ----------------------------------------------------------------------------
def unet_encoder_forward(x_nchw, params):
    """params: list of (w1, b1, w2, b2) per UNETBlock, weights in HWIO.
    Returns list of NCHW f32 feature maps (one per block), like the PyTorch module."""
    N, C0, H, W = x_nchw.shape
    CP0 = _round_up(C0, _LANE)
    x = jnp.transpose(x_nchw, (0, 2, 3, 1))                          # NCHW -> NHWC
    x = jnp.pad(x, ((0, 0), (0, 0), (0, 0), (0, CP0 - C0)))          # lane-pad C
    x = x.astype(jnp.bfloat16)                                       # MXU operand
    features = []
    for i, (w1, b1, w2, b2) in enumerate(params):
        last = i == len(params) - 1
        cout = w2.shape[-1]
        feat_p, pooled = unet_block(x, w1, b1, w2, b2, with_pool=not last)
        feat = feat_p[..., :cout]                        # strip lane padding
        features.append(jnp.transpose(feat, (0, 3, 1, 2)))   # back to NCHW
        if not last:
            # PyTorch pools after the last block too but discards it; skip there.
            x = pooled                                   # padded bf16, reused as-is
    return features


def init_params(key, channels):
    """Deterministic PyTorch-like (uniform fan-in) init for the conv stacks."""
    params = []
    for i in range(len(channels) - 1):
        cin, cout = channels[i], channels[i + 1]
        key, k1, k2, k3, k4 = jax.random.split(key, 5)
        s1 = 1.0 / math.sqrt(cin * 9)
        s2 = 1.0 / math.sqrt(cout * 9)
        w1 = jax.random.uniform(k1, (3, 3, cin, cout), jnp.float32, -s1, s1)
        b1 = jax.random.uniform(k2, (cout,), jnp.float32, -s1, s1)
        w2 = jax.random.uniform(k3, (3, 3, cout, cout), jnp.float32, -s2, s2)
        b2 = jax.random.uniform(k4, (cout,), jnp.float32, -s2, s2)
        params.append((w1, b1, w2, b2))
    return params


# ----------------------------------------------------------------------------
# Pure-JAX reference (XLA conv) mirroring the kernel's bf16 MXU operands
# ----------------------------------------------------------------------------
def _q(a):
    return a.astype(jnp.bfloat16).astype(jnp.float32)


def reference_forward(x_nchw, params):
    def conv_relu(x, w, b):
        y = jax.lax.conv_general_dilated(
            _q(x), _q(w), window_strides=(1, 1), padding="VALID",
            dimension_numbers=("NCHW", "HWIO", "NCHW"),
            precision=jax.lax.Precision.HIGHEST)
        return jnp.maximum(y + b[None, :, None, None], 0.0)

    x = x_nchw
    feats = []
    for i, (w1, b1, w2, b2) in enumerate(params):
        y = conv_relu(x, w1, b1)
        y = conv_relu(y, w2, b2)
        feats.append(y)
        if i < len(params) - 1:
            x = jax.lax.reduce_window(
                y, -jnp.inf, jax.lax.max,
                window_dimensions=(1, 1, 2, 2),
                window_strides=(1, 1, 2, 2),
                padding="VALID")
    return feats


if __name__ == "__main__":
    # Small synthetic config: channels=(4, 8, 16), batch=2, spatial=16.
    # Spatial trace: 16 -> conv -> 14 -> conv -> 12 (feat 0) -> pool -> 6
    #                 6 -> conv ->  4 -> conv ->  2 (feat 1)
    channels = (4, 8, 16)
    key = jax.random.PRNGKey(0)
    key, kx = jax.random.split(key)
    x = jax.random.normal(kx, (2, channels[0], 16, 16), jnp.float32)

    params = init_params(jax.random.PRNGKey(1), channels)

    feats = unet_encoder_forward(x, params)
    feats = [jax.block_until_ready(f) for f in feats]

    ref_feats = reference_forward(x, params)
    for f, r in zip(feats, ref_feats):
        assert f.shape == r.shape, (f.shape, r.shape)
        np.testing.assert_allclose(np.asarray(f), np.asarray(r),
                                   rtol=2e-3, atol=2e-3)

    print("KERNEL_OK")
</pallas_src>

<mosaic_0001>
module attributes {stable_mosaic.version = 11 : i64} {
  func.func @_unet_block_kernel_pool(%arg0: i32, %arg1: memref<1x16x16x128xbf16, #tpu.memory_space<vmem>>, %arg2: memref<1152x128xbf16, #tpu.memory_space<vmem>>, %arg3: memref<1x128xf32, #tpu.memory_space<vmem>>, %arg4: memref<1152x128xbf16, #tpu.memory_space<vmem>>, %arg5: memref<1x128xf32, #tpu.memory_space<vmem>>, %arg6: memref<1x12x12x128xf32, #tpu.memory_space<vmem>>, %arg7: memref<1x6x6x128xbf16, #tpu.memory_space<vmem>>, %arg8: memref<196x1152xbf16, #tpu.memory_space<vmem>>, %arg9: memref<14x14x128xbf16, #tpu.memory_space<vmem>>, %arg10: memref<144x1152xbf16, #tpu.memory_space<vmem>>) attributes {dimension_semantics = [#tpu.dimension_semantics<parallel>], iteration_bounds = array<i64: 2>, scalar_prefetch = 0 : i64, scratch_operands = 3 : i64, tpu.core_type = #tpu.core_type<tc>, window_params = [{transform_indices = @transform_0, window_bounds = array<i64: 1, 16, 16, 128>}, {pipeline_mode = #tpu.pipeline_mode<synchronous>, transform_indices = @transform_1, window_bounds = array<i64: 1152, 128>}, {pipeline_mode = #tpu.pipeline_mode<synchronous>, transform_indices = @transform_2, window_bounds = array<i64: 1, 128>}, {pipeline_mode = #tpu.pipeline_mode<synchronous>, transform_indices = @transform_3, window_bounds = array<i64: 1152, 128>}, {pipeline_mode = #tpu.pipeline_mode<synchronous>, transform_indices = @transform_4, window_bounds = array<i64: 1, 128>}, {transform_indices = @transform_5, window_bounds = array<i64: 1, 12, 12, 128>}, {transform_indices = @transform_6, window_bounds = array<i64: 1, 6, 6, 128>}]} {
    %c0 = arith.constant 0 : index
    %c0_0 = arith.constant 0 : index
    %c0_1 = arith.constant 0 : index
    %c0_2 = arith.constant 0 : index
    %0 = vector.load %arg1[%c0, %c0_0, %c0_1, %c0_2] : memref<1x16x16x128xbf16, #tpu.memory_space<vmem>>, vector<1x14x14x128xbf16>
    %1 = vector.shape_cast %0 : vector<1x14x14x128xbf16> to vector<14x14x128xbf16>
    %2 = vector.shape_cast %1 : vector<14x14x128xbf16> to vector<196x128xbf16>
    %c0_3 = arith.constant 0 : index
    %c0_4 = arith.constant 0 : index
    %3 = vector.load %arg8[%c0_3, %c0_4] : memref<196x1152xbf16, #tpu.memory_space<vmem>>, vector<196x128xbf16>
    tpu.vector_store %arg8[%c0_3, %c0_4], %2 {strides = array<i32>} : memref<196x1152xbf16, #tpu.memory_space<vmem>>, vector<196x128xbf16>,
    %c0_5 = arith.constant 0 : index
    %c0_6 = arith.constant 0 : index
    %c1 = arith.constant 1 : index
    %c0_7 = arith.constant 0 : index
    %4 = vector.load %arg1[%c0_5, %c0_6, %c1, %c0_7] : memref<1x16x16x128xbf16, #tpu.memory_space<vmem>>, vector<1x14x14x128xbf16>
    %5 = vector.shape_cast %4 : vector<1x14x14x128xbf16> to vector<14x14x128xbf16>
    %6 = vector.shape_cast %5 : vector<14x14x128xbf16> to vector<196x128xbf16>
    %c0_8 = arith.constant 0 : index
    %c128 = arith.constant 128 : index
    %7 = vector.load %arg8[%c0_8, %c128] : memref<196x1152xbf16, #tpu.memory_space<vmem>>, vector<196x128xbf16>
    tpu.vector_store %arg8[%c0_8, %c128], %6 {strides = array<i32>} : memref<196x1152xbf16, #tpu.memory_space<vmem>>, vector<196x128xbf16>,
    %c0_9 = arith.constant 0 : index
    %c0_10 = arith.constant 0 : index
    %c2 = arith.constant 2 : index
    %c0_11 = arith.constant 0 : index
    %8 = vector.load %arg1[%c0_9, %c0_10, %c2, %c0_11] : memref<1x16x16x128xbf16, #tpu.memory_space<vmem>>, vector<1x14x14x128xbf16>
    %9 = vector.shape_cast %8 : vector<1x14x14x128xbf16> to vector<14x14x128xbf16>
    %10 = vector.shape_cast %9 : vector<14x14x128xbf16> to vector<196x128xbf16>
    %c0_12 = arith.constant 0 : index
    %c256 = arith.constant 256 : index
    %11 = vector.load %arg8[%c0_12, %c256] : memref<196x1152xbf16, #tpu.memory_space<vmem>>, vector<196x128xbf16>
    tpu.vector_store %arg8[%c0_12, %c256], %10 {strides = array<i32>} : memref<196x1152xbf16, #tpu.memory_space<vmem>>, vector<196x128xbf16>,
    %c0_13 = arith.constant 0 : index
    %c1_14 = arith.constant 1 : index
    %c0_15 = arith.constant 0 : index
    %c0_16 = arith.constant 0 : index
    %12 = vector.load %arg1[%c0_13, %c1_14, %c0_15, %c0_16] : memref<1x16x16x128xbf16, #tpu.memory_space<vmem>>, vector<1x14x14x128xbf16>
    %13 = vector.shape_cast %12 : vector<1x14x14x128xbf16> to vector<14x14x128xbf16>
    %14 = vector.shape_cast %13 : vector<14x14x128xbf16> to vector<196x128xbf16>
    %c0_17 = arith.constant 0 : index
    %c384 = arith.constant 384 : index
    %15 = vector.load %arg8[%c0_17, %c384] : memref<196x1152xbf16, #tpu.memory_space<vmem>>, vector<196x128xbf16>
    tpu.vector_store %arg8[%c0_17, %c384], %14 {strides = array<i32>} : memref<196x1152xbf16, #tpu.memory_space<vmem>>, vector<196x128xbf16>,
    %c0_18 = arith.constant 0 : index
    %c1_19 = arith.constant 1 : index
    %c1_20 = arith.constant 1 : index
    %c0_21 = arith.constant 0 : index
    %16 = vector.load %arg1[%c0_18, %c1_19, %c1_20, %c0_21] : memref<1x16x16x128xbf16, #tpu.memory_space<vmem>>, vector<1x14x14x128xbf16>
    %17 = vector.shape_cast %16 : vector<1x14x14x128xbf16> to vector<14x14x128xbf16>
    %18 = vector.shape_cast %17 : vector<14x14x128xbf16> to vector<196x128xbf16>
    %c0_22 = arith.constant 0 : index
    %c512 = arith.constant 512 : index
    %19 = vector.load %arg8[%c0_22, %c512] : memref<196x1152xbf16, #tpu.memory_space<vmem>>, vector<196x128xbf16>
    tpu.vector_store %arg8[%c0_22, %c512], %18 {strides = array<i32>} : memref<196x1152xbf16, #tpu.memory_space<vmem>>, vector<196x128xbf16>,
    %c0_23 = arith.constant 0 : index
    %c1_24 = arith.constant 1 : index
    %c2_25 = arith.constant 2 : index
    %c0_26 = arith.constant 0 : index
    %20 = vector.load %arg1[%c0_23, %c1_24, %c2_25, %c0_26] : memref<1x16x16x128xbf16, #tpu.memory_space<vmem>>, vector<1x14x14x128xbf16>
    %21 = vector.shape_cast %20 : vector<1x14x14x128xbf16> to vector<14x14x128xbf16>
    %22 = vector.shape_cast %21 : vector<14x14x128xbf16> to vector<196x128xbf16>
    %c0_27 = arith.constant 0 : index
    %c640 = arith.constant 640 : index
    %23 = vector.load %arg8[%c0_27, %c640] : memref<196x1152xbf16, #tpu.memory_space<vmem>>, vector<196x128xbf16>
    tpu.vector_store %arg8[%c0_27, %c640], %22 {strides = array<i32>} : memref<196x1152xbf16, #tpu.memory_space<vmem>>, vector<196x128xbf16>,
    %c0_28 = arith.constant 0 : index
    %c2_29 = arith.constant 2 : index
    %c0_30 = arith.constant 0 : index
    %c0_31 = arith.constant 0 : index
    %24 = vector.load %arg1[%c0_28, %c2_29, %c0_30, %c0_31] : memref<1x16x16x128xbf16, #tpu.memory_space<vmem>>, vector<1x14x14x128xbf16>
    %25 = vector.shape_cast %24 : vector<1x14x14x128xbf16> to vector<14x14x128xbf16>
    %26 = vector.shape_cast %25 : vector<14x14x128xbf16> to vector<196x128xbf16>
    %c0_32 = arith.constant 0 : index
    %c768 = arith.constant 768 : index
    %27 = vector.load %arg8[%c0_32, %c768] : memref<196x1152xbf16, #tpu.memory_space<vmem>>, vector<196x128xbf16>
    tpu.vector_store %arg8[%c0_32, %c768], %26 {strides = array<i32>} : memref<196x1152xbf16, #tpu.memory_space<vmem>>, vector<196x128xbf16>,
    %c0_33 = arith.constant 0 : index
    %c2_34 = arith.constant 2 : index
    %c1_35 = arith.constant 1 : index
    %c0_36 = arith.constant 0 : index
    %28 = vector.load %arg1[%c0_33, %c2_34, %c1_35, %c0_36] : memref<1x16x16x128xbf16, #tpu.memory_space<vmem>>, vector<1x14x14x128xbf16>
    %29 = vector.shape_cast %28 : vector<1x14x14x128xbf16> to vector<14x14x128xbf16>
    %30 = vector.shape_cast %29 : vector<14x14x128xbf16> to vector<196x128xbf16>
    %c0_37 = arith.constant 0 : index
    %c896 = arith.constant 896 : index
    %31 = vector.load %arg8[%c0_37, %c896] : memref<196x1152xbf16, #tpu.memory_space<vmem>>, vector<196x128xbf16>
    tpu.vector_store %arg8[%c0_37, %c896], %30 {strides = array<i32>} : memref<196x1152xbf16, #tpu.memory_space<vmem>>, vector<196x128xbf16>,
    %c0_38 = arith.constant 0 : index
    %c2_39 = arith.constant 2 : index
    %c2_40 = arith.constant 2 : index
    %c0_41 = arith.constant 0 : index
    %32 = vector.load %arg1[%c0_38, %c2_39, %c2_40, %c0_41] : memref<1x16x16x128xbf16, #tpu.memory_space<vmem>>, vector<1x14x14x128xbf16>
    %33 = vector.shape_cast %32 : vector<1x14x14x128xbf16> to vector<14x14x128xbf16>
    %34 = vector.shape_cast %33 : vector<14x14x128xbf16> to vector<196x128xbf16>
    %c0_42 = arith.constant 0 : index
    %c1024 = arith.constant 1024 : index
    %35 = vector.load %arg8[%c0_42, %c1024] : memref<196x1152xbf16, #tpu.memory_space<vmem>>, vector<196x128xbf16>
    tpu.vector_store %arg8[%c0_42, %c1024], %34 {strides = array<i32>} : memref<196x1152xbf16, #tpu.memory_space<vmem>>, vector<196x128xbf16>,
    %c0_43 = arith.constant 0 : index
    %c0_44 = arith.constant 0 : index
    %36 = vector.load %arg8[%c0_43, %c0_44] : memref<196x1152xbf16, #tpu.memory_space<vmem>>, vector<196x1152xbf16>
    %c0_45 = arith.constant 0 : index
    %c0_46 = arith.constant 0 : index
    %37 = vector.load %arg2[%c0_45, %c0_46] : memref<1152x128xbf16, #tpu.memory_space<vmem>>, vector<1152x128xbf16>
    %cst = arith.constant dense<0.000000e+00> : vector<196x128xf32>
    %38 = tpu.matmul %36, %37, %cst {dimension_numbers = #tpu.dot_dimension_numbers<[1], [0], [0], [1], [0, 0, 1, 1], [], []>} : vector<196x1152xbf16>, vector<1152x128xbf16>, vector<196x128xf32> -> vector<196x128xf32>
    %c0_47 = arith.constant 0 : index
    %c0_48 = arith.constant 0 : index
    %39 = vector.load %arg3[%c0_47, %c0_48] : memref<1x128xf32, #tpu.memory_space<vmem>>, vector<1x128xf32>
    %40 = vector.broadcast %39 : vector<1x128xf32> to vector<196x128xf32>
    %41 = arith.addf %38, %40 : vector<196x128xf32>
    %cst_49 = arith.constant 0.000000e+00 : f32
    %42 = vector.broadcast %cst_49 : f32 to vector<196x128xf32>
    %43 = arith.maximumf %41, %42 : vector<196x128xf32>
    %44 = vector.shape_cast %43 : vector<196x128xf32> to vector<14x14x128xf32>
    %45 = arith.truncf %44 : vector<14x14x128xf32> to vector<14x14x128xbf16>
    %c0_50 = arith.constant 0 : index
    %c0_51 = arith.constant 0 : index
    %c0_52 = arith.constant 0 : index
    %46 = vector.load %arg9[%c0_50, %c0_51, %c0_52] : memref<14x14x128xbf16, #tpu.memory_space<vmem>>, vector<14x14x128xbf16>
    tpu.vector_store %arg9[%c0_50, %c0_51, %c0_52], %45 {strides = array<i32>} : memref<14x14x128xbf16, #tpu.memory_space<vmem>>, vector<14x14x128xbf16>,
    %c0_53 = arith.constant 0 : index
    %c0_54 = arith.constant 0 : index
    %c0_55 = arith.constant 0 : index
    %47 = vector.load %arg9[%c0_53, %c0_54, %c0_55] : memref<14x14x128xbf16, #tpu.memory_space<vmem>>, vector<12x12x128xbf16>
    %48 = vector.shape_cast %47 : vector<12x12x128xbf16> to vector<144x128xbf16>
    %c0_56 = arith.constant 0 : index
    %c0_57 = arith.constant 0 : index
    %49 = vector.load %arg10[%c0_56, %c0_57] : memref<144x1152xbf16, #tpu.memory_space<vmem>>, vector<144x128xbf16>
    tpu.vector_store %arg10[%c0_56, %c0_57], %48 {strides = array<i32>} : memref<144x1152xbf16, #tpu.memory_space<vmem>>, vector<144x128xbf16>,
    %c0_58 = arith.constant 0 : index
    %c1_59 = arith.constant 1 : index
    %c0_60 = arith.constant 0 : index
    %50 = vector.load %arg9[%c0_58, %c1_59, %c0_60] : memref<14x14x128xbf16, #tpu.memory_space<vmem>>, vector<12x12x128xbf16>
    %51 = vector.shape_cast %50 : vector<12x12x128xbf16> to vector<144x128xbf16>
    %c0_61 = arith.constant 0 : index
    %c128_62 = arith.constant 128 : index
    %52 = vector.load %arg10[%c0_61, %c128_62] : memref<144x1152xbf16, #tpu.memory_space<vmem>>, vector<144x128xbf16>
    tpu.vector_store %arg10[%c0_61, %c128_62], %51 {strides = array<i32>} : memref<144x1152xbf16, #tpu.memory_space<vmem>>, vector<144x128xbf16>,
    %c0_63 = arith.constant 0 : index
    %c2_64 = arith.constant 2 : index
    %c0_65 = arith.constant 0 : index
    %53 = vector.load %arg9[%c0_63, %c2_64, %c0_65] : memref<14x14x128xbf16, #tpu.memory_space<vmem>>, vector<12x12x128xbf16>
    %54 = vector.shape_cast %53 : vector<12x12x128xbf16> to vector<144x128xbf16>
    %c0_66 = arith.constant 0 : index
    %c256_67 = arith.constant 256 : index
    %55 = vector.load %arg10[%c0_66, %c256_67] : memref<144x1152xbf16, #tpu.memory_space<vmem>>, vector<144x128xbf16>
    tpu.vector_store %arg10[%c0_66, %c256_67], %54 {strides = array<i32>} : memref<144x1152xbf16, #tpu.memory_space<vmem>>, vector<144x128xbf16>,
    %c1_68 = arith.constant 1 : index
    %c0_69 = arith.constant 0 : index
    %c0_70 = arith.constant 0 : index
    %56 = vector.load %arg9[%c1_68, %c0_69, %c0_70] : memref<14x14x128xbf16, #tpu.memory_space<vmem>>, vector<12x12x128xbf16>
    %57 = vector.shape_cast %56 : vector<12x12x128xbf16> to vector<144x128xbf16>
    %c0_71 = arith.constant 0 : index
    %c384_72 = arith.constant 384 : index
    %58 = vector.load %arg10[%c0_71, %c384_72] : memref<144x1152xbf16, #tpu.memory_space<vmem>>, vector<144x128xbf16>
    tpu.vector_store %arg10[%c0_71, %c384_72], %57 {strides = array<i32>} : memref<144x1152xbf16, #tpu.memory_space<vmem>>, vector<144x128xbf16>,
    %c1_73 = arith.constant 1 : index
    %c1_74 = arith.constant 1 : index
    %c0_75 = arith.constant 0 : index
    %59 = vector.load %arg9[%c1_73, %c1_74, %c0_75] : memref<14x14x128xbf16, #tpu.memory_space<vmem>>, vector<12x12x128xbf16>
    %60 = vector.shape_cast %59 : vector<12x12x128xbf16> to vector<144x128xbf16>
    %c0_76 = arith.constant 0 : index
    %c512_77 = arith.constant 512 : index
    %61 = vector.load %arg10[%c0_76, %c512_77] : memref<144x1152xbf16, #tpu.memory_space<vmem>>, vector<144x128xbf16>
    tpu.vector_store %arg10[%c0_76, %c512_77], %60 {strides = array<i32>} : memref<144x1152xbf16, #tpu.memory_space<vmem>>, vector<144x128xbf16>,
    %c1_78 = arith.constant 1 : index
    %c2_79 = arith.constant 2 : index
    %c0_80 = arith.constant 0 : index
    %62 = vector.load %arg9[%c1_78, %c2_79, %c0_80] : memref<14x14x128xbf16, #tpu.memory_space<vmem>>, vector<12x12x128xbf16>
    %63 = vector.shape_cast %62 : vector<12x12x128xbf16> to vector<144x128xbf16>
    %c0_81 = arith.constant 0 : index
    %c640_82 = arith.constant 640 : index
    %64 = vector.load %arg10[%c0_81, %c640_82] : memref<144x1152xbf16, #tpu.memory_space<vmem>>, vector<144x128xbf16>
    tpu.vector_store %arg10[%c0_81, %c640_82], %63 {strides = array<i32>} : memref<144x1152xbf16, #tpu.memory_space<vmem>>, vector<144x128xbf16>,
    %c2_83 = arith.constant 2 : index
    %c0_84 = arith.constant 0 : index
    %c0_85 = arith.constant 0 : index
    %65 = vector.load %arg9[%c2_83, %c0_84, %c0_85] : memref<14x14x128xbf16, #tpu.memory_space<vmem>>, vector<12x12x128xbf16>
    %66 = vector.shape_cast %65 : vector<12x12x128xbf16> to vector<144x128xbf16>
    %c0_86 = arith.constant 0 : index
    %c768_87 = arith.constant 768 : index
    %67 = vector.load %arg10[%c0_86, %c768_87] : memref<144x1152xbf16, #tpu.memory_space<vmem>>, vector<144x128xbf16>
    tpu.vector_store %arg10[%c0_86, %c768_87], %66 {strides = array<i32>} : memref<144x1152xbf16, #tpu.memory_space<vmem>>, vector<144x128xbf16>,
    %c2_88 = arith.constant 2 : index
    %c1_89 = arith.constant 1 : index
    %c0_90 = arith.constant 0 : index
    %68 = vector.load %arg9[%c2_88, %c1_89, %c0_90] : memref<14x14x128xbf16, #tpu.memory_space<vmem>>, vector<12x12x128xbf16>
    %69 = vector.shape_cast %68 : vector<12x12x128xbf16> to vector<144x128xbf16>
    %c0_91 = arith.constant 0 : index
    %c896_92 = arith.constant 896 : index
    %70 = vector.load %arg10[%c0_91, %c896_92] : memref<144x1152xbf16, #tpu.memory_space<vmem>>, vector<144x128xbf16>
    tpu.vector_store %arg10[%c0_91, %c896_92], %69 {strides = array<i32>} : memref<144x1152xbf16, #tpu.memory_space<vmem>>, vector<144x128xbf16>,
    %c2_93 = arith.constant 2 : index
    %c2_94 = arith.constant 2 : index
    %c0_95 = arith.constant 0 : index
    %71 = vector.load %arg9[%c2_93, %c2_94, %c0_95] : memref<14x14x128xbf16, #tpu.memory_space<vmem>>, vector<12x12x128xbf16>
    %72 = vector.shape_cast %71 : vector<12x12x128xbf16> to vector<144x128xbf16>
    %c0_96 = arith.constant 0 : index
    %c1024_97 = arith.constant 1024 : index
    %73 = vector.load %arg10[%c0_96, %c1024_97] : memref<144x1152xbf16, #tpu.memory_space<vmem>>, vector<144x128xbf16>
    tpu.vector_store %arg10[%c0_96, %c1024_97], %72 {strides = array<i32>} : memref<144x1152xbf16, #tpu.memory_space<vmem>>, vector<144x128xbf16>,
    %c0_98 = arith.constant 0 : index
    %c0_99 = arith.constant 0 : index
    %74 = vector.load %arg10[%c0_98, %c0_99] : memref<144x1152xbf16, #tpu.memory_space<vmem>>, vector<144x1152xbf16>
    %c0_100 = arith.constant 0 : index
    %c0_101 = arith.constant 0 : index
    %75 = vector.load %arg4[%c0_100, %c0_101] : memref<1152x128xbf16, #tpu.memory_space<vmem>>, vector<1152x128xbf16>
    %cst_102 = arith.constant dense<0.000000e+00> : vector<144x128xf32>
    %76 = tpu.matmul %74, %75, %cst_102 {dimension_numbers = #tpu.dot_dimension_numbers<[1], [0], [0], [1], [0, 0, 1, 1], [], []>} : vector<144x1152xbf16>, vector<1152x128xbf16>, vector<144x128xf32> -> vector<144x128xf32>
    %c0_103 = arith.constant 0 : index
    %c0_104 = arith.constant 0 : index
    %77 = vector.load %arg5[%c0_103, %c0_104] : memref<1x128xf32, #tpu.memory_space<vmem>>, vector<1x128xf32>
    %78 = vector.broadcast %77 : vector<1x128xf32> to vector<144x128xf32>
    %79 = arith.addf %76, %78 : vector<144x128xf32>
    %cst_105 = arith.constant 0.000000e+00 : f32
    %80 = vector.broadcast %cst_105 : f32 to vector<144x128xf32>
    %81 = arith.maximumf %79, %80 : vector<144x128xf32>
    %82 = vector.shape_cast %81 : vector<144x128xf32> to vector<1x12x12x128xf32>
    %c0_106 = arith.constant 0 : index
    %c0_107 = arith.constant 0 : index
    %c0_108 = arith.constant 0 : index
    %c0_109 = arith.constant 0 : index
    %83 = vector.load %arg6[%c0_106, %c0_107, %c0_108, %c0_109] : memref<1x12x12x128xf32, #tpu.memory_space<vmem>>, vector<1x12x12x128xf32>
    tpu.vector_store %arg6[%c0_106, %c0_107, %c0_108, %c0_109], %82 {strides = array<i32>} : memref<1x12x12x128xf32, #tpu.memory_space<vmem>>, vector<1x12x12x128xf32>,
    %84 = vector.shape_cast %81 : vector<144x128xf32> to vector<12x12x128xf32>
    %85 = vector.shape_cast %84 : vector<12x12x128xf32> to vector<6x2x6x2x128xf32>
    %86 = vector.extract_strided_slice %85 {offsets = [0, 0, 0, 0, 0], sizes = [6, 1, 6, 1, 128], strides = [1, 1, 1, 1, 1]} : vector<6x2x6x2x128xf32> to vector<6x1x6x1x128xf32>
    %87 = vector.shape_cast %86 : vector<6x1x6x1x128xf32> to vector<6x6x128xf32>
    %88 = vector.extract_strided_slice %85 {offsets = [0, 0, 0, 1, 0], sizes = [6, 1, 6, 1, 128], strides = [1, 1, 1, 1, 1]} : vector<6x2x6x2x128xf32> to vector<6x1x6x1x128xf32>
    %89 = vector.shape_cast %88 : vector<6x1x6x1x128xf32> to vector<6x6x128xf32>
    %90 = arith.maximumf %87, %89 : vector<6x6x128xf32>
    %91 = vector.extract_strided_slice %85 {offsets = [0, 1, 0, 0, 0], sizes = [6, 1, 6, 1, 128], strides = [1, 1, 1, 1, 1]} : vector<6x2x6x2x128xf32> to vector<6x1x6x1x128xf32>
    %92 = vector.shape_cast %91 : vector<6x1x6x1x128xf32> to vector<6x6x128xf32>
    %93 = vector.extract_strided_slice %85 {offsets = [0, 1, 0, 1, 0], sizes = [6, 1, 6, 1, 128], strides = [1, 1, 1, 1, 1]} : vector<6x2x6x2x128xf32> to vector<6x1x6x1x128xf32>
    %94 = vector.shape_cast %93 : vector<6x1x6x1x128xf32> to vector<6x6x128xf32>
    %95 = arith.maximumf %92, %94 : vector<6x6x128xf32>
    %96 = arith.maximumf %90, %95 : vector<6x6x128xf32>
    %97 = vector.shape_cast %96 : vector<6x6x128xf32> to vector<1x6x6x128xf32>
    %98 = arith.truncf %97 : vector<1x6x6x128xf32> to vector<1x6x6x128xbf16>
    %c0_110 = arith.constant 0 : index
    %c0_111 = arith.constant 0 : index
    %c0_112 = arith.constant 0 : index
    %c0_113 = arith.constant 0 : index
    %99 = vector.load %arg7[%c0_110, %c0_111, %c0_112, %c0_113] : memref<1x6x6x128xbf16, #tpu.memory_space<vmem>>, vector<1x6x6x128xbf16>
    tpu.vector_store %arg7[%c0_110, %c0_111, %c0_112, %c0_113], %98 {strides = array<i32>} : memref<1x6x6x128xbf16, #tpu.memory_space<vmem>>, vector<1x6x6x128xbf16>,
    return
  }
  func.func @transform_0(%arg0: i32) -> (i32, i32, i32, i32) {
    %c0_i32 = arith.constant 0 : i32
    %c0_i32_0 = arith.constant 0 : i32
    %c0_i32_1 = arith.constant 0 : i32
    %c0_i32_2 = arith.constant 0 : i32
    return %arg0, %c0_i32, %c0_i32_0, %c0_i32_1 : i32, i32, i32, i32
  }
  func.func @transform_1(%arg0: i32) -> (i32, i32) {
    %c0_i32 = arith.constant 0 : i32
    %c0_i32_0 = arith.constant 0 : i32
    %c0_i32_1 = arith.constant 0 : i32
    return %c0_i32, %c0_i32_0 : i32, i32
  }
  func.func @transform_2(%arg0: i32) -> (i32, i32) {
    %c0_i32 = arith.constant 0 : i32
    %c0_i32_0 = arith.constant 0 : i32
    %c0_i32_1 = arith.constant 0 : i32
    return %c0_i32, %c0_i32_0 : i32, i32
  }
  func.func @transform_3(%arg0: i32) -> (i32, i32) {
    %c0_i32 = arith.constant 0 : i32
    %c0_i32_0 = arith.constant 0 : i32
    %c0_i32_1 = arith.constant 0 : i32
    return %c0_i32, %c0_i32_0 : i32, i32
  }
  func.func @transform_4(%arg0: i32) -> (i32, i32) {
    %c0_i32 = arith.constant 0 : i32
    %c0_i32_0 = arith.constant 0 : i32
    %c0_i32_1 = arith.constant 0 : i32
    return %c0_i32, %c0_i32_0 : i32, i32
  }
  func.func @transform_5(%arg0: i32) -> (i32, i32, i32, i32) {
    %c0_i32 = arith.constant 0 : i32
    %c0_i32_0 = arith.constant 0 : i32
    %c0_i32_1 = arith.constant 0 : i32
    %c0_i32_2 = arith.constant 0 : i32
    return %arg0, %c0_i32, %c0_i32_0, %c0_i32_1 : i32, i32, i32, i32
  }
  func.func @transform_6(%arg0: i32) -> (i32, i32, i32, i32) {
    %c0_i32 = arith.constant 0 : i32
    %c0_i32_0 = arith.constant 0 : i32
    %c0_i32_1 = arith.constant 0 : i32
    %c0_i32_2 = arith.constant 0 : i32
    return %arg0, %c0_i32, %c0_i32_0, %c0_i32_1 : i32, i32, i32, i32
  }
}

</mosaic_0001>

<bundles_post_ra>
// kernel: tpu_custom_call.1
= control target key start
LH: loop header
LB: loop body
LE: loop exit
PB: predicated region body
PF: predicated region fallthrough
CT: control target
= control target key end

     0   :  { %12 = vsyncpa [#allocation6], 0  ;;  %s33995_s0 = inlined_call_operand.hbm [shape: bf16[2,16,16,128], index: 0, kind: input, shape index: {}]   ;;  %s33996_s1 = inlined_call_operand.hbm [shape: bf16[1152,128], index: 1, kind: input, shape index: {}]   ;;  %s33997_s2 = inlined_call_operand.vmem [shape: f32[1,128], index: 2, kind: input, shape index: {}]   ;;  %s33998_s3 = inlined_call_operand.hbm [shape: bf16[1152,128], index: 3, kind: input, shape index: {}]   ;;  %s33999_s4 = inlined_call_operand.vmem [shape: f32[1,128], index: 4, kind: input, shape index: {}]   ;;  %s34000_s5 = inlined_call_operand.vmem [shape: f32[2,12,12,128], index: 5, kind: output, shape index: {0}]   ;;  %s34001_s6 = inlined_call_operand.vmem [shape: bf16[2,6,6,128], index: 6, kind: output, shape index: {1}]  }
   0x1   :  { %14 = vsyncpa [#allocation6 + $0x1], 0 }
   0x2   :  { %15 = vsyncpa [#allocation8], 0  ;;  %s28838_s21 = smov 0   ;;  %s28840_s22 = smov 0  }
   0x3   :  { %s28842_s23 = smov 0   ;;  %s28844_s24 = smov 0  }
   0x4 LB: > { %s28857_s25 = sadd.s32 4294967295, %s28791_s24   ;;  %p41_p0 = scmp.ne.s32.totalorder %s28783_s22, %s28779_s21  ;;  %s28791_s24 = sphi %s28844_s24, %s34333_s24   ;;  %s28787_s23 = sphi %s28842_s23, %s34332_s23   ;;  %s28783_s22 = sphi %s28840_s22, %s34331_s22   ;;  %s28779_s21 = sphi %s28838_s21, %s34330_s21  }
   0x5   : > { %p34002_p1 = scmp.eq.s32.totalorder %s28857_s25, 0  ;;  %p25763_p2 = scmp.ge.s32.totalorder %s28791_s24, 1 }
   0x6   : > { %p188_p3 = scmp.lt.s32.totalorder %s28791_s24, 3  ;;  %s28793_s28 = smov [#allocation7]  }
   0x7   : > { %p28865_p4 = por %p34002_p1, %p41_p0  ;;  %s200_s29 = sshll.u32 %s28793_s28, 4  ;;  %s201_s29 = int_to_ptr.vmem [resolvable:$true] %s200_s29 }
   0x8   : > { %p28869_p5 = pnand %p25763_p2, %p188_p3  ;;  %s28794_s7 = smov [#allocation9]  }
   0x9   : > { %s34024_s26 = scalar_select %p28865_p4, 1, 0 }
   0xa   : > { %s34025_s27 = scalar_select %p28869_p5, 1, 0 }
   0xb   : > { %p28293_p6 = pneg %p28869_p5  ;;  %s216_s8 = sshll.u32 %s28794_s7, 4  ;;  %s28881_s8 = int_to_ptr.vmem [resolvable:$true] %s216_s8 }
   0xc   : > { %s28667_s11 = scalar_lea.hbm %s33996_s1, 9216 }
   0xd   : > { %p28877_p7 = pnand %p28293_p6, %p34002_p1  ;;  %p28668_p8 = scmp.ne.s32.totalorder %s33996_s1, %s28667_s11 }
   0xe   : > { %p28674_p12 = scmp.lt.u32.totalorder %s28667_s11, %s33996_s1 }
   0xf   : > { %p28669_p9 = pneg %p28877_p7 }
  0x11   : > { %p28670_p10 = pnand %p28669_p9, %p28668_p8 }
  0x13   : > { %p28671_p11 = pneg %p28670_p10 }
  0x15   : > { %p28676_p13 = pnand %p28674_p12, %p28671_p11 }
  0x17   : > { %28679 = shalt.err (!%p28676_p13)
}
  0x18   : > { %s28680_s16 = scalar_lea.vmem %s201_s29, 9216  ;;  %p28688_p6 = scmp.lt.s32.totalorder %s201_s29, %s201_s29 }
  0x19   : > { %p28681_p0 = scmp.ne.s32.totalorder %s201_s29, %s28680_s16  ;;  %p28689_p1 = scmp.lt.s32.totalorder %s28680_s16, %s28680_s16 }
  0x1b   : > { %p28683_p2 = pnand %p28681_p0, %p28669_p9  ;;  %p28690_p4 = por %p28689_p1, %p28688_p6 }
  0x1d   : > { %p28684_p3 = pneg %p28683_p2 }
  0x1f   : > { %p28691_p5 = pnand %p28690_p4, %p28684_p3 }
  0x21   : > { %28694 = shalt.err (!%p28691_p5)
}
  0x22   : > { %s28795_s17 = smov 64   ;;  %s28796_s18 = smov 4  }
  0x23   : > { %28296 = dma.hbm_to_vmem [thread:$0]  (!%p28877_p7), %s33996_s1, 9216, %s201_s29, [#allocation8], %s28795_s17, %s28795_s17, %s28796_s18  }
  0x24   : > { %s28695_s7 = scalar_lea.hbm %s33998_s3, 9216 }
  0x25   : > { %p28696_p1 = scmp.ne.s32.totalorder %s33998_s3, %s28695_s7  ;;  %p28702_p8 = scmp.lt.u32.totalorder %s28695_s7, %s33998_s3 }
  0x27   : > { %p28698_p4 = pnand %p28696_p1, %p28669_p9 }
  0x29   : > { %p28699_p5 = pneg %p28698_p4 }
  0x2b   : > { %p28704_p10 = pnand %p28702_p8, %p28699_p5 }
  0x2d   : > { %28707 = shalt.err (!%p28704_p10)
}
  0x2e   : > { %s28708_s29 = scalar_lea.vmem %s28881_s8, 9216  ;;  %p28716_p0 = scmp.lt.s32.totalorder %s28881_s8, %s28881_s8 }
  0x2f   : > { %p28709_p11 = scmp.ne.s32.totalorder %s28881_s8, %s28708_s29  ;;  %p28717_p2 = scmp.lt.s32.totalorder %s28708_s29, %s28708_s29 }
  0x31   : > { %p28711_p12 = pnand %p28709_p11, %p28669_p9  ;;  %p28718_p3 = por %p28717_p2, %p28716_p0 }
  0x33   : > { %p28712_p13 = pneg %p28711_p12 }
  0x35   : > { %p28719_p6 = pnand %p28718_p3, %p28712_p13 }
  0x37   : > { %28722 = shalt.err (!%p28719_p6)
}
  0x38   : > { %28299 = dma.hbm_to_vmem [thread:$0]  (!%p28877_p7), %s33998_s3, 9216, %s28881_s8, [#allocation8], %s28795_s17, %s28795_s17, %s28796_s18  }
  0x39   : > { %s28937_s15 = sadd.s32 1, %s28791_s24   ;;  %s28_s30 = sadd.s32 1, %s28787_s23 }
  0x3a   : > { %s25_s16 = ssub.s32 %s28791_s24, %s28937_s15  ;;  %p35_p9 = scmp.ne.s32.totalorder %s28787_s23, %s28783_s22 }
  0x3b   : > { %p26_p1 = scmp.eq.s32.totalorder %s25_s16, 0  ;;  %p36_p4 = scmp.eq.s32.totalorder %s28791_s24, 0 }
  0x3c   : > { %p28306_p5 = scmp.lt.s32.totalorder %s28791_s24, 2  ;;  %s233_s19 = sand.u32 1, %s28787_s23  }
  0x3d   : > { %s28948_s20 = scalar_select %p26_p1, %s28787_s23, %s28_s30  }
  0x3e   : > { %p37_p8 = por %p36_p4, %p35_p9  ;;  %s25767_s21 = sshll.u32 %s233_s19, 7 }
  0x3f   : > { %s27386_s28 = sshll.u32 %s28791_s24, 11  ;;  %s237_s8 = scalar_lea.vmem [#allocation5], %s25767_s21 }
  0x40   : > { %s28954_s10 = scalar_lea.hbm %s33995_s0, %s27386_s28  ;;  %s244_s11 = sshll.u32 %s237_s8, 4  ;;  %s28960_s11 = int_to_ptr.vmem [resolvable:$true] %s244_s11 }
  0x41   : > { %p28956_p7 = pnand %p28306_p5, %p37_p8  ;;  %s28962_s24 = scalar_lea.sflag [#allocation6], %s233_s19 }
  0x42   : > { %s28723_s29 = scalar_lea.hbm %s28954_s10, 2048  ;;  %s28728_s30 = scalar_lea.hbm %s33995_s0, 4096 }
  0x43   : > { %p28724_p10 = scmp.ne.s32.totalorder %s28954_s10, %s28723_s29  ;;  %p28725_p11 = pneg %p28956_p7 }
  0x44   : > { %p28729_p0 = scmp.lt.u32.totalorder %s28954_s10, %s33995_s0  ;;  %p28730_p2 = scmp.lt.u32.totalorder %s28728_s30, %s28723_s29 }
  0x45   : > { %p28726_p12 = pnand %p28725_p11, %p28724_p10  ;;  %p28732_p6 = scmp.lt.u32.totalorder %s28723_s29, %s28954_s10 }
  0x46   : > { %p28731_p3 = por %p28730_p2, %p28729_p0 }
  0x47   : > { %p28727_p13 = pneg %p28726_p12 }
  0x48   : > { %p28733_p9 = por %p28732_p6, %p28731_p3 }
  0x4a   : > { %p28734_p1 = pnand %p28733_p9, %p28727_p13 }
  0x4c   : > { %28737 = shalt.err (!%p28734_p1)
}
  0x4d   : > { %s28738_s19 = scalar_lea.vmem %s28960_s11, 2048  ;;  %s28797_s28 = smov [#allocation5]  }
  0x4e   : > { %p28739_p4 = scmp.ne.s32.totalorder %s28960_s11, %s28738_s19  ;;  %s28743_s7 = sshll.u32 %s28797_s28, 4  ;;  %s28744_s7 = int_to_ptr.vmem [resolvable:$false] %s28743_s7 }
  0x4f   : > { %s28745_s9 = scalar_lea.vmem %s28744_s7, 4096  ;;  %p28746_p10 = scmp.lt.s32.totalorder %s28960_s11, %s28744_s7 }
  0x50   : > { %p28741_p5 = pnand %p28739_p4, %p28725_p11  ;;  %p28747_p12 = scmp.lt.s32.totalorder %s28745_s9, %s28738_s19 }
  0x52   : > { %p28742_p8 = pneg %p28741_p5  ;;  %p28748_p0 = por %p28747_p12, %p28746_p10 }
  0x54   : > { %p28749_p2 = pnand %p28748_p0, %p28742_p8 }
  0x56   : > { %28752 = shalt.err (!%p28749_p2)
}
  0x57   : > { %28303 = dma.hbm_to_vmem [thread:$0]  (!%p28956_p7), %s28954_s10, 2048, %s28960_s11, %s28962_s24, %s28795_s17, %s28795_s17, %s28796_s18  }
  0x58   : > { %p34028_p11 = scmp.ne.s32.totalorder %s34025_s27, 0 }
  0x5a   : > { %256 = sbr.rel (%p34028_p11) target bundleno = 1595 (0x63b), region = 40 }
  0x61   : > { %s258_s8 = sand.u32 1, %s28783_s22   ;;  %p34029_p13 = scmp.ne.s32.totalorder %s34024_s26, 0 }
  0x62   : > { %s25771_s29 = sshll.u32 %s258_s8, 7  ;;  %s259_s13 = scalar_lea.sflag [#allocation6], %s258_s8 }
  0x63   : > { %s28996_s14 = scalar_lea.vmem [#allocation5], %s25771_s29 }
  0x64   : > { %28770 = dma.done.wait (%p34029_p13), %s259_s13, 2048  }
  0x65   : > { %28772 = vsyncadd (%p34029_p13), %s259_s13, 4294965248  ;;  %p34030_p3 = scmp.eq.s32.totalorder %s28857_s25, 0 }
  0x67   : > { %28774 = dma.done.wait (%p34030_p3), [#allocation8], 18432   ;;  %p34031_p7 = pmov %p34030_p3 }
  0x68   : > { %vm2405_vm0 = vsmask.f32 256  ;;  %vm2406_vm1 = vsmask.f32 1284  ;;  %vm2408_vm3 = vsmask.f32 2312  ;;  %v382_v25 = vlaneseq }
  0x69   : > { %28776 = vsyncadd (%p34031_p7), [#allocation8], 4294948864  ;;  %vm2410_vm5 = vsmask.f32 3340  ;;  %v28350_v1 = vld [vmem:[#allocation7 + $0x40] sm:$0xff]   ;;  %v28354_v5 = vld [vmem:[#allocation7 + $0x48] sm:$0xff]  }
  0x6a   : > { %vm2407_vm2 = vmor %vm2405_vm0, %vm2406_vm1  ;;  %v28351_v2 = vld [vmem:[#allocation7] sm:$0xff]   ;;  %27451 = vmatprep.subr.bf16.mxu0 %v28350_v1  ;;  %v28355_v6 = vld [vmem:[#allocation7 + $0x8] sm:$0xff]   ;;  %vm2412_vm7 = vsmask.f32 4368  ;;  %v28798_v23 = vmov 1966171168  }
  0x6b   : > { %vm29006_vm4 = vmor %vm2407_vm2, %vm2408_vm3  ;;  %v28352_v3 = vld [vmem:[#allocation7 + $0xc0] sm:$0xff]   ;;  %27452 = vmatpush3.bf16.msra.mxu0 %v28351_v2  ;;  %v28356_v7 = vld [vmem:[#allocation7 + $0xc8] sm:$0xff]   ;;  %v380_v24 = vunpack.c.l.s4 %v28798_v23  ;;  %vm2414_vm9 = vsmask.f32 5396  ;;  %vm2416_vm10 = vsmask.f32 6424 }
  0x6c   : > { %v28353_v4 = vld [vmem:[#allocation7 + $0x80] sm:$0xff]   ;;  %27545 = vmatprep.subr.bf16.mxu1 %v28352_v3  ;;  %27453 = vmatprep.subr.bf16.mxu0 %v28354_v5  ;;  %v28357_v8 = vld [vmem:[#allocation7 + $0x88] sm:$0xff]   ;;  %v28358_v9 = vld [vmem:[#allocation7 + $0x50] sm:$0xff]   ;;  %v29024_v32 = vshrl.u32 %v382_v25, 7  ;;  %v28799_v34 = vmov 1935823168  }
  0x6d   : > { %27546 = vmatpush3.bf16.msra.mxu1 %v28353_v4  ;;  %v28359_v10 = vld [vmem:[#allocation7 + $0x10] sm:$0xff]   ;;  %vm29013_vm6 = vmor %vm29006_vm4, %vm2410_vm5  ;;  %v28362_v14 = vld [vmem:[#allocation7 + $0x58] sm:$0xff]   ;;  %v381_v31 = vunpack.c.0.s8 %v380_v24  ;;  %v1032_v35 = vunpack.c.l.s4 %v28799_v34  ;;  %vm2418_vm11 = vsmask.f32 7452  ;;  %vm28801_vm15 = vmmov 0   ;;  %p304_p6 = scmp.lt.s32.totalorder %s28857_s25, 1 }
  0x6e   : > { %27547 = vmatprep.subr.bf16.mxu1 %v28356_v7  ;;  %v28360_v12 = vld [vmem:[#allocation7 + $0xd0] sm:$0xff]   ;;  %v28363_v15 = vld [vmem:[#allocation7 + $0x18] sm:$0xff]   ;;  %v28366_v18 = vld [vmem:[#allocation7 + $0x60] sm:$0xff]   ;;  %34038 = vst [vmem:[#allocation12_spill] sm:$0xff] %v29024_v32  ;;  %vm18775_vm0 = vsmask.f32 1280 }
  0x6f   : > { %27454 = vmatpush3.bf16.msra.mxu0 %v28355_v6  ;;  %v28361_v13 = vld [vmem:[#allocation7 + $0x90] sm:$0xff]   ;;  %v28364_v16 = vld [vmem:[#allocation7 + $0xd8] sm:$0xff]   ;;  %v28367_v19 = vld [vmem:[#allocation7 + $0x20] sm:$0xff]   ;;  %v29027_v39 = vsub.s32 %v381_v31, %v29024_v32  ;;  %v1033_v41 = vunpack.c.0.s8 %v1032_v35  ;;  %vm18776_vm1 = vsmask.f32 3336  ;;  %s34335_s25 = smov (!%p304_p6, %s28857_s25), 1 }
  0x70   : > { %27455 = vmatprep.subr.bf16.mxu0 %v28358_v9  ;;  %v28365_v17 = vld [vmem:[#allocation7 + $0x98] sm:$0xff]   ;;  %v28368_v20 = vld [vmem:[#allocation7 + $0xe0] sm:$0xff]   ;;  %v28370_v22 = vld [vmem:[#allocation7 + $0x68] sm:$0xff]   ;;  %vm18778_vm2 = vsmask.f32 5392  ;;  %s28281_s10 = smul.u32 192, %s34335_s25 }
  0x71   : > { %27548 = vmatpush3.bf16.msra.mxu1 %v28357_v8  ;;  %v28369_v21 = vld [vmem:[#allocation7 + $0xa0] sm:$0xff]   ;;  %vm29020_vm8 = vmor %vm29013_vm6, %vm2412_vm7  ;;  %v28371_v27 = vld [vmem:[#allocation7 + $0x28] sm:$0xff]   ;;  %v29042_v51 = vsub.s32 %v1033_v41, %v29024_v32  ;;  %vm18780_vm3 = vsmask.f32 7448  ;;  %vm19601_vm7 = vcmask 1040384   ;;  %s28282_s30 = smul.u32 24, %s34335_s25 }
  0x72   : > { %27549 = vmatprep.subr.bf16.mxu1 %v28360_v12  ;;  %v28372_v28 = vld [vmem:[#allocation7 + $0xe8] sm:$0xff]   ;;  %v28374_v30 = vld [vmem:[#allocation7 + $0x70] sm:$0xff]   ;;  %v28378_v38 = vld [vmem:[#allocation7 + $0x78] sm:$0xff]   ;;  %s33793_s24 = scalar_lea.vmem %s34000_s5, %s28281_s10 }
  0x73   : > { %27456 = vmatpush3.bf16.msra.mxu0 %v28359_v10  ;;  %v28373_v29 = vld [vmem:[#allocation7 + $0xa8] sm:$0xff]   ;;  %v28375_v33 = vld [vmem:[#allocation7 + $0x30] sm:$0xff]   ;;  %v28379_v40 = vld [vmem:[#allocation7 + $0x38] sm:$0xff]   ;;  %s33838_s21 = scalar_lea.vmem %s34001_s6, %s28282_s30 }
  0x74   : > { %27457 = vmatprep.subr.bf16.mxu0 %v28362_v14  ;;  %v28376_v36 = vld [vmem:[#allocation7 + $0xf0] sm:$0xff]   ;;  %v28380_v42 = vld [vmem:[#allocation7 + $0xf8] sm:$0xff]   ;;  %v25776_v43 = vld.sshfl [vmem:[%s28996_s14] sm:$0x33 pattern:$0x75316420] }
  0x75   : > { %27550 = vmatpush3.bf16.msra.mxu1 %v28361_v13  ;;  %v28377_v37 = vld [vmem:[#allocation7 + $0xb0] sm:$0xff]   ;;  %vm29033_vm12 = vmor %vm29020_vm8, %vm2414_vm9  ;;  %v25777_v45 = vld.sshfl [vmem:[%s28996_s14 + $0x4] sm:$0x13 pattern:$0x75316420]  ;;  %v378_v46 = vcombine.high %v25776_v43, %v25776_v43  ;;  %v385_v47 = vrot.slane %v25776_v43, %v29027_v39  ;;  %vm19602_vm8 = vcmask 1042434  }
  0x76   : > { %27551 = vmatprep.subr.bf16.mxu1 %v28364_v16  ;;  %v25778_v48 = vld.sshfl [vmem:[%s28996_s14 + $0x8] sm:$0x33 pattern:$0x75316420]  ;;  %v402_v49 = vcombine.high %v25777_v45, %v25777_v45  ;;  %v409_v50 = vrot.slane %v25777_v45, %v29027_v39  ;;  %v28384_v52 = vld [vmem:[#allocation7 + $0xb8] sm:$0xff]   ;;  %v28385_v53 = vld [vmem:[#allocation7 + $0x140] sm:$0xff]  }
  0x77   : > { %27458 = vmatpush3.bf16.msra.mxu0 %v28363_v15  ;;  %v392_v54 = vrot.slane %v378_v46, %v29027_v39  ;;  %v393_v55 = vcombine.high %v385_v47, %v385_v47  ;;  %v425_v56 = vcombine.high %v25778_v48, %v25778_v48  ;;  %v29046_v57 = vrot.slane %v25778_v48, %v29027_v39  ;;  %v25830_v58 = vld.sshfl [vmem:[%s28996_s14 + $0x4] sm:$0x33 pattern:$0x75316420]  ;;  %vm29052_vm13 = vmor %vm29033_vm12, %vm2416_vm10  ;;  %v31484_v8 = vld [vmem:[%s33997_s2] ss:$0 sm:$0xff] }
  0x78   : > { %27459 = vmatprep.subr.bf16.mxu0 %v28366_v18  ;;  %v416_v60 = vrot.slane %v402_v49, %v29027_v39  ;;  %v417_v61 = vcombine.high %v409_v50, %v409_v50  ;;  %v1764_v62 = vcombine.high %v25830_v58, %v25830_v58  ;;  %v29058_v63 = vrot.slane %v25830_v58, %v29027_v39  ;;  %vm29078_vm14 = vmor %vm29052_vm13, %vm2418_vm11  ;;  %v25982_v35 = vld.sshfl [vmem:[%s28996_s14 + $0x8] sm:$0x32 pattern:$0x75316420] }
  0x79   : > { %27552 = vmatpush3.bf16.msra.mxu1 %v28365_v17  ;;  %v394_v0 = vcombine.high %v392_v54, %v392_v54  ;;  %v29062_v1 = vcombine.high %v29046_v57, %v29046_v57  ;;  %v1029_v2 = vcombine.low %v385_v47, %v393_v55  ;;  %v29065_v3 = vrot.slane %v425_v56, %v29027_v39  ;;  %v26068_v59 = vld.sshfl [vmem:[%s28996_s14 + $0xc] sm:$0x13 pattern:$0x75316420]  ;;  %vm18777_vm4 = vmor %vm18775_vm0, %vm18776_vm1 }
  0x7a   : > { %27553 = vmatprep.subr.bf16.mxu1 %v28368_v20  ;;  %v1053_v4 = vcombine.low %v409_v50, %v417_v61  ;;  %v1054_v5 = vcombine.low %v416_v60, %v29046_v57  ;;  %v29069_v6 = vrot.slane %v1764_v62, %v29027_v39  ;;  %v29073_v7 = vcombine.high %v29058_v63, %v29058_v63  ;;  %vm32098_vm5 = vmor %vm18777_vm4, %vm18778_vm2 }
  0x7b   : > { %27460 = vmatpush3.bf16.msra.mxu0 %v28367_v19  ;;  %v1030_v9 = vcombine.low %v392_v54, %v394_v0  ;;  %v1037_v10 = vrot.slane %v1029_v2, %v29042_v51  ;;  %v2421_v11 = vshrl.u32 %v385_v47, 16  ;;  %v2426_v12 = vshll.u32 %v392_v54, 16  ;;  %vm32111_vm6 = vmor %vm32098_vm5, %vm18780_vm3 }
  0x7c   : > { %27461 = vmatprep.subr.bf16.mxu0 %v28370_v22  ;;  %v1061_v13 = vrot.slane %v1053_v4, %v29042_v51  ;;  %v1068_v14 = vrot.slane %v1054_v5, %v29042_v51  ;;  %v1780_v15 = vcombine.high %v29069_v6, %v29069_v6  ;;  %v2429_v16 = vshrl.u32 %v392_v54, 16  ;;  %vm32168_vm11 = vmor %vm19601_vm7, %vm19602_vm8 }
  0x7d   : > { %27554 = vmatpush3.bf16.msra.mxu1 %v28369_v21  ;;  %v1044_v17 = vrot.slane %v1030_v9, %v29042_v51  ;;  %v2428_v18 = vsel %vm29078_vm14, %v2421_v11, %v2426_v12  ;;  %v2434_v19 = vshll.u32 %v393_v55, 16  ;;  %v2437_v20 = vshrl.u32 %v393_v55, 16  ;;  %v26069_v9 = vld.sshfl [vmem:[%s28996_s14 + $0x10] sm:$0x33 pattern:$0x75316420] }
  0x7e   : > { %27555 = vmatprep.subr.bf16.mxu1 %v28372_v28  ;;  %v1069_v21 = vcombine.low %v1061_v13, %v1068_v14  ;;  %v2442_v22 = vshll.u32 %v394_v0, 16  ;;  %v2445_v23 = vshrl.u32 %v394_v0, 16  ;;  %v2450_v24 = vshll.u32 %v29058_v63, 16 }
  0x7f   : > { %27462 = vmatpush3.bf16.msra.mxu0 %v28371_v27  ;;  %v1045_v25 = vcombine.low %v1037_v10, %v1044_v17  ;;  %v2436_v26 = vsel %vm29078_vm14, %v2429_v16, %v2434_v19  ;;  %v2453_v27 = vshrl.u32 %v29058_v63, 16  ;;  %v2458_v28 = vshll.u32 %v29069_v6, 16 }
  0x80   : > { %27463 = vmatprep.subr.bf16.mxu0 %v28374_v30  ;;  %25805 = vst.sshfl [vmem:[#allocation2 + $0x24] sm:$0x33 pattern:$0x75316420] %v1069_v21  ;;  %v2444_v30 = vsel %vm29078_vm14, %v2437_v20, %v2442_v22  ;;  %v2452_v31 = vsel %vm29078_vm14, %v2445_v23, %v2450_v24  ;;  %v2466_v34 = vshll.u32 %v29073_v7, 16  ;;  %v3977_v48 = vcombine.high %v25982_v35, %v25982_v35 }
  0x81   : > { %27556 = vmatpush3.bf16.msra.mxu1 %v28373_v29  ;;  %v25980_v29 = vld.sshfl [vmem:[%s28996_s14] sm:$0x32 pattern:$0x75316420]  ;;  %v3218_v43 = vcombine.low %v2428_v18, %v2444_v30  ;;  %v3219_v44 = vcombine.low %v2436_v26, %v2452_v31  ;;  %v29119_v58 = vrot.slane %v25982_v35, %v29027_v39  ;;  %v4618_v0 = vcombine.low %v29069_v6, %v1780_v15 }
  0x82   : > { %27557 = vmatprep.subr.bf16.mxu1 %v28376_v36  ;;  %25804 = vst.sshfl [vmem:[#allocation2] sm:$0x33 pattern:$0x75316420] %v1045_v25  ;;  %v2460_v36 = vsel %vm29078_vm14, %v2453_v27, %v2458_v28  ;;  %v3929_v46 = vcombine.high %v25980_v29, %v25980_v29  ;;  %v3936_v47 = vrot.slane %v25980_v29, %v29027_v39  ;;  %vm19604_vm9 = vcmask 1044484  }
  0x83   : > { %27464 = vmatpush3.bf16.msra.mxu0 %v28375_v33  ;;  %v2461_v33 = vshrl.u32 %v29069_v6, 16  ;;  %v3226_v50 = vrot.slane %v3218_v43, %v29042_v51  ;;  %v29124_v62 = vrot.slane %v3977_v48, %v29027_v39  ;;  %v4626_v12 = vrot.slane %v4618_v0, %v29042_v51  ;;  %v25832_v26 = vld.sshfl [vmem:[%s28996_s14 + $0xc] sm:$0x33 pattern:$0x75316420]  ;;  %vm19605_vm12 = vmor %vm32168_vm11, %vm19604_vm9 }
  0x84   : > { %27465 = vmatprep.subr.bf16.mxu0 %v28378_v38  ;;  %v2474_v38 = vshll.u32 %v1780_v15, 16  ;;  %v3943_v55 = vrot.slane %v3929_v46, %v29027_v39  ;;  %v3944_v56 = vcombine.high %v3936_v47, %v3936_v47  ;;  %v5330_v13 = vcombine.high %v26068_v59, %v26068_v59 }
  0x85   : > { %27558 = vmatpush3.bf16.msra.mxu1 %v28377_v37  ;;  %v2469_v37 = vshrl.u32 %v29073_v7, 16  ;;  %v2468_v41 = vsel %vm29078_vm14, %v2461_v33, %v2466_v34  ;;  %v3993_v10 = vcombine.high %v29124_v62, %v29124_v62  ;;  %v4619_v11 = vcombine.low %v29073_v7, %v29124_v62 }
  0x86   : > { %27559 = vmatprep.subr.bf16.mxu1 %v28380_v42  ;;  %v2483_v42 = vshll.u32 %v29065_v3, 16  ;;  %v3945_v4 = vcombine.high %v3943_v55, %v3943_v55  ;;  %v4595_v5 = vcombine.low %v3944_v56, %v29058_v63  ;;  %v29138_v15 = vcombine.high %v29065_v3, %v29065_v3 }
  0x87   : > { %27466 = vmatpush3.bf16.msra.mxu0 %v28379_v40  ;;  %v2478_v40 = vshrl.u32 %v29046_v57, 16  ;;  %v2476_v45 = vsel %vm29078_vm14, %v2469_v37, %v2474_v38  ;;  %v4633_v63 = vrot.slane %v4619_v11, %v29042_v51  ;;  %v5337_v17 = vrot.slane %v26068_v59, %v29027_v39 }
  0x88   : > { %27639 = vmatprep.subr.bf16.mxu0 %v28385_v53  ;;  %v3242_v53 = vcombine.low %v2460_v36, %v2476_v45  ;;  %v4594_v16 = vcombine.low %v3943_v55, %v3945_v4  ;;  %v4609_v6 = vrot.slane %v4595_v5, %v29042_v51  ;;  %v5344_v18 = vrot.slane %v5330_v13, %v29027_v39  ;;  %v28396_v55 = vld [vmem:[#allocation7 + $0x148] sm:$0xff]  }
  0x89   : > { %27560 = vmatpush3.bf16.msra.mxu1 %v28384_v52  ;;  %v2485_v49 = vsel %vm29078_vm14, %v2478_v40, %v2483_v42  ;;  %v3233_v52 = vrot.slane %v3219_v44, %v29042_v51  ;;  %v5353_v19 = vcombine.high %v26069_v9, %v26069_v9  ;;  %v29145_v20 = vrot.slane %v26069_v9, %v29027_v39  ;;  %v28381_v45 = vld [vmem:[#allocation2] ss:$36 sps:$4 sm:$0xff]  }
  0x8a   : > { %v3243_v54 = vcombine.low %v2468_v41, %v2485_v49  ;;  %v3250_v61 = vrot.slane %v3242_v53, %v29042_v51  ;;  %v4602_v7 = vrot.slane %v4594_v16, %v29042_v51  ;;  %v5957_v21 = vcombine.low %v29046_v57, %v29062_v1  ;;  %v28389_v41 = vld [vmem:[#allocation7 + $0x100] sm:$0xff]  }
  0x8b   : > { %v3234_v60 = vcombine.low %v3226_v50, %v3233_v52  ;;  %v5958_v22 = vcombine.low %v29065_v3, %v29138_v15  ;;  %v4634_v23 = vcombine.low %v4626_v12, %v4633_v63  ;;  %v5345_v24 = vcombine.high %v5337_v17, %v5337_v17  ;;  %v28397_v12 = vld [vmem:[#allocation7 + $0x108] sm:$0xff]  }
  0x8c   : > { %v3257_v2 = vrot.slane %v3243_v54, %v29042_v51  ;;  %v29152_v25 = vrot.slane %v5353_v19, %v29027_v39  ;;  %v4610_v27 = vcombine.low %v4602_v7, %v4609_v6  ;;  %v29157_v28 = vcombine.high %v29145_v20, %v29145_v20 }
  0x8d   : > { %25955 = vst.sshfl [vmem:[#allocation2 + $0x4] sm:$0x33 pattern:$0x75316420] %v3234_v60  ;;  %v5965_v29 = vrot.slane %v5957_v21, %v29042_v51  ;;  %v5972_v30 = vrot.slane %v5958_v22, %v29042_v51  ;;  %v5981_v57 = vcombine.low %v5337_v17, %v5345_v24  ;;  %v5982_v31 = vcombine.low %v5344_v18, %v29145_v20 }
  0x8e   : > { %v3258_v14 = vcombine.low %v3250_v61, %v3257_v2  ;;  %26015 = vst.sshfl [vmem:[#allocation2 + $0x2c] sm:$0x33 pattern:$0x75316420] %v4634_v23  ;;  %v1078_v33 = vcombine.low %v29062_v1, %v5337_v17  ;;  %v1102_v35 = vcombine.low %v5345_v24, %v29152_v25  ;;  %v1812_v36 = vcombine.high %v25832_v26, %v25832_v26 }
  0x8f   : > { %26014 = vst.sshfl [vmem:[#allocation2 + $0x8] sm:$0x33 pattern:$0x75316420] %v4610_v27  ;;  %v5973_v34 = vcombine.low %v5965_v29, %v5972_v30  ;;  %v5989_v37 = vrot.slane %v5981_v57, %v29042_v51  ;;  %v5996_v38 = vrot.slane %v5982_v31, %v29042_v51  ;;  %v1819_v43 = vrot.slane %v25832_v26, %v29027_v39 }
  0x90   : > { %25956 = vst.sshfl [vmem:[#allocation2 + $0x28] sm:$0x33 pattern:$0x75316420] %v3258_v14  ;;  %v1092_v40 = vrot.slane %v1078_v33, %v29042_v51  ;;  %v1116_v42 = vrot.slane %v1102_v35, %v29042_v51  ;;  %v1826_v44 = vrot.slane %v1812_v36, %v29027_v39  ;;  %v2486_v48 = vshrl.u32 %v29065_v3, 16 }
  0x91   : > { %26095 = vst.sshfl [vmem:[#allocation2 + $0xc] sm:$0x33 pattern:$0x75316420] %v5973_v34  ;;  %v5997_v47 = vcombine.low %v5989_v37, %v5996_v38  ;;  %v3992_v49 = vcombine.high %v29119_v58, %v29119_v58  ;;  %v29173_v52 = vcombine.high %v1819_v43, %v1819_v43  ;;  %v2491_v54 = vshll.u32 %v29062_v1, 16 }
  0x92   : > { %v1117_v50 = vcombine.low %v5996_v38, %v1116_v42  ;;  %v1828_v53 = vcombine.high %v1826_v44, %v1826_v44  ;;  %v1093_v56 = vcombine.low %v5972_v30, %v1092_v40  ;;  %v2494_v59 = vshrl.u32 %v29062_v1, 16  ;;  %v25984_v3 = vld.sshfl [vmem:[%s28996_s14 + $0x10] sm:$0x32 pattern:$0x75316420] }
  0x93   : > { %26096 = vst.sshfl [vmem:[#allocation2 + $0x30] sm:$0x33 pattern:$0x75316420] %v5997_v47  ;;  %v2499_v60 = vshll.u32 %v29138_v15, 16  ;;  %v2502_v61 = vshrl.u32 %v29138_v15, 16  ;;  %v2493_v58 = vsel %vm29078_vm14, %v2486_v48, %v2491_v54  ;;  %v4025_v23 = vcombine.high %v25984_v3, %v25984_v3 }
  0x94   : > { %25807 = vst.sshfl [vmem:[#allocation2 + $0x6c] sm:$0x33 pattern:$0x75316420] %v1117_v50  ;;  %v2507_v0 = vshll.u32 %v1819_v43, 16  ;;  %v2510_v2 = vshrl.u32 %v1819_v43, 16  ;;  %v4032_v27 = vrot.slane %v25984_v3, %v29027_v39  ;;  %v4642_v29 = vcombine.low %v3992_v49, %v1819_v43 }
  0x95   : > { %v2515_v4 = vshll.u32 %v1826_v44, 16  ;;  %25806 = vst.sshfl [vmem:[#allocation2 + $0x48] sm:$0x33 pattern:$0x75316420] %v1093_v56  ;;  %v2501_v5 = vsel %vm29078_vm14, %v2494_v59, %v2499_v60  ;;  %v2518_v9 = vshrl.u32 %v1826_v44, 16  ;;  %v29207_v37 = vrot.slane %v4025_v23, %v29027_v39 }
  0x96   : > { %v2523_v1 = vshll.u32 %v29173_v52, 16  ;;  %v2526_v11 = vshrl.u32 %v29173_v52, 16  ;;  %v2509_v13 = vsel %vm29078_vm14, %v2502_v61, %v2507_v0  ;;  %v2531_v16 = vshll.u32 %v1828_v53, 16  ;;  %v28410_v15 = vld [vmem:[#allocation7 + $0x150] sm:$0xff]   ;;  %v28420_v43 = vld [vmem:[#allocation7 + $0x158] sm:$0xff]   ;;  %v28432_v61 = vld [vmem:[#allocation7 + $0x160] sm:$0xff]  }
  0x97   : > { %v28383_v46 = vld [vmem:[#allocation2 + $0x4] ss:$36 sps:$4 sm:$0xff]   ;;  %v2517_v14 = vsel %vm29078_vm14, %v2510_v2, %v2515_v4  ;;  %v2535_v6 = vshrl.u32 %v29145_v20, 16  ;;  %v2540_v17 = vshll.u32 %v29152_v25, 16  ;;  %v2543_v18 = vshrl.u32 %v29152_v25, 16 }
  0x98   : > { %16392 = vmatprep.mubr.bf16.mxu0 %v28383_v46  ;;  %v2525_v63 = vsel %vm29078_vm14, %v2518_v9, %v2523_v1  ;;  %v2548_v19 = vshll.u32 %v29157_v28, 16  ;;  %v2533_v7 = vsel %vm29078_vm14, %v2526_v11, %v2531_v16  ;;  %v3266_v21 = vcombine.low %v2493_v58, %v2509_v13  ;;  %v26070_v24 = vld.sshfl [vmem:[%s28996_s14 + $0x14] sm:$0x13 pattern:$0x75316420] }
  0x99   : > { %16393 = vmatmul.mubr.bf16.vlgmr.msra.gmra.mrb[0].mxu0 %v28381_v45  ;;  %v3267_v22 = vcombine.low %v2501_v5, %v2517_v14  ;;  %v2542_v20 = vsel %vm29078_vm14, %v2535_v6, %v2540_v17  ;;  %v28411_v30 = vld [vmem:[#allocation7 + $0x110] sm:$0xff]   ;;  %v4643_v38 = vcombine.low %v3993_v10, %v1826_v44  ;;  %v4650_v40 = vrot.slane %v4642_v29, %v29042_v51  ;;  %v26071_v42 = vld.sshfl [vmem:[%s28996_s14 + $0x18] sm:$0x33 pattern:$0x75316420]  ;;  %v28433_v14 = vld [vmem:[#allocation7 + $0x120] sm:$0xff]  }
  0x9a   : > { %27640 = vmatpush3.bf16.msra.mxu0 %v28389_v41  ;;  %v2550_v26 = vsel %vm29078_vm14, %v2543_v18, %v2548_v19  ;;  %v28386_v57 = vld [vmem:[#allocation2 + $0x8] ss:$36 sps:$4 sm:$0xff]   ;;  %v3274_v33 = vrot.slane %v3266_v21, %v29042_v51  ;;  %v3290_v35 = vcombine.low %v2525_v63, %v2542_v20  ;;  %v26008_v41 = vcombine.high %v1826_v44, %v4032_v27 }
  0x9b   : > { %27641 = vmatprep.subr.bf16.mxu0 %v28396_v55  ;;  %v28388_v31 = vld [vmem:[#allocation2 + $0xc] ss:$36 sps:$4 sm:$0xff]   ;;  %v3281_v34 = vrot.slane %v3267_v22, %v29042_v51  ;;  %v3291_v36 = vcombine.low %v2533_v7, %v2550_v26  ;;  %v4657_v48 = vrot.slane %v4643_v38, %v29042_v51  ;;  %v4666_v49 = vcombine.low %v29173_v52, %v29207_v37  ;;  %v25834_v4 = vld.sshfl [vmem:[%s28996_s14 + $0x14] sm:$0x33 pattern:$0x75316420] }
  0x9c   : > { %16528 = vmatprep.mubr.bf16.mxu1 %v28388_v31  ;;  %v3298_v46 = vrot.slane %v3290_v35, %v29042_v51  ;;  %v4681_v62 = vrot.slane %v26008_v41, %v29042_v51  ;;  %v5377_v10 = vcombine.high %v26070_v24, %v26070_v24  ;;  %v29222_v44 = vcombine.high %v29152_v25, %v29152_v25  ;;  %v28422_v55 = vld [vmem:[#allocation7 + $0x118] sm:$0xff]  }
  0x9d   : > { %v3282_v45 = vcombine.low %v3274_v33, %v3281_v34  ;;  %v3305_v47 = vrot.slane %v3291_v36, %v29042_v51  ;;  %16529 = vmatmul.mubr.bf16.vlgmr.msra.gmra.mrb[0].mxu1 %v28386_v57  ;;  %v5384_v53 = vrot.slane %v26070_v24, %v29027_v39  ;;  %v5400_v54 = vcombine.high %v26071_v42, %v26071_v42  ;;  %v28392_v29 = vld [vmem:[#allocation2 + $0x48] ss:$36 sps:$4 sm:$0xff]  }
  0x9e   : > { %27642 = vmatpush3.bf16.msra.mxu0 %v28397_v12  ;;  %v4658_v56 = vcombine.low %v4650_v40, %v4657_v48  ;;  %v4674_v59 = vrot.slane %v4666_v49, %v29042_v51  ;;  %v5391_v52 = vrot.slane %v5377_v10, %v29027_v39  ;;  %v29228_v60 = vrot.slane %v26071_v42, %v29027_v39  ;;  %v25986_v48 = vld.sshfl [vmem:[%s28996_s14 + $0x18] sm:$0x32 pattern:$0x75316420] }
  0x9f   : > { %27643 = vmatprep.subr.bf16.mxu0 %v28410_v15  ;;  %v3306_v50 = vcombine.low %v3298_v46, %v3305_v47  ;;  %25957 = vst.sshfl [vmem:[#allocation2 + $0x4c] sm:$0x33 pattern:$0x75316420] %v3282_v45  ;;  %v5392_v3 = vcombine.high %v5384_v53, %v5384_v53  ;;  %v29231_v58 = vrot.slane %v5400_v54, %v29027_v39  ;;  %v2551_v20 = vshrl.u32 %v29157_v28, 16 }
  0xa0   : > { %v6005_v0 = vcombine.low %v29152_v25, %v29222_v44  ;;  %v6006_v2 = vcombine.low %v29157_v28, %v5384_v53  ;;  %v4682_v5 = vcombine.low %v4674_v59, %v4681_v62  ;;  %26016 = vst.sshfl [vmem:[#allocation2 + $0x50] sm:$0x33 pattern:$0x75316420] %v4658_v56  ;;  %v6029_v9 = vcombine.low %v5391_v52, %v29228_v60 }
  0xa1   : > { %25958 = vst.sshfl [vmem:[#allocation2 + $0x70] sm:$0x33 pattern:$0x75316420] %v3306_v50  ;;  %v29240_v1 = vcombine.high %v29228_v60, %v29228_v60  ;;  %v6030_v13 = vcombine.low %v5392_v3, %v29231_v58  ;;  %v1126_v16 = vcombine.low %v29222_v44, %v5391_v52  ;;  %v1860_v15 = vcombine.high %v25834_v4, %v25834_v4 }
  0xa2   : > { %27644 = vmatpush3.bf16.msra.mxu0 %v28411_v30  ;;  %v6013_v11 = vrot.slane %v6005_v0, %v29042_v51  ;;  %v6020_v12 = vrot.slane %v6006_v2, %v29042_v51  ;;  %26017 = vst.sshfl [vmem:[#allocation2 + $0x74] sm:$0x33 pattern:$0x75316420] %v4682_v5  ;;  %v6037_v25 = vrot.slane %v6029_v9, %v29042_v51  ;;  %v2556_v26 = vshll.u32 %v29222_v44, 16 }
  0xa3   : > { %27645 = vmatprep.subr.bf16.mxu0 %v28420_v43  ;;  %v1150_v6 = vcombine.low %v29228_v60, %v29240_v1  ;;  %v6044_v17 = vrot.slane %v6030_v13, %v29042_v51  ;;  %v29251_v18 = vrot.slane %v25834_v4, %v29027_v39  ;;  %v1140_v19 = vrot.slane %v1126_v16, %v29042_v51  ;;  %v26073_v4 = vld.sshfl [vmem:[%s28996_s14 + $0x20] sm:$0x33 pattern:$0x75316420] }
  0xa4   : > { %v6021_v63 = vcombine.low %v6013_v11, %v6020_v12  ;;  %v1874_v21 = vrot.slane %v1860_v15, %v29027_v39  ;;  %v29258_v22 = vcombine.high %v29231_v58, %v29231_v58  ;;  %v2559_v33 = vshrl.u32 %v29222_v44, 16 }
  0xa5   : > { %v1164_v7 = vrot.slane %v1150_v6, %v29042_v51  ;;  %v6045_v23 = vcombine.low %v6037_v25, %v6044_v17  ;;  %v29262_v24 = vcombine.high %v29251_v18, %v29251_v18  ;;  %v1141_v30 = vcombine.low %v6020_v12, %v1140_v19  ;;  %v25836_v6 = vld.sshfl [vmem:[%s28996_s14 + $0x1c] sm:$0x33 pattern:$0x75316420] }
  0xa6   : > { %27646 = vmatpush3.bf16.msra.mxu0 %v28422_v55  ;;  %26097 = vst.sshfl [vmem:[#allocation2 + $0x54] sm:$0x33 pattern:$0x75316420] %v6021_v63  ;;  %v1876_v31 = vcombine.high %v1874_v21, %v1874_v21  ;;  %v2558_v34 = vsel %vm29078_vm14, %v2551_v20, %v2556_v26  ;;  %v2564_v35 = vshll.u32 %v29251_v18, 16  ;;  %v2567_v36 = vshrl.u32 %v29251_v18, 16 }
  0xa7   : > { %27647 = vmatprep.subr.bf16.mxu0 %v28432_v61  ;;  %v1165_v57 = vcombine.low %v6044_v17, %v1164_v7  ;;  %26098 = vst.sshfl [vmem:[#allocation2 + $0x78] sm:$0x33 pattern:$0x75316420] %v6045_v23  ;;  %v2572_v28 = vshll.u32 %v1874_v21, 16  ;;  %v2575_v38 = vshrl.u32 %v1874_v21, 16  ;;  %v4041_v52 = vcombine.high %v29207_v37, %v29207_v37 }
  0xa8   : > { %v28390_v27 = vld [vmem:[#allocation2 + $0x4c] ss:$36 sps:$4 sm:$0xff]   ;;  %25808 = vst.sshfl [vmem:[#allocation2 + $0x90] sm:$0x33 pattern:$0x75316420] %v1141_v30  ;;  %v2566_v43 = vsel %vm29078_vm14, %v2559_v33, %v2564_v35  ;;  %v4080_v2 = vrot.slane %v25986_v48, %v29027_v39  ;;  %v4691_v25 = vcombine.low %v29251_v18, %v29262_v24  ;;  %v29313_v30 = vrot.slane %v26073_v4, %v29027_v39 }
  0xa9   : > { %16400 = vmatprep.mubr.bf16.mxu0 %v28390_v27  ;;  %25809 = vst.sshfl [vmem:[#allocation2 + $0xb4] sm:$0x33 pattern:$0x75316420] %v1165_v57  ;;  %v2580_v40 = vshll.u32 %v29262_v24, 16  ;;  %v2583_v41 = vshrl.u32 %v29262_v24, 16  ;;  %v2574_v45 = vsel %vm29078_vm14, %v2567_v36, %v2572_v28  ;;  %v4690_v37 = vcombine.low %v4041_v52, %v1874_v21 }
  0xaa   : > { %27648 = vmatpush3.bf16.msra.mxu0 %v28433_v14  ;;  %v2588_v42 = vshll.u32 %v1876_v31, 16  ;;  %v2592_v46 = vshrl.u32 %v29228_v60, 16  ;;  %v2597_v47 = vshll.u32 %v29231_v58, 16  ;;  %v2600_v10 = vshrl.u32 %v29231_v58, 16  ;;  %v28395_v9 = vld [vmem:[#allocation2 + $0x50] ss:$36 sps:$4 sm:$0xff]  }
  0xab   : > { %16401 = vmatmul.mubr.bf16.gmra.mrb[4].mxu0 %v28392_v29  ;;  %v2582_v49 = vsel %vm29078_vm14, %v2575_v38, %v2580_v40  ;;  %v2605_v50 = vshll.u32 %v29240_v1, 16  ;;  %v2608_v53 = vshrl.u32 %v29240_v1, 16  ;;  %v2613_v54 = vshll.u32 %v29258_v22, 16 }
  0xac   : > { %v2590_v62 = vsel %vm29078_vm14, %v2583_v41, %v2588_v42  ;;  %v2599_v44 = vsel %vm29078_vm14, %v2592_v46, %v2597_v47  ;;  %v3314_v55 = vcombine.low %v2558_v34, %v2574_v45  ;;  %v3315_v59 = vcombine.low %v2566_v43, %v2582_v49  ;;  %v26072_v61 = vld.sshfl [vmem:[%s28996_s14 + $0x1c] sm:$0x13 pattern:$0x75316420] }
  0xad   : > { %v2607_v56 = vsel %vm29078_vm14, %v2600_v10, %v2605_v50  ;;  %v4073_v60 = vcombine.high %v25986_v48, %v25986_v48  ;;  %v2615_v3 = vsel %vm29078_vm14, %v2608_v53, %v2613_v54  ;;  %v26009_v16 = vcombine.high %v1874_v21, %v4080_v2  ;;  %v29319_v36 = vld.sshfl [vmem:[%s28996_s14 + $0x24] sm:$0x33 pattern:$0x75316420] }
  0xae   : > { %v3322_v58 = vrot.slane %v3314_v55, %v29042_v51  ;;  %v3338_v0 = vcombine.low %v2590_v62, %v2607_v56  ;;  %v28393_v5 = vld [vmem:[#allocation2 + $0x54] ss:$36 sps:$4 sm:$0xff]   ;;  %v3329_v11 = vrot.slane %v3315_v59, %v29042_v51  ;;  %v3339_v12 = vcombine.low %v2599_v44, %v2615_v3 }
  0xaf   : > { %v4087_v13 = vrot.slane %v4073_v60, %v29027_v39  ;;  %16536 = vmatprep.mubr.bf16.mxu1 %v28393_v5  ;;  %v4698_v19 = vrot.slane %v4690_v37, %v29042_v51  ;;  %v4705_v7 = vrot.slane %v4691_v25, %v29042_v51  ;;  %v4722_v23 = vrot.slane %v26009_v16, %v29042_v51 }
  0xb0   : > { %v3346_v14 = vrot.slane %v3338_v0, %v29042_v51  ;;  %v3330_v15 = vcombine.low %v3322_v58, %v3329_v11  ;;  %v3353_v63 = vrot.slane %v3339_v12, %v29042_v51  ;;  %16537 = vmatmul.mubr.bf16.gmra.mrb[4].mxu1 %v28395_v9  ;;  %v5424_v20 = vcombine.high %v26072_v61, %v26072_v61  ;;  %v28400_v58 = vld [vmem:[#allocation2 + $0x90] ss:$36 sps:$4 sm:$0xff]  }
  0xb1   : > { %v4089_v17 = vcombine.high %v4087_v13, %v4087_v13  ;;  %v5431_v18 = vrot.slane %v26072_v61, %v29027_v39  ;;  %v5447_v21 = vcombine.high %v26073_v4, %v26073_v4  ;;  %v4706_v24 = vcombine.low %v4698_v19, %v4705_v7 }
  0xb2   : > { %v3354_v26 = vcombine.low %v3346_v14, %v3353_v63  ;;  %25959 = vst.sshfl [vmem:[#allocation2 + $0x94] sm:$0x33 pattern:$0x75316420] %v3330_v15  ;;  %v5438_v29 = vrot.slane %v5424_v20, %v29027_v39  ;;  %v1908_v57 = vcombine.high %v25836_v6, %v25836_v6  ;;  %v5462_v28 = vcombine.high %v29313_v30, %v29313_v30 }
  0xb3   : > { %v4715_v27 = vcombine.low %v4087_v13, %v4089_v17  ;;  %v5439_v33 = vcombine.high %v5431_v18, %v5431_v18  ;;  %v5461_v34 = vrot.slane %v5447_v21, %v29027_v39  ;;  %v6053_v35 = vcombine.low %v29240_v1, %v5431_v18  ;;  %26018 = vst.sshfl [vmem:[#allocation2 + $0x98] sm:$0x33 pattern:$0x75316420] %v4706_v24 }
  0xb4   : > { %25960 = vst.sshfl [vmem:[#allocation2 + $0xb8] sm:$0x33 pattern:$0x75316420] %v3354_v26  ;;  %v6054_v38 = vcombine.low %v29258_v22, %v5438_v29  ;;  %v29325_v40 = vrot.slane %v25836_v6, %v29027_v39  ;;  %v29328_v41 = vrot.slane %v1908_v57, %v29027_v39  ;;  %v6078_v48 = vcombine.low %v29313_v30, %v5462_v28 }
  0xb5   : > { %v4729_v31 = vrot.slane %v4715_v27, %v29042_v51  ;;  %v6061_v43 = vrot.slane %v6053_v35, %v29042_v51  ;;  %v6077_v45 = vcombine.low %v5439_v33, %v5461_v34  ;;  %v29331_v46 = vcombine.high %v5461_v34, %v5461_v34  ;;  %v25988_v1 = vld.sshfl [vmem:[%s28996_s14 + $0x20] sm:$0x32 pattern:$0x75316420] }
  0xb6   : > { %v6068_v47 = vrot.slane %v6054_v38, %v29042_v51  ;;  %v1174_v49 = vcombine.low %v5431_v18, %v5439_v33  ;;  %v29338_v62 = vcombine.high %v29325_v40, %v29325_v40  ;;  %v29344_v44 = vcombine.high %v29328_v41, %v29328_v41  ;;  %v26074_v57 = vld.sshfl [vmem:[%s28996_s14 + $0x24] sm:$0x13 pattern:$0x75316420]  ;;  %v28445_v38 = vld [vmem:[#allocation7 + $0x168] sm:$0xff]  }
  0xb7   : > { %v4730_v42 = vcombine.low %v4722_v23, %v4729_v31  ;;  %v6085_v10 = vrot.slane %v6077_v45, %v29042_v51  ;;  %v1198_v50 = vcombine.low %v5461_v34, %v29331_v46  ;;  %v6092_v54 = vrot.slane %v6078_v48, %v29042_v51  ;;  %v26075_v31 = vld.sshfl [vmem:[%s28996_s14 + $0x28] sm:$0x33 pattern:$0x75316420]  ;;  %27649 = vmatprep.subr.bf16.mxu0 %v28445_v38 }
  0xb8   : > { %v6069_v53 = vcombine.low %v6061_v43, %v6068_v47  ;;  %v1188_v55 = vrot.slane %v1174_v49, %v29042_v51  ;;  %v29350_v56 = vrot.slane %v29319_v36, %v29027_v39  ;;  %v2616_v52 = vshrl.u32 %v29258_v22, 16 }
  0xb9   : > { %26019 = vst.sshfl [vmem:[#allocation2 + $0xbc] sm:$0x33 pattern:$0x75316420] %v4730_v42  ;;  %v1212_v59 = vrot.slane %v1198_v50, %v29042_v51  ;;  %v2621_v60 = vshll.u32 %v29325_v40, 16  ;;  %v2624_v61 = vshrl.u32 %v29325_v40, 16  ;;  %v6093_v0 = vcombine.low %v6085_v10, %v6092_v54 }
  0xba   : > { %26099 = vst.sshfl [vmem:[#allocation2 + $0x9c] sm:$0x33 pattern:$0x75316420] %v6069_v53  ;;  %v1189_v2 = vcombine.low %v6068_v47, %v1188_v55  ;;  %v2629_v4 = vshll.u32 %v29328_v41, 16  ;;  %v4121_v5 = vcombine.high %v25988_v1, %v25988_v1  ;;  %v2632_v12 = vshrl.u32 %v29328_v41, 16 }
  0xbb   : > { %v28398_v3 = vld [vmem:[#allocation2 + $0x94] ss:$36 sps:$4 sm:$0xff]   ;;  %v1213_v9 = vcombine.low %v6092_v54, %v1212_v59  ;;  %v2623_v11 = vsel %vm29078_vm14, %v2616_v52, %v2621_v60  ;;  %v2637_v22 = vshll.u32 %v29338_v62, 16  ;;  %v2640_v37 = vshrl.u32 %v29338_v62, 16  ;;  %v28447_v47 = vld [vmem:[#allocation7 + $0x128] sm:$0xff]  }
  0xbc   : > { %16408 = vmatprep.mubr.bf16.mxu0 %v28398_v3  ;;  %26100 = vst.sshfl [vmem:[#allocation2 + $0xc0] sm:$0x33 pattern:$0x75316420] %v6093_v0  ;;  %v2631_v13 = vsel %vm29078_vm14, %v2624_v61, %v2629_v4  ;;  %v2645_v14 = vshll.u32 %v29344_v44, 16  ;;  %v2649_v25 = vshrl.u32 %v29313_v30, 16  ;;  %v4128_v29 = vrot.slane %v25988_v1, %v29027_v39  ;;  %27650 = vmatpush3.bf16.msra.mxu0 %v28447_v47 }
  0xbd   : > { %25810 = vst.sshfl [vmem:[#allocation2 + $0xd8] sm:$0x33 pattern:$0x75316420] %v1189_v2  ;;  %16409 = vmatmul.mubr.bf16.gmra.mrb[8].mxu0 %v28400_v58  ;;  %v2639_v16 = vsel %vm29078_vm14, %v2632_v12, %v2637_v22  ;;  %v2654_v6 = vshll.u32 %v5461_v34, 16  ;;  %v2657_v15 = vshrl.u32 %v5461_v34, 16  ;;  %v4135_v30 = vrot.slane %v4121_v5, %v29027_v39 }
  0xbe   : > { %25811 = vst.sshfl [vmem:[#allocation2 + $0xfc] sm:$0x33 pattern:$0x75316420] %v1213_v9  ;;  %v2662_v63 = vshll.u32 %v5462_v28, 16  ;;  %v2647_v17 = vsel %vm29078_vm14, %v2640_v37, %v2645_v14  ;;  %v2665_v19 = vshrl.u32 %v5462_v28, 16  ;;  %v3362_v18 = vcombine.low %v2623_v11, %v2639_v16 }
  0xbf   : > { %v2670_v7 = vshll.u32 %v29331_v46, 16  ;;  %v2673_v23 = vshrl.u32 %v29331_v46, 16  ;;  %v2656_v20 = vsel %vm29078_vm14, %v2649_v25, %v2654_v6  ;;  %v2678_v27 = vshll.u32 %v29350_v56, 16 }
  0xc0   : > { %v2664_v26 = vsel %vm29078_vm14, %v2657_v15, %v2662_v63  ;;  %v3363_v24 = vcombine.low %v2631_v13, %v2647_v17  ;;  %v3370_v34 = vrot.slane %v3362_v18, %v29042_v51  ;;  %v4738_v28 = vcombine.low %v29325_v40, %v29338_v62  ;;  %v28403_v49 = vld [vmem:[#allocation2 + $0x98] ss:$36 sps:$4 sm:$0xff]   ;;  %v29396_v59 = vld.sshfl [vmem:[%s28996_s14 + $0x2c] sm:$0x13 pattern:$0x75316420] }
  0xc1   : > { %v2672_v21 = vsel %vm29078_vm14, %v2665_v19, %v2670_v7  ;;  %v2680_v33 = vsel %vm29078_vm14, %v2673_v23, %v2678_v27  ;;  %v4136_v45 = vcombine.high %v4128_v29, %v4128_v29  ;;  %v4137_v1 = vcombine.high %v4135_v30, %v4135_v30  ;;  %v25840_v11 = vld.sshfl [vmem:[%s28996_s14 + $0x2c] sm:$0x33 pattern:$0x75316420] }
  0xc2   : > { %v3386_v35 = vcombine.low %v2656_v20, %v2672_v21  ;;  %v3377_v42 = vrot.slane %v3363_v24, %v29042_v51  ;;  %v3387_v43 = vcombine.low %v2664_v26, %v2680_v33  ;;  %v4739_v50 = vcombine.low %v29328_v41, %v29344_v44 }
  0xc3   : > { %v28401_v48 = vld [vmem:[#allocation2 + $0x9c] ss:$36 sps:$4 sm:$0xff]   ;;  %v4746_v53 = vrot.slane %v4738_v28, %v29042_v51  ;;  %v4762_v62 = vcombine.low %v4135_v30, %v4137_v1  ;;  %v4763_v55 = vcombine.low %v4136_v45, %v29350_v56  ;;  %v5471_v60 = vcombine.high %v26074_v57, %v26074_v57 }
  0xc4   : > { %v3394_v10 = vrot.slane %v3386_v35, %v29042_v51  ;;  %v3378_v54 = vcombine.low %v3370_v34, %v3377_v42  ;;  %v3401_v40 = vrot.slane %v3387_v43, %v29042_v51  ;;  %16544 = vmatprep.mubr.bf16.mxu1 %v28401_v48  ;;  %v4753_v52 = vrot.slane %v4739_v50, %v29042_v51 }
  0xc5   : > { %v5478_v61 = vrot.slane %v26074_v57, %v29027_v39  ;;  %v5494_v41 = vcombine.high %v26075_v31, %v26075_v31  ;;  %16545 = vmatmul.mubr.bf16.gmra.mrb[8].mxu1 %v28403_v49  ;;  %v4770_v3 = vrot.slane %v4762_v62, %v29042_v51  ;;  %v4777_v58 = vrot.slane %v4763_v55, %v29042_v51  ;;  %v28406_v38 = vld [vmem:[#allocation2 + $0xd8] ss:$36 sps:$4 sm:$0xff]  }
  0xc6   : > { %v3402_v44 = vcombine.low %v3394_v10, %v3401_v40  ;;  %25961 = vst.sshfl [vmem:[#allocation2 + $0xdc] sm:$0x33 pattern:$0x75316420] %v3378_v54  ;;  %v29403_v0 = vrot.slane %v26075_v31, %v29027_v39  ;;  %v4754_v2 = vcombine.low %v4746_v53, %v4753_v52  ;;  %v5485_v4 = vrot.slane %v5471_v60, %v29027_v39 }
  0xc7   : > { %v5486_v5 = vcombine.high %v5478_v61, %v5478_v61  ;;  %v5508_v9 = vrot.slane %v5494_v41, %v29027_v39  ;;  %v4778_v12 = vcombine.low %v4770_v3, %v4777_v58  ;;  %v29412_v13 = vrot.slane %v29396_v59, %v29027_v39 }
  0xc8   : > { %25962 = vst.sshfl [vmem:[#allocation2 + $0x100] sm:$0x33 pattern:$0x75316420] %v3402_v44  ;;  %v5509_v22 = vcombine.high %v29403_v0, %v29403_v0  ;;  %v1956_v37 = vcombine.high %v29319_v36, %v29319_v36  ;;  %v6101_v25 = vcombine.low %v29331_v46, %v5485_v4  ;;  %v1222_v6 = vcombine.low %v5485_v4, %v29403_v0 }
  0xc9   : > { %26020 = vst.sshfl [vmem:[#allocation2 + $0xe0] sm:$0x33 pattern:$0x75316420] %v4754_v2  ;;  %v5510_v14 = vcombine.high %v5508_v9, %v5508_v9  ;;  %v6102_v16 = vcombine.low %v5478_v61, %v5486_v5  ;;  %v29425_v19 = vcombine.high %v29350_v56, %v29350_v56  ;;  %v2004_v21 = vcombine.high %v25840_v11, %v25840_v11 }
  0xca   : > { %26021 = vst.sshfl [vmem:[#allocation2 + $0x104] sm:$0x33 pattern:$0x75316420] %v4778_v12  ;;  %v6125_v15 = vcombine.low %v29403_v0, %v5509_v22  ;;  %v1246_v63 = vcombine.low %v5509_v22, %v29412_v13  ;;  %v29421_v17 = vrot.slane %v1956_v37, %v29027_v39  ;;  %v6109_v7 = vrot.slane %v6101_v25, %v29042_v51 }
  0xcb   : > { %v25990_v36 = vld.sshfl [vmem:[%s28996_s14 + $0x28] sm:$0x32 pattern:$0x75316420]  ;;  %v6116_v46 = vrot.slane %v6102_v16, %v29042_v51  ;;  %v6126_v23 = vcombine.low %v5508_v9, %v5510_v14  ;;  %v1236_v20 = vrot.slane %v1222_v6, %v29042_v51  ;;  %v29439_v57 = vrot.slane %v25840_v11, %v29027_v39  ;;  %v28455_v6 = vld [vmem:[#allocation7 + $0x180] sm:$0xff]  }
  0xcc   : > { %v6133_v26 = vrot.slane %v6125_v15, %v29042_v51  ;;  %v1260_v27 = vrot.slane %v1246_v63, %v29042_v51  ;;  %v29435_v18 = vcombine.high %v29421_v17, %v29421_v17  ;;  %v29442_v31 = vrot.slane %v2004_v21, %v29027_v39  ;;  %v26077_v12 = vld.sshfl [vmem:[%s28996_s14 + $0x30] sm:$0x33 pattern:$0x75316420] }
  0xcd   : > { %v6117_v24 = vcombine.low %v6109_v7, %v6116_v46  ;;  %v6140_v29 = vrot.slane %v6126_v23, %v29042_v51  ;;  %v1237_v30 = vcombine.low %v6116_v46, %v1236_v20  ;;  %v2681_v33 = vshrl.u32 %v29350_v56, 16  ;;  %v26078_v46 = vld.sshfl [vmem:[%s28996_s14 + $0x34] sm:$0x13 pattern:$0x75316420] }
  0xce   : > { %v2686_v34 = vshll.u32 %v29421_v17, 16  ;;  %v2689_v35 = vshrl.u32 %v29421_v17, 16  ;;  %v2694_v45 = vshll.u32 %v29425_v19, 16  ;;  %v4169_v1 = vcombine.high %v25990_v36, %v25990_v36  ;;  %v28456_v23 = vld [vmem:[#allocation7 + $0x170] sm:$0xff]  }
  0xcf   : > { %v28404_v28 = vld [vmem:[#allocation2 + $0xdc] ss:$36 sps:$4 sm:$0xff]   ;;  %v6141_v42 = vcombine.low %v6133_v26, %v6140_v29  ;;  %26101 = vst.sshfl [vmem:[#allocation2 + $0xe4] sm:$0x33 pattern:$0x75316420] %v6117_v24  ;;  %v1261_v43 = vcombine.low %v6140_v29, %v1260_v27  ;;  %v4176_v5 = vrot.slane %v25990_v36, %v29027_v39  ;;  %v4786_v11 = vcombine.low %v29421_v17, %v29435_v18 }
  0xd0   : > { %25812 = vst.sshfl [vmem:[#allocation2 + $0x120] sm:$0x33 pattern:$0x75316420] %v1237_v30  ;;  %v2688_v47 = vsel %vm29078_vm14, %v2681_v33, %v2686_v34  ;;  %v2697_v48 = vshrl.u32 %v29425_v19, 16  ;;  %v2702_v56 = vshll.u32 %v29435_v18, 16  ;;  %16416 = vmatprep.mubr.bf16.mxu0 %v28404_v28  ;;  %v2696_v10 = vsel %vm29078_vm14, %v2689_v35, %v2694_v45  ;;  %27651 = vmatprep.subr.bf16.mxu0 %v28456_v23 }
  0xd1   : > { %v2706_v49 = vshrl.u32 %v29403_v0, 16  ;;  %26102 = vst.sshfl [vmem:[#allocation2 + $0x108] sm:$0x33 pattern:$0x75316420] %v6141_v42  ;;  %v2711_v50 = vshll.u32 %v5508_v9, 16  ;;  %16417 = vmatmul.mubr.bf16.gmra.mrb[12].mxu0 %v28406_v38  ;;  %v4184_v63 = vcombine.high %v4176_v5, %v4176_v5  ;;  %v4794_v21 = vrot.slane %v4786_v11, %v29042_v51 }
  0xd2   : > { %25813 = vst.sshfl [vmem:[#allocation2 + $0x144] sm:$0x33 pattern:$0x75316420] %v1261_v43  ;;  %v2714_v53 = vshrl.u32 %v5508_v9, 16  ;;  %v2719_v54 = vshll.u32 %v5509_v22, 16  ;;  %v2704_v40 = vsel %vm29078_vm14, %v2697_v48, %v2702_v56  ;;  %v4183_v9 = vrot.slane %v4169_v1, %v29027_v39 }
  0xd3   : > { %v2722_v62 = vshrl.u32 %v5509_v22, 16  ;;  %v2727_v55 = vshll.u32 %v5510_v14, 16  ;;  %v2730_v52 = vshrl.u32 %v5510_v14, 16  ;;  %v2713_v60 = vsel %vm29078_vm14, %v2706_v49, %v2711_v50  ;;  %v28454_v22 = vld [vmem:[#allocation7 + $0x1c0] sm:$0xff]   ;;  %v28457_v17 = vld [vmem:[#allocation7 + $0x1c8] sm:$0xff]  }
  0xd4   : > { %v2721_v61 = vsel %vm29078_vm14, %v2714_v53, %v2719_v54  ;;  %v2735_v41 = vshll.u32 %v29439_v57, 16  ;;  %v2738_v44 = vshrl.u32 %v29439_v57, 16  ;;  %v2743_v58 = vshll.u32 %v29442_v31, 16  ;;  %27733 = vmatprep.subr.bf16.mxu1 %v28454_v22  ;;  %v28409_v26 = vld [vmem:[#allocation2 + $0xe0] ss:$36 sps:$4 sm:$0xff]  }
  0xd5   : > { %v2729_v3 = vsel %vm29078_vm14, %v2722_v62, %v2727_v55  ;;  %v3410_v0 = vcombine.low %v2688_v47, %v2704_v40  ;;  %v3411_v2 = vcombine.low %v2696_v10, %v2713_v60  ;;  %v4185_v7 = vcombine.high %v4183_v9, %v4183_v9  ;;  %27734 = vmatpush3.bf16.msra.mxu1 %v28455_v6  ;;  %v25842_v1 = vld.sshfl [vmem:[%s28996_s14 + $0x34] sm:$0x33 pattern:$0x75316420] }
  0xd6   : > { %v2737_v4 = vsel %vm29078_vm14, %v2730_v52, %v2735_v41  ;;  %v2745_v37 = vsel %vm29078_vm14, %v2738_v44, %v2743_v58  ;;  %v4787_v36 = vcombine.low %v29425_v19, %v4183_v9  ;;  %v5518_v24 = vcombine.high %v29396_v59, %v29396_v59  ;;  %27735 = vmatprep.subr.bf16.mxu1 %v28457_v17  ;;  %v28461_v9 = vld [vmem:[#allocation7 + $0x188] sm:$0xff]  }
  0xd7   : > { %v3418_v14 = vrot.slane %v3410_v0, %v29042_v51  ;;  %v3425_v25 = vrot.slane %v3411_v2, %v29042_v51  ;;  %v3434_v16 = vcombine.low %v2721_v61, %v2737_v4  ;;  %v3435_v15 = vcombine.low %v2729_v3, %v2745_v37 }
  0xd8   : > { %v28407_v20 = vld [vmem:[#allocation2 + $0xe4] ss:$36 sps:$4 sm:$0xff]   ;;  %v4801_v19 = vrot.slane %v4787_v36, %v29042_v51  ;;  %v4810_v30 = vcombine.low %v4184_v63, %v29439_v57  ;;  %v4811_v33 = vcombine.low %v4185_v7, %v29442_v31  ;;  %v5532_v34 = vrot.slane %v5518_v24, %v29027_v39 }
  0xd9   : > { %v3426_v27 = vcombine.low %v3418_v14, %v3425_v25  ;;  %v3442_v18 = vrot.slane %v3434_v16, %v29042_v51  ;;  %v3449_v29 = vrot.slane %v3435_v15, %v29042_v51  ;;  %16552 = vmatprep.mubr.bf16.mxu1 %v28407_v20  ;;  %v5533_v35 = vcombine.high %v29412_v13, %v29412_v13  ;;  %v28460_v15 = vld [vmem:[#allocation7 + $0x130] sm:$0xff]  }
  0xda   : > { %v5541_v28 = vcombine.high %v26077_v12, %v26077_v12  ;;  %v29491_v59 = vrot.slane %v26077_v12, %v29027_v39  ;;  %16553 = vmatmul.mubr.bf16.gmra.mrb[12].mxu1 %v28409_v26  ;;  %v4802_v42 = vcombine.low %v4794_v21, %v4801_v19  ;;  %v4818_v43 = vrot.slane %v4810_v30, %v29042_v51  ;;  %v28414_v7 = vld [vmem:[#allocation2 + $0x120] ss:$36 sps:$4 sm:$0xff]  }
  0xdb   : > { %25963 = vst.sshfl [vmem:[#allocation2 + $0x124] sm:$0x33 pattern:$0x75316420] %v3426_v27  ;;  %v3450_v38 = vcombine.low %v3442_v18, %v3449_v29  ;;  %v4825_v45 = vrot.slane %v4811_v33, %v29042_v51  ;;  %v29504_v56 = vrot.slane %v26078_v46, %v29027_v39  ;;  %v6149_v49 = vcombine.low %v29412_v13, %v5533_v35 }
  0xdc   : > { %v29497_v47 = vrot.slane %v5541_v28, %v29027_v39  ;;  %v29501_v48 = vcombine.high %v29491_v59, %v29491_v59  ;;  %26022 = vst.sshfl [vmem:[#allocation2 + $0x128] sm:$0x33 pattern:$0x75316420] %v4802_v42  ;;  %v6150_v50 = vcombine.low %v5532_v34, %v29491_v59  ;;  %v684_v53 = vcombine.high %v26078_v46, %v26078_v46 }
  0xdd   : > { %25964 = vst.sshfl [vmem:[#allocation2 + $0x148] sm:$0x33 pattern:$0x75316420] %v3450_v38  ;;  %v4826_v10 = vcombine.low %v4818_v43, %v4825_v45  ;;  %v6157_v40 = vrot.slane %v6149_v49, %v29042_v51  ;;  %v29515_v55 = vcombine.high %v29439_v57, %v29439_v57  ;;  %v2020_v61 = vcombine.high %v29442_v31, %v29442_v31 }
  0xde   : > { %v5557_v54 = vcombine.high %v29497_v47, %v29497_v47  ;;  %v6174_v62 = vcombine.low %v29501_v48, %v29504_v56  ;;  %v6164_v13 = vrot.slane %v6150_v50, %v29042_v51  ;;  %v29519_v52 = vrot.slane %v684_v53, %v29027_v39  ;;  %v29530_v57 = vld.sshfl [vmem:[%s28996_s14 + $0x30] sm:$0x32 pattern:$0x75316420]  ;;  %27736 = vmatpush3.bf16.msra.mxu1 %v28461_v9 }
  0xdf   : > { %26023 = vst.sshfl [vmem:[#allocation2 + $0x14c] sm:$0x33 pattern:$0x75316420] %v4826_v10  ;;  %v1270_v60 = vcombine.low %v5533_v35, %v29497_v47  ;;  %v2052_v3 = vcombine.high %v25842_v1, %v25842_v1  ;;  %v29527_v58 = vrot.slane %v25842_v1, %v29027_v39  ;;  %v2746_v5 = vshrl.u32 %v29442_v31, 16  ;;  %27652 = vmatpush3.bf16.msra.mxu0 %v28460_v15 }
  0xe0   : > { %v6173_v41 = vcombine.low %v29497_v47, %v5557_v54  ;;  %v6188_v44 = vrot.slane %v6174_v62, %v29042_v51  ;;  %v6165_v0 = vcombine.low %v6157_v40, %v6164_v13  ;;  %v1294_v4 = vcombine.low %v5557_v54, %v29519_v52 }
  0xe1   : > { %v1284_v2 = vrot.slane %v1270_v60, %v29042_v51  ;;  %v29537_v12 = vrot.slane %v2052_v3, %v29027_v39  ;;  %v29541_v22 = vcombine.high %v29527_v58, %v29527_v58  ;;  %v2751_v37 = vshll.u32 %v29515_v55, 16 }
  0xe2   : > { %v6181_v11 = vrot.slane %v6173_v41, %v29042_v51  ;;  %26103 = vst.sshfl [vmem:[#allocation2 + $0x12c] sm:$0x33 pattern:$0x75316420] %v6165_v0  ;;  %v1308_v25 = vrot.slane %v1294_v4, %v29042_v51  ;;  %v2754_v16 = vshrl.u32 %v29515_v55, 16  ;;  %v2759_v6 = vshll.u32 %v2020_v61, 16 }
  0xe3   : > { %v1285_v14 = vcombine.low %v6164_v13, %v1284_v2  ;;  %v2753_v46 = vsel %vm29078_vm14, %v2746_v5, %v2751_v37  ;;  %v2763_v23 = vshrl.u32 %v29491_v59, 16  ;;  %v4217_v17 = vcombine.high %v29530_v57, %v29530_v57  ;;  %v28466_v61 = vld [vmem:[#allocation7 + $0x1d0] sm:$0xff]  }
  0xe4   : > { %v28412_v63 = vld [vmem:[#allocation2 + $0x124] ss:$36 sps:$4 sm:$0xff]   ;;  %v6189_v36 = vcombine.low %v6181_v11, %v6188_v44  ;;  %v1309_v20 = vcombine.low %v6188_v44, %v1308_v25  ;;  %v2761_v26 = vsel %vm29078_vm14, %v2754_v16, %v2759_v6  ;;  %v2768_v27 = vshll.u32 %v29497_v47, 16  ;;  %27737 = vmatprep.subr.bf16.mxu1 %v28466_v61  ;;  %v28468_v16 = vld [vmem:[#allocation7 + $0x1d8] sm:$0xff]  }
  0xe5   : > { %25814 = vst.sshfl [vmem:[#allocation2 + $0x168] sm:$0x33 pattern:$0x75316420] %v1285_v14  ;;  %v2771_v18 = vshrl.u32 %v29497_v47, 16  ;;  %16424 = vmatprep.mubr.bf16.mxu0 %v28412_v63  ;;  %v2776_v21 = vshll.u32 %v29501_v48, 16  ;;  %v4224_v50 = vrot.slane %v29530_v57, %v29027_v39  ;;  %v4231_v53 = vrot.slane %v4217_v17, %v29027_v39 }
  0xe6   : > { %26104 = vst.sshfl [vmem:[#allocation2 + $0x150] sm:$0x33 pattern:$0x75316420] %v6189_v36  ;;  %v2779_v24 = vshrl.u32 %v29501_v48, 16  ;;  %v2784_v29 = vshll.u32 %v5557_v54, 16  ;;  %16425 = vmatmul.mubr.bf16.gmra.mrb[16].mxu0 %v28414_v7  ;;  %v2770_v30 = vsel %vm29078_vm14, %v2763_v23, %v2768_v27  ;;  %v4859_v60 = vcombine.low %v29527_v58, %v29541_v22 }
  0xe7   : > { %v2787_v19 = vshrl.u32 %v5557_v54, 16  ;;  %25815 = vst.sshfl [vmem:[#allocation2 + $0x18c] sm:$0x33 pattern:$0x75316420] %v1309_v20  ;;  %v2792_v33 = vshll.u32 %v29527_v58, 16  ;;  %v2778_v28 = vsel %vm29078_vm14, %v2771_v18, %v2776_v21  ;;  %v3458_v1 = vcombine.low %v2753_v46, %v2770_v30 }
  0xe8   : > { %v2795_v34 = vshrl.u32 %v29527_v58, 16  ;;  %v2800_v35 = vshll.u32 %v29537_v12, 16  ;;  %v2786_v59 = vsel %vm29078_vm14, %v2779_v24, %v2784_v29  ;;  %v2803_v38 = vshrl.u32 %v29537_v12, 16  ;;  %v28467_v0 = vld [vmem:[#allocation7 + $0x190] sm:$0xff]  }
  0xe9   : > { %v2808_v42 = vshll.u32 %v29541_v22, 16  ;;  %v2794_v43 = vsel %vm29078_vm14, %v2787_v19, %v2792_v33  ;;  %v3459_v47 = vcombine.low %v2761_v26, %v2778_v28  ;;  %v26079_v48 = vld.sshfl [vmem:[%s28996_s14 + $0x38] sm:$0x33 pattern:$0x75316420]  ;;  %v3466_v40 = vrot.slane %v3458_v1, %v29042_v51  ;;  %27738 = vmatpush3.bf16.msra.mxu1 %v28467_v0 }
  0xea   : > { %v2802_v45 = vsel %vm29078_vm14, %v2795_v34, %v2800_v35  ;;  %v26080_v54 = vld.sshfl [vmem:[%s28996_s14 + $0x3c] sm:$0x13 pattern:$0x75316420]  ;;  %v4233_v44 = vcombine.high %v4231_v53, %v4231_v53  ;;  %v4834_v3 = vcombine.low %v29515_v55, %v4231_v53  ;;  %v26010_v57 = vcombine.high %v29442_v31, %v4224_v50  ;;  %v28417_v4 = vld [vmem:[#allocation2 + $0x128] ss:$36 sps:$4 sm:$0xff]   ;;  %27739 = vmatprep.subr.bf16.mxu1 %v28468_v16 }
  0xeb   : > { %v2810_v49 = vsel %vm29078_vm14, %v2803_v38, %v2808_v42  ;;  %v3482_v10 = vcombine.low %v2786_v59, %v2802_v45  ;;  %v3473_v62 = vrot.slane %v3459_v47, %v29042_v51  ;;  %v4873_v11 = vrot.slane %v4859_v60, %v29042_v51  ;;  %v25844_v58 = vld.sshfl [vmem:[%s28996_s14 + $0x3c] sm:$0x33 pattern:$0x75316420] }
  0xec   : > { %v3483_v13 = vcombine.low %v2794_v43, %v2810_v49  ;;  %v5580_v37 = vcombine.high %v29504_v56, %v29504_v56  ;;  %v4842_v14 = vrot.slane %v4834_v3, %v29042_v51  ;;  %v4849_v25 = vrot.slane %v26010_v57, %v29042_v51  ;;  %v25994_v1 = vld.sshfl [vmem:[%s28996_s14 + $0x38] sm:$0x32 pattern:$0x75316420] }
  0xed   : > { %v3490_v41 = vrot.slane %v3482_v10, %v29042_v51  ;;  %v28415_v2 = vld [vmem:[#allocation2 + $0x12c] ss:$36 sps:$4 sm:$0xff]   ;;  %v3474_v5 = vcombine.low %v3466_v40, %v3473_v62  ;;  %v4858_v55 = vcombine.low %v4233_v44, %v29537_v12  ;;  %v5588_v31 = vcombine.high %v26079_v48, %v26079_v48 }
  0xee   : > { %v3497_v9 = vrot.slane %v3483_v13, %v29042_v51  ;;  %16560 = vmatprep.mubr.bf16.mxu1 %v28415_v2  ;;  %v5595_v15 = vrot.slane %v26079_v48, %v29027_v39  ;;  %v5612_v63 = vcombine.high %v26080_v54, %v26080_v54  ;;  %v5619_v7 = vrot.slane %v26080_v54, %v29027_v39  ;;  %v28471_v47 = vld [vmem:[#allocation7 + $0x198] sm:$0xff]  }
  0xef   : > { %25965 = vst.sshfl [vmem:[#allocation2 + $0x16c] sm:$0x33 pattern:$0x75316420] %v3474_v5  ;;  %16561 = vmatmul.mubr.bf16.gmra.mrb[16].mxu1 %v28417_v4  ;;  %v4850_v56 = vcombine.low %v4842_v14, %v4849_v25  ;;  %v4866_v36 = vrot.slane %v4858_v55, %v29042_v51  ;;  %v5602_v46 = vrot.slane %v5588_v31, %v29027_v39  ;;  %v2811_v45 = vshrl.u32 %v29541_v22, 16 }
  0xf0   : > { %v3498_v6 = vcombine.low %v3490_v41, %v3497_v9  ;;  %v2068_v23 = vcombine.high %v29537_v12, %v29537_v12  ;;  %v5603_v17 = vcombine.high %v5595_v15, %v5595_v15  ;;  %v5626_v20 = vrot.slane %v5612_v63, %v29027_v39  ;;  %27740 = vmatpush3.bf16.msra.mxu1 %v28471_v47  ;;  %v28421_v60 = vld [vmem:[#allocation2 + $0x168] ss:$36 sps:$4 sm:$0xff]  }
  0xf1   : > { %v6197_v26 = vcombine.low %v29519_v52, %v5595_v15  ;;  %v29602_v27 = vcombine.high %v5619_v7, %v5619_v7  ;;  %v4874_v18 = vcombine.low %v4866_v36, %v4873_v11  ;;  %26024 = vst.sshfl [vmem:[#allocation2 + $0x170] sm:$0x33 pattern:$0x75316420] %v4850_v56  ;;  %v5604_v21 = vcombine.high %v5602_v46, %v5602_v46 }
  0xf2   : > { %25966 = vst.sshfl [vmem:[#allocation2 + $0x190] sm:$0x33 pattern:$0x75316420] %v3498_v6  ;;  %v6198_v24 = vcombine.low %v5580_v37, %v5602_v46  ;;  %v2100_v29 = vcombine.high %v25844_v58, %v25844_v58  ;;  %v6221_v30 = vcombine.low %v5603_v17, %v5619_v7  ;;  %v1318_v33 = vcombine.low %v5595_v15, %v5603_v17 }
  0xf3   : > { %v6205_v19 = vrot.slane %v6197_v26, %v29042_v51  ;;  %v1342_v34 = vcombine.low %v5619_v7, %v29602_v27  ;;  %26025 = vst.sshfl [vmem:[#allocation2 + $0x194] sm:$0x33 pattern:$0x75316420] %v4874_v18  ;;  %v6222_v28 = vcombine.low %v5604_v21, %v5626_v20  ;;  %v29608_v52 = vrot.slane %v25844_v58, %v29027_v39 }
  0xf4   : > { %v6212_v35 = vrot.slane %v6198_v24, %v29042_v51  ;;  %v29611_v59 = vrot.slane %v2100_v29, %v29027_v39  ;;  %v6229_v38 = vrot.slane %v6221_v30, %v29042_v51  ;;  %v1332_v42 = vrot.slane %v1318_v33, %v29042_v51  ;;  %v26081_v20 = vld.sshfl [vmem:[%s28996_s14 + $0x40] sm:$0x33 pattern:$0x75316420] }
  0xf5   : > { %v1356_v43 = vrot.slane %v1342_v34, %v29042_v51  ;;  %v6236_v49 = vrot.slane %v6222_v28, %v29042_v51  ;;  %v2115_v10 = vcombine.high %v29608_v52, %v29608_v52  ;;  %v2816_v54 = vshll.u32 %v2068_v23, 16  ;;  %v28476_v29 = vld [vmem:[#allocation7 + $0x1e0] sm:$0xff]  }
  0xf6   : > { %v6213_v48 = vcombine.low %v6205_v19, %v6212_v35  ;;  %v29623_v50 = vcombine.high %v29611_v59, %v29611_v59  ;;  %v1333_v53 = vcombine.low %v6212_v35, %v1332_v42  ;;  %v2820_v40 = vshrl.u32 %v5595_v15, 16  ;;  %v26082_v35 = vld.sshfl [vmem:[%s28996_s14 + $0x44] sm:$0x13 pattern:$0x75316420]  ;;  %27741 = vmatprep.subr.bf16.mxu1 %v28476_v29 }
  0xf7   : > { %v2825_v62 = vshll.u32 %v5602_v46, 16  ;;  %v6237_v22 = vcombine.low %v6229_v38, %v6236_v49  ;;  %v1357_v61 = vcombine.low %v6236_v49, %v1356_v43  ;;  %v2828_v41 = vshrl.u32 %v5602_v46, 16  ;;  %v28478_v28 = vld [vmem:[#allocation7 + $0x1a0] sm:$0xff]  }
  0xf8   : > { %26105 = vst.sshfl [vmem:[#allocation2 + $0x174] sm:$0x33 pattern:$0x75316420] %v6213_v48  ;;  %v4265_v44 = vcombine.high %v25994_v1, %v25994_v1  ;;  %v2818_v3 = vsel %vm29078_vm14, %v2811_v45, %v2816_v54  ;;  %v2833_v0 = vshll.u32 %v5603_v17, 16  ;;  %v2836_v2 = vshrl.u32 %v5603_v17, 16  ;;  %27742 = vmatpush3.bf16.msra.mxu1 %v28478_v28 }
  0xf9   : > { %v28418_v13 = vld [vmem:[#allocation2 + $0x16c] ss:$36 sps:$4 sm:$0xff]   ;;  %25816 = vst.sshfl [vmem:[#allocation2 + $0x1b0] sm:$0x33 pattern:$0x75316420] %v1333_v53  ;;  %v2827_v57 = vsel %vm29078_vm14, %v2820_v40, %v2825_v62  ;;  %v4272_v23 = vrot.slane %v25994_v1, %v29027_v39  ;;  %v4906_v24 = vcombine.low %v29608_v52, %v2115_v10  ;;  %v4907_v34 = vcombine.low %v29611_v59, %v29623_v50 }
  0xfa   : > { %16432 = vmatprep.mubr.bf16.mxu0 %v28418_v13  ;;  %26106 = vst.sshfl [vmem:[#allocation2 + $0x198] sm:$0x33 pattern:$0x75316420] %v6237_v22  ;;  %v2841_v4 = vshll.u32 %v5604_v21, 16  ;;  %v2844_v5 = vshrl.u32 %v5604_v21, 16  ;;  %v2835_v37 = vsel %vm29078_vm14, %v2828_v41, %v2833_v0  ;;  %v4279_v17 = vrot.slane %v4265_v44, %v29027_v39 }
  0xfb   : > { %25817 = vst.sshfl [vmem:[#allocation2 + $0x1d4] sm:$0x33 pattern:$0x75316420] %v1357_v61  ;;  %v2849_v9 = vshll.u32 %v29608_v52, 16  ;;  %v2852_v11 = vshrl.u32 %v29608_v52, 16  ;;  %16433 = vmatmul.mubr.bf16.gmra.mrb[20].mxu0 %v28421_v60  ;;  %v3506_v7 = vcombine.low %v2818_v3, %v2835_v37  ;;  %v26011_v33 = vcombine.high %v29537_v12, %v4272_v23 }
  0xfc   : > { %v2857_v58 = vshll.u32 %v29611_v59, 16  ;;  %v2860_v14 = vshrl.u32 %v29611_v59, 16  ;;  %v2865_v25 = vshll.u32 %v2115_v10, 16  ;;  %v2843_v55 = vsel %vm29078_vm14, %v2836_v2, %v2841_v4  ;;  %v28425_v42 = vld [vmem:[#allocation2 + $0x170] ss:$36 sps:$4 sm:$0xff]   ;;  %v28480_v13 = vld [vmem:[#allocation7 + $0x1e8] sm:$0xff]  }
  0xfd   : > { %v2851_v31 = vsel %vm29078_vm14, %v2844_v5, %v2849_v9  ;;  %v2868_v16 = vshrl.u32 %v2115_v10, 16  ;;  %v2873_v6 = vshll.u32 %v29623_v50, 16  ;;  %v3507_v56 = vcombine.low %v2827_v57, %v2843_v55  ;;  %v29660_v52 = vld.sshfl [vmem:[%s28996_s14 + $0x48] sm:$0x33 pattern:$0x75316420]  ;;  %27743 = vmatprep.subr.bf16.mxu1 %v28480_v13 }
  0xfe   : > { %v2859_v15 = vsel %vm29078_vm14, %v2852_v11, %v2857_v58  ;;  %v2867_v63 = vsel %vm29078_vm14, %v2860_v14, %v2865_v25  ;;  %v3514_v26 = vrot.slane %v3506_v7, %v29042_v51  ;;  %v4281_v30 = vcombine.high %v4279_v17, %v4279_v17  ;;  %v25846_v10 = vld.sshfl [vmem:[%s28996_s14 + $0x44] sm:$0x33 pattern:$0x75316420]  ;;  %v28477_v59 = vld [vmem:[#allocation7 + $0x178] sm:$0xff]   ;;  %v28482_v44 = vld [vmem:[#allocation7 + $0x1a8] sm:$0xff]  }
  0xff   : > { %v2875_v36 = vsel %vm29078_vm14, %v2868_v16, %v2873_v6  ;;  %v3530_v46 = vcombine.low %v2851_v31, %v2867_v63  ;;  %v3521_v18 = vrot.slane %v3507_v56, %v29042_v51  ;;  %v4914_v1 = vrot.slane %v4906_v24, %v29042_v51  ;;  %v28479_v50 = vld [vmem:[#allocation7 + $0x138] sm:$0xff]   ;;  %27653 = vmatprep.subr.bf16.mxu0 %v28477_v59  ;;  %v28486_v55 = vld [vmem:[#allocation7 + $0x1f0] sm:$0xff]  }
 0x100   : > { %v3531_v21 = vcombine.low %v2859_v15, %v2875_v36  ;;  %v4883_v47 = vcombine.low %v4279_v17, %v4281_v30  ;;  %v4890_v48 = vrot.slane %v26011_v33, %v29042_v51  ;;  %v4921_v12 = vrot.slane %v4907_v34, %v29042_v51  ;;  %27654 = vmatpush3.bf16.msra.mxu0 %v28479_v50  ;;  %v28487_v15 = vld [vmem:[#allocation7 + $0x1b0] sm:$0xff]  }
 0x101   : > { %v3538_v19 = vrot.slane %v3530_v46, %v29042_v51  ;;  %v28423_v38 = vld [vmem:[#allocation2 + $0x174] ss:$36 sps:$4 sm:$0xff]   ;;  %v3522_v43 = vcombine.low %v3514_v26, %v3521_v18  ;;  %v5635_v49 = vcombine.high %v26081_v20, %v26081_v20  ;;  %v5642_v54 = vrot.slane %v26081_v20, %v29027_v39  ;;  %27744 = vmatpush3.bf16.msra.mxu1 %v28482_v44  ;;  %v28488_v46 = vld [vmem:[#allocation7 + $0x1f8] sm:$0xff]  }
 0x102   : > { %v3545_v45 = vrot.slane %v3531_v21, %v29042_v51  ;;  %16568 = vmatprep.mubr.bf16.mxu1 %v28423_v38  ;;  %v5659_v40 = vcombine.high %v26082_v35, %v26082_v35  ;;  %v5666_v62 = vrot.slane %v26082_v35, %v29027_v39  ;;  %v4897_v60 = vrot.slane %v4883_v47, %v29042_v51  ;;  %v28428_v30 = vld [vmem:[#allocation2 + $0x1b0] ss:$36 sps:$4 sm:$0xff]  }
 0x103   : > { %25967 = vst.sshfl [vmem:[#allocation2 + $0x1b4] sm:$0x33 pattern:$0x75316420] %v3522_v43  ;;  %16569 = vmatmul.mubr.bf16.gmra.mrb[20].mxu1 %v28425_v42  ;;  %v4922_v22 = vcombine.low %v4914_v1, %v4921_v12  ;;  %v29669_v61 = vrot.slane %v5635_v49, %v29027_v39  ;;  %v29673_v41 = vrot.slane %v29660_v52, %v29027_v39  ;;  %v2877_v26 = vshrl.u32 %v5642_v54, 16 }
 0x104   : > { %v3546_v53 = vcombine.low %v3538_v19, %v3545_v45  ;;  %v29675_v3 = vcombine.high %v5642_v54, %v5642_v54  ;;  %v5673_v57 = vrot.slane %v5659_v40, %v29027_v39  ;;  %v5674_v0 = vcombine.high %v5666_v62, %v5666_v62  ;;  %27745 = vmatprep.subr.bf16.mxu1 %v28486_v55  ;;  %v25996_v1 = vld.sshfl [vmem:[%s28996_s14 + $0x40] sm:$0x32 pattern:$0x75316420] }
 0x105   : > { %v2148_v2 = vcombine.high %v25846_v10, %v25846_v10  ;;  %v4898_v4 = vcombine.low %v4890_v48, %v4897_v60  ;;  %26027 = vst.sshfl [vmem:[#allocation2 + $0x1dc] sm:$0x33 pattern:$0x75316420] %v4922_v22  ;;  %v5651_v5 = vcombine.high %v29669_v61, %v29669_v61  ;;  %v6245_v9 = vcombine.low %v29602_v27, %v29669_v61 }
 0x106   : > { %25968 = vst.sshfl [vmem:[#allocation2 + $0x1d8] sm:$0x33 pattern:$0x75316420] %v3546_v53  ;;  %v29683_v11 = vrot.slane %v25846_v10, %v29027_v39  ;;  %v6246_v37 = vcombine.low %v5642_v54, %v29675_v3  ;;  %v6270_v58 = vcombine.low %v5666_v62, %v5674_v0  ;;  %v1390_v14 = vcombine.low %v5673_v57, %v29673_v41 }
 0x107   : > { %v29688_v25 = vrot.slane %v2148_v2, %v29027_v39  ;;  %26026 = vst.sshfl [vmem:[#allocation2 + $0x1b8] sm:$0x33 pattern:$0x75316420] %v4898_v4  ;;  %v6253_v31 = vrot.slane %v6245_v9, %v29042_v51  ;;  %v6269_v16 = vcombine.low %v5651_v5, %v5673_v57  ;;  %v1366_v27 = vcombine.low %v29669_v61, %v5651_v5 }
 0x108   : > { %v29694_v6 = vcombine.high %v29683_v11, %v29683_v11  ;;  %v6260_v63 = vrot.slane %v6246_v37, %v29042_v51  ;;  %v6284_v7 = vrot.slane %v6270_v58, %v29042_v51  ;;  %v1404_v56 = vrot.slane %v1390_v14, %v29042_v51  ;;  %27746 = vmatpush3.bf16.msra.mxu1 %v28487_v15  ;;  %v26084_v4 = vld.sshfl [vmem:[%s28996_s14 + $0x4c] sm:$0x13 pattern:$0x75316420]  ;;  %v28492_v14 = vld [vmem:[#allocation7 + $0x1b8] sm:$0xff]  }
 0x109   : > { %v29701_v36 = vcombine.high %v29688_v25, %v29688_v25  ;;  %v6277_v23 = vrot.slane %v6269_v16, %v29042_v51  ;;  %v1380_v17 = vrot.slane %v1366_v27, %v29042_v51  ;;  %v2172_v20 = vcombine.high %v29660_v52, %v29660_v52  ;;  %v29718_v52 = vld.sshfl [vmem:[%s28996_s14 + $0x48] sm:$0x32 pattern:$0x75316420]  ;;  %27747 = vmatprep.subr.bf16.mxu1 %v28488_v46 }
 0x10a   : > { %v6261_v18 = vcombine.low %v6253_v31, %v6260_v63  ;;  %v1405_v21 = vcombine.low %v6284_v7, %v1404_v56  ;;  %v2882_v24 = vshll.u32 %v29669_v61, 16  ;;  %v2885_v29 = vshrl.u32 %v29669_v61, 16  ;;  %v26085_v15 = vld.sshfl [vmem:[%s28996_s14 + $0x50] sm:$0x33 pattern:$0x75316420] }
 0x10b   : > { %v6285_v33 = vcombine.low %v6277_v23, %v6284_v7  ;;  %v1381_v34 = vcombine.low %v6260_v63, %v1380_v17  ;;  %v29710_v35 = vrot.slane %v2172_v20, %v29027_v39  ;;  %v2890_v28 = vshll.u32 %v29675_v3, 16 }
 0x10c   : > { %26107 = vst.sshfl [vmem:[#allocation2 + $0x1bc] sm:$0x33 pattern:$0x75316420] %v6261_v18  ;;  %v2884_v38 = vsel %vm29078_vm14, %v2877_v26, %v2882_v24  ;;  %v2893_v42 = vshrl.u32 %v29675_v3, 16  ;;  %v2898_v43 = vshll.u32 %v5651_v5, 16  ;;  %v4313_v57 = vcombine.high %v25996_v1, %v25996_v1  ;;  %27748 = vmatpush3.bf16.msra.mxu1 %v28492_v14 }
 0x10d   : > { %v28426_v19 = vld [vmem:[#allocation2 + $0x1b4] ss:$36 sps:$4 sm:$0xff]   ;;  %25819 = vst.sshfl [vmem:[#allocation2 + $0x21c] sm:$0x33 pattern:$0x75316420] %v1405_v21  ;;  %v2892_v47 = vsel %vm29078_vm14, %v2885_v29, %v2890_v28  ;;  %v4320_v0 = vrot.slane %v25996_v1, %v29027_v39  ;;  %v4361_v2 = vcombine.high %v29718_v52, %v29718_v52  ;;  %v4954_v23 = vcombine.low %v29688_v25, %v29701_v36 }
 0x10e   : > { %v2901_v45 = vshrl.u32 %v5651_v5, 16  ;;  %16440 = vmatprep.mubr.bf16.mxu0 %v28426_v19  ;;  %26108 = vst.sshfl [vmem:[#allocation2 + $0x1e0] sm:$0x33 pattern:$0x75316420] %v6285_v33  ;;  %v2906_v48 = vshll.u32 %v29683_v11, 16  ;;  %v2900_v10 = vsel %vm29078_vm14, %v2893_v42, %v2898_v43  ;;  %v4327_v31 = vrot.slane %v4313_v57, %v29027_v39 }
 0x10f   : > { %25818 = vst.sshfl [vmem:[#allocation2 + $0x1f8] sm:$0x33 pattern:$0x75316420] %v1381_v34  ;;  %v2909_v12 = vshrl.u32 %v29683_v11, 16  ;;  %v2914_v49 = vshll.u32 %v29688_v25, 16  ;;  %16441 = vmatmul.mubr.bf16.gmra.mrb[24].mxu0 %v28428_v30  ;;  %v3554_v61 = vcombine.low %v2884_v38, %v2900_v10  ;;  %v4328_v16 = vcombine.high %v4320_v0, %v4320_v0 }
 0x110   : > { %v2917_v59 = vshrl.u32 %v29688_v25, 16  ;;  %v2922_v50 = vshll.u32 %v29694_v6, 16  ;;  %v2925_v53 = vshrl.u32 %v29694_v6, 16  ;;  %v2908_v54 = vsel %vm29078_vm14, %v2901_v45, %v2906_v48  ;;  %v28431_v7 = vld [vmem:[#allocation2 + $0x1b8] ss:$36 sps:$4 sm:$0xff]  }
 0x111   : > { %v2916_v40 = vsel %vm29078_vm14, %v2909_v12, %v2914_v49  ;;  %v2930_v62 = vshll.u32 %v29701_v36, 16  ;;  %v2934_v13 = vshrl.u32 %v29673_v41, 16  ;;  %v2939_v22 = vshll.u32 %v29710_v35, 16 }
 0x112   : > { %v2924_v60 = vsel %vm29078_vm14, %v2917_v59, %v2922_v50  ;;  %v3555_v44 = vcombine.low %v2892_v47, %v2908_v54  ;;  %v3562_v9 = vrot.slane %v3554_v61, %v29042_v51  ;;  %v29751_v27 = vrot.slane %v4361_v2, %v29027_v39  ;;  %v25848_v1 = vld.sshfl [vmem:[%s28996_s14 + $0x4c] sm:$0x33 pattern:$0x75316420] }
 0x113   : > { %v2932_v3 = vsel %vm29078_vm14, %v2925_v53, %v2930_v62  ;;  %v2941_v5 = vsel %vm29078_vm14, %v2934_v13, %v2939_v22  ;;  %v29759_v17 = vcombine.high %v29673_v41, %v29673_v41  ;;  %v4329_v26 = vcombine.high %v4327_v31, %v4327_v31 }
 0x114   : > { %v3569_v37 = vrot.slane %v3555_v44, %v29042_v51  ;;  %v3578_v58 = vcombine.low %v2916_v40, %v2932_v3  ;;  %v3579_v55 = vcombine.low %v2924_v60, %v2941_v5  ;;  %v4931_v18 = vcombine.low %v4328_v16, %v29683_v11 }
 0x115   : > { %v28429_v63 = vld [vmem:[#allocation2 + $0x1bc] ss:$36 sps:$4 sm:$0xff]   ;;  %v4955_v21 = vcombine.low %v29694_v6, %v29751_v27  ;;  %v4962_v24 = vrot.slane %v4954_v23, %v29042_v51  ;;  %v29768_v25 = vcombine.high %v29710_v35, %v29710_v35  ;;  %v5706_v36 = vcombine.high %v26084_v4, %v26084_v4 }
 0x116   : > { %v3570_v56 = vcombine.low %v3562_v9, %v3569_v37  ;;  %v3586_v46 = vrot.slane %v3578_v58, %v29042_v51  ;;  %v3593_v20 = vrot.slane %v3579_v55, %v29042_v51  ;;  %16576 = vmatprep.mubr.bf16.mxu1 %v28429_v63  ;;  %v5713_v29 = vrot.slane %v26084_v4, %v29027_v39  ;;  %v28436_v4 = vld [vmem:[#allocation2 + $0x1f8] ss:$36 sps:$4 sm:$0xff]  }
 0x117   : > { %16577 = vmatmul.mubr.bf16.gmra.mrb[24].mxu1 %v28431_v7  ;;  %v4930_v30 = vcombine.low %v4327_v31, %v4329_v26  ;;  %v4945_v11 = vrot.slane %v4931_v18, %v29042_v51  ;;  %v4969_v33 = vrot.slane %v4955_v21, %v29042_v51  ;;  %v5720_v6 = vrot.slane %v5706_v36, %v29027_v39  ;;  %v26000_v21 = vld.sshfl [vmem:[%s28996_s14 + $0x50] sm:$0x32 pattern:$0x75316420] }
 0x118   : > { %25969 = vst.sshfl [vmem:[#allocation2 + $0x1fc] sm:$0x33 pattern:$0x75316420] %v3570_v56  ;;  %v3594_v19 = vcombine.low %v3586_v46, %v3593_v20  ;;  %v5721_v34 = vcombine.high %v5713_v29, %v5713_v29  ;;  %v29775_v28 = vrot.slane %v26085_v15, %v29027_v39  ;;  %v6293_v38 = vcombine.low %v29673_v41, %v29759_v17 }
 0x119   : > { %v4938_v42 = vrot.slane %v4930_v30, %v29042_v51  ;;  %v4970_v43 = vcombine.low %v4962_v24, %v4969_v33  ;;  %v6294_v45 = vcombine.low %v29710_v35, %v29768_v25  ;;  %v848_v59 = vcombine.high %v26085_v15, %v26085_v15 }
 0x11a   : > { %25970 = vst.sshfl [vmem:[#allocation2 + $0x220] sm:$0x33 pattern:$0x75316420] %v3594_v19  ;;  %v6301_v47 = vrot.slane %v6293_v38, %v29042_v51  ;;  %v6317_v48 = vcombine.low %v5713_v29, %v5721_v34  ;;  %v6318_v12 = vcombine.low %v5720_v6, %v29775_v28  ;;  %v1414_v41 = vcombine.low %v29759_v17, %v5713_v29 }
 0x11b   : > { %v4946_v49 = vcombine.low %v4938_v42, %v4945_v11  ;;  %26029 = vst.sshfl [vmem:[#allocation2 + $0x224] sm:$0x33 pattern:$0x75316420] %v4970_v43  ;;  %v6308_v10 = vrot.slane %v6294_v45, %v29042_v51  ;;  %v29790_v40 = vrot.slane %v848_v59, %v29027_v39  ;;  %v2196_v13 = vcombine.high %v25848_v1, %v25848_v1 }
 0x11c   : > { %v6325_v50 = vrot.slane %v6317_v48, %v29042_v51  ;;  %v6332_v53 = vrot.slane %v6318_v12, %v29042_v51  ;;  %v1428_v62 = vrot.slane %v1414_v41, %v29042_v51  ;;  %v2203_v22 = vrot.slane %v25848_v1, %v29027_v39  ;;  %v26086_v41 = vld.sshfl [vmem:[%s28996_s14 + $0x54] sm:$0x13 pattern:$0x75316420] }
 0x11d   : > { %26028 = vst.sshfl [vmem:[#allocation2 + $0x200] sm:$0x33 pattern:$0x75316420] %v4946_v49  ;;  %v6309_v54 = vcombine.low %v6301_v47, %v6308_v10  ;;  %v29796_v61 = vcombine.high %v29775_v28, %v29775_v28  ;;  %v1438_v44 = vcombine.low %v5721_v34, %v29790_v40  ;;  %v29800_v3 = vrot.slane %v2196_v13, %v29027_v39 }
 0x11e   : > { %v6333_v60 = vcombine.low %v6325_v50, %v6332_v53  ;;  %v2942_v57 = vshrl.u32 %v29710_v35, 16  ;;  %v2947_v0 = vshll.u32 %v29759_v17, 16  ;;  %v1429_v5 = vcombine.low %v6308_v10, %v1428_v62 }
 0x11f   : > { %26109 = vst.sshfl [vmem:[#allocation2 + $0x204] sm:$0x33 pattern:$0x75316420] %v6309_v54  ;;  %v29804_v9 = vcombine.high %v2203_v22, %v2203_v22  ;;  %v2950_v37 = vshrl.u32 %v29759_v17, 16  ;;  %v4368_v58 = vrot.slane %v29718_v52, %v29027_v39  ;;  %v1452_v14 = vrot.slane %v1438_v44, %v29042_v51 }
 0x120   : > { %26110 = vst.sshfl [vmem:[#allocation2 + $0x228] sm:$0x33 pattern:$0x75316420] %v6333_v60  ;;  %v2212_v55 = vcombine.high %v29800_v3, %v29800_v3  ;;  %v2949_v35 = vsel %vm29078_vm14, %v2942_v57, %v2947_v0  ;;  %v2955_v31 = vshll.u32 %v29768_v25, 16  ;;  %v2958_v16 = vshrl.u32 %v29768_v25, 16 }
 0x121   : > { %v28434_v2 = vld [vmem:[#allocation2 + $0x1fc] ss:$36 sps:$4 sm:$0xff]   ;;  %25820 = vst.sshfl [vmem:[#allocation2 + $0x240] sm:$0x33 pattern:$0x75316420] %v1429_v5  ;;  %v1453_v52 = vcombine.low %v6332_v53, %v1452_v14  ;;  %v4376_v42 = vcombine.high %v4368_v58, %v4368_v58  ;;  %v4409_v43 = vcombine.high %v26000_v21, %v26000_v21  ;;  %v4416_v49 = vrot.slane %v26000_v21, %v29027_v39 }
 0x122   : > { %16448 = vmatprep.mubr.bf16.mxu0 %v28434_v2  ;;  %v2963_v15 = vshll.u32 %v2203_v22, 16  ;;  %v2966_v63 = vshrl.u32 %v2203_v22, 16  ;;  %v2971_v7 = vshll.u32 %v29800_v3, 16  ;;  %v2957_v56 = vsel %vm29078_vm14, %v2950_v37, %v2955_v31 }
 0x123   : > { %16449 = vmatmul.mubr.bf16.gmra.mrb[28].mxu0 %v28436_v4  ;;  %v2974_v46 = vshrl.u32 %v29800_v3, 16  ;;  %v2979_v23 = vshll.u32 %v29804_v9, 16  ;;  %v2982_v26 = vshrl.u32 %v29804_v9, 16  ;;  %v2987_v18 = vshll.u32 %v2212_v55, 16 }
 0x124   : > { %v2965_v17 = vsel %vm29078_vm14, %v2958_v16, %v2963_v15  ;;  %v2973_v20 = vsel %vm29078_vm14, %v2966_v63, %v2971_v7  ;;  %25821 = vst.sshfl [vmem:[#allocation2 + $0x264] sm:$0x33 pattern:$0x75316420] %v1453_v52  ;;  %v2991_v25 = vshrl.u32 %v29775_v28, 16  ;;  %v2996_v36 = vshll.u32 %v29790_v40, 16 }
 0x125   : > { %v2981_v24 = vsel %vm29078_vm14, %v2974_v46, %v2979_v23  ;;  %v2999_v29 = vshrl.u32 %v29790_v40, 16  ;;  %v2989_v19 = vsel %vm29078_vm14, %v2982_v26, %v2987_v18  ;;  %v3004_v30 = vshll.u32 %v29796_v61, 16  ;;  %v28439_v34 = vld [vmem:[#allocation2 + $0x200] ss:$36 sps:$4 sm:$0xff]  }
 0x126   : > { %v3602_v11 = vcombine.low %v2949_v35, %v2965_v17  ;;  %v3603_v33 = vcombine.low %v2957_v56, %v2973_v20  ;;  %v2998_v38 = vsel %vm29078_vm14, %v2991_v25, %v2996_v36  ;;  %v4377_v28 = vcombine.high %v29751_v27, %v29751_v27  ;;  %v26087_v54 = vld.sshfl [vmem:[%s28996_s14 + $0x58] sm:$0x33 pattern:$0x75316420] }
 0x127   : > { %v28437_v6 = vld [vmem:[#allocation2 + $0x204] ss:$36 sps:$4 sm:$0xff]   ;;  %v3006_v45 = vsel %vm29078_vm14, %v2999_v29, %v3004_v30  ;;  %v3626_v48 = vcombine.low %v2981_v24, %v2998_v38  ;;  %v29845_v10 = vrot.slane %v4409_v43, %v29027_v39  ;;  %v4978_v59 = vcombine.low %v4376_v42, %v2203_v22 }
 0x128   : > { %v3610_v1 = vrot.slane %v3602_v11, %v29042_v51  ;;  %v3617_v47 = vrot.slane %v3603_v33, %v29042_v51  ;;  %16584 = vmatprep.mubr.bf16.mxu1 %v28437_v6  ;;  %v3627_v12 = vcombine.low %v2989_v19, %v3006_v45  ;;  %v4979_v53 = vcombine.low %v4377_v28, %v29800_v3  ;;  %v25850_v14 = vld.sshfl [vmem:[%s28996_s14 + $0x54] sm:$0x33 pattern:$0x75316420] }
 0x129   : > { %16585 = vmatmul.mubr.bf16.gmra.mrb[28].mxu1 %v28439_v34  ;;  %v3634_v50 = vrot.slane %v3626_v48, %v29042_v51  ;;  %v4986_v13 = vrot.slane %v4978_v59, %v29042_v51  ;;  %v5002_v60 = vcombine.low %v29804_v9, %v29845_v10  ;;  %v26012_v44 = vcombine.high %v29800_v3, %v4416_v49  ;;  %v26002_v59 = vld.sshfl [vmem:[%s28996_s14 + $0x58] sm:$0x32 pattern:$0x75316420] }
 0x12a   : > { %v3618_v27 = vcombine.low %v3610_v1, %v3617_v47  ;;  %v3641_v62 = vrot.slane %v3627_v12, %v29042_v51  ;;  %v4993_v22 = vrot.slane %v4979_v53, %v29042_v51  ;;  %v5745_v57 = vcombine.high %v29790_v40, %v29790_v40 }
 0x12b   : > { %v5753_v0 = vcombine.high %v26086_v41, %v26086_v41  ;;  %v5760_v2 = vrot.slane %v26086_v41, %v29027_v39  ;;  %v5010_v5 = vrot.slane %v5002_v60, %v29042_v51  ;;  %v5017_v37 = vrot.slane %v26012_v44, %v29042_v51  ;;  %v28442_v28 = vld [vmem:[#allocation2 + $0x240] ss:$36 sps:$4 sm:$0xff]  }
 0x12c   : > { %25971 = vst.sshfl [vmem:[#allocation2 + $0x244] sm:$0x33 pattern:$0x75316420] %v3618_v27  ;;  %v3642_v4 = vcombine.low %v3634_v50, %v3641_v62  ;;  %v5776_v58 = vcombine.high %v26087_v54, %v26087_v54  ;;  %v4994_v55 = vcombine.low %v4986_v13, %v4993_v22  ;;  %v5783_v35 = vrot.slane %v26087_v54, %v29027_v39 }
 0x12d   : > { %v5767_v9 = vrot.slane %v5753_v0, %v29027_v39  ;;  %v5768_v3 = vcombine.high %v5760_v2, %v5760_v2  ;;  %v5018_v31 = vcombine.low %v5010_v5, %v5017_v37  ;;  %v6341_v15 = vcombine.low %v29790_v40, %v5745_v57 }
 0x12e   : > { %25972 = vst.sshfl [vmem:[#allocation2 + $0x268] sm:$0x33 pattern:$0x75316420] %v3642_v4  ;;  %v5790_v16 = vrot.slane %v5776_v58, %v29027_v39  ;;  %v6342_v63 = vcombine.low %v29796_v61, %v5760_v2  ;;  %v29868_v52 = vcombine.high %v5783_v35, %v5783_v35  ;;  %v2244_v56 = vcombine.high %v25850_v14, %v25850_v14 }
 0x12f   : > { %26030 = vst.sshfl [vmem:[#allocation2 + $0x248] sm:$0x33 pattern:$0x75316420] %v4994_v55  ;;  %v6365_v7 = vcombine.low %v5767_v9, %v5783_v35  ;;  %v6349_v46 = vrot.slane %v6341_v15, %v29042_v51  ;;  %v29873_v20 = vrot.slane %v25850_v14, %v29027_v39  ;;  %v1462_v18 = vcombine.low %v5745_v57, %v5767_v9 }
 0x130   : > { %26031 = vst.sshfl [vmem:[#allocation2 + $0x26c] sm:$0x33 pattern:$0x75316420] %v5018_v31  ;;  %v6356_v23 = vrot.slane %v6342_v63, %v29042_v51  ;;  %v6366_v17 = vcombine.low %v5768_v3, %v5790_v16  ;;  %v1486_v40 = vcombine.low %v5783_v35, %v29868_v52  ;;  %v29878_v21 = vrot.slane %v2244_v56, %v29027_v39 }
 0x131   : > { %v6373_v26 = vrot.slane %v6365_v7, %v29042_v51  ;;  %v29883_v36 = vcombine.high %v29873_v20, %v29873_v20  ;;  %v1476_v29 = vrot.slane %v1462_v18, %v29042_v51  ;;  %v29889_v11 = vcombine.high %v5790_v16, %v5790_v16  ;;  %v26088_v9 = vld.sshfl [vmem:[%s28996_s14 + $0x5c] sm:$0x13 pattern:$0x75316420] }
 0x132   : > { %v6357_v24 = vcombine.low %v6349_v46, %v6356_v23  ;;  %v6380_v25 = vrot.slane %v6366_v17, %v29042_v51  ;;  %v1500_v19 = vrot.slane %v1486_v40, %v29042_v51  ;;  %v2260_v30 = vcombine.high %v29878_v21, %v29878_v21  ;;  %v26089_v15 = vld.sshfl [vmem:[%s28996_s14 + $0x60] sm:$0x33 pattern:$0x75316420] }
 0x133   : > { %v3007_v6 = vshrl.u32 %v29796_v61, 16  ;;  %v3012_v34 = vshll.u32 %v5745_v57, 16  ;;  %v3015_v38 = vshrl.u32 %v5745_v57, 16  ;;  %v1477_v43 = vcombine.low %v6356_v23, %v1476_v29 }
 0x134   : > { %v6381_v33 = vcombine.low %v6373_v26, %v6380_v25  ;;  %26111 = vst.sshfl [vmem:[#allocation2 + $0x24c] sm:$0x33 pattern:$0x75316420] %v6357_v24  ;;  %v1501_v45 = vcombine.low %v6380_v25, %v1500_v19  ;;  %v3020_v1 = vshll.u32 %v29873_v20, 16  ;;  %v4425_v47 = vcombine.high %v29845_v10, %v29845_v10 }
 0x135   : > { %v28440_v42 = vld [vmem:[#allocation2 + $0x244] ss:$36 sps:$4 sm:$0xff]   ;;  %v3014_v48 = vsel %vm29078_vm14, %v3007_v6, %v3012_v34  ;;  %v3023_v12 = vshrl.u32 %v29873_v20, 16  ;;  %v3028_v49 = vshll.u32 %v29878_v21, 16  ;;  %v3031_v61 = vshrl.u32 %v29878_v21, 16 }
 0x136   : > { %26112 = vst.sshfl [vmem:[#allocation2 + $0x270] sm:$0x33 pattern:$0x75316420] %v6381_v33  ;;  %16456 = vmatprep.mubr.bf16.mxu0 %v28440_v42  ;;  %v3022_v41 = vsel %vm29078_vm14, %v3015_v38, %v3020_v1  ;;  %v3036_v27 = vshll.u32 %v29883_v36, 16  ;;  %v3039_v10 = vshrl.u32 %v29883_v36, 16  ;;  %v4457_v58 = vcombine.high %v26002_v59, %v26002_v59 }
 0x137   : > { %25822 = vst.sshfl [vmem:[#allocation2 + $0x288] sm:$0x33 pattern:$0x75316420] %v1477_v43  ;;  %v3044_v50 = vshll.u32 %v2260_v30, 16  ;;  %16457 = vmatmul.mubr.bf16.gmra.mrb[32].mxu0 %v28442_v28  ;;  %v3030_v53 = vsel %vm29078_vm14, %v3023_v12, %v3028_v49  ;;  %v3048_v54 = vshrl.u32 %v5783_v35, 16  ;;  %v4464_v14 = vrot.slane %v26002_v59, %v29027_v39 }
 0x138   : > { %25823 = vst.sshfl [vmem:[#allocation2 + $0x2ac] sm:$0x33 pattern:$0x75316420] %v1501_v45  ;;  %v3053_v62 = vshll.u32 %v5790_v16, 16  ;;  %v3056_v13 = vshrl.u32 %v5790_v16, 16  ;;  %v3038_v60 = vsel %vm29078_vm14, %v3031_v61, %v3036_v27  ;;  %v3650_v4 = vcombine.low %v3014_v48, %v3030_v53 }
 0x139   : > { %v3046_v44 = vsel %vm29078_vm14, %v3039_v10, %v3044_v50  ;;  %v3061_v22 = vshll.u32 %v29868_v52, 16  ;;  %v3064_v57 = vshrl.u32 %v29868_v52, 16  ;;  %v3069_v2 = vshll.u32 %v29889_v11, 16  ;;  %v28446_v7 = vld [vmem:[#allocation2 + $0x248] ss:$36 sps:$4 sm:$0xff]  }
 0x13a   : > { %v3055_v0 = vsel %vm29078_vm14, %v3048_v54, %v3053_v62  ;;  %v3651_v5 = vcombine.low %v3022_v41, %v3038_v60  ;;  %v5026_v55 = vcombine.low %v4425_v47, %v29878_v21  ;;  %v3658_v35 = vrot.slane %v3650_v4, %v29042_v51  ;;  %v25852_v33 = vld.sshfl [vmem:[%s28996_s14 + $0x5c] sm:$0x33 pattern:$0x75316420] }
 0x13b   : > { %v3063_v37 = vsel %vm29078_vm14, %v3056_v13, %v3061_v22  ;;  %v3071_v3 = vsel %vm29078_vm14, %v3064_v57, %v3069_v2  ;;  %v4471_v46 = vrot.slane %v4457_v58, %v29027_v39  ;;  %v5027_v23 = vcombine.low %v29873_v20, %v29883_v36  ;;  %v29963_v50 = vld.sshfl [vmem:[%s28996_s14 + $0x64] sm:$0x33 pattern:$0x75316420] }
 0x13c   : > { %v3665_v31 = vrot.slane %v3651_v5, %v29042_v51  ;;  %v3674_v16 = vcombine.low %v3046_v44, %v3063_v37  ;;  %v3675_v56 = vcombine.low %v3055_v0, %v3071_v3  ;;  %v5034_v17 = vrot.slane %v5026_v55, %v29042_v51  ;;  %v26004_v0 = vld.sshfl [vmem:[%s28996_s14 + $0x60] sm:$0x32 pattern:$0x75316420] }
 0x13d   : > { %v28443_v63 = vld [vmem:[#allocation2 + $0x24c] ss:$36 sps:$4 sm:$0xff]   ;;  %v26013_v40 = vcombine.high %v29878_v21, %v4464_v14  ;;  %v4473_v25 = vcombine.high %v4471_v46, %v4471_v46  ;;  %v5041_v29 = vrot.slane %v5027_v23, %v29042_v51  ;;  %v5800_v30 = vcombine.high %v26088_v9, %v26088_v9 }
 0x13e   : > { %v3666_v26 = vcombine.low %v3658_v35, %v3665_v31  ;;  %v3682_v18 = vrot.slane %v3674_v16, %v29042_v51  ;;  %16592 = vmatprep.mubr.bf16.mxu1 %v28443_v63  ;;  %v3689_v24 = vrot.slane %v3675_v56, %v29042_v51  ;;  %v5807_v20 = vrot.slane %v26088_v9, %v29027_v39 }
 0x13f   : > { %16593 = vmatmul.mubr.bf16.gmra.mrb[32].mxu1 %v28446_v7  ;;  %v5058_v19 = vrot.slane %v26013_v40, %v29042_v51  ;;  %v5823_v36 = vcombine.high %v26089_v15, %v26089_v15  ;;  %v5042_v34 = vcombine.low %v5034_v17, %v5041_v29  ;;  %v5051_v38 = vcombine.low %v4471_v46, %v4473_v25  ;;  %v28450_v35 = vld [vmem:[#allocation2 + $0x288] ss:$36 sps:$4 sm:$0xff]  }
 0x140   : > { %25973 = vst.sshfl [vmem:[#allocation2 + $0x28c] sm:$0x33 pattern:$0x75316420] %v3666_v26  ;;  %v3690_v6 = vcombine.low %v3682_v18, %v3689_v24  ;;  %v29938_v21 = vrot.slane %v26089_v15, %v29027_v39  ;;  %v5814_v42 = vrot.slane %v5800_v30, %v29027_v39  ;;  %v5815_v28 = vcombine.high %v5807_v20, %v5807_v20 }
 0x141   : > { %v29942_v43 = vrot.slane %v5823_v36, %v29027_v39  ;;  %v6389_v45 = vcombine.low %v29868_v52, %v5807_v20  ;;  %v5065_v1 = vrot.slane %v5051_v38, %v29042_v51  ;;  %26032 = vst.sshfl [vmem:[#allocation2 + $0x290] sm:$0x33 pattern:$0x75316420] %v5042_v34  ;;  %v2292_v48 = vcombine.high %v25852_v33, %v25852_v33 }
 0x142   : > { %25974 = vst.sshfl [vmem:[#allocation2 + $0x2b0] sm:$0x33 pattern:$0x75316420] %v3690_v6  ;;  %v29948_v47 = vcombine.high %v29938_v21, %v29938_v21  ;;  %v29951_v12 = vrot.slane %v25852_v33, %v29027_v39  ;;  %v6390_v49 = vcombine.low %v29889_v11, %v5814_v42  ;;  %v1510_v10 = vcombine.low %v5807_v20, %v5815_v28 }
 0x143   : > { %v6397_v61 = vrot.slane %v6389_v45, %v29042_v51  ;;  %v6413_v59 = vcombine.low %v5815_v28, %v29942_v43  ;;  %v29958_v52 = vcombine.high %v29942_v43, %v29942_v43  ;;  %v5066_v41 = vcombine.low %v5058_v19, %v5065_v1  ;;  %v26090_v45 = vld.sshfl [vmem:[%s28996_s14 + $0x64] sm:$0x13 pattern:$0x75316420] }
 0x144   : > { %v6414_v27 = vcombine.low %v29938_v21, %v29948_v47  ;;  %v29966_v53 = vrot.slane %v2292_v48, %v29027_v39  ;;  %v6404_v54 = vrot.slane %v6390_v49, %v29042_v51  ;;  %v2307_v60 = vcombine.high %v29951_v12, %v29951_v12 }
 0x145   : > { %v6421_v62 = vrot.slane %v6413_v59, %v29042_v51  ;;  %v1534_v13 = vcombine.low %v29942_v43, %v29958_v52  ;;  %26033 = vst.sshfl [vmem:[#allocation2 + $0x2b4] sm:$0x33 pattern:$0x75316420] %v5066_v41  ;;  %v1524_v22 = vrot.slane %v1510_v10, %v29042_v51  ;;  %v29984_v5 = vrot.slane %v29963_v50, %v29027_v39 }
 0x146   : > { %v6428_v44 = vrot.slane %v6414_v27, %v29042_v51  ;;  %v29978_v57 = vcombine.high %v29966_v53, %v29966_v53  ;;  %v6405_v2 = vcombine.low %v6397_v61, %v6404_v54  ;;  %v3072_v37 = vshrl.u32 %v29889_v11, 16  ;;  %v26091_v61 = vld.sshfl [vmem:[%s28996_s14 + $0x68] sm:$0x33 pattern:$0x75316420] }
 0x147   : > { %v1548_v4 = vrot.slane %v1534_v13, %v29042_v51  ;;  %v1525_v14 = vcombine.low %v6404_v54, %v1524_v22  ;;  %v3077_v55 = vshll.u32 %v29951_v12, 16  ;;  %v3080_v9 = vshrl.u32 %v29951_v12, 16 }
 0x148   : > { %v6429_v58 = vcombine.low %v6421_v62, %v6428_v44  ;;  %26113 = vst.sshfl [vmem:[#allocation2 + $0x294] sm:$0x33 pattern:$0x75316420] %v6405_v2  ;;  %v3085_v16 = vshll.u32 %v29966_v53, 16  ;;  %v4505_v15 = vcombine.high %v26004_v0, %v26004_v0  ;;  %v4512_v63 = vrot.slane %v26004_v0, %v29027_v39 }
 0x149   : > { %v28448_v3 = vld [vmem:[#allocation2 + $0x28c] ss:$36 sps:$4 sm:$0xff]   ;;  %v1549_v31 = vcombine.low %v6428_v44, %v1548_v4  ;;  %25824 = vst.sshfl [vmem:[#allocation2 + $0x2d0] sm:$0x33 pattern:$0x75316420] %v1525_v14  ;;  %v3079_v11 = vsel %vm29078_vm14, %v3072_v37, %v3077_v55  ;;  %v5075_v54 = vcombine.low %v29966_v53, %v29978_v57  ;;  %v5847_v2 = vcombine.high %v26090_v45, %v26090_v45 }
 0x14a   : > { %26114 = vst.sshfl [vmem:[#allocation2 + $0x2b8] sm:$0x33 pattern:$0x75316420] %v6429_v58  ;;  %v3088_v7 = vshrl.u32 %v29966_v53, 16  ;;  %v3093_v56 = vshll.u32 %v2307_v60, 16  ;;  %16464 = vmatprep.mubr.bf16.mxu0 %v28448_v3  ;;  %v3087_v23 = vsel %vm29078_vm14, %v3080_v9, %v3085_v16  ;;  %v4519_v42 = vrot.slane %v4505_v15, %v29027_v39 }
 0x14b   : > { %v3096_v46 = vshrl.u32 %v2307_v60, 16  ;;  %25825 = vst.sshfl [vmem:[#allocation2 + $0x2f4] sm:$0x33 pattern:$0x75316420] %v1549_v31  ;;  %v3101_v17 = vshll.u32 %v29978_v57, 16  ;;  %16465 = vmatmul.mubr.bf16.gmra.mrb[36].mxu0 %v28450_v35  ;;  %v4520_v28 = vcombine.high %v4512_v63, %v4512_v63  ;;  %v5089_v22 = vrot.slane %v5075_v54, %v29042_v51 }
 0x14c   : > { %v3105_v26 = vshrl.u32 %v29938_v21, 16  ;;  %v3110_v18 = vshll.u32 %v29942_v43, 16  ;;  %v3095_v40 = vsel %vm29078_vm14, %v3088_v7, %v3093_v56  ;;  %v3113_v24 = vshrl.u32 %v29942_v43, 16  ;;  %v28453_v41 = vld [vmem:[#allocation2 + $0x290] ss:$36 sps:$4 sm:$0xff]  }
 0x14d   : > { %v3118_v25 = vshll.u32 %v29948_v47, 16  ;;  %v3121_v29 = vshrl.u32 %v29948_v47, 16  ;;  %v3103_v19 = vsel %vm29078_vm14, %v3096_v46, %v3101_v17  ;;  %v3126_v20 = vshll.u32 %v29958_v52, 16 }
 0x14e   : > { %v3112_v30 = vsel %vm29078_vm14, %v3105_v26, %v3110_v18  ;;  %v3129_v36 = vshrl.u32 %v29958_v52, 16  ;;  %v3134_v6 = vshll.u32 %v29984_v5, 16  ;;  %v3698_v34 = vcombine.low %v3079_v11, %v3095_v40  ;;  %v30031_v4 = vld.sshfl [vmem:[%s28996_s14 + $0x6c] sm:$0x13 pattern:$0x75316420] }
 0x14f   : > { %v3120_v33 = vsel %vm29078_vm14, %v3113_v24, %v3118_v25  ;;  %v3699_v38 = vcombine.low %v3087_v23, %v3103_v19  ;;  %v3128_v21 = vsel %vm29078_vm14, %v3121_v29, %v3126_v20  ;;  %v5074_v43 = vcombine.low %v29951_v12, %v2307_v60  ;;  %v25856_v18 = vld.sshfl [vmem:[%s28996_s14 + $0x6c] sm:$0x33 pattern:$0x75316420] }
 0x150   : > { %v3136_v1 = vsel %vm29078_vm14, %v3129_v36, %v3134_v6  ;;  %v3706_v47 = vrot.slane %v3698_v34, %v29042_v51  ;;  %v3722_v49 = vcombine.low %v3112_v30, %v3128_v21  ;;  %v4521_v10 = vcombine.high %v4519_v42, %v4519_v42 }
 0x151   : > { %v3713_v48 = vrot.slane %v3699_v38, %v29042_v51  ;;  %v28451_v59 = vld [vmem:[#allocation2 + $0x294] ss:$36 sps:$4 sm:$0xff]   ;;  %v3723_v27 = vcombine.low %v3120_v33, %v3136_v1  ;;  %v5082_v12 = vrot.slane %v5074_v43, %v29042_v51  ;;  %v5099_v60 = vcombine.low %v4520_v28, %v29984_v5 }
 0x152   : > { %v3730_v13 = vrot.slane %v3722_v49, %v29042_v51  ;;  %16600 = vmatprep.mubr.bf16.mxu1 %v28451_v59  ;;  %v5098_v0 = vcombine.low %v4519_v42, %v4521_v10  ;;  %v5854_v57 = vrot.slane %v26090_v45, %v29027_v39  ;;  %v5870_v37 = vcombine.high %v26091_v61, %v26091_v61 }
 0x153   : > { %v3714_v62 = vcombine.low %v3706_v47, %v3713_v48  ;;  %v3737_v44 = vrot.slane %v3723_v27, %v29042_v51  ;;  %16601 = vmatmul.mubr.bf16.gmra.mrb[36].mxu1 %v28453_v41  ;;  %v5113_v53 = vrot.slane %v5099_v60, %v29042_v51  ;;  %v30036_v58 = vrot.slane %v26091_v61, %v29027_v39  ;;  %v28462_v48 = vld [vmem:[#allocation2 + $0x2d0] ss:$36 sps:$4 sm:$0xff]   ;;  %v26006_v41 = vld.sshfl [vmem:[%s28996_s14 + $0x68] sm:$0x32 pattern:$0x75316420] }
 0x154   : > { %v5090_v55 = vcombine.low %v5082_v12, %v5089_v22  ;;  %v5106_v9 = vrot.slane %v5098_v0, %v29042_v51  ;;  %v5861_v3 = vrot.slane %v5847_v2, %v29027_v39  ;;  %v5862_v35 = vcombine.high %v5854_v57, %v5854_v57 }
 0x155   : > { %25975 = vst.sshfl [vmem:[#allocation2 + $0x2d4] sm:$0x33 pattern:$0x75316420] %v3714_v62  ;;  %v3738_v14 = vcombine.low %v3730_v13, %v3737_v44  ;;  %v5884_v31 = vrot.slane %v5870_v37, %v29027_v39  ;;  %v5885_v16 = vcombine.high %v30036_v58, %v30036_v58  ;;  %v30045_v15 = vrot.slane %v30031_v4, %v29027_v39 }
 0x156   : > { %v5114_v63 = vcombine.low %v5106_v9, %v5113_v53  ;;  %26034 = vst.sshfl [vmem:[#allocation2 + $0x2d8] sm:$0x33 pattern:$0x75316420] %v5090_v55  ;;  %v6437_v11 = vcombine.low %v29958_v52, %v5861_v3  ;;  %v1558_v7 = vcombine.low %v5861_v3, %v30036_v58  ;;  %v2340_v56 = vcombine.high %v29963_v50, %v29963_v50 }
 0x157   : > { %25976 = vst.sshfl [vmem:[#allocation2 + $0x2f8] sm:$0x33 pattern:$0x75316420] %v3738_v14  ;;  %v5886_v46 = vcombine.high %v5884_v31, %v5884_v31  ;;  %v6438_v23 = vcombine.low %v5854_v57, %v5862_v35  ;;  %v6461_v17 = vcombine.low %v30036_v58, %v5885_v16  ;;  %v1582_v26 = vcombine.low %v5885_v16, %v30045_v15 }
 0x158   : > { %26035 = vst.sshfl [vmem:[#allocation2 + $0x2fc] sm:$0x33 pattern:$0x75316420] %v5114_v63  ;;  %v6445_v40 = vrot.slane %v6437_v11, %v29042_v51  ;;  %v1572_v24 = vrot.slane %v1558_v7, %v29042_v51  ;;  %v2354_v25 = vrot.slane %v2340_v56, %v29027_v39  ;;  %v30059_v52 = vcombine.high %v29984_v5, %v29984_v5 }
 0x159   : > { %v6452_v50 = vrot.slane %v6438_v23, %v29042_v51  ;;  %v6462_v29 = vcombine.low %v5884_v31, %v5886_v46  ;;  %v6469_v19 = vrot.slane %v6461_v17, %v29042_v51  ;;  %v1596_v30 = vrot.slane %v1582_v26, %v29042_v51  ;;  %v26093_v17 = vld.sshfl [vmem:[%s28996_s14 + $0x70] sm:$0x33 pattern:$0x75316420] }
 0x15a   : > { %v2356_v20 = vcombine.high %v2354_v25, %v2354_v25  ;;  %v2388_v36 = vcombine.high %v25856_v18, %v25856_v18  ;;  %v30065_v33 = vrot.slane %v25856_v18, %v29027_v39  ;;  %v3137_v6 = vshrl.u32 %v29984_v5, 16 }
 0x15b   : > { %v6453_v34 = vcombine.low %v6445_v40, %v6452_v50  ;;  %v6476_v38 = vrot.slane %v6462_v29, %v29042_v51  ;;  %v1573_v21 = vcombine.low %v6452_v50, %v1572_v24  ;;  %v3142_v42 = vshll.u32 %v2354_v25, 16  ;;  %v30103_v40 = vld.sshfl [vmem:[%s28996_s14 + $0x74] sm:$0x13 pattern:$0x75316420] }
 0x15c   : > { %v30070_v28 = vrot.slane %v2388_v36, %v29027_v39  ;;  %v3145_v43 = vshrl.u32 %v2354_v25, 16  ;;  %v3150_v45 = vshll.u32 %v30059_v52, 16  ;;  %v3153_v1 = vshrl.u32 %v30059_v52, 16 }
 0x15d   : > { %v6477_v49 = vcombine.low %v6469_v19, %v6476_v38  ;;  %26115 = vst.sshfl [vmem:[#allocation2 + $0x2dc] sm:$0x33 pattern:$0x75316420] %v6453_v34  ;;  %v1597_v61 = vcombine.low %v6476_v38, %v1596_v30  ;;  %v3144_v5 = vsel %vm29078_vm14, %v3137_v6, %v3142_v42  ;;  %v3158_v59 = vshll.u32 %v2356_v20, 16 }
 0x15e   : > { %v28458_v47 = vld [vmem:[#allocation2 + $0x2d4] ss:$36 sps:$4 sm:$0xff]   ;;  %25826 = vst.sshfl [vmem:[#allocation2 + $0x318] sm:$0x33 pattern:$0x75316420] %v1573_v21  ;;  %v3152_v27 = vsel %vm29078_vm14, %v3145_v43, %v3150_v45  ;;  %v4553_v3 = vcombine.high %v26006_v41, %v26006_v41  ;;  %v4560_v35 = vrot.slane %v26006_v41, %v29027_v39  ;;  %v5122_v11 = vcombine.low %v2354_v25, %v2356_v20 }
 0x15f   : > { %v3162_v10 = vshrl.u32 %v30036_v58, 16  ;;  %v3167_v54 = vshll.u32 %v5884_v31, 16  ;;  %v3170_v12 = vshrl.u32 %v5884_v31, 16  ;;  %16472 = vmatprep.mubr.bf16.mxu0 %v28458_v47  ;;  %v3160_v62 = vsel %vm29078_vm14, %v3153_v1, %v3158_v59  ;;  %v28465_v29 = vld [vmem:[#allocation2 + $0x2d8] ss:$36 sps:$4 sm:$0xff]  }
 0x160   : > { %26116 = vst.sshfl [vmem:[#allocation2 + $0x300] sm:$0x33 pattern:$0x75316420] %v6477_v49  ;;  %v3175_v13 = vshll.u32 %v5885_v16, 16  ;;  %v3178_v60 = vshrl.u32 %v5885_v16, 16  ;;  %16473 = vmatmul.mubr.bf16.gmra.mrb[40].mxu0 %v28462_v48  ;;  %v3746_v14 = vcombine.low %v3144_v5, %v3160_v62  ;;  %v4568_v23 = vcombine.high %v4560_v35, %v4560_v35 }
 0x161   : > { %25827 = vst.sshfl [vmem:[#allocation2 + $0x33c] sm:$0x33 pattern:$0x75316420] %v1597_v61  ;;  %v3183_v44 = vshll.u32 %v5886_v46, 16  ;;  %v3169_v22 = vsel %vm29078_vm14, %v3162_v10, %v3167_v54  ;;  %v3186_v0 = vshrl.u32 %v5886_v46, 16  ;;  %v4567_v46 = vrot.slane %v4553_v3, %v29027_v39 }
 0x162   : > { %v3191_v2 = vshll.u32 %v30065_v33, 16  ;;  %v3194_v53 = vshrl.u32 %v30065_v33, 16  ;;  %v3177_v57 = vsel %vm29078_vm14, %v3170_v12, %v3175_v13  ;;  %v3199_v58 = vshll.u32 %v30070_v28, 16 }
 0x163   : > { %v3185_v37 = vsel %vm29078_vm14, %v3178_v60, %v3183_v44  ;;  %v3747_v9 = vcombine.low %v3152_v27, %v3169_v22  ;;  %v3754_v16 = vrot.slane %v3746_v14, %v29042_v51  ;;  %v5130_v18 = vrot.slane %v5122_v11, %v29042_v51 }
 0x164   : > { %v3193_v55 = vsel %vm29078_vm14, %v3186_v0, %v3191_v2  ;;  %v3201_v31 = vsel %vm29078_vm14, %v3194_v53, %v3199_v58  ;;  %v5894_v24 = vcombine.high %v30031_v4, %v30031_v4  ;;  %v5909_v50 = vcombine.high %v30045_v15, %v30045_v15  ;;  %v26148_v0 = vld.sshfl [vmem:[%s28996_s14 + $0x8] sm:$0x33 pattern:$0x75316420] }
 0x165   : > { %v3770_v63 = vcombine.low %v3177_v57, %v3193_v55  ;;  %v3761_v7 = vrot.slane %v3747_v9, %v29042_v51  ;;  %v3771_v56 = vcombine.low %v3185_v37, %v3201_v31  ;;  %v4569_v20 = vcombine.high %v4567_v46, %v4567_v46  ;;  %v26149_v9 = vld.sshfl [vmem:[%s28996_s14 + $0xc] sm:$0x33 pattern:$0x75316420] }
 0x166   : > { %v5123_v36 = vcombine.low %v30059_v52, %v4567_v46  ;;  %v5146_v6 = vcombine.low %v4568_v23, %v30065_v33  ;;  %v5908_v34 = vrot.slane %v5894_v24, %v29027_v39  ;;  %v5917_v38 = vcombine.high %v26093_v17, %v26093_v17  ;;  %v26150_v31 = vld.sshfl [vmem:[%s28996_s14 + $0x10] sm:$0x33 pattern:$0x75316420] }
 0x167   : > { %v3778_v26 = vrot.slane %v3770_v63, %v29042_v51  ;;  %v28463_v25 = vld [vmem:[#allocation2 + $0x2dc] ss:$36 sps:$4 sm:$0xff]   ;;  %v3762_v19 = vcombine.low %v3754_v16, %v3761_v7  ;;  %v3785_v30 = vrot.slane %v3771_v56, %v29042_v51  ;;  %v5924_v21 = vrot.slane %v26093_v17, %v29027_v39 }
 0x168   : > { %16608 = vmatprep.mubr.bf16.mxu1 %v28463_v25  ;;  %v5137_v42 = vrot.slane %v5123_v36, %v29042_v51  ;;  %v5147_v43 = vcombine.low %v4569_v20, %v30070_v28  ;;  %v5948_v45 = vrot.slane %v30103_v40, %v29027_v39  ;;  %v5154_v52 = vrot.slane %v5146_v6, %v29042_v51  ;;  %v28472_v11 = vld [vmem:[#allocation2 + $0x318] ss:$36 sps:$4 sm:$0xff]  }
 0x169   : > { %v3786_v4 = vcombine.low %v3778_v26, %v3785_v30  ;;  %25977 = vst.sshfl [vmem:[#allocation2 + $0x31c] sm:$0x33 pattern:$0x75316420] %v3762_v19  ;;  %16609 = vmatmul.mubr.bf16.gmra.mrb[40].mxu1 %v28465_v29  ;;  %v5931_v1 = vrot.slane %v5917_v38, %v29027_v39  ;;  %v5932_v47 = vcombine.high %v5924_v21, %v5924_v21  ;;  %v3202_v22 = vshrl.u32 %v30070_v28, 16 }
 0x16a   : > { %v6485_v48 = vcombine.low %v30045_v15, %v5909_v50  ;;  %v5138_v49 = vcombine.low %v5130_v18, %v5137_v42  ;;  %v5161_v61 = vrot.slane %v5147_v43, %v29042_v51  ;;  %v6486_v5 = vcombine.low %v5908_v34, %v5924_v21 }
 0x16b   : > { %25978 = vst.sshfl [vmem:[#allocation2 + $0x340] sm:$0x33 pattern:$0x75316420] %v3786_v4  ;;  %v5933_v59 = vcombine.high %v5931_v1, %v5931_v1  ;;  %v6510_v27 = vcombine.low %v5932_v47, %v5948_v45  ;;  %v1611_v10 = vrot.slane %v5908_v34, %v29042_v51  ;;  %v1618_v62 = vrot.slane %v5909_v50, %v29042_v51 }
 0x16c   : > { %v6493_v41 = vrot.slane %v6485_v48, %v29042_v51  ;;  %v5162_v54 = vcombine.low %v5154_v52, %v5161_v61  ;;  %26036 = vst.sshfl [vmem:[#allocation2 + $0x320] sm:$0x33 pattern:$0x75316420] %v5138_v49  ;;  %v6500_v12 = vrot.slane %v6486_v5, %v29042_v51  ;;  %v2403_v15 = vcombine.high %v30065_v33, %v30065_v33 }
 0x16d   : > { %v6509_v13 = vcombine.low %v5931_v1, %v5933_v59  ;;  %v6524_v60 = vrot.slane %v6510_v27, %v29042_v51  ;;  %v2404_v44 = vcombine.high %v30070_v28, %v30070_v28  ;;  %v1619_v53 = vcombine.low %v1611_v10, %v1618_v62  ;;  %v26327_v4 = vld.sshfl [vmem:[%s28996_s14 + $0x8] sm:$0x32 pattern:$0x75316420] }
 0x16e   : > { %26037 = vst.sshfl [vmem:[#allocation2 + $0x344] sm:$0x33 pattern:$0x75316420] %v5162_v54  ;;  %v6501_v2 = vcombine.low %v6493_v41, %v6500_v12  ;;  %v3207_v57 = vshll.u32 %v2403_v15, 16  ;;  %v3210_v37 = vshrl.u32 %v2403_v15, 16  ;;  %v5176_v33 = vrot.slane %v2403_v15, %v29042_v51 }
 0x16f   : > { %v6517_v58 = vrot.slane %v6509_v13, %v29042_v51  ;;  %v3215_v14 = vshll.u32 %v2404_v44, 16  ;;  %v5183_v55 = vrot.slane %v2404_v44, %v29042_v51  ;;  %25828 = vst.sshfl [vmem:[#allocation2 + $0x360] sm:$0x11 pattern:$0x75316420] %v1619_v53  ;;  %v5941_v3 = vcombine.high %v30103_v40, %v30103_v40 }
 0x170   : > { %26117 = vst.sshfl [vmem:[#allocation2 + $0x324] sm:$0x33 pattern:$0x75316420] %v6501_v2  ;;  %v3209_v28 = vsel %vm29078_vm14, %v3202_v22, %v3207_v57  ;;  %v5956_v35 = vcombine.high %v5948_v45, %v5948_v45  ;;  %v6668_v16 = vcombine.high %v26148_v0, %v26148_v0  ;;  %v6675_v40 = vrot.slane %v26148_v0, %v29027_v39 }
 0x171   : > { %v6525_v7 = vcombine.low %v6517_v58, %v6524_v60  ;;  %v3217_v56 = vsel %vm29078_vm14, %v3210_v37, %v3215_v14  ;;  %v3800_v46 = vrot.slane %v3209_v28, %v29042_v51  ;;  %v5184_v23 = vcombine.low %v5176_v33, %v5183_v55  ;;  %v30183_v62 = vld.sshfl [vmem:[%s28996_s14 + $0x10] sm:$0x32 pattern:$0x75316420] }
 0x172   : > { %v28469_v63 = vld [vmem:[#allocation2 + $0x31c] ss:$36 sps:$4 sm:$0xff]   ;;  %v3807_v17 = vrot.slane %v3217_v56, %v29042_v51  ;;  %v5955_v26 = vrot.slane %v5941_v3, %v29027_v39  ;;  %v6546_v18 = vrot.slane %v5956_v35, %v29042_v51  ;;  %v6682_v24 = vrot.slane %v6668_v16, %v29027_v39 }
 0x173   : > { %16480 = vmatprep.mubr.bf16.mxu0 %v28469_v63  ;;  %26118 = vst.sshfl [vmem:[#allocation2 + $0x348] sm:$0x33 pattern:$0x75316420] %v6525_v7  ;;  %v6692_v50 = vcombine.high %v26149_v9, %v26149_v9  ;;  %v30151_v25 = vrot.slane %v26149_v9, %v29027_v39  ;;  %v6716_v29 = vcombine.high %v26150_v31, %v26150_v31  ;;  %v7334_v43 = vshrl.u32 %v6675_v40, 16 }
 0x174   : > { %26038 = vst.sshfl [vmem:[#allocation2 + $0x368] sm:$0x11 pattern:$0x75316420] %v5184_v23  ;;  %16481 = vmatmul.mubr.bf16.gmra.mrb[44].mxu0 %v28472_v11  ;;  %v3808_v19 = vcombine.low %v3800_v46, %v3807_v17  ;;  %v6539_v30 = vrot.slane %v5955_v26, %v29042_v51  ;;  %v6683_v20 = vcombine.high %v6675_v40, %v6675_v40  ;;  %v7339_v45 = vshll.u32 %v6682_v24, 16 }
 0x175   : > { %v30155_v36 = vrot.slane %v26150_v31, %v29027_v39  ;;  %v6684_v6 = vcombine.high %v6682_v24, %v6682_v24  ;;  %v30158_v34 = vrot.slane %v6692_v50, %v29027_v39  ;;  %v30162_v38 = vcombine.high %v30151_v25, %v30151_v25  ;;  %v28475_v13 = vld [vmem:[#allocation2 + $0x320] ss:$36 sps:$4 sm:$0xff]  }
 0x176   : > { %v30165_v21 = vrot.slane %v6716_v29, %v29027_v39  ;;  %25979 = vst.sshfl [vmem:[#allocation2 + $0x364] sm:$0x11 pattern:$0x75316420] %v3808_v19  ;;  %v6547_v42 = vcombine.low %v6539_v30, %v6546_v18  ;;  %v7342_v52 = vshrl.u32 %v6682_v24, 16  ;;  %v7347_v47 = vshll.u32 %v6683_v20, 16 }
 0x177   : > { %v30170_v1 = vcombine.high %v30158_v34, %v30158_v34  ;;  %v7350_v48 = vshrl.u32 %v6683_v20, 16  ;;  %v7355_v49 = vshll.u32 %v6684_v6, 16  ;;  %v7341_v61 = vsel %vm29078_vm14, %v7334_v43, %v7339_v45 }
 0x178   : > { %26119 = vst.sshfl [vmem:[#allocation2 + $0x36c] sm:$0x11 pattern:$0x75316420] %v6547_v42  ;;  %v7358_v5 = vshrl.u32 %v6684_v6, 16  ;;  %v7363_v59 = vshll.u32 %v30151_v25, 16  ;;  %v7349_v27 = vsel %vm29078_vm14, %v7342_v52, %v7347_v47  ;;  %v8842_v0 = vcombine.high %v26327_v4, %v26327_v4 }
 0x179   : > { %v7366_v41 = vshrl.u32 %v30151_v25, 16  ;;  %v7357_v10 = vsel %vm29078_vm14, %v7350_v48, %v7355_v49  ;;  %v7371_v54 = vshll.u32 %v30158_v34, 16  ;;  %v7374_v12 = vshrl.u32 %v30158_v34, 16 }
 0x17a   : > { %v28473_v15 = vld [vmem:[#allocation2 + $0x324] ss:$36 sps:$4 sm:$0xff]   ;;  %v7365_v60 = vsel %vm29078_vm14, %v7358_v5, %v7363_v59  ;;  %v7379_v44 = vshll.u32 %v30162_v38, 16  ;;  %v8131_v22 = vcombine.low %v7341_v61, %v7357_v10  ;;  %v7382_v53 = vshrl.u32 %v30162_v38, 16 }
 0x17b   : > { %v7373_v2 = vsel %vm29078_vm14, %v7366_v41, %v7371_v54  ;;  %v7387_v57 = vshll.u32 %v30170_v1, 16  ;;  %v7391_v37 = vshrl.u32 %v30155_v36, 16  ;;  %16616 = vmatprep.mubr.bf16.mxu1 %v28473_v15  ;;  %v7396_v14 = vshll.u32 %v30165_v21, 16 }
 0x17c   : > { %v7381_v58 = vsel %vm29078_vm14, %v7374_v12, %v7379_v44  ;;  %v8132_v33 = vcombine.low %v7349_v27, %v7365_v60  ;;  %v8139_v55 = vrot.slane %v8131_v22, %v29042_v51  ;;  %16617 = vmatmul.mubr.bf16.gmra.mrb[44].mxu1 %v28475_v13  ;;  %v8849_v3 = vrot.slane %v26327_v4, %v29027_v39  ;;  %v26415_v6 = vld.sshfl [vmem:[%s28996_s14 + $0x14] sm:$0x13 pattern:$0x75316420] }
 0x17d   : > { %v15188_v9 = vld [vmem:[#allocation2 + $0x360] sm:$0x33]  ;;  %v7389_v28 = vsel %vm29078_vm14, %v7382_v53, %v7387_v57  ;;  %v8856_v35 = vrot.slane %v8842_v0, %v29027_v39  ;;  %v8890_v31 = vcombine.high %v30183_v62, %v30183_v62  ;;  %v30205_v11 = vsel %vm29078_vm14, %v7391_v37, %v7396_v14  ;;  %v26496_v5 = vld.sshfl [vmem:[%s28996_s14 + $0x14] sm:$0x33 pattern:$0x75316420] }
 0x17e   : > { %v26843_v16 = vcombine.high %v15188_v9, %v15188_v9  ;;  %v26842_v63 = vcombine.low %v15188_v9, %v15188_v9  ;;  %v8146_v7 = vrot.slane %v8132_v33, %v29042_v51  ;;  %v8155_v46 = vcombine.low %v7373_v2, %v7389_v28 }
 0x17f   : > { %v15189_v56 = vld [vmem:[#allocation2 + $0x368] sm:$0x33]  ;;  %v8156_v23 = vcombine.low %v7381_v58, %v30205_v11  ;;  %v8857_v17 = vcombine.high %v8849_v3, %v8849_v3  ;;  %v8858_v26 = vcombine.high %v8856_v35, %v8856_v35  ;;  %v30210_v50 = vrot.slane %v8890_v31, %v29027_v39 }
 0x180   : > { %16488 = vmatprep.mubr.bf16.mxu0 %v26843_v16  ;;  %v26845_v18 = vcombine.high %v15189_v56, %v15189_v56  ;;  %v26844_v40 = vcombine.low %v15189_v56, %v15189_v56  ;;  %v8147_v24 = vcombine.low %v8139_v55, %v8146_v7  ;;  %v8163_v29 = vrot.slane %v8155_v46, %v29042_v51 }
 0x181   : > { %16489 = vmatmul.mubr.bf16.gmra.mrb[48].mxu0 %v26842_v63  ;;  %v8170_v19 = vrot.slane %v8156_v23, %v29042_v51  ;;  %v9507_v30 = vcombine.low %v8856_v35, %v8858_v26  ;;  %v9508_v20 = vcombine.low %v8857_v17, %v30151_v25  ;;  %v9531_v4 = vcombine.low %v30158_v34, %v30170_v1  ;;  %v26416_v25 = vld.sshfl [vmem:[%s28996_s14 + $0x18] sm:$0x33 pattern:$0x75316420] }
 0x182   : > { %16624 = vmatprep.mubr.bf16.mxu1 %v26845_v18  ;;  %26274 = vst.sshfl [vmem:[#allocation2 + $0x10] sm:$0x33 pattern:$0x75316420] %v8147_v24  ;;  %v9532_v42 = vcombine.low %v30162_v38, %v30210_v50  ;;  %v10234_v43 = vcombine.high %v30155_v36, %v30155_v36  ;;  %v34005_v48 = vmov 0.0   ;;  %v10235_v49 = vcombine.high %v30165_v21, %v30165_v21 }
 0x183   : > { %v8171_v45 = vcombine.low %v8163_v29, %v8170_v19  ;;  %v9515_v52 = vrot.slane %v9507_v30, %v29042_v51  ;;  %v9522_v47 = vrot.slane %v9508_v20, %v29042_v51  ;;  %28145 = vmatprep.subr.bf16.mxu0 %v34005_v48  ;;  %v9539_v34 = vrot.slane %v9531_v4, %v29042_v51  ;;  %v28496_v29 = vld [vmem:[#allocation7 + $0x200] sm:$0xff]  }
 0x184   : > { %v9546_v1 = vrot.slane %v9532_v42, %v29042_v51  ;;  %v10243_v38 = vcombine.high %v26415_v6, %v26415_v6  ;;  %v10250_v61 = vrot.slane %v26415_v6, %v29027_v39  ;;  %16625 = vmatmul.mubr.bf16.gmra.mrb[48].mxu1 %v26844_v40  ;;  %v10273_v41 = vrot.slane %v26416_v25, %v29027_v39 }
 0x185   : > { %26275 = vst.sshfl [vmem:[#allocation2 + $0x34] sm:$0x33 pattern:$0x75316420] %v8171_v45  ;;  %v9523_v59 = vcombine.low %v9515_v52, %v9522_v47  ;;  %v10870_v27 = vcombine.low %v30155_v36, %v10234_v43  ;;  %v10871_v10 = vcombine.low %v30165_v21, %v10235_v49  ;;  %v11605_v44 = vcombine.high %v26496_v5, %v26496_v5 }
 0x186   : > { %v9547_v54 = vcombine.low %v9539_v34, %v9546_v1  ;;  %v10257_v12 = vrot.slane %v10243_v38, %v29027_v39  ;;  %v10258_v15 = vcombine.high %v10250_v61, %v10250_v61  ;;  %v30239_v2 = vrot.slane %v26496_v5, %v29027_v39  ;;  %v28503_v38 = vld [vmem:[#allocation7 + $0x208] sm:$0xff]  }
 0x187   : > { %26361 = vst.sshfl [vmem:[#allocation2 + $0x14] sm:$0x33 pattern:$0x75316420] %v9523_v59  ;;  %v10878_v13 = vrot.slane %v10870_v27, %v29042_v51  ;;  %v10885_v60 = vrot.slane %v10871_v10, %v29042_v51  ;;  %v11629_v53 = vcombine.high %v26416_v25, %v26416_v25  ;;  %v30242_v57 = vrot.slane %v11605_v44, %v29027_v39 }
 0x188   : > { %26362 = vst.sshfl [vmem:[#allocation2 + $0x38] sm:$0x33 pattern:$0x75316420] %v9547_v54  ;;  %v10894_v22 = vcombine.low %v10250_v61, %v10258_v15  ;;  %v10895_v0 = vcombine.low %v10257_v12, %v10273_v41  ;;  %v12255_v37 = vshrl.u32 %v30165_v21, 16  ;;  %v12260_v58 = vshll.u32 %v10234_v43, 16 }
 0x189   : > { %v10886_v36 = vcombine.low %v10878_v13, %v10885_v60  ;;  %v30249_v55 = vcombine.high %v30239_v2, %v30239_v2  ;;  %v30252_v9 = vrot.slane %v11629_v53, %v29027_v39  ;;  %v11621_v28 = vcombine.high %v30242_v57, %v30242_v57  ;;  %v26331_v10 = vld.sshfl [vmem:[%s28996_s14 + $0x18] sm:$0x32 pattern:$0x75316420]  ;;  %v28516_v60 = vld [vmem:[#allocation7 + $0x210] sm:$0xff]  }
 0x18a   : > { %v10902_v14 = vrot.slane %v10894_v22, %v29042_v51  ;;  %v10909_v33 = vrot.slane %v10895_v0, %v29042_v51  ;;  %v12262_v3 = vsel %vm29078_vm14, %v12255_v37, %v12260_v58  ;;  %v12263_v21 = vshrl.u32 %v10234_v43, 16 }
 0x18b   : > { %26442 = vst.sshfl [vmem:[#allocation2 + $0x18] sm:$0x33 pattern:$0x75316420] %v10886_v36  ;;  %v12268_v35 = vshll.u32 %v10235_v49, 16  ;;  %v12271_v16 = vshrl.u32 %v10235_v49, 16  ;;  %v30279_v49 = vcombine.high %v10273_v41, %v10273_v41  ;;  %v8897_v15 = vrot.slane %v30183_v62, %v29027_v39 }
 0x18c   : > { %v10910_v31 = vcombine.low %v10902_v14, %v10909_v33  ;;  %v12276_v63 = vshll.u32 %v30239_v2, 16  ;;  %v12279_v7 = vshrl.u32 %v30239_v2, 16  ;;  %v12284_v46 = vshll.u32 %v30242_v57, 16  ;;  %v28489_v19 = vld [vmem:[#allocation2 + $0x10] ss:$36 sps:$4 sm:$0xff]  }
 0x18d   : > { %v12270_v56 = vsel %vm29078_vm14, %v12263_v21, %v12268_v35  ;;  %v12287_v23 = vshrl.u32 %v30242_v57, 16  ;;  %v12292_v17 = vshll.u32 %v30249_v55, 16  ;;  %v12295_v18 = vshrl.u32 %v30249_v55, 16 }
 0x18e   : > { %26443 = vst.sshfl [vmem:[#allocation2 + $0x3c] sm:$0x33 pattern:$0x75316420] %v10910_v31  ;;  %v12278_v26 = vsel %vm29078_vm14, %v12271_v16, %v12276_v63  ;;  %v12300_v40 = vshll.u32 %v11621_v28, 16  ;;  %v12304_v24 = vshrl.u32 %v10273_v41, 16  ;;  %v12286_v20 = vsel %vm29078_vm14, %v12279_v7, %v12284_v46 }
 0x18f   : > { %v28491_v30 = vld [vmem:[#allocation2 + $0x14] ss:$36 sps:$4 sm:$0xff]   ;;  %v12294_v6 = vsel %vm29078_vm14, %v12287_v23, %v12292_v17  ;;  %v12309_v4 = vshll.u32 %v30252_v9, 16  ;;  %v13044_v42 = vcombine.low %v30205_v11, %v12270_v56  ;;  %v13045_v45 = vcombine.low %v12262_v3, %v12278_v26  ;;  %v28526_v31 = vld [vmem:[#allocation7 + $0x218] sm:$0xff]  }
 0x190   : > { %v12302_v43 = vsel %vm29078_vm14, %v12295_v18, %v12300_v40  ;;  %16664 = vmatprep.mubr.bf16.mxu0 %v28491_v30  ;;  %v7456_v59 = vshrl.u32 %v30252_v9, 16  ;;  %v7461_v27 = vshll.u32 %v30279_v49, 16  ;;  %v8180_v54 = vcombine.low %v12270_v56, %v12286_v20  ;;  %v26417_v62 = vld.sshfl [vmem:[%s28996_s14 + $0x1c] sm:$0x13 pattern:$0x75316420] }
 0x191   : > { %v12311_v52 = vsel %vm29078_vm14, %v12304_v24, %v12309_v4  ;;  %v13052_v47 = vrot.slane %v13044_v42, %v29042_v51  ;;  %v13068_v25 = vcombine.low %v12286_v20, %v12302_v43  ;;  %16665 = vmatmul.mubr.bf16.vlgmr.msra.gmra.mrb[52].mxu0 %v28489_v19  ;;  %v13059_v34 = vrot.slane %v13045_v45, %v29042_v51  ;;  %v26418_v33 = vld.sshfl [vmem:[%s28996_s14 + $0x20] sm:$0x33 pattern:$0x75316420] }
 0x192   : > { %v13069_v1 = vcombine.low %v12294_v6, %v12311_v52  ;;  %28146 = vmatpush3.bf16.msra.mxu0 %v28496_v29  ;;  %v30290_v12 = vsel %vm29078_vm14, %v7456_v59, %v7461_v27  ;;  %v8906_v13 = vcombine.high %v30210_v50, %v30210_v50  ;;  %v8194_v44 = vrot.slane %v8180_v54, %v29042_v51  ;;  %v26498_v17 = vld.sshfl [vmem:[%s28996_s14 + $0x1c] sm:$0x33 pattern:$0x75316420] }
 0x193   : > { %v13076_v11 = vrot.slane %v13068_v25, %v29042_v51  ;;  %v13060_v61 = vcombine.low %v13052_v47, %v13059_v34  ;;  %28147 = vmatprep.subr.bf16.mxu0 %v34005_v48  ;;  %v8204_v22 = vcombine.low %v12302_v43, %v30290_v12  ;;  %v8938_v0 = vcombine.high %v26331_v10, %v26331_v10 }
 0x194   : > { %v13083_v5 = vrot.slane %v13069_v1, %v29042_v51  ;;  %v8905_v53 = vcombine.high %v8897_v15, %v8897_v15  ;;  %v8945_v36 = vrot.slane %v26331_v10, %v29027_v39  ;;  %v9556_v37 = vcombine.low %v8906_v13, %v30242_v57 }
 0x195   : > { %26621 = vst.sshfl [vmem:[#allocation2 + $0x1c] sm:$0x33 pattern:$0x75316420] %v13060_v61  ;;  %v8195_v58 = vcombine.low %v13059_v34, %v8194_v44  ;;  %v8218_v14 = vrot.slane %v8204_v22, %v29042_v51  ;;  %v30304_v50 = vrot.slane %v8938_v0, %v29027_v39  ;;  %v10282_v35 = vcombine.high %v30252_v9, %v30252_v9  ;;  %v28493_v24 = vld [vmem:[#allocation2 + $0x18] ss:$36 sps:$4 sm:$0xff]  }
 0x196   : > { %v13084_v41 = vcombine.low %v13076_v11, %v13083_v5  ;;  %28148 = vmatpush3.bf16.msra.mxu0 %v28503_v38  ;;  %v9555_v28 = vcombine.low %v8905_v53, %v30239_v2  ;;  %v9570_v3 = vrot.slane %v9556_v37, %v29042_v51  ;;  %v26355_v21 = vcombine.high %v30242_v57, %v8945_v36 }
 0x197   : > { %28149 = vmatprep.subr.bf16.mxu0 %v34005_v48  ;;  %v8219_v16 = vcombine.low %v13083_v5, %v8218_v14  ;;  %26276 = vst.sshfl [vmem:[#allocation2 + $0x58] sm:$0x33 pattern:$0x75316420] %v8195_v58  ;;  %v9579_v63 = vcombine.low %v30249_v55, %v30304_v50  ;;  %v10290_v7 = vcombine.high %v26417_v62, %v26417_v62  ;;  %v12320_v61 = vshrl.u32 %v30279_v49, 16 }
 0x198   : > { %26622 = vst.sshfl [vmem:[#allocation2 + $0x40] sm:$0x33 pattern:$0x75316420] %v13084_v41  ;;  %v10297_v56 = vrot.slane %v26417_v62, %v29027_v39  ;;  %v9563_v2 = vrot.slane %v9555_v28, %v29042_v51  ;;  %v9594_v46 = vrot.slane %v26355_v21, %v29042_v51  ;;  %v10313_v57 = vcombine.high %v26418_v33, %v26418_v33 }
 0x199   : > { %v10320_v23 = vrot.slane %v26418_v33, %v29027_v39  ;;  %26277 = vst.sshfl [vmem:[#allocation2 + $0x7c] sm:$0x33 pattern:$0x75316420] %v8219_v16  ;;  %v9587_v26 = vrot.slane %v9579_v63, %v29042_v51  ;;  %v10304_v18 = vrot.slane %v10290_v7, %v29027_v39  ;;  %v10918_v55 = vcombine.low %v30252_v9, %v10282_v35 }
 0x19a   : > { %28150 = vmatpush3.bf16.msra.mxu0 %v28516_v60  ;;  %v10305_v40 = vcombine.high %v10297_v56, %v10297_v56  ;;  %v9571_v19 = vcombine.low %v9563_v2, %v9570_v3  ;;  %v10327_v30 = vrot.slane %v10313_v57, %v29027_v39  ;;  %v10919_v20 = vcombine.low %v30279_v49, %v10297_v56 }
 0x19b   : > { %28151 = vmatprep.subr.bf16.mxu0 %v34005_v48  ;;  %v9595_v6 = vcombine.low %v9587_v26, %v9594_v46  ;;  %v10926_v4 = vrot.slane %v10918_v55, %v29042_v51  ;;  %v10942_v42 = vcombine.low %v10304_v18, %v10320_v23  ;;  %v11653_v43 = vcombine.high %v26498_v17, %v26498_v17 }
 0x19c   : > { %26363 = vst.sshfl [vmem:[#allocation2 + $0x5c] sm:$0x33 pattern:$0x75316420] %v9571_v19  ;;  %v10933_v45 = vrot.slane %v10919_v20, %v29042_v51  ;;  %v10943_v9 = vcombine.low %v10305_v40, %v10327_v30  ;;  %v30329_v52 = vrot.slane %v26498_v17, %v29027_v39  ;;  %v30331_v47 = vcombine.high %v10320_v23, %v10320_v23 }
 0x19d   : > { %26364 = vst.sshfl [vmem:[#allocation2 + $0x80] sm:$0x33 pattern:$0x75316420] %v9595_v6  ;;  %v10950_v25 = vrot.slane %v10942_v42, %v29042_v51  ;;  %v30335_v34 = vrot.slane %v11653_v43, %v29027_v39  ;;  %v12325_v59 = vshll.u32 %v10282_v35, 16  ;;  %v12328_v27 = vshrl.u32 %v10282_v35, 16 }
 0x19e   : > { %28152 = vmatpush3.bf16.msra.mxu0 %v28526_v31  ;;  %v10934_v1 = vcombine.low %v10926_v4, %v10933_v45  ;;  %v10957_v11 = vrot.slane %v10943_v9, %v29042_v51  ;;  %v30340_v38 = vcombine.high %v30329_v52, %v30329_v52  ;;  %v12333_v41 = vshll.u32 %v30329_v52, 16  ;;  %v26333_v17 = vld.sshfl [vmem:[%s28996_s14 + $0x20] sm:$0x32 pattern:$0x75316420] }
 0x19f   : > { %v28495_v29 = vld [vmem:[#allocation2 + $0x1c] ss:$36 sps:$4 sm:$0xff]   ;;  %28153 = vmatprep.subr.bf16.mxu0 %v34005_v48  ;;  %v11669_v5 = vcombine.high %v30335_v34, %v30335_v34  ;;  %v12336_v54 = vshrl.u32 %v30329_v52, 16  ;;  %v12341_v15 = vshll.u32 %v30335_v34, 16  ;;  %v12327_v13 = vsel %vm29078_vm14, %v12320_v61, %v12325_v59 }
 0x1a0   : > { %16800 = vmatprep.mubr.bf16.mxu1 %v28495_v29  ;;  %v10958_v10 = vcombine.low %v10950_v25, %v10957_v11  ;;  %26444 = vst.sshfl [vmem:[#allocation2 + $0x60] sm:$0x33 pattern:$0x75316420] %v10934_v1  ;;  %v12344_v60 = vshrl.u32 %v30335_v34, 16  ;;  %v12349_v49 = vshll.u32 %v30340_v38, 16  ;;  %v12335_v22 = vsel %vm29078_vm14, %v12328_v27, %v12333_v41 }
 0x1a1   : > { %16801 = vmatmul.mubr.bf16.vlgmr.msra.gmra.mrb[52].mxu1 %v28493_v24  ;;  %v12352_v44 = vshrl.u32 %v30340_v38, 16  ;;  %v12343_v0 = vsel %vm29078_vm14, %v12336_v54, %v12341_v15  ;;  %v12357_v53 = vshll.u32 %v11669_v5, 16  ;;  %v12361_v36 = vshrl.u32 %v10320_v23, 16  ;;  %v28499_v28 = vld [vmem:[#allocation2 + $0x58] ss:$36 sps:$4 sm:$0xff]  }
 0x1a2   : > { %26445 = vst.sshfl [vmem:[#allocation2 + $0x84] sm:$0x33 pattern:$0x75316420] %v10958_v10  ;;  %v12351_v37 = vsel %vm29078_vm14, %v12344_v60, %v12349_v49  ;;  %v12366_v62 = vshll.u32 %v10327_v30, 16  ;;  %v12369_v58 = vshrl.u32 %v10327_v30, 16  ;;  %v13092_v21 = vcombine.low %v30290_v12, %v12335_v22 }
 0x1a3   : > { %v12374_v14 = vshll.u32 %v30331_v47, 16  ;;  %v12359_v3 = vsel %vm29078_vm14, %v12352_v44, %v12357_v53  ;;  %v13093_v35 = vcombine.low %v12327_v13, %v12343_v0  ;;  %v30367_v63 = vcombine.high %v10327_v30, %v10327_v30  ;;  %v26419_v42 = vld.sshfl [vmem:[%s28996_s14 + $0x24] sm:$0x13 pattern:$0x75316420] }
 0x1a4   : > { %v28497_v33 = vld [vmem:[#allocation2 + $0x5c] ss:$36 sps:$4 sm:$0xff]   ;;  %v12368_v31 = vsel %vm29078_vm14, %v12361_v36, %v12366_v62  ;;  %v13100_v7 = vrot.slane %v13092_v21, %v29042_v51  ;;  %v7521_v26 = vshrl.u32 %v30331_v47, 16  ;;  %v8228_v55 = vcombine.low %v12335_v22, %v12351_v37 }
 0x1a5   : > { %v12376_v16 = vsel %vm29078_vm14, %v12369_v58, %v12374_v14  ;;  %16672 = vmatprep.mubr.bf16.mxu0 %v28497_v33  ;;  %v13107_v56 = vrot.slane %v13093_v35, %v29042_v51  ;;  %v13116_v2 = vcombine.low %v12351_v37, %v12368_v31  ;;  %v7526_v18 = vshll.u32 %v30367_v63, 16  ;;  %v26420_v45 = vld.sshfl [vmem:[%s28996_s14 + $0x28] sm:$0x33 pattern:$0x75316420] }
 0x1a6   : > { %v13117_v46 = vcombine.low %v12359_v3, %v12376_v16  ;;  %16673 = vmatmul.mubr.bf16.gmra.mrb[56].mxu0 %v28499_v28  ;;  %v8954_v24 = vcombine.high %v30304_v50, %v30304_v50  ;;  %v8986_v19 = vcombine.high %v26333_v17, %v26333_v17  ;;  %v8242_v30 = vrot.slane %v8228_v55, %v29042_v51  ;;  %v26500_v27 = vld.sshfl [vmem:[%s28996_s14 + $0x24] sm:$0x33 pattern:$0x75316420] }
 0x1a7   : > { %v13108_v57 = vcombine.low %v13100_v7, %v13107_v56  ;;  %v13124_v12 = vrot.slane %v13116_v2, %v29042_v51  ;;  %v30380_v29 = vsel %vm29078_vm14, %v7521_v26, %v7526_v18  ;;  %v8993_v6 = vrot.slane %v26333_v17, %v29027_v39 }
 0x1a8   : > { %v13131_v23 = vrot.slane %v13117_v46, %v29042_v51  ;;  %v8252_v20 = vcombine.low %v12368_v31, %v30380_v29  ;;  %v9603_v4 = vcombine.low %v8954_v24, %v30335_v34  ;;  %v9000_v43 = vrot.slane %v8986_v19, %v29027_v39 }
 0x1a9   : > { %26623 = vst.sshfl [vmem:[#allocation2 + $0x64] sm:$0x33 pattern:$0x75316420] %v13108_v57  ;;  %v9604_v50 = vcombine.low %v30329_v52, %v30340_v38  ;;  %v8243_v9 = vcombine.low %v13107_v56, %v8242_v30  ;;  %v26356_v11 = vcombine.high %v30335_v34, %v8993_v6  ;;  %v10337_v59 = vcombine.high %v26419_v42, %v26419_v42  ;;  %v28502_v53 = vld [vmem:[#allocation2 + $0x60] ss:$36 sps:$4 sm:$0xff]  }
 0x1aa   : > { %v13132_v40 = vcombine.low %v13124_v12, %v13131_v23  ;;  %v8266_v25 = vrot.slane %v8252_v20, %v29042_v51  ;;  %v9611_v1 = vrot.slane %v9603_v4, %v29042_v51  ;;  %v9002_v61 = vcombine.high %v9000_v43, %v9000_v43  ;;  %v28536_v56 = vld [vmem:[#allocation7 + $0x220] sm:$0xff]  }
 0x1ab   : > { %v9618_v5 = vrot.slane %v9604_v50, %v29042_v51  ;;  %26278 = vst.sshfl [vmem:[#allocation2 + $0xa0] sm:$0x33 pattern:$0x75316420] %v8243_v9  ;;  %v9635_v41 = vrot.slane %v26356_v11, %v29042_v51  ;;  %v10344_v54 = vrot.slane %v26419_v42, %v29027_v39  ;;  %v10360_v52 = vcombine.high %v26420_v45, %v26420_v45 }
 0x1ac   : > { %26624 = vst.sshfl [vmem:[#allocation2 + $0x88] sm:$0x33 pattern:$0x75316420] %v13132_v40  ;;  %v8267_v10 = vcombine.low %v13131_v23, %v8266_v25  ;;  %v9628_v15 = vcombine.low %v9000_v43, %v9002_v61  ;;  %v10351_v13 = vrot.slane %v10337_v59, %v29027_v39  ;;  %v10367_v60 = vrot.slane %v26420_v45, %v29027_v39 }
 0x1ad   : > { %v9619_v38 = vcombine.low %v9611_v1, %v9618_v5  ;;  %v10352_v34 = vcombine.high %v10344_v54, %v10344_v54  ;;  %v10374_v49 = vrot.slane %v10360_v52, %v29027_v39  ;;  %v10966_v44 = vcombine.low %v30331_v47, %v10344_v54  ;;  %28154 = vmatpush3.bf16.msra.mxu0 %v28536_v56  ;;  %v30446_v1 = vld.sshfl [vmem:[%s28996_s14 + $0x2c] sm:$0x33 pattern:$0x75316420] }
 0x1ae   : > { %26279 = vst.sshfl [vmem:[#allocation2 + $0xc4] sm:$0x33 pattern:$0x75316420] %v8267_v10  ;;  %v11701_v22 = vcombine.high %v26500_v27, %v26500_v27  ;;  %v9642_v36 = vrot.slane %v9628_v15, %v29042_v51  ;;  %v10375_v37 = vcombine.high %v10367_v60, %v10367_v60  ;;  %v10967_v62 = vcombine.low %v30367_v63, %v10351_v13 }
 0x1af   : > { %26365 = vst.sshfl [vmem:[#allocation2 + $0xa4] sm:$0x33 pattern:$0x75316420] %v9619_v38  ;;  %v30405_v58 = vrot.slane %v26500_v27, %v29027_v39  ;;  %v10974_v14 = vrot.slane %v10966_v44, %v29042_v51  ;;  %v10990_v33 = vcombine.low %v10352_v34, %v10374_v49  ;;  %v30411_v3 = vcombine.high %v10374_v49, %v10374_v49 }
 0x1b0   : > { %v30409_v28 = vrot.slane %v11701_v22, %v29027_v39  ;;  %v9643_v47 = vcombine.low %v9635_v41, %v9642_v36  ;;  %v10981_v21 = vrot.slane %v10967_v62, %v29042_v51  ;;  %v10991_v35 = vcombine.low %v10367_v60, %v10375_v37  ;;  %28155 = vmatprep.subr.bf16.mxu0 %v34005_v48  ;;  %v26335_v15 = vld.sshfl [vmem:[%s28996_s14 + $0x28] sm:$0x32 pattern:$0x75316420] }
 0x1b1   : > { %v30416_v31 = vcombine.high %v30405_v58, %v30405_v58  ;;  %v10998_v16 = vrot.slane %v10990_v33, %v29042_v51  ;;  %v12385_v57 = vshrl.u32 %v30367_v63, 16  ;;  %v12390_v12 = vshll.u32 %v30405_v58, 16  ;;  %v26421_v33 = vld.sshfl [vmem:[%s28996_s14 + $0x2c] sm:$0x13 pattern:$0x75316420] }
 0x1b2   : > { %v30421_v7 = vcombine.high %v30409_v28, %v30409_v28  ;;  %26366 = vst.sshfl [vmem:[#allocation2 + $0xc8] sm:$0x33 pattern:$0x75316420] %v9643_v47  ;;  %v10982_v2 = vcombine.low %v10974_v14, %v10981_v21  ;;  %v11005_v46 = vrot.slane %v10991_v35, %v29042_v51  ;;  %v12393_v23 = vshrl.u32 %v30405_v58, 16 }
 0x1b3   : > { %v28500_v0 = vld [vmem:[#allocation2 + $0x64] ss:$36 sps:$4 sm:$0xff]   ;;  %v12398_v17 = vshll.u32 %v30409_v28, 16  ;;  %v12401_v26 = vshrl.u32 %v30409_v28, 16  ;;  %v12392_v40 = vsel %vm29078_vm14, %v12385_v57, %v12390_v12  ;;  %v12406_v55 = vshll.u32 %v30416_v31, 16 }
 0x1b4   : > { %16808 = vmatprep.mubr.bf16.mxu1 %v28500_v0  ;;  %v11006_v18 = vcombine.low %v10998_v16, %v11005_v46  ;;  %26446 = vst.sshfl [vmem:[#allocation2 + $0xa8] sm:$0x33 pattern:$0x75316420] %v10982_v2  ;;  %v12409_v24 = vshrl.u32 %v30416_v31, 16  ;;  %v12414_v19 = vshll.u32 %v30421_v7, 16  ;;  %v30452_v5 = vrot.slane %v30446_v1, %v29027_v39 }
 0x1b5   : > { %16809 = vmatmul.mubr.bf16.gmra.mrb[56].mxu1 %v28502_v53  ;;  %v12400_v63 = vsel %vm29078_vm14, %v12393_v23, %v12398_v17  ;;  %v12418_v30 = vshrl.u32 %v10367_v60, 16  ;;  %v12423_v20 = vshll.u32 %v10374_v49, 16  ;;  %v12408_v6 = vsel %vm29078_vm14, %v12401_v26, %v12406_v55  ;;  %v28506_v27 = vld [vmem:[#allocation2 + $0xa0] ss:$36 sps:$4 sm:$0xff]  }
 0x1b6   : > { %26447 = vst.sshfl [vmem:[#allocation2 + $0xcc] sm:$0x33 pattern:$0x75316420] %v11006_v18  ;;  %v12426_v4 = vshrl.u32 %v10374_v49, 16  ;;  %v12431_v42 = vshll.u32 %v10375_v37, 16  ;;  %v12416_v50 = vsel %vm29078_vm14, %v12409_v24, %v12414_v19  ;;  %v13140_v25 = vcombine.low %v30380_v29, %v12400_v63 }
 0x1b7   : > { %v12434_v43 = vshrl.u32 %v10375_v37, 16  ;;  %v12425_v45 = vsel %vm29078_vm14, %v12418_v30, %v12423_v20  ;;  %v12439_v9 = vshll.u32 %v30411_v3, 16  ;;  %v13141_v61 = vcombine.low %v12392_v40, %v12408_v6  ;;  %v26422_v56 = vld.sshfl [vmem:[%s28996_s14 + $0x30] sm:$0x33 pattern:$0x75316420] }
 0x1b8   : > { %v12433_v11 = vsel %vm29078_vm14, %v12426_v4, %v12431_v42  ;;  %v13148_v41 = vrot.slane %v13140_v25, %v29042_v51  ;;  %v7586_v34 = vshrl.u32 %v30411_v3, 16  ;;  %v7591_v49 = vshll.u32 %v30452_v5, 16 }
 0x1b9   : > { %v28504_v59 = vld [vmem:[#allocation2 + $0xa4] ss:$36 sps:$4 sm:$0xff]   ;;  %v12441_v10 = vsel %vm29078_vm14, %v12434_v43, %v12439_v9  ;;  %v13164_v54 = vcombine.low %v12416_v50, %v12433_v11  ;;  %v13155_v29 = vrot.slane %v13141_v61, %v29042_v51  ;;  %v8276_v22 = vcombine.low %v12400_v63, %v12416_v50 }
 0x1ba   : > { %v13165_v52 = vcombine.low %v12425_v45, %v12441_v10  ;;  %16680 = vmatprep.mubr.bf16.mxu0 %v28504_v59  ;;  %v9034_v0 = vcombine.high %v26335_v15, %v26335_v15  ;;  %v30465_v53 = vsel %vm29078_vm14, %v7586_v34, %v7591_v49  ;;  %v9041_v36 = vrot.slane %v26335_v15, %v29027_v39 }
 0x1bb   : > { %v13172_v38 = vrot.slane %v13164_v54, %v29042_v51  ;;  %16681 = vmatmul.mubr.bf16.gmra.mrb[60].mxu0 %v28506_v27  ;;  %v13156_v13 = vcombine.low %v13148_v41, %v13155_v29  ;;  %v9651_v37 = vcombine.low %v30405_v58, %v30416_v31  ;;  %v8290_v62 = vrot.slane %v8276_v22, %v29042_v51 }
 0x1bc   : > { %v13179_v60 = vrot.slane %v13165_v52, %v29042_v51  ;;  %v8300_v14 = vcombine.low %v12433_v11, %v30465_v53  ;;  %v9048_v47 = vrot.slane %v9034_v0, %v29027_v39  ;;  %v9049_v21 = vcombine.high %v9041_v36, %v9041_v36 }
 0x1bd   : > { %26625 = vst.sshfl [vmem:[#allocation2 + $0xac] sm:$0x33 pattern:$0x75316420] %v13156_v13  ;;  %v9652_v35 = vcombine.low %v30409_v28, %v30421_v7  ;;  %v9659_v16 = vrot.slane %v9651_v37, %v29042_v51  ;;  %v8291_v2 = vcombine.low %v13155_v29, %v8290_v62  ;;  %v10384_v12 = vcombine.high %v26421_v33, %v26421_v33  ;;  %v28509_v4 = vld [vmem:[#allocation2 + $0xa8] ss:$36 sps:$4 sm:$0xff]  }
 0x1be   : > { %v13180_v44 = vcombine.low %v13172_v38, %v13179_v60  ;;  %v8314_v46 = vrot.slane %v8300_v14, %v29042_v51  ;;  %v9050_v58 = vcombine.high %v9048_v47, %v9048_v47  ;;  %v9676_v57 = vcombine.low %v9049_v21, %v30452_v5  ;;  %v30484_v28 = vld.sshfl [vmem:[%s28996_s14 + $0x34] sm:$0x33 pattern:$0x75316420] }
 0x1bf   : > { %v9666_v31 = vrot.slane %v9652_v35, %v29042_v51  ;;  %26280 = vst.sshfl [vmem:[#allocation2 + $0xe8] sm:$0x33 pattern:$0x75316420] %v8291_v2  ;;  %v10391_v17 = vrot.slane %v26421_v33, %v29027_v39  ;;  %v10407_v26 = vcombine.high %v26422_v56, %v26422_v56  ;;  %v10414_v18 = vrot.slane %v26422_v56, %v29027_v39 }
 0x1c0   : > { %26626 = vst.sshfl [vmem:[#allocation2 + $0xd0] sm:$0x33 pattern:$0x75316420] %v13180_v44  ;;  %v8315_v23 = vcombine.low %v13179_v60, %v8314_v46  ;;  %v9675_v40 = vcombine.low %v9048_v47, %v9050_v58  ;;  %v9690_v55 = vrot.slane %v9676_v57, %v29042_v51  ;;  %v10398_v24 = vrot.slane %v10384_v12, %v29027_v39 }
 0x1c1   : > { %v9667_v7 = vcombine.low %v9659_v16, %v9666_v31  ;;  %v10399_v63 = vcombine.high %v10391_v17, %v10391_v17  ;;  %v10421_v19 = vrot.slane %v10407_v26, %v29027_v39  ;;  %v10422_v30 = vcombine.high %v10414_v18, %v10414_v18 }
 0x1c2   : > { %26281 = vst.sshfl [vmem:[#allocation2 + $0x10c] sm:$0x33 pattern:$0x75316420] %v8315_v23  ;;  %v11749_v20 = vcombine.high %v30446_v1, %v30446_v1  ;;  %v9683_v42 = vrot.slane %v9675_v40, %v29042_v51  ;;  %v11014_v43 = vcombine.low %v30411_v3, %v10398_v24  ;;  %v30495_v50 = vcombine.high %v30452_v5, %v30452_v5 }
 0x1c3   : > { %26367 = vst.sshfl [vmem:[#allocation2 + $0xec] sm:$0x33 pattern:$0x75316420] %v9667_v7  ;;  %v30499_v45 = vrot.slane %v30484_v28, %v29027_v39  ;;  %v10423_v9 = vcombine.high %v10421_v19, %v10421_v19  ;;  %v11015_v25 = vcombine.low %v10391_v17, %v10399_v63  ;;  %v11038_v11 = vcombine.low %v10414_v18, %v10422_v30 }
 0x1c4   : > { %v30502_v1 = vrot.slane %v11749_v20, %v29027_v39  ;;  %v9691_v61 = vcombine.low %v9683_v42, %v9690_v55  ;;  %v11022_v59 = vrot.slane %v11014_v43, %v29042_v51  ;;  %v12450_v3 = vshrl.u32 %v30452_v5, 16  ;;  %v26337_v55 = vld.sshfl [vmem:[%s28996_s14 + $0x30] sm:$0x32 pattern:$0x75316420] }
 0x1c5   : > { %v11029_v27 = vrot.slane %v11015_v25, %v29042_v51  ;;  %v11039_v10 = vcombine.low %v10421_v19, %v10423_v9  ;;  %v11046_v41 = vrot.slane %v11038_v11, %v29042_v51  ;;  %v12463_v38 = vshll.u32 %v30495_v50, 16 }
 0x1c6   : > { %v11765_v54 = vcombine.high %v30502_v1, %v30502_v1  ;;  %26368 = vst.sshfl [vmem:[#allocation2 + $0x110] sm:$0x33 pattern:$0x75316420] %v9691_v61  ;;  %v12455_v29 = vshll.u32 %v30502_v1, 16  ;;  %v12458_v52 = vshrl.u32 %v30502_v1, 16  ;;  %v6932_v58 = vcombine.high %v30484_v28, %v30484_v28 }
 0x1c7   : > { %v28507_v6 = vld [vmem:[#allocation2 + $0xac] ss:$36 sps:$4 sm:$0xff]   ;;  %v11030_v15 = vcombine.low %v11022_v59, %v11029_v27  ;;  %v11053_v13 = vrot.slane %v11039_v10, %v29042_v51  ;;  %v12466_v5 = vshrl.u32 %v30495_v50, 16  ;;  %v12475_v44 = vshrl.u32 %v10414_v18, 16 }
 0x1c8   : > { %16816 = vmatprep.mubr.bf16.mxu1 %v28507_v6  ;;  %v12471_v60 = vshll.u32 %v11765_v54, 16  ;;  %v12457_v34 = vsel %vm29078_vm14, %v12450_v3, %v12455_v29  ;;  %v12465_v49 = vsel %vm29078_vm14, %v12458_v52, %v12463_v38  ;;  %v12480_v22 = vshll.u32 %v10421_v19, 16  ;;  %v26424_v59 = vld.sshfl [vmem:[%s28996_s14 + $0x38] sm:$0x33 pattern:$0x75316420] }
 0x1c9   : > { %16817 = vmatmul.mubr.bf16.gmra.mrb[60].mxu1 %v28509_v4  ;;  %v11054_v0 = vcombine.low %v11046_v41, %v11053_v13  ;;  %26448 = vst.sshfl [vmem:[#allocation2 + $0xf0] sm:$0x33 pattern:$0x75316420] %v11030_v15  ;;  %v12483_v37 = vshrl.u32 %v10421_v19, 16  ;;  %v12488_v62 = vshll.u32 %v10422_v30, 16  ;;  %v13188_v56 = vcombine.low %v30465_v53, %v12465_v49 }
 0x1ca   : > { %v12473_v36 = vsel %vm29078_vm14, %v12466_v5, %v12471_v60  ;;  %v12482_v14 = vsel %vm29078_vm14, %v12475_v44, %v12480_v22  ;;  %v12491_v33 = vshrl.u32 %v10422_v30, 16  ;;  %v12496_v47 = vshll.u32 %v10423_v9, 16  ;;  %v28512_v57 = vld [vmem:[#allocation2 + $0xe8] ss:$36 sps:$4 sm:$0xff]  }
 0x1cb   : > { %v12499_v21 = vshrl.u32 %v10423_v9, 16  ;;  %26449 = vst.sshfl [vmem:[#allocation2 + $0x114] sm:$0x33 pattern:$0x75316420] %v11054_v0  ;;  %v12490_v35 = vsel %vm29078_vm14, %v12483_v37, %v12488_v62  ;;  %v12504_v16 = vshll.u32 %v30499_v45, 16  ;;  %v13189_v2 = vcombine.low %v12457_v34, %v12473_v36 }
 0x1cc   : > { %v12498_v46 = vsel %vm29078_vm14, %v12491_v33, %v12496_v47  ;;  %v13196_v23 = vrot.slane %v13188_v56, %v29042_v51  ;;  %v30536_v53 = vrot.slane %v6932_v58, %v29027_v39  ;;  %v7651_v63 = vshrl.u32 %v30499_v45, 16  ;;  %v26423_v4 = vld.sshfl [vmem:[%s28996_s14 + $0x34] sm:$0x13 pattern:$0x75316420] }
 0x1cd   : > { %v28510_v31 = vld [vmem:[#allocation2 + $0xec] ss:$36 sps:$4 sm:$0xff]   ;;  %v12506_v12 = vsel %vm29078_vm14, %v12499_v21, %v12504_v16  ;;  %v13203_v17 = vrot.slane %v13189_v2, %v29042_v51  ;;  %v13212_v26 = vcombine.low %v12482_v14, %v12498_v46  ;;  %v8324_v30 = vcombine.low %v12465_v49, %v12482_v14 }
 0x1ce   : > { %v13213_v18 = vcombine.low %v12490_v35, %v12506_v12  ;;  %16688 = vmatprep.mubr.bf16.mxu0 %v28510_v31  ;;  %v7656_v19 = vshll.u32 %v30536_v53, 16  ;;  %v9082_v20 = vcombine.high %v26337_v55, %v26337_v55  ;;  %v9089_v6 = vrot.slane %v26337_v55, %v29027_v39  ;;  %v26506_v22 = vld.sshfl [vmem:[%s28996_s14 + $0x3c] sm:$0x33 pattern:$0x75316420] }
 0x1cf   : > { %v13204_v7 = vcombine.low %v13196_v23, %v13203_v17  ;;  %v13220_v40 = vrot.slane %v13212_v26, %v29042_v51  ;;  %16689 = vmatmul.mubr.bf16.gmra.mrb[64].mxu0 %v28512_v57  ;;  %v9699_v43 = vcombine.low %v30502_v1, %v11765_v54  ;;  %v8338_v9 = vrot.slane %v8324_v30, %v29042_v51  ;;  %v30559_v54 = vld.sshfl [vmem:[%s28996_s14 + $0x3c] sm:$0x13 pattern:$0x75316420]  ;;  %v28549_v23 = vld [vmem:[#allocation7 + $0x228] sm:$0xff]  }
 0x1d0   : > { %v13227_v28 = vrot.slane %v13213_v18, %v29042_v51  ;;  %v30547_v42 = vsel %vm29078_vm14, %v7651_v63, %v7656_v19  ;;  %v9096_v11 = vrot.slane %v9082_v20, %v29027_v39  ;;  %v9097_v61 = vcombine.high %v9089_v6, %v9089_v6  ;;  %28156 = vmatpush3.bf16.msra.mxu0 %v28549_v23 }
 0x1d1   : > { %26627 = vst.sshfl [vmem:[#allocation2 + $0xf4] sm:$0x33 pattern:$0x75316420] %v13204_v7  ;;  %v8348_v25 = vcombine.low %v12498_v46, %v30547_v42  ;;  %v9707_v3 = vrot.slane %v9699_v43, %v29042_v51  ;;  %v10431_v27 = vcombine.high %v26423_v4, %v26423_v4  ;;  %v10438_v10 = vrot.slane %v26423_v4, %v29027_v39 }
 0x1d2   : > { %v13228_v24 = vcombine.low %v13220_v40, %v13227_v28  ;;  %v8339_v41 = vcombine.low %v13203_v17, %v8338_v9  ;;  %v9098_v52 = vcombine.high %v9096_v11, %v9096_v11  ;;  %v9700_v1 = vcombine.low %v30495_v50, %v9096_v11  ;;  %v28515_v36 = vld [vmem:[#allocation2 + $0xf0] ss:$36 sps:$4 sm:$0xff]   ;;  %28157 = vmatprep.subr.bf16.mxu0 %v34005_v48 }
 0x1d3   : > { %v8362_v29 = vrot.slane %v8348_v25, %v29042_v51  ;;  %v9723_v38 = vcombine.low %v9097_v61, %v30499_v45  ;;  %v10445_v15 = vrot.slane %v10431_v27, %v29027_v39  ;;  %v10446_v13 = vcombine.high %v10438_v10, %v10438_v10 }
 0x1d4   : > { %26628 = vst.sshfl [vmem:[#allocation2 + $0x118] sm:$0x33 pattern:$0x75316420] %v13228_v24  ;;  %v10454_v5 = vcombine.high %v26424_v59, %v26424_v59  ;;  %v9714_v34 = vrot.slane %v9700_v1, %v29042_v51  ;;  %v9724_v49 = vcombine.low %v9098_v52, %v30536_v53  ;;  %v10461_v44 = vrot.slane %v26424_v59, %v29027_v39 }
 0x1d5   : > { %v8363_v60 = vcombine.low %v13227_v28, %v8362_v29  ;;  %26282 = vst.sshfl [vmem:[#allocation2 + $0x130] sm:$0x33 pattern:$0x75316420] %v8339_v41  ;;  %v9731_v50 = vrot.slane %v9723_v38, %v29042_v51  ;;  %v30571_v62 = vrot.slane %v30559_v54, %v29027_v39  ;;  %v11062_v14 = vcombine.low %v10438_v10, %v10446_v13 }
 0x1d6   : > { %v10468_v37 = vrot.slane %v10454_v5, %v29027_v39  ;;  %v9715_v33 = vcombine.low %v9707_v3, %v9714_v34  ;;  %v9738_v47 = vrot.slane %v9724_v49, %v29042_v51  ;;  %v10469_v21 = vcombine.high %v10461_v44, %v10461_v44 }
 0x1d7   : > { %26283 = vst.sshfl [vmem:[#allocation2 + $0x154] sm:$0x33 pattern:$0x75316420] %v8363_v60  ;;  %v11063_v35 = vcombine.low %v10445_v15, %v10461_v44  ;;  %v11070_v56 = vrot.slane %v11062_v14, %v29042_v51  ;;  %v30577_v2 = vcombine.high %v30499_v45, %v30499_v45  ;;  %v11813_v46 = vcombine.high %v30536_v53, %v30536_v53 }
 0x1d8   : > { %v10470_v16 = vcombine.high %v10468_v37, %v10468_v37  ;;  %v9739_v58 = vcombine.low %v9731_v50, %v9738_v47  ;;  %26369 = vst.sshfl [vmem:[#allocation2 + $0x134] sm:$0x33 pattern:$0x75316420] %v9715_v33  ;;  %v11087_v57 = vcombine.low %v10469_v21, %v30571_v62  ;;  %v11845_v12 = vcombine.high %v26506_v22, %v26506_v22 }
 0x1d9   : > { %v11077_v31 = vrot.slane %v11063_v35, %v29042_v51  ;;  %v30584_v26 = vrot.slane %v26506_v22, %v29027_v39  ;;  %v12515_v18 = vshrl.u32 %v30536_v53, 16  ;;  %v12520_v28 = vshll.u32 %v30577_v2, 16  ;;  %v26339_v50 = vld.sshfl [vmem:[%s28996_s14 + $0x38] sm:$0x32 pattern:$0x75316420] }
 0x1da   : > { %v11086_v17 = vcombine.low %v10468_v37, %v10470_v16  ;;  %26370 = vst.sshfl [vmem:[#allocation2 + $0x158] sm:$0x33 pattern:$0x75316420] %v9739_v58  ;;  %v11101_v7 = vrot.slane %v11087_v57, %v29042_v51  ;;  %v30589_v40 = vrot.slane %v11845_v12, %v29027_v39  ;;  %v12523_v24 = vshrl.u32 %v30577_v2, 16 }
 0x1db   : > { %v28513_v0 = vld [vmem:[#allocation2 + $0xf4] ss:$36 sps:$4 sm:$0xff]   ;;  %v11078_v45 = vcombine.low %v11070_v56, %v11077_v31  ;;  %v12528_v63 = vshll.u32 %v11813_v46, 16  ;;  %v12522_v19 = vsel %vm29078_vm14, %v12515_v18, %v12520_v28  ;;  %v12532_v30 = vshrl.u32 %v10461_v44, 16 }
 0x1dc   : > { %16824 = vmatprep.mubr.bf16.mxu1 %v28513_v0  ;;  %v11094_v55 = vrot.slane %v11086_v17, %v29042_v51  ;;  %v12537_v20 = vshll.u32 %v10468_v37, 16  ;;  %v12540_v6 = vshrl.u32 %v10468_v37, 16  ;;  %v12545_v9 = vshll.u32 %v10469_v21, 16 }
 0x1dd   : > { %16825 = vmatmul.mubr.bf16.gmra.mrb[64].mxu1 %v28515_v36  ;;  %26450 = vst.sshfl [vmem:[#allocation2 + $0x138] sm:$0x33 pattern:$0x75316420] %v11078_v45  ;;  %v12530_v43 = vsel %vm29078_vm14, %v12523_v24, %v12528_v63  ;;  %v12548_v25 = vshrl.u32 %v10469_v21, 16  ;;  %v12553_v61 = vshll.u32 %v10470_v16, 16  ;;  %v30616_v49 = vcombine.high %v30584_v26, %v30584_v26 }
 0x1de   : > { %v11102_v4 = vcombine.low %v11094_v55, %v11101_v7  ;;  %v12539_v11 = vsel %vm29078_vm14, %v12532_v30, %v12537_v20  ;;  %v12556_v59 = vshrl.u32 %v10470_v16, 16  ;;  %v12561_v3 = vshll.u32 %v30584_v26, 16  ;;  %v28519_v13 = vld [vmem:[#allocation2 + $0x130] ss:$36 sps:$4 sm:$0xff]  }
 0x1df   : > { %v12547_v27 = vsel %vm29078_vm14, %v12540_v6, %v12545_v9  ;;  %v12564_v10 = vshrl.u32 %v30584_v26, 16  ;;  %v12569_v41 = vshll.u32 %v30589_v40, 16  ;;  %v13236_v29 = vcombine.low %v30547_v42, %v12530_v43  ;;  %v26426_v31 = vld.sshfl [vmem:[%s28996_s14 + $0x40] sm:$0x33 pattern:$0x75316420] }
 0x1e0   : > { %26451 = vst.sshfl [vmem:[#allocation2 + $0x15c] sm:$0x33 pattern:$0x75316420] %v11102_v4  ;;  %v12555_v52 = vsel %vm29078_vm14, %v12548_v25, %v12553_v61  ;;  %v12563_v1 = vsel %vm29078_vm14, %v12556_v59, %v12561_v3  ;;  %v13237_v38 = vcombine.low %v12522_v19, %v12539_v11  ;;  %v7716_v14 = vshrl.u32 %v30589_v40, 16 }
 0x1e1   : > { %v28517_v15 = vld [vmem:[#allocation2 + $0x134] ss:$36 sps:$4 sm:$0xff]   ;;  %v12571_v5 = vsel %vm29078_vm14, %v12564_v10, %v12569_v41  ;;  %v13244_v60 = vrot.slane %v13236_v29, %v29042_v51  ;;  %v13260_v34 = vcombine.low %v12547_v27, %v12563_v1  ;;  %v7721_v33 = vshll.u32 %v30616_v49, 16 }
 0x1e2   : > { %v13251_v42 = vrot.slane %v13237_v38, %v29042_v51  ;;  %v13261_v44 = vcombine.low %v12555_v52, %v12571_v5  ;;  %16696 = vmatprep.mubr.bf16.mxu0 %v28517_v15  ;;  %v9130_v47 = vcombine.high %v26339_v50, %v26339_v50  ;;  %v8372_v35 = vcombine.low %v12530_v43, %v12547_v27  ;;  %v26427_v45 = vld.sshfl [vmem:[%s28996_s14 + $0x44] sm:$0x13 pattern:$0x75316420] }
 0x1e3   : > { %v13268_v22 = vrot.slane %v13260_v34, %v29042_v51  ;;  %16697 = vmatmul.mubr.bf16.gmra.mrb[68].mxu0 %v28519_v13  ;;  %v30626_v21 = vsel %vm29078_vm14, %v7716_v14, %v7721_v33  ;;  %v9137_v56 = vrot.slane %v26339_v50, %v29027_v39  ;;  %v10478_v57 = vcombine.high %v30559_v54, %v30559_v54 }
 0x1e4   : > { %v13252_v0 = vcombine.low %v13244_v60, %v13251_v42  ;;  %v13275_v36 = vrot.slane %v13261_v44, %v29042_v51  ;;  %v8396_v16 = vcombine.low %v12563_v1, %v30626_v21  ;;  %v9144_v46 = vrot.slane %v9130_v47, %v29027_v39 }
 0x1e5   : > { %v8386_v58 = vrot.slane %v8372_v35, %v29042_v51  ;;  %v26357_v18 = vcombine.high %v30536_v53, %v9137_v56  ;;  %v9772_v28 = vcombine.low %v30584_v26, %v30616_v49  ;;  %v10492_v55 = vrot.slane %v10478_v57, %v29027_v39  ;;  %v26508_v26 = vld.sshfl [vmem:[%s28996_s14 + $0x44] sm:$0x33 pattern:$0x75316420] }
 0x1e6   : > { %v13276_v37 = vcombine.low %v13268_v22, %v13275_v36  ;;  %26629 = vst.sshfl [vmem:[#allocation2 + $0x13c] sm:$0x33 pattern:$0x75316420] %v13252_v0  ;;  %v8410_v12 = vrot.slane %v8396_v16, %v29042_v51  ;;  %v9146_v23 = vcombine.high %v9144_v46, %v9144_v46  ;;  %v9747_v17 = vcombine.low %v30577_v2, %v9144_v46 }
 0x1e7   : > { %v8387_v7 = vcombine.low %v13251_v42, %v8386_v58  ;;  %v10493_v24 = vcombine.high %v30571_v62, %v30571_v62  ;;  %v9762_v19 = vrot.slane %v26357_v18, %v29042_v51  ;;  %v9786_v53 = vrot.slane %v9772_v28, %v29042_v51  ;;  %v28522_v43 = vld [vmem:[#allocation2 + $0x138] ss:$36 sps:$4 sm:$0xff]  }
 0x1e8   : > { %26630 = vst.sshfl [vmem:[#allocation2 + $0x160] sm:$0x33 pattern:$0x75316420] %v13276_v37  ;;  %v8411_v63 = vcombine.low %v13275_v36, %v8410_v12  ;;  %v9755_v54 = vrot.slane %v9747_v17, %v29042_v51  ;;  %v9771_v2 = vcombine.low %v9146_v23, %v30589_v40  ;;  %v10501_v30 = vcombine.high %v26426_v31, %v26426_v31 }
 0x1e9   : > { %26284 = vst.sshfl [vmem:[#allocation2 + $0x178] sm:$0x33 pattern:$0x75316420] %v8387_v7  ;;  %v10508_v20 = vrot.slane %v26426_v31, %v29027_v39  ;;  %v10525_v6 = vcombine.high %v26427_v45, %v26427_v45  ;;  %v30652_v25 = vrot.slane %v26427_v45, %v29027_v39  ;;  %v11861_v10 = vcombine.high %v30589_v40, %v30589_v40 }
 0x1ea   : > { %26285 = vst.sshfl [vmem:[#allocation2 + $0x19c] sm:$0x33 pattern:$0x75316420] %v8411_v63  ;;  %v9763_v9 = vcombine.low %v9755_v54, %v9762_v19  ;;  %v9779_v62 = vrot.slane %v9771_v2, %v29042_v51  ;;  %v10515_v11 = vrot.slane %v10501_v30, %v29027_v39  ;;  %v11893_v41 = vcombine.high %v26508_v26, %v26508_v26  ;;  %v28558_v19 = vld [vmem:[#allocation7 + $0x230] sm:$0xff]  }
 0x1eb   : > { %v10516_v61 = vcombine.high %v10508_v20, %v10508_v20  ;;  %v10539_v59 = vrot.slane %v10525_v6, %v29027_v39  ;;  %v11110_v3 = vcombine.low %v10492_v55, %v10508_v20  ;;  %v30659_v29 = vrot.slane %v26508_v26, %v29027_v39  ;;  %28158 = vmatpush3.bf16.msra.mxu0 %v28558_v19 }
 0x1ec   : > { %v9787_v27 = vcombine.low %v9779_v62, %v9786_v53  ;;  %26371 = vst.sshfl [vmem:[#allocation2 + $0x17c] sm:$0x33 pattern:$0x75316420] %v9763_v9  ;;  %v10517_v52 = vcombine.high %v10515_v11, %v10515_v11  ;;  %v11111_v1 = vcombine.low %v10493_v24, %v10515_v11  ;;  %v30664_v13 = vrot.slane %v11893_v41, %v29027_v39 }
 0x1ed   : > { %v11118_v38 = vrot.slane %v11110_v3, %v29042_v51  ;;  %v11134_v15 = vcombine.low %v10516_v61, %v30652_v25  ;;  %v30668_v5 = vcombine.high %v30659_v29, %v30659_v29  ;;  %v12580_v44 = vshrl.u32 %v30616_v49, 16  ;;  %28159 = vmatprep.subr.bf16.mxu0 %v34005_v48 }
 0x1ee   : > { %26372 = vst.sshfl [vmem:[#allocation2 + $0x1a0] sm:$0x33 pattern:$0x75316420] %v9787_v27  ;;  %v11125_v60 = vrot.slane %v11111_v1, %v29042_v51  ;;  %v11135_v34 = vcombine.low %v10517_v52, %v10539_v59  ;;  %v12585_v22 = vshll.u32 %v11861_v10, 16  ;;  %v12589_v0 = vshrl.u32 %v10508_v20, 16 }
 0x1ef   : > { %v28520_v4 = vld [vmem:[#allocation2 + $0x13c] ss:$36 sps:$4 sm:$0xff]   ;;  %v11142_v42 = vrot.slane %v11134_v15, %v29042_v51  ;;  %v12594_v36 = vshll.u32 %v10515_v11, 16  ;;  %v12597_v14 = vshrl.u32 %v10515_v11, 16  ;;  %v12602_v33 = vshll.u32 %v10516_v61, 16 }
 0x1f0   : > { %16832 = vmatprep.mubr.bf16.mxu1 %v28520_v4  ;;  %v11126_v50 = vcombine.low %v11118_v38, %v11125_v60  ;;  %v11149_v37 = vrot.slane %v11135_v34, %v29042_v51  ;;  %v12587_v47 = vsel %vm29078_vm14, %v12580_v44, %v12585_v22  ;;  %v12605_v16 = vshrl.u32 %v10516_v61, 16  ;;  %v26429_v44 = vld.sshfl [vmem:[%s28996_s14 + $0x4c] sm:$0x13 pattern:$0x75316420] }
 0x1f1   : > { %16833 = vmatmul.mubr.bf16.gmra.mrb[68].mxu1 %v28522_v43  ;;  %v12596_v35 = vsel %vm29078_vm14, %v12589_v0, %v12594_v36  ;;  %v12610_v56 = vshll.u32 %v10517_v52, 16  ;;  %v12604_v49 = vsel %vm29078_vm14, %v12597_v14, %v12602_v33  ;;  %v12613_v58 = vshrl.u32 %v10517_v52, 16  ;;  %v28525_v45 = vld [vmem:[#allocation2 + $0x178] ss:$36 sps:$4 sm:$0xff]  }
 0x1f2   : > { %v11150_v46 = vcombine.low %v11142_v42, %v11149_v37  ;;  %26452 = vst.sshfl [vmem:[#allocation2 + $0x180] sm:$0x33 pattern:$0x75316420] %v11126_v50  ;;  %v12618_v31 = vshll.u32 %v30659_v29, 16  ;;  %v12621_v12 = vshrl.u32 %v30659_v29, 16  ;;  %v13284_v55 = vcombine.low %v30626_v21, %v12596_v35 }
 0x1f3   : > { %v12612_v57 = vsel %vm29078_vm14, %v12605_v16, %v12610_v56  ;;  %v12626_v23 = vshll.u32 %v30664_v13, 16  ;;  %v12629_v17 = vshrl.u32 %v30664_v13, 16  ;;  %v12634_v28 = vshll.u32 %v30668_v5, 16 }
 0x1f4   : > { %26453 = vst.sshfl [vmem:[#allocation2 + $0x1a4] sm:$0x33 pattern:$0x75316420] %v11150_v46  ;;  %v12620_v7 = vsel %vm29078_vm14, %v12613_v58, %v12618_v31  ;;  %v13285_v24 = vcombine.low %v12587_v47, %v12604_v49  ;;  %v7044_v54 = vcombine.high %v30664_v13, %v30664_v13  ;;  %v13292_v53 = vrot.slane %v13284_v55, %v29042_v51 }
 0x1f5   : > { %v28523_v18 = vld [vmem:[#allocation2 + $0x17c] ss:$36 sps:$4 sm:$0xff]   ;;  %v12628_v63 = vsel %vm29078_vm14, %v12621_v12, %v12626_v23  ;;  %v12636_v2 = vsel %vm29078_vm14, %v12629_v17, %v12634_v28  ;;  %v26341_v21 = vld.sshfl [vmem:[%s28996_s14 + $0x40] sm:$0x32 pattern:$0x75316420]  ;;  %v8420_v3 = vcombine.low %v12596_v35, %v12612_v57  ;;  %v9819_v15 = vcombine.low %v30659_v29, %v30668_v5 }
 0x1f6   : > { %16704 = vmatprep.mubr.bf16.mxu0 %v28523_v18  ;;  %v13299_v30 = vrot.slane %v13285_v24, %v29042_v51  ;;  %v13308_v20 = vcombine.low %v12612_v57, %v12628_v63  ;;  %v13309_v6 = vcombine.low %v12620_v7, %v12636_v2  ;;  %v7781_v9 = vshrl.u32 %v30668_v5, 16  ;;  %v26428_v52 = vld.sshfl [vmem:[%s28996_s14 + $0x48] sm:$0x33 pattern:$0x75316420] }
 0x1f7   : > { %16705 = vmatmul.mubr.bf16.gmra.mrb[72].mxu0 %v28525_v45  ;;  %v7786_v62 = vshll.u32 %v7044_v54, 16  ;;  %v9178_v11 = vcombine.high %v26341_v21, %v26341_v21  ;;  %v9185_v27 = vrot.slane %v26341_v21, %v29027_v39  ;;  %v8434_v1 = vrot.slane %v8420_v3, %v29042_v51  ;;  %v26510_v14 = vld.sshfl [vmem:[%s28996_s14 + $0x4c] sm:$0x33 pattern:$0x75316420] }
 0x1f8   : > { %v13300_v26 = vcombine.low %v13292_v53, %v13299_v30  ;;  %v13316_v4 = vrot.slane %v13308_v20, %v29042_v51  ;;  %v13323_v43 = vrot.slane %v13309_v6, %v29042_v51  ;;  %v9820_v42 = vcombine.low %v30664_v13, %v7044_v54 }
 0x1f9   : > { %v30705_v59 = vsel %vm29078_vm14, %v7781_v9, %v7786_v62  ;;  %v9192_v41 = vrot.slane %v9178_v11, %v29027_v39  ;;  %v26358_v38 = vcombine.high %v30589_v40, %v9185_v27  ;;  %v10540_v22 = vcombine.high %v30652_v25, %v30652_v25  ;;  %v26166_v11 = vld.sshfl [vmem:[%s28996_s14 + $0x50] sm:$0x33 pattern:$0x75316420] }
 0x1fa   : > { %26631 = vst.sshfl [vmem:[#allocation2 + $0x184] sm:$0x33 pattern:$0x75316420] %v13300_v26  ;;  %v13324_v61 = vcombine.low %v13316_v4, %v13323_v43  ;;  %v8444_v10 = vcombine.low %v12628_v63, %v30705_v59  ;;  %v8435_v0 = vcombine.low %v13299_v30, %v8434_v1  ;;  %v9827_v50 = vrot.slane %v9819_v15, %v29042_v51 }
 0x1fb   : > { %v9194_v34 = vcombine.high %v9192_v41, %v9192_v41  ;;  %v9803_v36 = vrot.slane %v26358_v38, %v29042_v51  ;;  %v10548_v37 = vcombine.high %v26428_v52, %v26428_v52  ;;  %v9834_v29 = vrot.slane %v9820_v42, %v29042_v51  ;;  %v28529_v58 = vld [vmem:[#allocation2 + $0x180] ss:$36 sps:$4 sm:$0xff]  }
 0x1fc   : > { %26632 = vst.sshfl [vmem:[#allocation2 + $0x1a8] sm:$0x33 pattern:$0x75316420] %v13324_v61  ;;  %v8458_v60 = vrot.slane %v8444_v10, %v29042_v51  ;;  %v10555_v5 = vrot.slane %v26428_v52, %v29027_v39  ;;  %v10572_v47 = vcombine.high %v26429_v44, %v26429_v44  ;;  %v10579_v35 = vrot.slane %v26429_v44, %v29027_v39 }
 0x1fd   : > { %v9796_v33 = vcombine.low %v9192_v41, %v9194_v34  ;;  %26286 = vst.sshfl [vmem:[#allocation2 + $0x1c0] sm:$0x33 pattern:$0x75316420] %v8435_v0  ;;  %v10562_v13 = vrot.slane %v10548_v37, %v29027_v39  ;;  %v9835_v16 = vcombine.low %v9827_v50, %v9834_v29  ;;  %v11941_v46 = vcombine.high %v26510_v14, %v26510_v14 }
 0x1fe   : > { %v8459_v40 = vcombine.low %v13323_v43, %v8458_v60  ;;  %v10563_v56 = vcombine.high %v10555_v5, %v10555_v5  ;;  %v10586_v57 = vrot.slane %v10572_v47, %v29027_v39  ;;  %v10587_v12 = vcombine.high %v10579_v35, %v10579_v35  ;;  %v26343_v47 = vld.sshfl [vmem:[%s28996_s14 + $0x48] sm:$0x32 pattern:$0x75316420] }
 0x1ff   : > { %v9810_v25 = vrot.slane %v9796_v33, %v29042_v51  ;;  %v10564_v31 = vcombine.high %v10562_v13, %v10562_v13  ;;  %v11158_v23 = vcombine.low %v10540_v22, %v10562_v13  ;;  %26374 = vst.sshfl [vmem:[#allocation2 + $0x1e8] sm:$0x33 pattern:$0x75316420] %v9835_v16  ;;  %v30730_v45 = vrot.slane %v26510_v14, %v29027_v39 }
 0x200   : > { %26287 = vst.sshfl [vmem:[#allocation2 + $0x1e4] sm:$0x33 pattern:$0x75316420] %v8459_v40  ;;  %v11159_v18 = vcombine.low %v10555_v5, %v10563_v56  ;;  %v30733_v7 = vrot.slane %v11941_v46, %v29027_v39  ;;  %v11183_v24 = vcombine.low %v10579_v35, %v10587_v12  ;;  %v12646_v30 = vshrl.u32 %v10555_v5, 16 }
 0x201   : > { %v9811_v17 = vcombine.low %v9803_v36, %v9810_v25  ;;  %v11166_v28 = vrot.slane %v11158_v23, %v29042_v51  ;;  %v11182_v55 = vcombine.low %v10564_v31, %v10586_v57  ;;  %v30739_v54 = vcombine.high %v30730_v45, %v30730_v45 }
 0x202   : > { %v11173_v63 = vrot.slane %v11159_v18, %v29042_v51  ;;  %v30743_v19 = vcombine.high %v30733_v7, %v30733_v7  ;;  %v11197_v53 = vrot.slane %v11183_v24, %v29042_v51  ;;  %v12651_v20 = vshll.u32 %v10562_v13, 16 }
 0x203   : > { %v28527_v49 = vld [vmem:[#allocation2 + $0x184] ss:$36 sps:$4 sm:$0xff]   ;;  %26373 = vst.sshfl [vmem:[#allocation2 + $0x1c4] sm:$0x33 pattern:$0x75316420] %v9811_v17  ;;  %v11190_v2 = vrot.slane %v11182_v55, %v29042_v51  ;;  %v7100_v37 = vcombine.high %v26166_v11, %v26166_v11  ;;  %v7107_v29 = vrot.slane %v26166_v11, %v29027_v39  ;;  %v9233_v57 = vrot.slane %v26343_v47, %v29027_v39 }
 0x204   : > { %16840 = vmatprep.mubr.bf16.mxu1 %v28527_v49  ;;  %v11174_v6 = vcombine.low %v11166_v28, %v11173_v63  ;;  %v12654_v21 = vshrl.u32 %v10562_v13, 16  ;;  %v12659_v26 = vshll.u32 %v10563_v56, 16  ;;  %v12653_v43 = vsel %vm29078_vm14, %v12646_v30, %v12651_v20 }
 0x205   : > { %16841 = vmatmul.mubr.bf16.gmra.mrb[72].mxu1 %v28529_v58  ;;  %v11198_v4 = vcombine.low %v11190_v2, %v11197_v53  ;;  %v12662_v9 = vshrl.u32 %v10563_v56, 16  ;;  %v12667_v62 = vshll.u32 %v10564_v31, 16  ;;  %v12670_v3 = vshrl.u32 %v10564_v31, 16 }
 0x206   : > { %26454 = vst.sshfl [vmem:[#allocation2 + $0x1c8] sm:$0x33 pattern:$0x75316420] %v11174_v6  ;;  %v12661_v61 = vsel %vm29078_vm14, %v12654_v21, %v12659_v26  ;;  %v12675_v27 = vshll.u32 %v30730_v45, 16  ;;  %v12678_v10 = vshrl.u32 %v30730_v45, 16  ;;  %v30774_v13 = vrot.slane %v7100_v37, %v29027_v39 }
 0x207   : > { %26455 = vst.sshfl [vmem:[#allocation2 + $0x1ec] sm:$0x33 pattern:$0x75316420] %v11198_v4  ;;  %v12669_v41 = vsel %vm29078_vm14, %v12662_v9, %v12667_v62  ;;  %v12683_v52 = vshll.u32 %v30733_v7, 16  ;;  %v12686_v1 = vshrl.u32 %v30733_v7, 16  ;;  %v13332_v42 = vcombine.low %v30705_v59, %v12661_v61 }
 0x208   : > { %v12691_v38 = vshll.u32 %v30739_v54, 16  ;;  %v12677_v15 = vsel %vm29078_vm14, %v12670_v3, %v12675_v27  ;;  %v12694_v60 = vshrl.u32 %v30739_v54, 16  ;;  %v12699_v34 = vshll.u32 %v30743_v19, 16  ;;  %v28532_v22 = vld [vmem:[#allocation2 + $0x1c0] ss:$36 sps:$4 sm:$0xff]  }
 0x209   : > { %v12685_v0 = vsel %vm29078_vm14, %v12678_v10, %v12683_v52  ;;  %v13333_v50 = vcombine.low %v12653_v43, %v12669_v41  ;;  %v13340_v40 = vrot.slane %v13332_v42, %v29042_v51  ;;  %v30780_v56 = vld.sshfl [vmem:[%s28996_s14 + $0x50] sm:$0x32 pattern:$0x75316420]  ;;  %v7847_v46 = vshrl.u32 %v7107_v29, 16 }
 0x20a   : > { %v28530_v44 = vld [vmem:[#allocation2 + $0x1c4] ss:$36 sps:$4 sm:$0xff]   ;;  %v12693_v36 = vsel %vm29078_vm14, %v12686_v1, %v12691_v38  ;;  %v12701_v14 = vsel %vm29078_vm14, %v12694_v60, %v12699_v34  ;;  %v7852_v58 = vshll.u32 %v30774_v13, 16  ;;  %v9226_v31 = vcombine.high %v26343_v47, %v26343_v47 }
 0x20b   : > { %v13356_v33 = vcombine.low %v12677_v15, %v12693_v36  ;;  %16712 = vmatprep.mubr.bf16.mxu0 %v28530_v44  ;;  %v13347_v59 = vrot.slane %v13333_v50, %v29042_v51  ;;  %v13357_v5 = vcombine.low %v12685_v0, %v12701_v14  ;;  %v9274_v12 = vcombine.high %v30780_v56, %v30780_v56  ;;  %v26431_v2 = vld.sshfl [vmem:[%s28996_s14 + $0x54] sm:$0x13 pattern:$0x75316420] }
 0x20c   : > { %16713 = vmatmul.mubr.bf16.gmra.mrb[76].mxu0 %v28532_v22  ;;  %v30788_v23 = vsel %vm29078_vm14, %v7847_v46, %v7852_v58  ;;  %v8468_v17 = vcombine.low %v12661_v61, %v12677_v15  ;;  %v9240_v18 = vrot.slane %v9226_v31, %v29027_v39  ;;  %v9867_v28 = vcombine.low %v30733_v7, %v30743_v19  ;;  %v26432_v9 = vld.sshfl [vmem:[%s28996_s14 + $0x58] sm:$0x33 pattern:$0x75316420] }
 0x20d   : > { %v13364_v35 = vrot.slane %v13356_v33, %v29042_v51  ;;  %v13348_v25 = vcombine.low %v13340_v40, %v13347_v59  ;;  %v13371_v16 = vrot.slane %v13357_v5, %v29042_v51  ;;  %v8492_v55 = vcombine.low %v12693_v36, %v30788_v23  ;;  %v26512_v1 = vld.sshfl [vmem:[%s28996_s14 + $0x54] sm:$0x33 pattern:$0x75316420]  ;;  %v28569_v36 = vld [vmem:[#allocation7 + $0x238] sm:$0xff]  }
 0x20e   : > { %v9241_v24 = vcombine.high %v9233_v57, %v9233_v57  ;;  %v30795_v63 = vrot.slane %v9274_v12, %v29027_v39  ;;  %v8482_v53 = vrot.slane %v8468_v17, %v29042_v51  ;;  %v9242_v30 = vcombine.high %v9240_v18, %v9240_v18  ;;  %v28535_v15 = vld [vmem:[#allocation2 + $0x1c8] ss:$36 sps:$4 sm:$0xff]   ;;  %28160 = vmatpush3.bf16.msra.mxu0 %v28569_v36 }
 0x20f   : > { %v13372_v49 = vcombine.low %v13364_v35, %v13371_v16  ;;  %26633 = vst.sshfl [vmem:[#allocation2 + $0x1cc] sm:$0x33 pattern:$0x75316420] %v13348_v25  ;;  %v9875_v20 = vrot.slane %v9867_v28, %v29042_v51  ;;  %v10610_v6 = vcombine.high %v7107_v29, %v7107_v29  ;;  %v8506_v21 = vrot.slane %v8492_v55, %v29042_v51 }
 0x210   : > { %v9844_v26 = vcombine.low %v9241_v24, %v30730_v45  ;;  %v9868_v7 = vcombine.low %v30739_v54, %v30795_v63  ;;  %v10611_v19 = vcombine.high %v30774_v13, %v30774_v13  ;;  %v8483_v4 = vcombine.low %v13347_v59, %v8482_v53 }
 0x211   : > { %26634 = vst.sshfl [vmem:[#allocation2 + $0x1f0] sm:$0x33 pattern:$0x75316420] %v13372_v49  ;;  %v9843_v43 = vcombine.low %v9240_v18, %v9242_v30  ;;  %v10619_v62 = vcombine.high %v26431_v2, %v26431_v2  ;;  %v10626_v11 = vrot.slane %v26431_v2, %v29027_v39  ;;  %v8507_v61 = vcombine.low %v13371_v16, %v8506_v21 }
 0x212   : > { %v9858_v3 = vrot.slane %v9844_v26, %v29042_v51  ;;  %v9882_v27 = vrot.slane %v9868_v7, %v29042_v51  ;;  %v30811_v45 = vrot.slane %v26432_v9, %v29027_v39  ;;  %26288 = vst.sshfl [vmem:[#allocation2 + $0x208] sm:$0x33 pattern:$0x75316420] %v8483_v4  ;;  %v11206_v52 = vcombine.low %v7107_v29, %v10610_v6 }
 0x213   : > { %v9851_v54 = vrot.slane %v9843_v43, %v29042_v51  ;;  %v10633_v10 = vrot.slane %v10619_v62, %v29027_v39  ;;  %v10634_v41 = vcombine.high %v10626_v11, %v10626_v11  ;;  %26289 = vst.sshfl [vmem:[#allocation2 + $0x22c] sm:$0x33 pattern:$0x75316420] %v8507_v61  ;;  %v11207_v34 = vcombine.low %v30774_v13, %v10611_v19 }
 0x214   : > { %v9883_v60 = vcombine.low %v9875_v20, %v9882_v27  ;;  %v11214_v44 = vrot.slane %v11206_v52, %v29042_v51  ;;  %v11989_v37 = vcombine.high %v26512_v1, %v26512_v1  ;;  %v30821_v14 = vrot.slane %v26512_v1, %v29027_v39 }
 0x215   : > { %v9859_v42 = vcombine.low %v9851_v54, %v9858_v3  ;;  %v11230_v22 = vcombine.low %v10626_v11, %v10634_v41  ;;  %v11231_v0 = vcombine.low %v10633_v10, %v30811_v45  ;;  %v11221_v50 = vrot.slane %v11207_v34, %v29042_v51  ;;  %v26347_v10 = vld.sshfl [vmem:[%s28996_s14 + $0x58] sm:$0x32 pattern:$0x75316420]  ;;  %v30869_v41 = vpop.f32.mrb[0].mxu0 }
 0x216   : > { %26376 = vst.sshfl [vmem:[#allocation2 + $0x230] sm:$0x33 pattern:$0x75316420] %v9883_v60  ;;  %v12013_v40 = vcombine.high %v26432_v9, %v26432_v9  ;;  %v12711_v59 = vshrl.u32 %v30774_v13, 16  ;;  %v12716_v5 = vshll.u32 %v10610_v6, 16  ;;  %v30827_v35 = vrot.slane %v11989_v37, %v29027_v39 }
 0x217   : > { %26375 = vst.sshfl [vmem:[#allocation2 + $0x20c] sm:$0x33 pattern:$0x75316420] %v9859_v42  ;;  %v11238_v33 = vrot.slane %v11230_v22, %v29042_v51  ;;  %v11245_v29 = vrot.slane %v11231_v0, %v29042_v51  ;;  %v11222_v47 = vcombine.low %v11214_v44, %v11221_v50  ;;  %v30831_v25 = vcombine.high %v30821_v14, %v30821_v14 }
 0x218   : > { %v28533_v38 = vld [vmem:[#allocation2 + $0x1cc] ss:$36 sps:$4 sm:$0xff]   ;;  %v30834_v16 = vrot.slane %v12013_v40, %v29027_v39  ;;  %v12718_v49 = vsel %vm29078_vm14, %v12711_v59, %v12716_v5  ;;  %v12719_v58 = vshrl.u32 %v10610_v6, 16  ;;  %v12724_v31 = vshll.u32 %v10611_v19, 16 }
 0x219   : > { %16848 = vmatprep.mubr.bf16.mxu1 %v28533_v38  ;;  %v11246_v46 = vcombine.low %v11238_v33, %v11245_v29  ;;  %26456 = vst.sshfl [vmem:[#allocation2 + $0x210] sm:$0x33 pattern:$0x75316420] %v11222_v47  ;;  %v12005_v13 = vcombine.high %v30827_v35, %v30827_v35  ;;  %v12727_v57 = vshrl.u32 %v10611_v19, 16  ;;  %v12732_v12 = vshll.u32 %v30821_v14, 16 }
 0x21a   : > { %16849 = vmatmul.mubr.bf16.gmra.mrb[76].mxu1 %v28535_v15  ;;  %v12735_v17 = vshrl.u32 %v30821_v14, 16  ;;  %v12726_v18 = vsel %vm29078_vm14, %v12719_v58, %v12724_v31  ;;  %v12740_v28 = vshll.u32 %v30827_v35, 16  ;;  %v12743_v55 = vshrl.u32 %v30827_v35, 16  ;;  %v28539_v4 = vld [vmem:[#allocation2 + $0x208] ss:$36 sps:$4 sm:$0xff]   ;;  %v30872_v38 = vpop.f32.mrb[1].mxu0 }
 0x21b   : > { %26457 = vst.sshfl [vmem:[#allocation2 + $0x234] sm:$0x33 pattern:$0x75316420] %v11246_v46  ;;  %v12748_v24 = vshll.u32 %v30831_v25, 16  ;;  %v12734_v2 = vsel %vm29078_vm14, %v12727_v57, %v12732_v12  ;;  %v12751_v53 = vshrl.u32 %v30831_v25, 16  ;;  %v13380_v7 = vcombine.low %v30788_v23, %v12726_v18 }
 0x21c   : > { %v12756_v30 = vshll.u32 %v12005_v13, 16  ;;  %v12760_v20 = vshrl.u32 %v30811_v45, 16  ;;  %v12742_v6 = vsel %vm29078_vm14, %v12735_v17, %v12740_v28  ;;  %v12765_v26 = vshll.u32 %v30834_v16, 16  ;;  %v30874_v15 = vpop.f32.mrb[0].mxu1  ;;  %v30878_v34 = vpop.f32.mrb[2].mxu0 }
 0x21d   : > { %v12750_v21 = vsel %vm29078_vm14, %v12743_v55, %v12748_v24  ;;  %v13381_v9 = vcombine.low %v12718_v49, %v12734_v2  ;;  %v13388_v11 = vrot.slane %v13380_v7, %v29042_v51  ;;  %v30864_v3 = vcombine.high %v30811_v45, %v30811_v45  ;;  %v30880_v42 = vpop.f32.mrb[1].mxu1  ;;  %v30882_v0 = vpop.f32.mrb[3].mxu0  ;;  %v26433_v58 = vld.sshfl [vmem:[%s28996_s14 + $0x5c] sm:$0x13 pattern:$0x75316420] }
 0x21e   : > { %v28537_v19 = vld [vmem:[#allocation2 + $0x20c] ss:$36 sps:$4 sm:$0xff]   ;;  %v12758_v43 = vsel %vm29078_vm14, %v12751_v53, %v12756_v30  ;;  %v12767_v62 = vsel %vm29078_vm14, %v12760_v20, %v12765_v26  ;;  %v7912_v45 = vshrl.u32 %v30834_v16, 16  ;;  %v8516_v22 = vcombine.low %v12726_v18, %v12742_v6  ;;  %v30884_v36 = vpop.f32.mrb[2].mxu1  ;;  %v30913_v28 = vpop.f32.mrb[4].mxu0 }
 0x21f   : > { %v13404_v61 = vcombine.low %v12742_v6, %v12758_v43  ;;  %16720 = vmatprep.mubr.bf16.mxu0 %v28537_v19  ;;  %v13395_v27 = vrot.slane %v13381_v9, %v29042_v51  ;;  %v13405_v23 = vcombine.low %v12750_v21, %v12767_v62  ;;  %v7917_v60 = vshll.u32 %v30864_v3, 16  ;;  %v30894_v33 = vpop.f32.mrb[3].mxu1  ;;  %v26434_v13 = vld.sshfl [vmem:[%s28996_s14 + $0x60] sm:$0x33 pattern:$0x75316420] }
 0x220   : > { %16721 = vmatmul.mubr.bf16.gmra.mrb[80].mxu0 %v28539_v4  ;;  %v9281_v37 = vrot.slane %v30780_v56, %v29027_v39  ;;  %v9290_v40 = vcombine.high %v30795_v63, %v30795_v63  ;;  %v8530_v29 = vrot.slane %v8516_v22, %v29042_v51  ;;  %v9322_v5 = vcombine.high %v26347_v10, %v26347_v10  ;;  %v30915_v55 = vpop.f32.mrb[4].mxu1  ;;  %v26514_v30 = vld.sshfl [vmem:[%s28996_s14 + $0x5c] sm:$0x33 pattern:$0x75316420]  ;;  %v30921_v20 = vpop.f32.mrb[5].mxu0 }
 0x221   : > { %v13412_v54 = vrot.slane %v13404_v61, %v29042_v51  ;;  %v13396_v52 = vcombine.low %v13388_v11, %v13395_v27  ;;  %v13419_v1 = vrot.slane %v13405_v23, %v29042_v51  ;;  %v30888_v50 = vsel %vm29078_vm14, %v7912_v45, %v7917_v60  ;;  %v30930_v19 = vpop.f32.mrb[6].mxu0 }
 0x222   : > { %v8540_v59 = vcombine.low %v12758_v43, %v30888_v50  ;;  %v9289_v47 = vcombine.high %v9281_v37, %v9281_v37  ;;  %v9329_v46 = vrot.slane %v26347_v10, %v29027_v39  ;;  %v9892_v49 = vcombine.low %v9290_v40, %v30827_v35  ;;  %v30938_v11 = vpop.f32.mrb[7].mxu0  ;;  %v28542_v23 = vld [vmem:[#allocation2 + $0x210] ss:$36 sps:$4 sm:$0xff]  }
 0x223   : > { %v13420_v44 = vcombine.low %v13412_v54, %v13419_v1  ;;  %26635 = vst.sshfl [vmem:[#allocation2 + $0x214] sm:$0x33 pattern:$0x75316420] %v13396_v52  ;;  %v8531_v31 = vcombine.low %v13395_v27, %v8530_v29  ;;  %v30903_v63 = vrot.slane %v9322_v5, %v29027_v39  ;;  %v30911_v18 = vcombine.high %v30834_v16, %v30834_v16 }
 0x224   : > { %v8554_v56 = vrot.slane %v8540_v59, %v29042_v51  ;;  %v9891_v57 = vcombine.low %v9289_v47, %v30821_v14  ;;  %v9906_v12 = vrot.slane %v9892_v49, %v29042_v51  ;;  %v26359_v17 = vcombine.high %v30827_v35, %v9329_v46  ;;  %v30923_v35 = vpop.f32.mrb[5].mxu1 }
 0x225   : > { %26636 = vst.sshfl [vmem:[#allocation2 + $0x238] sm:$0x33 pattern:$0x75316420] %v13420_v44  ;;  %v9915_v2 = vcombine.low %v30831_v25, %v30903_v63  ;;  %v10666_v53 = vcombine.high %v26433_v58, %v26433_v58  ;;  %v10673_v14 = vrot.slane %v26433_v58, %v29027_v39  ;;  %v10689_v26 = vcombine.high %v26434_v13, %v26434_v13  ;;  %v30932_v4 = vpop.f32.mrb[6].mxu1 }
 0x226   : > { %v8555_v24 = vcombine.low %v13419_v1, %v8554_v56  ;;  %26290 = vst.sshfl [vmem:[#allocation2 + $0x250] sm:$0x33 pattern:$0x75316420] %v8531_v31  ;;  %v9899_v6 = vrot.slane %v9891_v57, %v29042_v51  ;;  %v9930_v21 = vrot.slane %v26359_v17, %v29042_v51  ;;  %v30928_v7 = vrot.slane %v26434_v13, %v29027_v39  ;;  %v30940_v61 = vpop.f32.mrb[7].mxu1  ;;  %v30968_v13 = vpop.f32.mrb[8].mxu0 }
 0x227   : > { %v9923_v25 = vrot.slane %v9915_v2, %v29042_v51  ;;  %v10680_v43 = vrot.slane %v10666_v53, %v29027_v39  ;;  %v10681_v9 = vcombine.high %v10673_v14, %v10673_v14  ;;  %v11254_v62 = vcombine.low %v30834_v16, %v30911_v18  ;;  %v30970_v57 = vpop.f32.mrb[8].mxu1 }
 0x228   : > { %26291 = vst.sshfl [vmem:[#allocation2 + $0x274] sm:$0x33 pattern:$0x75316420] %v8555_v24  ;;  %v9907_v54 = vcombine.low %v9899_v6, %v9906_v12  ;;  %v10703_v10 = vrot.slane %v10689_v26, %v29027_v39  ;;  %v11255_v52 = vcombine.low %v30864_v3, %v10673_v14  ;;  %v12037_v44 = vcombine.high %v26514_v30, %v26514_v30  ;;  %v30977_v53 = vpop.f32.mrb[9].mxu1 }
 0x229   : > { %v9931_v1 = vcombine.low %v9923_v25, %v9930_v21  ;;  %v11262_v45 = vrot.slane %v11254_v62, %v29042_v51  ;;  %v11278_v60 = vcombine.low %v10680_v43, %v30928_v7  ;;  %v30948_v37 = vrot.slane %v26514_v30, %v29027_v39  ;;  %v30986_v26 = vpop.f32.mrb[10].mxu1 }
 0x22a   : > { %26377 = vst.sshfl [vmem:[#allocation2 + $0x254] sm:$0x33 pattern:$0x75316420] %v9907_v54  ;;  %v11269_v16 = vrot.slane %v11255_v52, %v29042_v51  ;;  %v11279_v22 = vcombine.low %v10681_v9, %v10703_v10  ;;  %v30952_v40 = vcombine.high %v30928_v7, %v30928_v7  ;;  %v30956_v59 = vrot.slane %v12037_v44, %v29027_v39 }
 0x22b   : > { %26378 = vst.sshfl [vmem:[#allocation2 + $0x278] sm:$0x33 pattern:$0x75316420] %v9931_v1  ;;  %v11286_v29 = vrot.slane %v11278_v60, %v29042_v51  ;;  %v30961_v46 = vcombine.high %v30948_v37, %v30948_v37  ;;  %v12776_v49 = vshrl.u32 %v30864_v3, 16  ;;  %v12781_v31 = vshll.u32 %v30911_v18, 16 }
 0x22c   : > { %v28540_v27 = vld [vmem:[#allocation2 + $0x214] ss:$36 sps:$4 sm:$0xff]   ;;  %v11270_v5 = vcombine.low %v11262_v45, %v11269_v16  ;;  %v11293_v47 = vrot.slane %v11279_v22, %v29042_v51  ;;  %v12053_v58 = vcombine.high %v30956_v59, %v30956_v59  ;;  %v12784_v56 = vshrl.u32 %v30911_v18, 16  ;;  %v30975_v3 = vpop.f32.mrb[9].mxu0 }
 0x22d   : > { %16856 = vmatprep.mubr.bf16.mxu1 %v28540_v27  ;;  %v12789_v17 = vshll.u32 %v30948_v37, 16  ;;  %v12792_v24 = vshrl.u32 %v30948_v37, 16  ;;  %v12797_v2 = vshll.u32 %v30956_v59, 16  ;;  %v12783_v14 = vsel %vm29078_vm14, %v12776_v49, %v12781_v31  ;;  %v30984_v21 = vpop.f32.mrb[10].mxu0 }
 0x22e   : > { %16857 = vmatmul.mubr.bf16.gmra.mrb[80].mxu1 %v28542_v23  ;;  %v11294_v12 = vcombine.low %v11286_v29, %v11293_v47  ;;  %26458 = vst.sshfl [vmem:[#allocation2 + $0x258] sm:$0x33 pattern:$0x75316420] %v11270_v5  ;;  %v12800_v18 = vshrl.u32 %v30956_v59, 16  ;;  %v12805_v30 = vshll.u32 %v30961_v46, 16  ;;  %v31007_v47 = vcombine.high %v10703_v10, %v10703_v10 }
 0x22f   : > { %v12808_v6 = vshrl.u32 %v30961_v46, 16  ;;  %v12791_v25 = vsel %vm29078_vm14, %v12784_v56, %v12789_v17  ;;  %v12799_v43 = vsel %vm29078_vm14, %v12792_v24, %v12797_v2  ;;  %v12813_v9 = vshll.u32 %v12053_v58, 16  ;;  %v30993_v27 = vpop.f32.mrb[11].mxu0  ;;  %v30995_v23 = vpop.f32.mrb[11].mxu1  ;;  %v28545_v44 = vld [vmem:[#allocation2 + $0x250] ss:$36 sps:$4 sm:$0xff]  }
 0x230   : > { %26459 = vst.sshfl [vmem:[#allocation2 + $0x27c] sm:$0x33 pattern:$0x75316420] %v11294_v12  ;;  %v12817_v62 = vshrl.u32 %v30928_v7, 16  ;;  %v12807_v54 = vsel %vm29078_vm14, %v12800_v18, %v12805_v30  ;;  %v12822_v52 = vshll.u32 %v10703_v10, 16  ;;  %v13428_v22 = vcombine.low %v30888_v50, %v12791_v25 }
 0x231   : > { %v12825_v1 = vshrl.u32 %v10703_v10, 16  ;;  %v12830_v45 = vshll.u32 %v30952_v40, 16  ;;  %v12815_v16 = vsel %vm29078_vm14, %v12808_v6, %v12813_v9  ;;  %v13429_v7 = vcombine.low %v12783_v14, %v12799_v43  ;;  %v26349_v12 = vld.sshfl [vmem:[%s28996_s14 + $0x60] sm:$0x32 pattern:$0x75316420] }
 0x232   : > { %v28543_v60 = vld [vmem:[#allocation2 + $0x254] ss:$36 sps:$4 sm:$0xff]   ;;  %v12824_v29 = vsel %vm29078_vm14, %v12817_v62, %v12822_v52  ;;  %v13436_v49 = vrot.slane %v13428_v22, %v29042_v51  ;;  %v31012_v17 = vpop.f32.mrb[12].mxu0  ;;  %v31014_v50 = vpop.f32.mrb[12].mxu1  ;;  %v7977_v30 = vshrl.u32 %v30952_v40, 16  ;;  %v7982_v6 = vshll.u32 %v31007_v47, 16 }
 0x233   : > { %v12832_v5 = vsel %vm29078_vm14, %v12825_v1, %v12830_v45  ;;  %16728 = vmatprep.mubr.bf16.mxu0 %v28543_v60  ;;  %v13443_v58 = vrot.slane %v13429_v7, %v29042_v51  ;;  %v13452_v31 = vcombine.low %v12807_v54, %v12824_v29  ;;  %v31018_v10 = vpop.f32.mrb[13].mxu0  ;;  %v31020_v18 = vpop.f32.mrb[13].mxu1  ;;  %v8564_v52 = vcombine.low %v12791_v25, %v12807_v54 }
 0x234   : > { %v13453_v56 = vcombine.low %v12815_v16, %v12832_v5  ;;  %16729 = vmatmul.mubr.bf16.gmra.mrb[84].mxu0 %v28545_v44  ;;  %v31024_v43 = vpop.f32.mrb[14].mxu0  ;;  %v31026_v9 = vpop.f32.mrb[14].mxu1  ;;  %v9338_v1 = vcombine.high %v30903_v63, %v30903_v63  ;;  %v31036_v44 = vsel %vm29078_vm14, %v7977_v30, %v7982_v6  ;;  %v9370_v16 = vcombine.high %v26349_v12, %v26349_v12  ;;  %v26435_v63 = vld.sshfl [vmem:[%s28996_s14 + $0x64] sm:$0x13 pattern:$0x75316420] }
 0x235   : > { %v13444_v24 = vcombine.low %v13436_v49, %v13443_v58  ;;  %v13460_v2 = vrot.slane %v13452_v31, %v29042_v51  ;;  %34045 = vst [vmem:[#allocation13_spill] sm:$0xff] %v31026_v9  ;;  %v31030_v45 = vpop.f32.mrb[15].mxu0  ;;  %v31032_v60 = vpop.f32.mrb[15].mxu1  ;;  %v8578_v22 = vrot.slane %v8564_v52, %v29042_v51  ;;  %v8588_v7 = vcombine.low %v12824_v29, %v31036_v44 }
 0x236   : > { %v13467_v14 = vrot.slane %v13453_v56, %v29042_v51  ;;  %34046 = vst [vmem:[#allocation14_spill] sm:$0xff] %v31032_v60  ;;  %v9377_v25 = vrot.slane %v26349_v12, %v29027_v39  ;;  %v9939_v54 = vcombine.low %v9338_v1, %v30956_v59  ;;  %v9384_v5 = vrot.slane %v9370_v16, %v29027_v39  ;;  %v26436_v31 = vld.sshfl [vmem:[%s28996_s14 + $0x68] sm:$0x33 pattern:$0x75316420]  ;;  %v31052_v52 = vpop.f32.mrb[16].mxu0 }
 0x237   : > { %26637 = vst.sshfl [vmem:[#allocation2 + $0x25c] sm:$0x33 pattern:$0x75316420] %v13444_v24  ;;  %v9940_v49 = vcombine.low %v30948_v37, %v30961_v46  ;;  %v8579_v56 = vcombine.low %v13443_v58, %v8578_v22  ;;  %v8602_v24 = vrot.slane %v8588_v7, %v29042_v51  ;;  %v10713_v12 = vcombine.high %v26435_v63, %v26435_v63  ;;  %v31054_v1 = vpop.f32.mrb[16].mxu1  ;;  %v31058_v22 = vpop.f32.mrb[17].mxu0 }
 0x238   : > { %v13468_v62 = vcombine.low %v13460_v2, %v13467_v14  ;;  %v9947_v2 = vrot.slane %v9939_v54, %v29042_v51  ;;  %v26360_v30 = vcombine.high %v30956_v59, %v9377_v25  ;;  %v9386_v6 = vcombine.high %v9384_v5, %v9384_v5  ;;  %34047 = vst [vmem:[#allocation15_spill] sm:$0xff] %v31052_v52  ;;  %v31060_v7 = vpop.f32.mrb[17].mxu1  ;;  %v31064_v48 = vpop.f32.mrb[18].mxu0 }
 0x239   : > { %v9954_v29 = vrot.slane %v9940_v49, %v29042_v51  ;;  %34048 = vst [vmem:[#allocation16_spill] sm:$0xff] %v31054_v1  ;;  %v8603_v16 = vcombine.low %v13467_v14, %v8602_v24  ;;  %26292 = vst.sshfl [vmem:[#allocation2 + $0x298] sm:$0x33 pattern:$0x75316420] %v8579_v56  ;;  %v10720_v46 = vrot.slane %v26435_v63, %v29027_v39  ;;  %v31066_v32 = vpop.f32.mrb[18].mxu1 }
 0x23a   : > { %26638 = vst.sshfl [vmem:[#allocation2 + $0x280] sm:$0x33 pattern:$0x75316420] %v13468_v62  ;;  %v9971_v37 = vrot.slane %v26360_v30, %v29042_v51  ;;  %v10736_v58 = vcombine.high %v26436_v31, %v26436_v31  ;;  %34049 = vst [vmem:[#allocation17_spill] sm:$0xff] %v31058_v22  ;;  %v9964_v25 = vcombine.low %v9384_v5, %v9386_v6  ;;  %v31070_v30 = vpop.f32.mrb[19].mxu0 }
 0x23b   : > { %v26516_v62 = vld.sshfl [vmem:[%s28996_s14 + $0x64] sm:$0x33 pattern:$0x75316420]  ;;  %34050 = vst [vmem:[#allocation18_spill] sm:$0xff] %v31060_v7  ;;  %v9955_v59 = vcombine.low %v9947_v2, %v9954_v29  ;;  %v10727_v54 = vrot.slane %v10713_v12, %v29027_v39  ;;  %v10743_v49 = vrot.slane %v26436_v31, %v29027_v39  ;;  %34051 = vst [vmem:[#allocation19_spill] sm:$0xff] %v31064_v48 }
 0x23c   : > { %34052 = vst [vmem:[#allocation20_spill] sm:$0xff] %v31066_v32  ;;  %26293 = vst.sshfl [vmem:[#allocation2 + $0x2bc] sm:$0x33 pattern:$0x75316420] %v8603_v16  ;;  %v10728_v14 = vcombine.high %v10720_v46, %v10720_v46  ;;  %v10750_v56 = vrot.slane %v10736_v58, %v29027_v39  ;;  %v11302_v63 = vcombine.low %v30952_v40, %v10720_v46  ;;  %v31072_v7 = vpop.f32.mrb[19].mxu1 }
 0x23d   : > { %v12085_v24 = vcombine.high %v26516_v62, %v26516_v62  ;;  %34053 = vst [vmem:[#allocation21_spill] sm:$0xff] %v31070_v30  ;;  %34054 = vst [vmem:[#allocation22_spill] sm:$0xff] %v31072_v7  ;;  %v28548_v2 = vld [vmem:[#allocation2 + $0x258] ss:$36 sps:$4 sm:$0xff]   ;;  %v9978_v6 = vrot.slane %v9964_v25, %v29042_v51  ;;  %v10751_v31 = vcombine.high %v10743_v49, %v10743_v49  ;;  %vm19606_vm10 = vcmask 1046534  }
 0x23e   : > { %26379 = vst.sshfl [vmem:[#allocation2 + $0x29c] sm:$0x33 pattern:$0x75316420] %v9955_v59  ;;  %v11303_v29 = vcombine.low %v31007_v47, %v10727_v54  ;;  %v31077_v12 = vrot.slane %v26516_v62, %v29027_v39  ;;  %v11310_v16 = vrot.slane %v11302_v63, %v29042_v51  ;;  %v11326_v58 = vcombine.low %v10728_v14, %v10750_v56  ;;  %vm32203_vm13 = vmor %vm19605_vm12, %vm19606_vm10 }
 0x23f   : > { %v31081_v40 = vrot.slane %v12085_v24, %v29027_v39  ;;  %v31083_v46 = vcombine.high %v10750_v56, %v10750_v56  ;;  %v9979_v7 = vcombine.low %v9971_v37, %v9978_v6  ;;  %v11327_v25 = vcombine.low %v10743_v49, %v10751_v31  ;;  %v31100_v6 = vpop.f32.mrb[20].mxu1 }
 0x240   : > { %v11317_v32 = vrot.slane %v11303_v29, %v29042_v51  ;;  %v31088_v59 = vcombine.high %v31077_v12, %v31077_v12  ;;  %v11334_v62 = vrot.slane %v11326_v58, %v29042_v51  ;;  %v12841_v37 = vshrl.u32 %v31007_v47, 16  ;;  %34056 = vst [vmem:[#allocation24_spill] sm:$0xff] %v31100_v6 }
 0x241   : > { %v28546_v5 = vld [vmem:[#allocation2 + $0x25c] ss:$36 sps:$4 sm:$0xff]   ;;  %v31093_v54 = vcombine.high %v31081_v40, %v31081_v40  ;;  %26380 = vst.sshfl [vmem:[#allocation2 + $0x2c0] sm:$0x33 pattern:$0x75316420] %v9979_v7  ;;  %v11341_v63 = vrot.slane %v11327_v25, %v29042_v51 }
 0x242   : > { %16864 = vmatprep.mubr.bf16.mxu1 %v28546_v5  ;;  %v11318_v14 = vcombine.low %v11310_v16, %v11317_v32  ;;  %v12846_v24 = vshll.u32 %v31077_v12, 16  ;;  %v31098_v5 = vpop.f32.mrb[20].mxu0  ;;  %v12854_v29 = vshll.u32 %v31081_v40, 16  ;;  %v12857_v58 = vshrl.u32 %v31081_v40, 16  ;;  %v31107_v7 = vpop.f32.mrb[21].mxu1 }
 0x243   : > { %16865 = vmatmul.mubr.bf16.gmra.mrb[84].mxu1 %v28548_v2  ;;  %34055 = vst [vmem:[#allocation23_spill] sm:$0xff] %v31098_v5  ;;  %v12849_v2 = vshrl.u32 %v31077_v12, 16  ;;  %v31105_v1 = vpop.f32.mrb[21].mxu0  ;;  %34058 = vst [vmem:[#allocation26_spill] sm:$0xff] %v31107_v7  ;;  %v11342_v32 = vcombine.low %v11334_v62, %v11341_v63  ;;  %v12862_v16 = vshll.u32 %v31088_v59, 16  ;;  %v12865_v25 = vshrl.u32 %v31088_v59, 16 }
 0x244   : > { %34057 = vst [vmem:[#allocation25_spill] sm:$0xff] %v31105_v1  ;;  %26460 = vst.sshfl [vmem:[#allocation2 + $0x2a0] sm:$0x33 pattern:$0x75316420] %v11318_v14  ;;  %v12848_v47 = vsel %vm29078_vm14, %v12841_v37, %v12846_v24  ;;  %v31113_v6 = vpop.f32.mrb[22].mxu0 }
 0x245   : > { %34059 = vst [vmem:[#allocation27_spill] sm:$0xff] %v31113_v6  ;;  %v31115_v5 = vpop.f32.mrb[22].mxu1  ;;  %v12856_v30 = vsel %vm29078_vm14, %v12849_v2, %v12854_v29  ;;  %v12870_v1 = vshll.u32 %v31093_v54, 16  ;;  %v12874_v7 = vshrl.u32 %v10743_v49, 16  ;;  %v12879_v62 = vshll.u32 %v10750_v56, 16  ;;  %v31120_v14 = vpop.f32.mrb[23].mxu0 }
 0x246   : > { %34060 = vst [vmem:[#allocation28_spill] sm:$0xff] %v31115_v5  ;;  %34061 = vst [vmem:[#allocation29_spill] sm:$0xff] %v31120_v14  ;;  %v31122_v63 = vpop.f32.mrb[23].mxu1  ;;  %v12864_v37 = vsel %vm29078_vm14, %v12857_v58, %v12862_v16  ;;  %v12882_v24 = vshrl.u32 %v10750_v56, 16  ;;  %v12887_v6 = vshll.u32 %v10751_v31, 16  ;;  %v12890_v5 = vshrl.u32 %v10751_v31, 16 }
 0x247   : > { %34062 = vst [vmem:[#allocation30_spill] sm:$0xff] %v31122_v63  ;;  %26461 = vst.sshfl [vmem:[#allocation2 + $0x2c4] sm:$0x33 pattern:$0x75316420] %v11342_v32  ;;  %v12872_v48 = vsel %vm29078_vm14, %v12865_v25, %v12870_v1  ;;  %v12881_v2 = vsel %vm29078_vm14, %v12874_v7, %v12879_v62  ;;  %v12895_v49 = vshll.u32 %v31083_v46, 16  ;;  %v13476_v29 = vcombine.low %v31036_v44, %v12856_v30 }
 0x248   : > { %v31133_v14 = vld.sshfl [vmem:[%s28996_s14 + $0x6c] sm:$0x33 pattern:$0x75316420]  ;;  %v12889_v32 = vsel %vm29078_vm14, %v12882_v24, %v12887_v6  ;;  %v13477_v58 = vcombine.low %v12848_v47, %v12864_v37  ;;  %v28552_v16 = vld [vmem:[#allocation2 + $0x298] ss:$36 sps:$4 sm:$0xff]  }
 0x249   : > { %v31139_v56 = vrot.slane %v31133_v14, %v29027_v39  ;;  %v28550_v31 = vld [vmem:[#allocation2 + $0x29c] ss:$36 sps:$4 sm:$0xff]   ;;  %v12897_v1 = vsel %vm29078_vm14, %v12890_v5, %v12895_v49  ;;  %v13484_v7 = vrot.slane %v13476_v29, %v29042_v51  ;;  %v13500_v25 = vcombine.low %v12872_v48, %v12889_v32  ;;  %v31146_v22 = vpop.f32.mrb[24].mxu0  ;;  %v31148_v6 = vpop.f32.mrb[24].mxu1 }
 0x24a   : > { %v26351_v62 = vld.sshfl [vmem:[%s28996_s14 + $0x68] sm:$0x32 pattern:$0x75316420]  ;;  %v13491_v44 = vrot.slane %v13477_v58, %v29042_v51  ;;  %v13501_v63 = vcombine.low %v12881_v2, %v12897_v1  ;;  %34063 = vst [vmem:[#allocation31_spill] sm:$0xff] %v31146_v22  ;;  %34064 = vst [vmem:[#allocation32_spill] sm:$0xff] %v31148_v6  ;;  %16736 = vmatprep.mubr.bf16.mxu0 %v28550_v31 }
 0x24b   : > { %v13508_v47 = vrot.slane %v13500_v25, %v29042_v51  ;;  %v31151_v37 = vpop.f32.mrb[25].mxu0  ;;  %v31153_v24 = vpop.f32.mrb[25].mxu1  ;;  %16737 = vmatmul.mubr.bf16.gmra.mrb[88].mxu0 %v28552_v16  ;;  %v8042_v2 = vshrl.u32 %v31083_v46, 16  ;;  %v8047_v1 = vshll.u32 %v31139_v56, 16  ;;  %v8612_v16 = vcombine.low %v12856_v30, %v12872_v48 }
 0x24c   : > { %34065 = vst [vmem:[#allocation33_spill] sm:$0xff] %v31151_v37  ;;  %34066 = vst [vmem:[#allocation34_spill] sm:$0xff] %v31153_v24  ;;  %v13492_v5 = vcombine.low %v13484_v7, %v13491_v44  ;;  %v13515_v49 = vrot.slane %v13501_v63, %v29042_v51  ;;  %v31156_v29 = vpop.f32.mrb[26].mxu0  ;;  %v31158_v58 = vpop.f32.mrb[26].mxu1  ;;  %v9418_v7 = vcombine.high %v26351_v62, %v26351_v62  ;;  %vm25573_vm0 = vcmask 1045509  }
 0x24d   : > { %34067 = vst [vmem:[#allocation35_spill] sm:$0xff] %v31156_v29  ;;  %34068 = vst [vmem:[#allocation36_spill] sm:$0xff] %v31158_v58  ;;  %v31162_v31 = vpop.f32.mrb[27].mxu0  ;;  %v31164_v25 = vpop.f32.mrb[27].mxu1  ;;  %v31168_v63 = vsel %vm29078_vm14, %v8042_v2, %v8047_v1  ;;  %v9425_v24 = vrot.slane %v26351_v62, %v29027_v39  ;;  %v9987_v58 = vcombine.low %v31077_v12, %v31088_v59 }
 0x24e   : > { %34069 = vst [vmem:[#allocation37_spill] sm:$0xff] %v31162_v31  ;;  %34070 = vst [vmem:[#allocation38_spill] sm:$0xff] %v31164_v25  ;;  %v13516_v6 = vcombine.low %v13508_v47, %v13515_v49  ;;  %v8626_v29 = vrot.slane %v8612_v16, %v29042_v51  ;;  %v8636_v31 = vcombine.low %v12889_v32, %v31168_v63  ;;  %v26437_v25 = vld.sshfl [vmem:[%s28996_s14 + $0x6c] sm:$0x13 pattern:$0x75316420] }
 0x24f   : > { %26639 = vst.sshfl [vmem:[#allocation2 + $0x2a4] sm:$0x33 pattern:$0x75316420] %v13492_v5  ;;  %v9432_v47 = vrot.slane %v9418_v7, %v29027_v39  ;;  %v9433_v5 = vcombine.high %v9425_v24, %v9425_v24  ;;  %v9988_v48 = vcombine.low %v31081_v40, %v31093_v54  ;;  %v9995_v30 = vrot.slane %v9987_v58, %v29042_v51  ;;  %v31182_v12 = vpop.f32.mrb[28].mxu0  ;;  %v31184_v59 = vpop.f32.mrb[28].mxu1 }
 0x250   : > { %26640 = vst.sshfl [vmem:[#allocation2 + $0x2c8] sm:$0x33 pattern:$0x75316420] %v13516_v6  ;;  %v8627_v62 = vcombine.low %v13491_v44, %v8626_v29  ;;  %v8650_v1 = vrot.slane %v8636_v31, %v29042_v51  ;;  %34071 = vst [vmem:[#allocation39_spill] sm:$0xff] %v31182_v12  ;;  %v10760_v24 = vcombine.high %v26437_v25, %v26437_v25  ;;  %v31188_v7 = vpop.f32.mrb[29].mxu0 }
 0x251   : > { %v26438_v2 = vld.sshfl [vmem:[%s28996_s14 + $0x70] sm:$0x33 pattern:$0x75316420]  ;;  %34072 = vst [vmem:[#allocation40_spill] sm:$0xff] %v31184_v59  ;;  %v9434_v6 = vcombine.high %v9432_v47, %v9432_v47  ;;  %v10002_v32 = vrot.slane %v9988_v48, %v29042_v51  ;;  %v10012_v16 = vcombine.low %v9433_v5, %v31139_v56  ;;  %34073 = vst [vmem:[#allocation41_spill] sm:$0xff] %v31188_v7 }
 0x252   : > { %v31190_v40 = vpop.f32.mrb[29].mxu1  ;;  %v8651_v54 = vcombine.low %v13515_v49, %v8650_v1  ;;  %26294 = vst.sshfl [vmem:[#allocation2 + $0x2e0] sm:$0x33 pattern:$0x75316420] %v8627_v62  ;;  %v10767_v44 = vrot.slane %v26437_v25, %v29027_v39  ;;  %v10783_v29 = vcombine.high %v26438_v2, %v26438_v2  ;;  %v10790_v58 = vrot.slane %v26438_v2, %v29027_v39  ;;  %v31197_v59 = vpop.f32.mrb[30].mxu0 }
 0x253   : > { %34074 = vst [vmem:[#allocation42_spill] sm:$0xff] %v31190_v40  ;;  %v31195_v31 = vld.sshfl [vmem:[%s28996_s14 + $0x74] sm:$0x33 pattern:$0x75316420]  ;;  %34075 = vst [vmem:[#allocation43_spill] sm:$0xff] %v31197_v59  ;;  %v10003_v48 = vcombine.low %v9995_v30, %v10002_v32  ;;  %v10011_v5 = vcombine.low %v9432_v47, %v9434_v6  ;;  %v10026_v37 = vrot.slane %v10012_v16, %v29042_v51 }
 0x254   : > { %v31199_v12 = vpop.f32.mrb[30].mxu1  ;;  %v10774_v7 = vrot.slane %v10760_v24, %v29027_v39  ;;  %v31203_v40 = vpop.f32.mrb[31].mxu0  ;;  %26295 = vst.sshfl [vmem:[#allocation2 + $0x304] sm:$0x33 pattern:$0x75316420] %v8651_v54  ;;  %v10775_v25 = vcombine.high %v10767_v44, %v10767_v44  ;;  %v10797_v2 = vrot.slane %v10783_v29, %v29027_v39  ;;  %v10798_v62 = vcombine.high %v10790_v58, %v10790_v58 }
 0x255   : > { %34076 = vst [vmem:[#allocation44_spill] sm:$0xff] %v31199_v12  ;;  %34077 = vst [vmem:[#allocation45_spill] sm:$0xff] %v31203_v40  ;;  %v31205_v49 = vpop.f32.mrb[31].mxu1  ;;  %v12133_v1 = vcombine.high %v31133_v14, %v31133_v14  ;;  %v28555_v12 = vld [vmem:[#allocation2 + $0x2a0] ss:$36 sps:$4 sm:$0xff]   ;;  %v10019_v47 = vrot.slane %v10011_v5, %v29042_v51  ;;  %v31214_v6 = vcombine.high %v31139_v56, %v31139_v56 }
 0x256   : > { %34078 = vst [vmem:[#allocation46_spill] sm:$0xff] %v31205_v49  ;;  %26381 = vst.sshfl [vmem:[#allocation2 + $0x2e4] sm:$0x33 pattern:$0x75316420] %v10003_v48  ;;  %v11350_v30 = vcombine.low %v31083_v46, %v10774_v7  ;;  %v31218_v32 = vrot.slane %v31195_v31, %v29027_v39  ;;  %v10799_v16 = vcombine.high %v10797_v2, %v10797_v2  ;;  %v12906_v46 = vshrl.u32 %v31139_v56, 16 }
 0x257   : > { %v28553_v59 = vld [vmem:[#allocation2 + $0x2a4] ss:$36 sps:$4 sm:$0xff]   ;;  %v11351_v24 = vcombine.low %v10767_v44, %v10775_v25  ;;  %v11374_v54 = vcombine.low %v10790_v58, %v10798_v62  ;;  %v31221_v14 = vrot.slane %v12133_v1, %v29027_v39  ;;  %v10027_v29 = vcombine.low %v10019_v47, %v10026_v37  ;;  %v31231_v44 = vpop.f32.mrb[32].mxu0  ;;  %v31233_v25 = vpop.f32.mrb[32].mxu1 }
 0x258   : > { %16872 = vmatprep.mubr.bf16.mxu1 %v28553_v59  ;;  %v11358_v48 = vrot.slane %v11350_v30, %v29042_v51  ;;  %v11375_v5 = vcombine.low %v10797_v2, %v10799_v16  ;;  %34079 = vst [vmem:[#allocation47_spill] sm:$0xff] %v31231_v44  ;;  %34080 = vst [vmem:[#allocation48_spill] sm:$0xff] %v31233_v25  ;;  %v12919_v56 = vshll.u32 %v31214_v6, 16  ;;  %v31240_v1 = vpop.f32.mrb[33].mxu1  ;;  %v12936_v52 = vshll.u32 %v10797_v2, 16 }
 0x259   : > { %16873 = vmatmul.mubr.bf16.gmra.mrb[88].mxu1 %v28555_v12  ;;  %v11365_v7 = vrot.slane %v11351_v24, %v29042_v51  ;;  %v11382_v49 = vrot.slane %v11374_v54, %v29042_v51  ;;  %v31229_v40 = vcombine.high %v31221_v14, %v31221_v14  ;;  %26382 = vst.sshfl [vmem:[#allocation2 + $0x308] sm:$0x33 pattern:$0x75316420] %v10027_v29  ;;  %v12911_v37 = vshll.u32 %v31221_v14, 16  ;;  %v31238_v12 = vpop.f32.mrb[33].mxu0 }
 0x25a   : > { %v12914_v59 = vshrl.u32 %v31221_v14, 16  ;;  %34081 = vst [vmem:[#allocation49_spill] sm:$0xff] %v31238_v12  ;;  %34082 = vst [vmem:[#allocation50_spill] sm:$0xff] %v31240_v1  ;;  %v11389_v30 = vrot.slane %v11375_v5, %v29042_v51  ;;  %v12922_v24 = vshrl.u32 %v31214_v6, 16  ;;  %v31245_v44 = vpop.f32.mrb[34].mxu0  ;;  %v31247_v29 = vpop.f32.mrb[34].mxu1 }
 0x25b   : > { %v11366_v47 = vcombine.low %v11358_v48, %v11365_v7  ;;  %v12927_v54 = vshll.u32 %v31229_v40, 16  ;;  %34083 = vst [vmem:[#allocation51_spill] sm:$0xff] %v31245_v44  ;;  %34084 = vst [vmem:[#allocation52_spill] sm:$0xff] %v31247_v29  ;;  %v12913_v25 = vsel %vm29078_vm14, %v12906_v46, %v12911_v37  ;;  %v12931_v12 = vshrl.u32 %v10790_v58, 16  ;;  %v31253_v1 = vpop.f32.mrb[35].mxu0  ;;  %v31255_v48 = vpop.f32.mrb[35].mxu1 }
 0x25c   : > { %v12921_v22 = vsel %vm29078_vm14, %v12914_v59, %v12919_v56  ;;  %v11390_v7 = vcombine.low %v11382_v49, %v11389_v30  ;;  %v12939_v44 = vshrl.u32 %v10797_v2, 16  ;;  %v12944_v60 = vshll.u32 %v10798_v62, 16  ;;  %v31273_v30 = vpop.f32.mrb[36].mxu0 }
 0x25d   : > { %26462 = vst.sshfl [vmem:[#allocation2 + $0x2e8] sm:$0x33 pattern:$0x75316420] %v11366_v47  ;;  %v12929_v5 = vsel %vm29078_vm14, %v12922_v24, %v12927_v54  ;;  %v12938_v29 = vsel %vm29078_vm14, %v12931_v12, %v12936_v52  ;;  %v12947_v46 = vshrl.u32 %v10798_v62, 16  ;;  %v12952_v37 = vshll.u32 %v10799_v16, 16 }
 0x25e   : > { %v12955_v9 = vshrl.u32 %v10799_v16, 16  ;;  %26463 = vst.sshfl [vmem:[#allocation2 + $0x30c] sm:$0x33 pattern:$0x75316420] %v11390_v7  ;;  %v12946_v58 = vsel %vm29078_vm14, %v12939_v44, %v12944_v60  ;;  %v12960_v59 = vshll.u32 %v31218_v32, 16  ;;  %v13524_v49 = vcombine.low %v31168_v63, %v12921_v22 }
 0x25f   : > { %v13525_v56 = vcombine.low %v12913_v25, %v12929_v5  ;;  %v12954_v47 = vsel %vm29078_vm14, %v12947_v46, %v12952_v37  ;;  %v7316_v2 = vcombine.high %v31195_v31, %v31195_v31  ;;  %v28559_v62 = vld [vmem:[#allocation2 + $0x2e0] ss:$36 sps:$4 sm:$0xff]   ;;  %34085 = vst [vmem:[#allocation53_spill] sm:$0xff] %v31273_v30  ;;  %v31278_v24 = vpop.f32.mrb[37].mxu0  ;;  %v31280_v54 = vpop.f32.mrb[36].mxu1 }
 0x260   : > { %v28556_v52 = vld [vmem:[#allocation2 + $0x2e4] ss:$36 sps:$4 sm:$0xff]   ;;  %v12962_v16 = vsel %vm29078_vm14, %v12955_v9, %v12960_v59  ;;  %v13532_v12 = vrot.slane %v13524_v49, %v29042_v51  ;;  %v13548_v44 = vcombine.low %v12938_v29, %v12954_v47  ;;  %34086 = vst [vmem:[#allocation54_spill] sm:$0xff] %v31278_v24  ;;  %34087 = vst [vmem:[#allocation55_spill] sm:$0xff] %v31280_v54  ;;  %v31284_v5 = vpop.f32.mrb[38].mxu0  ;;  %v31286_v46 = vpop.f32.mrb[37].mxu1 }
 0x261   : > { %v13539_v60 = vrot.slane %v13525_v56, %v29042_v51  ;;  %v13549_v63 = vcombine.low %v12946_v58, %v12962_v16  ;;  %v31276_v25 = vrot.slane %v7316_v2, %v29027_v39  ;;  %16744 = vmatprep.mubr.bf16.mxu0 %v28556_v52  ;;  %v26353_v9 = vld.sshfl [vmem:[%s28996_s14 + $0x70] sm:$0x32 pattern:$0x75316420]  ;;  %34088 = vst [vmem:[#allocation56_spill] sm:$0xff] %v31284_v5  ;;  %34089 = vst [vmem:[#allocation57_spill] sm:$0xff] %v31286_v46 }
 0x262   : > { %v13556_v7 = vrot.slane %v13548_v44, %v29042_v51  ;;  %16745 = vmatmul.mubr.bf16.gmra.mrb[92].mxu0 %v28559_v62  ;;  %v31289_v58 = vpop.f32.mrb[39].mxu0  ;;  %v31291_v59 = vpop.f32.mrb[38].mxu1  ;;  %v8107_v2 = vshrl.u32 %v31218_v32, 16  ;;  %v8660_v16 = vcombine.low %v12921_v22, %v12938_v29  ;;  %v9473_v62 = vrot.slane %v26353_v9, %v29027_v39 }
 0x263   : > { %v13540_v31 = vcombine.low %v13532_v12, %v13539_v60  ;;  %v13563_v37 = vrot.slane %v13549_v63, %v29042_v51  ;;  %34090 = vst [vmem:[#allocation58_spill] sm:$0xff] %v31289_v58  ;;  %34091 = vst [vmem:[#allocation59_spill] sm:$0xff] %v31291_v59  ;;  %v31293_v49 = vpop.f32.mrb[39].mxu1  ;;  %v8112_v52 = vshll.u32 %v31276_v25, 16  ;;  %v9466_v12 = vcombine.high %v26353_v9, %v26353_v9 }
 0x264   : > { %34092 = vst [vmem:[#allocation60_spill] sm:$0xff] %v31293_v49  ;;  %v26439_v44 = vld.sshfl [vmem:[%s28996_s14 + $0x74] sm:$0x13 pattern:$0x75316420]  ;;  %v31307_v49 = vpop.f32.mrb[40].mxu1  ;;  %v8674_v59 = vrot.slane %v8660_v16, %v29042_v51 }
 0x265   : > { %26641 = vst.sshfl [vmem:[#allocation2 + $0x2ec] sm:$0x33 pattern:$0x75316420] %v13540_v31  ;;  %v13564_v56 = vcombine.low %v13556_v7, %v13563_v37  ;;  %v31301_v63 = vsel %vm29078_vm14, %v8107_v2, %v8112_v52  ;;  %v10035_v31 = vcombine.low %v31221_v14, %v31229_v40  ;;  %v31305_v7 = vpop.f32.mrb[40].mxu0  ;;  %34094 = vst [vmem:[#allocation62_spill] sm:$0xff] %v31307_v49 }
 0x266   : > { %34093 = vst [vmem:[#allocation61_spill] sm:$0xff] %v31305_v7  ;;  %v8684_v22 = vcombine.low %v12954_v47, %v31301_v63  ;;  %v9480_v29 = vrot.slane %v9466_v12, %v29027_v39  ;;  %v26440_v9 = vld.sshfl [vmem:[%s28996_s14 + $0x78] sm:$0x33 pattern:$0x75316420]  ;;  %v31313_v46 = vpop.f32.mrb[41].mxu0  ;;  %v10807_v40 = vcombine.high %v26439_v44, %v26439_v44  ;;  %v10814_v14 = vrot.slane %v26439_v44, %v29027_v39 }
 0x267   : > { %26642 = vst.sshfl [vmem:[#allocation2 + $0x310] sm:$0x33 pattern:$0x75316420] %v13564_v56  ;;  %v9481_v56 = vcombine.high %v9473_v62, %v9473_v62  ;;  %34095 = vst [vmem:[#allocation63_spill] sm:$0xff] %v31313_v46  ;;  %v31315_v54 = vpop.f32.mrb[41].mxu1  ;;  %v10043_v2 = vrot.slane %v10035_v31, %v29042_v51  ;;  %v8675_v47 = vcombine.low %v13539_v60, %v8674_v59 }
 0x268   : > { %34096 = vst [vmem:[#allocation64_spill] sm:$0xff] %v31315_v54  ;;  %v31319_v52 = vld.sshfl [vmem:[%s28996_s14 + $0x7c] sm:$0x13 pattern:$0x75316420]  ;;  %v31322_v49 = vpop.f32.mrb[42].mxu0  ;;  %v8698_v12 = vrot.slane %v8684_v22, %v29042_v51  ;;  %v9482_v62 = vcombine.high %v9480_v29, %v9480_v29  ;;  %v10036_v46 = vcombine.low %v31214_v6, %v9480_v29  ;;  %v10821_v58 = vrot.slane %v10807_v40, %v29027_v39 }
 0x269   : > { %34097 = vst [vmem:[#allocation65_spill] sm:$0xff] %v31322_v49  ;;  %v31324_v16 = vpop.f32.mrb[42].mxu1  ;;  %v31328_v7 = vpop.f32.mrb[43].mxu0  ;;  %v10059_v31 = vcombine.low %v9481_v56, %v31218_v32  ;;  %v10822_v44 = vcombine.high %v10814_v14, %v10814_v14  ;;  %v10830_v5 = vcombine.high %v26440_v9, %v26440_v9  ;;  %v10837_v59 = vrot.slane %v26440_v9, %v29027_v39  ;;  %v28562_v29 = vld [vmem:[#allocation2 + $0x2e8] ss:$36 sps:$4 sm:$0xff]  }
 0x26a   : > { %34098 = vst [vmem:[#allocation66_spill] sm:$0xff] %v31324_v16  ;;  %34099 = vst [vmem:[#allocation67_spill] sm:$0xff] %v31328_v7  ;;  %v31330_v54 = vpop.f32.mrb[43].mxu1  ;;  %v8699_v49 = vcombine.low %v13563_v37, %v8698_v12  ;;  %v10050_v16 = vrot.slane %v10036_v46, %v29042_v51  ;;  %v10060_v60 = vcombine.low %v9482_v62, %v31276_v25  ;;  %v31354_v24 = vpop.f32.mrb[44].mxu0 }
 0x26b   : > { %34100 = vst [vmem:[#allocation68_spill] sm:$0xff] %v31330_v54  ;;  %26296 = vst.sshfl [vmem:[#allocation2 + $0x328] sm:$0x33 pattern:$0x75316420] %v8675_v47  ;;  %v10067_v7 = vrot.slane %v10059_v31, %v29042_v51  ;;  %v10844_v54 = vrot.slane %v10830_v5, %v29027_v39  ;;  %v31342_v56 = vrot.slane %v31319_v52, %v29027_v39 }
 0x26c   : > { %v26522_v22 = vld.sshfl [vmem:[%s28996_s14 + $0x7c] sm:$0x33 pattern:$0x75316420]  ;;  %v11398_v40 = vcombine.low %v10814_v14, %v10822_v44  ;;  %v10051_v37 = vcombine.low %v10043_v2, %v10050_v16  ;;  %v10074_v46 = vrot.slane %v10060_v60, %v29042_v51  ;;  %v10845_v47 = vcombine.high %v10837_v59, %v10837_v59  ;;  %34101 = vst [vmem:[#allocation69_spill] sm:$0xff] %v31354_v24  ;;  %v31360_v44 = vpop.f32.mrb[45].mxu0 }
 0x26d   : > { %26297 = vst.sshfl [vmem:[#allocation2 + $0x34c] sm:$0x33 pattern:$0x75316420] %v8699_v49  ;;  %v11399_v12 = vcombine.low %v10821_v58, %v10837_v59  ;;  %v10846_v9 = vcombine.high %v10844_v54, %v10844_v54  ;;  %v31348_v31 = vcombine.high %v31218_v32, %v31218_v32  ;;  %v31352_v5 = vcombine.high %v31276_v25, %v31276_v25  ;;  %v31356_v49 = vpop.f32.mrb[44].mxu1  ;;  %v31368_v24 = vpop.f32.mrb[46].mxu0 }
 0x26e   : > { %v28560_v6 = vld [vmem:[#allocation2 + $0x2ec] ss:$36 sps:$4 sm:$0xff]   ;;  %v11406_v62 = vrot.slane %v11398_v40, %v29042_v51  ;;  %34102 = vst [vmem:[#allocation70_spill] sm:$0xff] %v31356_v49  ;;  %v10075_v2 = vcombine.low %v10067_v7, %v10074_v46  ;;  %v11423_v14 = vcombine.low %v10845_v47, %v31342_v56  ;;  %v12229_v16 = vcombine.high %v26522_v22, %v26522_v22  ;;  %v31362_v32 = vpop.f32.mrb[45].mxu1 }
 0x26f   : > { %16880 = vmatprep.mubr.bf16.mxu1 %v28560_v6  ;;  %26383 = vst.sshfl [vmem:[#allocation2 + $0x32c] sm:$0x33 pattern:$0x75316420] %v10051_v37  ;;  %v11413_v58 = vrot.slane %v11399_v12, %v29042_v51  ;;  %34103 = vst [vmem:[#allocation71_spill] sm:$0xff] %v31360_v44  ;;  %v11422_v60 = vcombine.low %v10844_v54, %v10846_v9  ;;  %v31365_v6 = vrot.slane %v26522_v22, %v29027_v39 }
 0x270   : > { %16881 = vmatmul.mubr.bf16.gmra.mrb[92].mxu1 %v28562_v29  ;;  %34104 = vst [vmem:[#allocation72_spill] sm:$0xff] %v31362_v32  ;;  %v12971_v40 = vshrl.u32 %v31276_v25, 16  ;;  %34105 = vst [vmem:[#allocation73_spill] sm:$0xff] %v31368_v24  ;;  %v31370_v29 = vpop.f32.mrb[46].mxu1  ;;  %v11437_v37 = vrot.slane %v11423_v14, %v29042_v51  ;;  %v31374_v46 = vrot.slane %v12229_v16, %v29027_v39  ;;  %v12976_v12 = vshll.u32 %v31348_v31, 16  ;;  %v31377_v32 = vpop.f32.mrb[47].mxu0 }
 0x271   : > { %34106 = vst [vmem:[#allocation74_spill] sm:$0xff] %v31370_v29  ;;  %26384 = vst.sshfl [vmem:[#allocation2 + $0x350] sm:$0x33 pattern:$0x75316420] %v10075_v2  ;;  %v11414_v7 = vcombine.low %v11406_v62, %v11413_v58  ;;  %v31379_v49 = vpop.f32.mrb[47].mxu1  ;;  %v11430_v22 = vrot.slane %v11422_v60, %v29042_v51 }
 0x272   : > { %34107 = vst [vmem:[#allocation75_spill] sm:$0xff] %v31377_v32  ;;  %34108 = vst [vmem:[#allocation76_spill] sm:$0xff] %v31379_v49  ;;  %v12979_v25 = vshrl.u32 %v31348_v31, 16  ;;  %v12984_v24 = vshll.u32 %v31352_v5, 16  ;;  %v31386_v62 = vsel %vm29078_vm14, %v12971_v40, %v12976_v12  ;;  %v12988_v2 = vshrl.u32 %v10837_v59, 16 }
 0x273   : > { %26464 = vst.sshfl [vmem:[#allocation2 + $0x330] sm:$0x33 pattern:$0x75316420] %v11414_v7  ;;  %v12993_v58 = vshll.u32 %v10844_v54, 16  ;;  %v12996_v14 = vshrl.u32 %v10844_v54, 16  ;;  %v11438_v16 = vcombine.low %v11430_v22, %v11437_v37 }
 0x274   : > { %v12986_v29 = vsel %vm29078_vm14, %v12979_v25, %v12984_v24  ;;  %v13001_v32 = vshll.u32 %v10845_v47, 16  ;;  %v13004_v49 = vshrl.u32 %v10845_v47, 16  ;;  %v13009_v44 = vshll.u32 %v10846_v9, 16  ;;  %v31398_v24 = vpop.f32.mrb[48].mxu0  ;;  %v31400_v47 = vpop.f32.mrb[48].mxu1 }
 0x275   : > { %v12995_v60 = vsel %vm29078_vm14, %v12988_v2, %v12993_v58  ;;  %v13012_v30 = vshrl.u32 %v10846_v9, 16  ;;  %v13017_v7 = vshll.u32 %v31365_v6, 16  ;;  %26465 = vst.sshfl [vmem:[#allocation2 + $0x354] sm:$0x33 pattern:$0x75316420] %v11438_v16  ;;  %v13572_v37 = vcombine.low %v31301_v63, %v12986_v29 }
 0x276   : > { %v13003_v40 = vsel %vm29078_vm14, %v12996_v14, %v13001_v32  ;;  %v13020_v59 = vshrl.u32 %v31365_v6, 16  ;;  %v13025_v54 = vshll.u32 %v31374_v46, 16  ;;  %34109 = vst [vmem:[#allocation77_spill] sm:$0xff] %v31400_v47  ;;  %v13011_v12 = vsel %vm29078_vm14, %v13004_v49, %v13009_v44  ;;  %v31407_v25 = vpop.f32.mrb[49].mxu0  ;;  %v31409_v32 = vpop.f32.mrb[49].mxu1 }
 0x277   : > { %v13019_v9 = vsel %vm29078_vm14, %v13012_v30, %v13017_v7  ;;  %v13573_v22 = vcombine.low %v31386_v62, %v12995_v60  ;;  %34110 = vst [vmem:[#allocation78_spill] sm:$0xff] %v31407_v25  ;;  %34111 = vst [vmem:[#allocation79_spill] sm:$0xff] %v31409_v32  ;;  %v28565_v58 = vld [vmem:[#allocation2 + $0x328] ss:$36 sps:$4 sm:$0xff]   ;;  %v13580_v14 = vrot.slane %v13572_v37, %v29042_v51  ;;  %v27542_v44 = vpop.f32.mrb[50].mxu0  ;;  %v27636_v60 = vpop.f32.mrb[50].mxu1 }
 0x278   : > { %v28563_v2 = vld [vmem:[#allocation2 + $0x32c] ss:$36 sps:$4 sm:$0xff]   ;;  %v13027_v63 = vsel %vm29078_vm14, %v13020_v59, %v13025_v54  ;;  %v13596_v16 = vcombine.low %v13003_v40, %v13019_v9  ;;  %v10089_v30 = vrot.slane %v31348_v31, %v29042_v51  ;;  %v28587_v7 = vld [vmem:[#allocation9 + $0x40] sm:$0xff]   ;;  %v10096_v59 = vrot.slane %v31352_v5, %v29042_v51  ;;  %v27543_v54 = vpop.f32.mrb[51].mxu0  ;;  %v27637_v37 = vpop.f32.mrb[51].mxu1 }
 0x279   : > { %v13587_v47 = vrot.slane %v13573_v22, %v29042_v51  ;;  %v13597_v49 = vcombine.low %v13011_v12, %v13027_v63  ;;  %v28588_v25 = vld [vmem:[#allocation9] sm:$0xff]   ;;  %16752 = vmatprep.mubr.bf16.mxu0 %v28563_v2  ;;  %v10854_v40 = vcombine.high %v31319_v52, %v31319_v52  ;;  %v8713_v9 = vrot.slane %v31386_v62, %v29042_v51  ;;  %v26674_v22 = vld.sshfl [vmem:[%s28996_s14 + $0x10] sm:$0x32 pattern:$0x75316420]  ;;  %v31426_v2 = vpop.f32.mrb[52].mxu0 }
 0x27a   : > { %v13604_v32 = vrot.slane %v13596_v16, %v29042_v51  ;;  %16753 = vmatmul.mubr.bf16.gmra.mrb[96].mxu0 %v28565_v58  ;;  %v31428_v63 = vpop.f32.mrb[52].mxu1  ;;  %v8720_v16 = vrot.slane %v12986_v29, %v29042_v51  ;;  %v10097_v5 = vcombine.low %v10089_v30, %v10096_v59  ;;  %v10869_v52 = vcombine.high %v31342_v56, %v31342_v56  ;;  %v26675_v58 = vld.sshfl [vmem:[%s28996_s14 + $0x14] sm:$0x33 pattern:$0x75316420] }
 0x27b   : > { %v13588_v12 = vcombine.low %v13580_v14, %v13587_v47  ;;  %v13611_v31 = vrot.slane %v13597_v49, %v29042_v51  ;;  %v10868_v44 = vrot.slane %v10854_v40, %v29027_v39  ;;  %v31435_v47 = vpop.f32.mrb[53].mxu0  ;;  %v31437_v14 = vpop.f32.mrb[53].mxu1  ;;  %27848 = vmatprep.subr.bf16.mxu1 %v28587_v7  ;;  %v12244_v49 = vcombine.high %v31365_v6, %v31365_v6  ;;  %v31451_v7 = vld.sshfl [vmem:[%s28996_s14 + $0x18] sm:$0x32 pattern:$0x75316420] }
 0x27c   : > { %34112 = vst [vmem:[#allocation80_spill] sm:$0xff] %v31437_v14  ;;  %v12245_v29 = vcombine.high %v31374_v46, %v31374_v46  ;;  %v13028_v30 = vshrl.u32 %v31374_v46, 16  ;;  %v31444_v60 = vpop.f32.mrb[54].mxu0  ;;  %v31446_v56 = vpop.f32.mrb[54].mxu1  ;;  %27849 = vmatpush3.bf16.msra.mxu1 %v28588_v25  ;;  %v8721_v59 = vcombine.low %v8713_v9, %v8720_v16  ;;  %v13762_v16 = vrot.slane %v26674_v22, %v29027_v39 }
 0x27d   : > { %v13612_v62 = vcombine.low %v13604_v32, %v13611_v31  ;;  %26643 = vst.sshfl [vmem:[#allocation2 + $0x334] sm:$0x33 pattern:$0x75316420] %v13588_v12  ;;  %34113 = vst [vmem:[#allocation81_spill] sm:$0xff] %v31446_v56  ;;  %v11452_v40 = vrot.slane %v10868_v44, %v29042_v51  ;;  %v11459_v32 = vrot.slane %v10869_v52, %v29042_v51  ;;  %v31453_v54 = vpop.f32.mrb[55].mxu0 }
 0x27e   : > { %26385 = vst.sshfl [vmem:[#allocation2 + $0x374] sm:$0x11 pattern:$0x75316420] %v10097_v5  ;;  %v31455_v6 = vpop.f32.mrb[55].mxu1  ;;  %v13033_v37 = vshll.u32 %v12244_v49, 16  ;;  %v13755_v31 = vcombine.high %v26674_v22, %v26674_v22  ;;  %v13779_v5 = vcombine.high %v26675_v58, %v26675_v58  ;;  %v13786_v44 = vrot.slane %v26675_v58, %v29027_v39 }
 0x27f   : > { %26644 = vst.sshfl [vmem:[#allocation2 + $0x358] sm:$0x33 pattern:$0x75316420] %v13612_v62  ;;  %v13036_v46 = vshrl.u32 %v12244_v49, 16  ;;  %v13041_v12 = vshll.u32 %v12245_v29, 16  ;;  %v11460_v9 = vcombine.low %v11452_v40, %v11459_v32 }
 0x280   : > { %v31457_v14 = vpop.f32.mrb[56].mxu0  ;;  %26298 = vst.sshfl [vmem:[#allocation2 + $0x370] sm:$0x11 pattern:$0x75316420] %v8721_v59  ;;  %v13035_v62 = vsel %vm29078_vm14, %v13028_v30, %v13033_v37  ;;  %v13769_v29 = vrot.slane %v13755_v31, %v29027_v39  ;;  %v13803_v59 = vcombine.high %v31451_v7, %v31451_v7  ;;  %v13793_v30 = vrot.slane %v13779_v5, %v29027_v39 }
 0x281   : > { %34114 = vst [vmem:[#allocation82_spill] sm:$0xff] %v31457_v14  ;;  %v31463_v52 = vpop.f32.mrb[57].mxu0  ;;  %v13043_v49 = vsel %vm29078_vm14, %v13036_v46, %v13041_v12  ;;  %26466 = vst.sshfl [vmem:[#allocation2 + $0x378] sm:$0x11 pattern:$0x75316420] %v11460_v9  ;;  %v13626_v58 = vrot.slane %v13035_v62, %v29042_v51  ;;  %v13794_v31 = vcombine.high %v13786_v44, %v13786_v44 }
 0x282   : > { %34116 = vst [vmem:[#allocation84_spill] sm:$0xff] %v31463_v52  ;;  %v31474_v40 = vpop.f32.mrb[58].mxu0  ;;  %v13633_v32 = vrot.slane %v13043_v49, %v29042_v51  ;;  %v13771_v12 = vcombine.high %v13769_v29, %v13769_v29  ;;  %v31491_v9 = vrot.slane %v13803_v59, %v29027_v39  ;;  %vm25561_vm14 = vcmask 1041409  }
 0x283   : > { %34118 = vst [vmem:[#allocation86_spill] sm:$0xff] %v31474_v40  ;;  %v31486_v37 = vpop.f32.mrb[59].mxu0 }
 0x284   : > { %34120 = vst [vmem:[#allocation88_spill] sm:$0xff] %v31486_v37  ;;  %v13634_v49 = vcombine.low %v13626_v58, %v13633_v32  ;;  %v27472_v37 = vadd.f32 %v30882_v0, %v30878_v34  ;;  %v14420_v59 = vcombine.low %v13769_v29, %v13771_v12  ;;  %v14445_v14 = vcombine.low %v13794_v31, %v31491_v9  ;;  %v28568_v34 = vld [vmem:[#allocation2 + $0x330] ss:$36 sps:$4 sm:$0xff]  }
 0x285   : > { %v27566_v12 = vadd.f32 %v30894_v33, %v30884_v36 }
 0x286   : > { %26645 = vst.sshfl [vmem:[#allocation2 + $0x37c] sm:$0x11 pattern:$0x75316420] %v13634_v49  ;;  %v16398_v29 = vadd.f32 %v27472_v37, %v31484_v8  ;;  %v13810_v49 = vrot.slane %v31451_v7, %v29027_v39 }
 0x288   : > { %v31459_v25 = vpop.f32.mrb[56].mxu1  ;;  %v31532_v33 = vadd.f32 %v27566_v12, %v16398_v29  ;;  %v27569_v12 = vadd.f32 %v30923_v35, %v30915_v55  ;;  %v26679_v35 = vld.sshfl [vmem:[%s28996_s14 + $0x24] sm:$0x33 pattern:$0x75316420] }
 0x289   : > { %34115 = vst [vmem:[#allocation83_spill] sm:$0xff] %v31459_v25  ;;  %v31465_v56 = vpop.f32.mrb[57].mxu1 }
 0x28a   : > { %34117 = vst [vmem:[#allocation85_spill] sm:$0xff] %v31465_v56  ;;  %v31476_v22 = vpop.f32.mrb[58].mxu1  ;;  %v13770_v56 = vcombine.high %v13762_v16, %v13762_v16  ;;  %v27469_v16 = vadd.f32 %v30872_v38, %v30869_v41  ;;  %v27563_v38 = vadd.f32 %v30880_v42, %v30874_v15  ;;  %v14428_v15 = vrot.slane %v14420_v59, %v29042_v51 }
 0x28b   : > { %34119 = vst [vmem:[#allocation87_spill] sm:$0xff] %v31476_v22  ;;  %v31488_v46 = vpop.f32.mrb[59].mxu1  ;;  %v13795_v22 = vcombine.high %v13793_v30, %v13793_v30  ;;  %v14459_v42 = vrot.slane %v14445_v14, %v29042_v51  ;;  %v13818_v59 = vcombine.high %v13810_v49, %v13810_v49  ;;  %v27572_v49 = vadd.f32 %v30940_v61, %v30932_v4 }
 0x28c   : > { %34121 = vst [vmem:[#allocation89_spill] sm:$0xff] %v31488_v46  ;;  %v14421_v25 = vcombine.low %v13770_v56, %v13786_v44  ;;  %v26677_v46 = vld.sshfl [vmem:[%s28996_s14 + $0x1c] sm:$0x33 pattern:$0x75316420]  ;;  %v16395_v41 = vadd.f32 %v27469_v16, %v31484_v8 }
 0x28d   : > { %v28566_v44 = vld [vmem:[#allocation2 + $0x334] ss:$36 sps:$4 sm:$0xff]   ;;  %v14444_v32 = vcombine.low %v13793_v30, %v13795_v22  ;;  %v13827_v7 = vcombine.high %v26677_v46, %v26677_v46 }
 0x28e   : > { %v31495_v62 = vpop.f32.mrb[60].mxu0  ;;  %v14435_v0 = vrot.slane %v14421_v25, %v29042_v51  ;;  %v15190_v16 = vld [vmem:[#allocation2 + $0x370] sm:$0x33]  ;;  %16888 = vmatprep.mubr.bf16.mxu1 %v28566_v44  ;;  %v13834_v44 = vrot.slane %v26677_v46, %v29027_v39  ;;  %v34126_v46 = vmov 0.0  }
 0x28f   : > { %v31502_v40 = vpop.f32.mrb[61].mxu0  ;;  %v26847_v22 = vcombine.high %v15190_v16, %v15190_v16  ;;  %v26846_v30 = vcombine.low %v15190_v16, %v15190_v16  ;;  %v14452_v36 = vrot.slane %v14444_v32, %v29042_v51  ;;  %16889 = vmatmul.mubr.bf16.gmra.mrb[96].mxu1 %v28568_v34  ;;  %v13841_v34 = vrot.slane %v13827_v7, %v29027_v39 }
 0x290   : > { %v31511_v58 = vpop.f32.mrb[62].mxu0  ;;  %v14436_v14 = vcombine.low %v14428_v15, %v14435_v0  ;;  %v27478_v0 = vadd.f32 %v30938_v11, %v30930_v19 }
 0x291   : > { %v31519_v31 = vpop.f32.mrb[63].mxu0  ;;  %16760 = vmatprep.mubr.bf16.mxu0 %v26847_v22 }
 0x292   : > { %16761 = vmatmul.mubr.bf16.gmra.mrb[100].mxu0 %v26846_v30  ;;  %26708 = vst.sshfl [vmem:[#allocation2 + $0x20] sm:$0x33 pattern:$0x75316420] %v14436_v14  ;;  %v16406_v55 = vadd.f32 %v27478_v0, %v31484_v8 }
 0x293   : > { %28161 = vmatprep.mubr.msk.bf16.mxu0 %vm28801_vm15, %v34126_v46  ;;  %v26680_v14 = vld.sshfl [vmem:[%s28996_s14 + $0x28] sm:$0x32 pattern:$0x75316420] }
 0x294   : > { %v31565_v61 = vadd.f32 %v27572_v49, %v16406_v55  ;;  %v13899_v0 = vcombine.high %v26680_v14, %v26680_v14 }
 0x29c   : > { %v31497_v5 = vpop.f32.mrb[60].mxu1 }
 0x29d   : > { %34122 = vst [vmem:[#allocation90_spill] sm:$0xff] %v31497_v5  ;;  %v31504_v52 = vpop.f32.mrb[61].mxu1  ;;  %v26678_v5 = vld.sshfl [vmem:[%s28996_s14 + $0x20] sm:$0x32 pattern:$0x75316420] }
 0x29e   : > { %34123 = vst [vmem:[#allocation91_spill] sm:$0xff] %v31504_v52  ;;  %v31513_v56 = vpop.f32.mrb[62].mxu1  ;;  %v31523_v52 = vadd.f32 %v27563_v38, %v16395_v41  ;;  %v13819_v41 = vcombine.high %v31491_v9, %v31491_v9  ;;  %v13851_v16 = vcombine.high %v26678_v5, %v26678_v5  ;;  %v13858_v32 = vrot.slane %v26678_v5, %v29027_v39 }
 0x29f   : > { %34124 = vst [vmem:[#allocation92_spill] sm:$0xff] %v31513_v56  ;;  %v31527_v56 = vpop.f32.mrb[63].mxu1  ;;  %v27475_v9 = vadd.f32 %v30921_v20, %v30913_v28  ;;  %v13842_v5 = vcombine.high %v13834_v44, %v13834_v44  ;;  %v15191_v28 = vld [vmem:[#allocation2 + $0x378] sm:$0x33] }
 0x2a0   : > { %v13865_v15 = vrot.slane %v13851_v16, %v29027_v39  ;;  %v14469_v20 = vcombine.low %v13819_v41, %v13841_v34  ;;  %v26702_v22 = vcombine.high %v13841_v34, %v13858_v32  ;;  %v26849_v11 = vcombine.high %v15191_v28, %v15191_v28 }
 0x2a1   : > { %v16403_v19 = vadd.f32 %v27475_v9, %v31484_v8  ;;  %v26848_v30 = vcombine.low %v15191_v28, %v15191_v28  ;;  %v13875_v16 = vcombine.high %v26679_v35, %v26679_v35  ;;  %v13882_v32 = vrot.slane %v26679_v35, %v29027_v39 }
 0x2a2   : > { %v31529_v25 = vpop.f32.mrb[64].mxu0  ;;  %v14507_v7 = vrot.slane %v26702_v22, %v29042_v51  ;;  %16896 = vmatprep.mubr.bf16.mxu1 %v26849_v11  ;;  %v27484_v22 = vadd.f32 %v30993_v27, %v30984_v21  ;;  %v13913_v35 = vrot.slane %v13899_v0, %v29027_v39  ;;  %v27578_v11 = vadd.f32 %v30995_v23, %v30986_v26 }
 0x2a3   : > { %34125 = vst [vmem:[#allocation93_spill] sm:$0xff] %v31529_v25  ;;  %v31534_v37 = vpop.f32.mrb[65].mxu0  ;;  %v14460_v25 = vcombine.low %v14452_v36, %v14459_v42  ;;  %v14468_v42 = vcombine.low %v13818_v59, %v13834_v44  ;;  %v14483_v59 = vrot.slane %v14469_v20, %v29042_v51  ;;  %v31563_v4 = vadd.f32 %v27569_v12, %v16403_v19 }
 0x2a4   : > { %v31538_v38 = vpop.f32.mrb[66].mxu0  ;;  %v13867_v44 = vcombine.high %v13865_v15, %v13865_v15  ;;  %16897 = vmatmul.mubr.bf16.gmra.mrb[100].mxu1 %v26848_v30  ;;  %v27481_v12 = vadd.f32 %v30975_v3, %v30968_v13  ;;  %v13889_v20 = vrot.slane %v13875_v16, %v29027_v39  ;;  %v27575_v3 = vadd.f32 %v30977_v53, %v30970_v57 }
 0x2a5   : > { %v31542_v29 = vpop.f32.mrb[67].mxu0  ;;  %26709 = vst.sshfl [vmem:[#allocation2 + $0x44] sm:$0x33 pattern:$0x75316420] %v14460_v25  ;;  %v14476_v36 = vrot.slane %v14468_v42, %v29042_v51  ;;  %v14492_v25 = vcombine.low %v13842_v5, %v13865_v15  ;;  %v13906_v5 = vrot.slane %v26680_v14, %v29027_v39  ;;  %v13890_v15 = vcombine.high %v13882_v32, %v13882_v32 }
 0x2a6   : > { %v26681_v42 = vld.sshfl [vmem:[%s28996_s14 + $0x2c] sm:$0x33 pattern:$0x75316420]  ;;  %v16411_v13 = vadd.f32 %v27481_v12, %v31484_v8 }
 0x2a7   : > { %v14500_v41 = vrot.slane %v14492_v25, %v29042_v51  ;;  %v14484_v9 = vcombine.low %v14476_v36, %v14483_v59  ;;  %v14516_v36 = vcombine.low %v13867_v44, %v13889_v20  ;;  %v14517_v21 = vcombine.low %v13882_v32, %v13890_v15  ;;  %v26682_v14 = vld.sshfl [vmem:[%s28996_s14 + $0x30] sm:$0x32 pattern:$0x75316420] }
 0x2a8   : > { %v26703_v27 = vcombine.high %v13889_v20, %v13906_v5  ;;  %v16414_v25 = vadd.f32 %v27484_v22, %v31484_v8  ;;  %v13915_v59 = vcombine.high %v13913_v35, %v13913_v35  ;;  %v13923_v16 = vcombine.high %v26681_v42, %v26681_v42 }
 0x2a9   : > { %v14508_v28 = vcombine.low %v14500_v41, %v14507_v7  ;;  %26710 = vst.sshfl [vmem:[#allocation2 + $0x68] sm:$0x33 pattern:$0x75316420] %v14484_v9  ;;  %v31592_v7 = vadd.f32 %v27575_v3, %v16411_v13  ;;  %v13930_v57 = vrot.slane %v26681_v42, %v29027_v39  ;;  %v14524_v53 = vrot.slane %v14516_v36, %v29042_v51 }
 0x2aa   : > { %v26683_v41 = vld.sshfl [vmem:[%s28996_s14 + $0x34] sm:$0x33 pattern:$0x75316420]  ;;  %v14531_v26 = vrot.slane %v14517_v21, %v29042_v51  ;;  %v14548_v23 = vrot.slane %v26703_v27, %v29042_v51  ;;  %v31601_v44 = vadd.f32 %v27578_v11, %v16414_v25  ;;  %v14541_v32 = vcombine.low %v13913_v35, %v13915_v59  ;;  %v28589_v59 = vld [vmem:[#allocation9 + $0x48] sm:$0xff]  }
 0x2ab   : > { %26711 = vst.sshfl [vmem:[#allocation2 + $0x8c] sm:$0x33 pattern:$0x75316420] %v14508_v28  ;;  %v13937_v9 = vrot.slane %v13923_v16, %v29027_v39  ;;  %v13938_v0 = vcombine.high %v13930_v57, %v13930_v57  ;;  %v13947_v5 = vcombine.high %v26682_v14, %v26682_v14  ;;  %v13954_v42 = vrot.slane %v26682_v14, %v29027_v39 }
 0x2ac   : > { %v28574_v55 = vld [vmem:[#allocation2 + $0x20] ss:$36 sps:$4 sm:$0xff]   ;;  %v14532_v12 = vcombine.low %v14524_v53, %v14531_v26  ;;  %v13978_v28 = vrot.slane %v26683_v41, %v29027_v39  ;;  %v27487_v20 = vadd.f32 %v31018_v10, %v31012_v17  ;;  %v14555_v15 = vrot.slane %v14541_v32, %v29042_v51  ;;  %v26684_v21 = vld.sshfl [vmem:[%s28996_s14 + $0x38] sm:$0x32 pattern:$0x75316420]  ;;  %27850 = vmatprep.subr.bf16.mxu1 %v28589_v59 }
 0x2ad   : > { %28162 = vmatmul.mubr.bf16.vlgmr.msra.gmra.mrb[104].mxu0 %v28574_v55  ;;  %v13939_v22 = vcombine.high %v13937_v9, %v13937_v9  ;;  %v13961_v55 = vrot.slane %v13947_v5, %v29027_v39  ;;  %v14564_v13 = vcombine.low %v13930_v57, %v13938_v0  ;;  %v13962_v35 = vcombine.high %v13954_v42, %v13954_v42  ;;  %v34127_v26 = vld [vmem:[#allocation13_spill] sm:$0xff]  ;;  %v34128_v32 = vld [vmem:[#allocation14_spill] sm:$0xff] }
 0x2ae   : > { %28165 = vmatprep.mubr.msk.bf16.mxu0 %vm28801_vm15, %v34126_v46  ;;  %26712 = vst.sshfl [vmem:[#allocation2 + $0xb0] sm:$0x33 pattern:$0x75316420] %v14532_v12  ;;  %v16419_v3 = vadd.f32 %v27487_v20, %v31484_v8  ;;  %v27490_v11 = vadd.f32 %v31030_v45, %v31024_v43  ;;  %v27581_v36 = vadd.f32 %v31020_v18, %v31014_v50 }
 0x2af   : > { %v14556_v17 = vcombine.low %v14548_v23, %v14555_v15  ;;  %v13963_v10 = vcombine.high %v13961_v55, %v13961_v55  ;;  %v14565_v25 = vcombine.low %v13937_v9, %v13939_v22  ;;  %v14572_v14 = vrot.slane %v14564_v13, %v29042_v51  ;;  %v26685_v43 = vld.sshfl [vmem:[%s28996_s14 + $0x3c] sm:$0x33 pattern:$0x75316420] }
 0x2b0   : > { %v31569_v34 = vpop.f32.mrb[64].mxu1  ;;  %v14589_v16 = vcombine.low %v13962_v35, %v13978_v28  ;;  %v16422_v57 = vadd.f32 %v27490_v11, %v31484_v8  ;;  %v31618_v53 = vadd.f32 %v27581_v36, %v16419_v3  ;;  %v27584_v0 = vadd.f32 %v34128_v32, %v34127_v26  ;;  %v28590_v3 = vld [vmem:[#allocation9 + $0x8] sm:$0xff]  }
 0x2b1   : > { %v31575_v49 = vpop.f32.mrb[65].mxu1  ;;  %26713 = vst.sshfl [vmem:[#allocation2 + $0xd4] sm:$0x33 pattern:$0x75316420] %v14556_v17  ;;  %v14579_v50 = vrot.slane %v14565_v25, %v29042_v51  ;;  %v14588_v18 = vcombine.low %v13961_v55, %v13963_v10  ;;  %v13971_v23 = vcombine.high %v26683_v41, %v26683_v41  ;;  %v13986_v9 = vcombine.high %v13978_v28, %v13978_v28  ;;  %v34130_v17 = vld [vmem:[#allocation15_spill] sm:$0xff] }
 0x2b2   : > { %v31580_v19 = vpop.f32.mrb[66].mxu1  ;;  %v28575_v27 = vld [vmem:[#allocation2 + $0x68] ss:$36 sps:$4 sm:$0xff]   ;;  %v14603_v12 = vrot.slane %v14589_v16, %v29042_v51  ;;  %v31631_v42 = vadd.f32 %v27584_v0, %v16422_v57  ;;  %v13995_v20 = vcombine.high %v26684_v21, %v26684_v21  ;;  %v14002_v15 = vrot.slane %v26684_v21, %v29027_v39  ;;  %v34131_v21 = vld [vmem:[#allocation17_spill] sm:$0xff]  ;;  %27851 = vmatpush3.bf16.msra.mxu1 %v28590_v3 }
 0x2b3   : > { %v31588_v30 = vpop.f32.mrb[67].mxu1  ;;  %v14580_v13 = vcombine.low %v14572_v14, %v14579_v50  ;;  %v14596_v35 = vrot.slane %v14588_v18, %v29042_v51  ;;  %v13985_v41 = vrot.slane %v13971_v23, %v29027_v39  ;;  %v14019_v28 = vcombine.high %v26685_v43, %v26685_v43  ;;  %v34132_v57 = vld [vmem:[#allocation19_spill] sm:$0xff]  ;;  %v34133_v26 = vld [vmem:[#allocation21_spill] sm:$0xff] }
 0x2b4   : > { %34129 = vst [vmem:[#allocation13_spill] sm:$0xff] %v31631_v42  ;;  %v14009_v11 = vrot.slane %v13995_v20, %v29027_v39  ;;  %v14010_v36 = vcombine.high %v14002_v15, %v14002_v15  ;;  %v27493_v10 = vadd.f32 %v34131_v21, %v34130_v17  ;;  %v27496_v32 = vadd.f32 %v34133_v26, %v34132_v57  ;;  %v26686_v23 = vld.sshfl [vmem:[%s28996_s14 + $0x40] sm:$0x32 pattern:$0x75316420]  ;;  %v34135_v15 = vld [vmem:[#allocation18_spill] sm:$0xff] }
 0x2b5   : > { %28166 = vmatmul.mubr.bf16.gmra.mrb[108].mxu0 %v28575_v27  ;;  %v14026_v27 = vrot.slane %v26685_v43, %v29027_v39  ;;  %v14604_v25 = vcombine.low %v14596_v35, %v14603_v12  ;;  %26714 = vst.sshfl [vmem:[#allocation2 + $0xf8] sm:$0x33 pattern:$0x75316420] %v14580_v13  ;;  %v13987_v14 = vcombine.high %v13985_v41, %v13985_v41  ;;  %v34134_v12 = vld [vmem:[#allocation16_spill] sm:$0xff]  ;;  %v34137_v17 = vld [vmem:[#allocation22_spill] sm:$0xff] }
 0x2b6   : > { %v31623_v45 = vpop.f32.mrb[68].mxu0  ;;  %28169 = vmatprep.mubr.msk.bf16.mxu0 %vm28801_vm15, %v34126_v46  ;;  %v14033_v16 = vrot.slane %v14019_v28, %v29027_v39  ;;  %v14011_v59 = vcombine.high %v14009_v11, %v14009_v11  ;;  %v14613_v0 = vcombine.low %v13986_v9, %v14009_v11  ;;  %v16427_v18 = vadd.f32 %v27493_v10, %v31484_v8  ;;  %v34136_v35 = vld [vmem:[#allocation20_spill] sm:$0xff] }
 0x2b7   : > { %v31626_v5 = vpop.f32.mrb[69].mxu0  ;;  %v14636_v50 = vcombine.low %v14010_v36, %v14026_v27  ;;  %26715 = vst.sshfl [vmem:[#allocation2 + $0x11c] sm:$0x33 pattern:$0x75316420] %v14604_v25  ;;  %v14612_v43 = vcombine.low %v13985_v41, %v13987_v14  ;;  %v16430_v20 = vadd.f32 %v27496_v32, %v31484_v8  ;;  %v27587_v13 = vadd.f32 %v34135_v15, %v34134_v12  ;;  %v34143_v12 = vld [vmem:[#allocation29_spill] sm:$0xff] }
 0x2b8   : > { %v31634_v22 = vpop.f32.mrb[70].mxu0  ;;  %v27590_v28 = vadd.f32 %v34137_v17, %v34136_v35  ;;  %v26687_v21 = vld.sshfl [vmem:[%s28996_s14 + $0x44] sm:$0x33 pattern:$0x75316420]  ;;  %v14627_v3 = vrot.slane %v14613_v0, %v29042_v51  ;;  %v14637_v57 = vcombine.low %v14011_v59, %v14033_v16  ;;  %v14034_v11 = vcombine.high %v14026_v27, %v14026_v27 }
 0x2b9   : > { %v31638_v55 = vpop.f32.mrb[71].mxu0  ;;  %v28576_v42 = vld [vmem:[#allocation2 + $0xb0] ss:$36 sps:$4 sm:$0xff]   ;;  %v14644_v9 = vrot.slane %v14636_v50, %v29042_v51  ;;  %v14620_v36 = vrot.slane %v14612_v43, %v29042_v51  ;;  %v31658_v10 = vadd.f32 %v27587_v13, %v16427_v18  ;;  %v14043_v25 = vcombine.high %v26686_v23, %v26686_v23  ;;  %v34141_v18 = vld [vmem:[#allocation25_spill] sm:$0xff] }
 0x2ba   : > { %v31660_v41 = vadd.f32 %v27590_v28, %v16430_v20  ;;  %v14651_v14 = vrot.slane %v14637_v57, %v29042_v51  ;;  %v14050_v26 = vrot.slane %v26686_v23, %v29027_v39  ;;  %v14067_v32 = vcombine.high %v26687_v21, %v26687_v21  ;;  %v34140_v50 = vld [vmem:[#allocation23_spill] sm:$0xff]  ;;  %v26688_v17 = vld.sshfl [vmem:[%s28996_s14 + $0x48] sm:$0x32 pattern:$0x75316420] }
 0x2bb   : > { %34138 = vst [vmem:[#allocation14_spill] sm:$0xff] %v31658_v10  ;;  %v14074_v0 = vrot.slane %v26687_v21, %v29027_v39  ;;  %v14628_v27 = vcombine.low %v14620_v36, %v14627_v3  ;;  %v14057_v59 = vrot.slane %v14043_v25, %v29027_v39  ;;  %v27499_v43 = vadd.f32 %v34141_v18, %v34140_v50  ;;  %v34142_v20 = vld [vmem:[#allocation27_spill] sm:$0xff]  ;;  %v26689_v36 = vld.sshfl [vmem:[%s28996_s14 + $0x4c] sm:$0x33 pattern:$0x75316420] }
 0x2bc   : > { %34139 = vst [vmem:[#allocation15_spill] sm:$0xff] %v31660_v41  ;;  %v14652_v15 = vcombine.low %v14644_v9, %v14651_v14  ;;  %v14081_v13 = vrot.slane %v14067_v32, %v29027_v39  ;;  %v26704_v35 = vcombine.high %v14033_v16, %v14050_v26  ;;  %v34145_v9 = vld [vmem:[#allocation26_spill] sm:$0xff]  ;;  %v34146_v32 = vld [vmem:[#allocation28_spill] sm:$0xff] }
 0x2bd   : > { %28170 = vmatmul.mubr.bf16.gmra.mrb[112].mxu0 %v28576_v42  ;;  %v27502_v42 = vadd.f32 %v34143_v12, %v34142_v20  ;;  %v14082_v23 = vcombine.high %v14074_v0, %v14074_v0  ;;  %26716 = vst.sshfl [vmem:[#allocation2 + $0x140] sm:$0x33 pattern:$0x75316420] %v14628_v27  ;;  %v14059_v28 = vcombine.high %v14057_v59, %v14057_v59  ;;  %v34144_v20 = vld [vmem:[#allocation24_spill] sm:$0xff]  ;;  %v34147_v12 = vld [vmem:[#allocation30_spill] sm:$0xff] }
 0x2be   : > { %28173 = vmatprep.mubr.msk.bf16.mxu0 %vm28801_vm15, %v34126_v46  ;;  %v14660_v21 = vcombine.low %v14034_v11, %v14057_v59  ;;  %v16435_v57 = vadd.f32 %v27499_v43, %v31484_v8  ;;  %v28577_v25 = vld [vmem:[#allocation2 + $0xf8] ss:$36 sps:$4 sm:$0xff]   ;;  %26717 = vst.sshfl [vmem:[#allocation2 + $0x164] sm:$0x33 pattern:$0x75316420] %v14652_v15  ;;  %v14675_v50 = vrot.slane %v26704_v35, %v29042_v51 }
 0x2bf   : > { %v16438_v3 = vadd.f32 %v27502_v42, %v31484_v8  ;;  %v14685_v18 = vcombine.low %v14074_v0, %v14082_v23  ;;  %v27593_v14 = vadd.f32 %v34145_v9, %v34144_v20  ;;  %v27596_v16 = vadd.f32 %v34147_v12, %v34146_v32  ;;  %v34160_v10 = vld [vmem:[#allocation36_spill] sm:$0xff] }
 0x2c0   : > { %v14668_v11 = vrot.slane %v14660_v21, %v29042_v51  ;;  %v14684_v27 = vcombine.low %v14059_v28, %v14081_v13  ;;  %v14091_v59 = vcombine.high %v26688_v17, %v26688_v17  ;;  %v14098_v43 = vrot.slane %v26688_v17, %v29027_v39 }
 0x2c1   : > { %v14699_v15 = vrot.slane %v14685_v18, %v29042_v51  ;;  %v31689_v0 = vadd.f32 %v27593_v14, %v16435_v57  ;;  %v31691_v23 = vadd.f32 %v27596_v16, %v16438_v3  ;;  %v14115_v35 = vcombine.high %v26689_v36, %v26689_v36  ;;  %v34154_v14 = vld [vmem:[#allocation31_spill] sm:$0xff]  ;;  %v34155_v3 = vld [vmem:[#allocation33_spill] sm:$0xff] }
 0x2c2   : > { %v14676_v9 = vcombine.low %v14668_v11, %v14675_v50  ;;  %v14692_v32 = vrot.slane %v14684_v27, %v29042_v51  ;;  %v14105_v28 = vrot.slane %v14091_v59, %v29027_v39  ;;  %v14122_v17 = vrot.slane %v26689_v36, %v29027_v39  ;;  %v34156_v16 = vld [vmem:[#allocation35_spill] sm:$0xff]  ;;  %v26690_v50 = vld.sshfl [vmem:[%s28996_s14 + $0x50] sm:$0x32 pattern:$0x75316420]  ;;  %v34158_v59 = vld [vmem:[#allocation32_spill] sm:$0xff] }
 0x2c3   : > { %34150 = vst [vmem:[#allocation21_spill] sm:$0xff] %v31689_v0  ;;  %34151 = vst [vmem:[#allocation16_spill] sm:$0xff] %v31691_v23  ;;  %v14129_v18 = vrot.slane %v14115_v35, %v29027_v39  ;;  %v26705_v57 = vcombine.high %v14081_v13, %v14098_v43  ;;  %v27505_v12 = vadd.f32 %v34155_v3, %v34154_v14  ;;  %v34157_v23 = vld [vmem:[#allocation37_spill] sm:$0xff] }
 0x2c4   : > { %v31682_v26 = vpop.f32.mrb[68].mxu1  ;;  %v27508_v0 = vadd.f32 %v34157_v23, %v34156_v16  ;;  %v14700_v11 = vcombine.low %v14692_v32, %v14699_v15  ;;  %26718 = vst.sshfl [vmem:[#allocation2 + $0x188] sm:$0x33 pattern:$0x75316420] %v14676_v9  ;;  %v14107_v27 = vcombine.high %v14105_v28, %v14105_v28  ;;  %v14130_v36 = vcombine.high %v14122_v17, %v14122_v17  ;;  %v34161_v15 = vld [vmem:[#allocation38_spill] sm:$0xff] }
 0x2c5   : > { %34148 = vst [vmem:[#allocation17_spill] sm:$0xff] %v31682_v26  ;;  %v31686_v42 = vpop.f32.mrb[69].mxu1  ;;  %28174 = vmatmul.mubr.bf16.gmra.mrb[116].mxu0 %v28577_v25  ;;  %v34159_v25 = vld [vmem:[#allocation34_spill] sm:$0xff]  ;;  %v14131_v13 = vcombine.high %v14129_v18, %v14129_v18  ;;  %v14716_v43 = vrot.slane %v26705_v57, %v29042_v51  ;;  %v16443_v14 = vadd.f32 %v27505_v12, %v31484_v8 }
 0x2c6   : > { %34149 = vst [vmem:[#allocation19_spill] sm:$0xff] %v31686_v42  ;;  %v31693_v20 = vpop.f32.mrb[70].mxu1  ;;  %28177 = vmatprep.mubr.msk.bf16.mxu0 %vm28801_vm15, %v34126_v46  ;;  %v27599_v41 = vadd.f32 %v34159_v25, %v34158_v59  ;;  %v26691_v35 = vld.sshfl [vmem:[%s28996_s14 + $0x54] sm:$0x33 pattern:$0x75316420]  ;;  %v16446_v23 = vadd.f32 %v27508_v0, %v31484_v8  ;;  %v14709_v3 = vcombine.low %v14105_v28, %v14107_v27 }
 0x2c7   : > { %34152 = vst [vmem:[#allocation18_spill] sm:$0xff] %v31693_v20  ;;  %v31698_v21 = vpop.f32.mrb[71].mxu1  ;;  %26719 = vst.sshfl [vmem:[#allocation2 + $0x1ac] sm:$0x33 pattern:$0x75316420] %v14700_v11  ;;  %v14732_v16 = vcombine.low %v14122_v17, %v14130_v36  ;;  %v27602_v9 = vadd.f32 %v34161_v15, %v34160_v10  ;;  %v14139_v32 = vcombine.high %v26690_v50, %v26690_v50 }
 0x2c8   : > { %34153 = vst [vmem:[#allocation20_spill] sm:$0xff] %v31698_v21  ;;  %v28578_v21 = vld [vmem:[#allocation2 + $0x140] ss:$36 sps:$4 sm:$0xff]   ;;  %v14733_v20 = vcombine.low %v14129_v18, %v14131_v13  ;;  %v31716_v42 = vadd.f32 %v27599_v41, %v16443_v14  ;;  %v14146_v25 = vrot.slane %v26690_v50, %v29027_v39  ;;  %v14163_v26 = vcombine.high %v26691_v35, %v26691_v35  ;;  %v34164_v36 = vld [vmem:[#allocation39_spill] sm:$0xff] }
 0x2c9   : > { %v26692_v59 = vld.sshfl [vmem:[%s28996_s14 + $0x58] sm:$0x32 pattern:$0x75316420]  ;;  %v14723_v57 = vrot.slane %v14709_v3, %v29042_v51  ;;  %v14740_v12 = vrot.slane %v14732_v16, %v29042_v51  ;;  %v31722_v0 = vadd.f32 %v27602_v9, %v16446_v23  ;;  %v14153_v28 = vrot.slane %v14139_v32, %v29027_v39  ;;  %v34165_v13 = vld [vmem:[#allocation41_spill] sm:$0xff] }
 0x2ca   : > { %34162 = vst [vmem:[#allocation22_spill] sm:$0xff] %v31716_v42  ;;  %v14747_v17 = vrot.slane %v14733_v20, %v29042_v51  ;;  %v14154_v10 = vcombine.high %v14146_v25, %v14146_v25  ;;  %v14170_v11 = vrot.slane %v26691_v35, %v29027_v39  ;;  %v14177_v41 = vrot.slane %v14163_v26, %v29027_v39  ;;  %v31730_v3 = vpop.f32.mrb[72].mxu0  ;;  %v34167_v32 = vld [vmem:[#allocation43_spill] sm:$0xff]  ;;  %v34168_v25 = vld [vmem:[#allocation45_spill] sm:$0xff] }
 0x2cb   : > { %34163 = vst [vmem:[#allocation23_spill] sm:$0xff] %v31722_v0  ;;  %v14724_v18 = vcombine.low %v14716_v43, %v14723_v57  ;;  %v14155_v27 = vcombine.high %v14153_v28, %v14153_v28  ;;  %v14187_v50 = vcombine.high %v26692_v59, %v26692_v59  ;;  %v27511_v14 = vadd.f32 %v34165_v13, %v34164_v36  ;;  %v31732_v20 = vpop.f32.mrb[73].mxu0  ;;  %v34171_v36 = vld [vmem:[#allocation42_spill] sm:$0xff] }
 0x2cc   : > { %v14748_v23 = vcombine.low %v14740_v12, %v14747_v17  ;;  %v14178_v16 = vcombine.high %v14170_v11, %v14170_v11  ;;  %v14179_v15 = vcombine.high %v14177_v41, %v14177_v41  ;;  %v14757_v9 = vcombine.low %v14154_v10, %v14170_v11  ;;  %34166 = vst [vmem:[#allocation25_spill] sm:$0xff] %v31732_v20  ;;  %v31741_v12 = vpop.f32.mrb[74].mxu0  ;;  %v34170_v11 = vld [vmem:[#allocation40_spill] sm:$0xff]  ;;  %v34173_v0 = vld [vmem:[#allocation46_spill] sm:$0xff] }
 0x2cd   : > { %28178 = vmatmul.mubr.bf16.gmra.mrb[120].mxu0 %v28578_v21  ;;  %26720 = vst.sshfl [vmem:[#allocation2 + $0x1d0] sm:$0x33 pattern:$0x75316420] %v14724_v18  ;;  %v14201_v26 = vrot.slane %v14187_v50, %v29027_v39  ;;  %v14756_v35 = vcombine.low %v14153_v28, %v14155_v27  ;;  %v16451_v43 = vadd.f32 %v27511_v14, %v31484_v8  ;;  %34169 = vst [vmem:[#allocation27_spill] sm:$0xff] %v31741_v12  ;;  %v34172_v18 = vld [vmem:[#allocation44_spill] sm:$0xff] }
 0x2ce   : > { %28181 = vmatprep.mubr.msk.bf16.mxu0 %vm28801_vm15, %v34126_v46  ;;  %v27514_v57 = vadd.f32 %v34168_v25, %v34167_v32  ;;  %v26693_v21 = vld.sshfl [vmem:[%s28996_s14 + $0x5c] sm:$0x33 pattern:$0x75316420]  ;;  %v14771_v17 = vrot.slane %v14757_v9, %v29042_v51  ;;  %v14780_v10 = vcombine.low %v14177_v41, %v14179_v15  ;;  %v27605_v13 = vadd.f32 %v34171_v36, %v34170_v11  ;;  %v31748_v50 = vpop.f32.mrb[75].mxu0 }
 0x2cf   : > { %26721 = vst.sshfl [vmem:[#allocation2 + $0x1f4] sm:$0x33 pattern:$0x75316420] %v14748_v23  ;;  %v27608_v42 = vadd.f32 %v34173_v0, %v34172_v18  ;;  %34174 = vst [vmem:[#allocation29_spill] sm:$0xff] %v31748_v50  ;;  %v14764_v28 = vrot.slane %v14756_v35, %v29042_v51  ;;  %v14781_v27 = vcombine.low %v14178_v16, %v14201_v26 }
 0x2d0   : > { %v16454_v14 = vadd.f32 %v27514_v57, %v31484_v8  ;;  %v26694_v32 = vld.sshfl [vmem:[%s28996_s14 + $0x60] sm:$0x32 pattern:$0x75316420]  ;;  %v14194_v25 = vrot.slane %v26692_v59, %v29027_v39  ;;  %v28579_v23 = vld [vmem:[#allocation2 + $0x188] ss:$36 sps:$4 sm:$0xff]   ;;  %v14788_v9 = vrot.slane %v14780_v10, %v29042_v51  ;;  %v31755_v41 = vadd.f32 %v27605_v13, %v16451_v43 }
 0x2d1   : > { %v14203_v15 = vcombine.high %v14201_v26, %v14201_v26  ;;  %v14211_v11 = vcombine.high %v26693_v21, %v26693_v21  ;;  %v14772_v36 = vcombine.low %v14764_v28, %v14771_v17  ;;  %v14795_v0 = vrot.slane %v14781_v27, %v29042_v51  ;;  %v34177_v43 = vld [vmem:[#allocation47_spill] sm:$0xff]  ;;  %v34178_v10 = vld [vmem:[#allocation49_spill] sm:$0xff]  ;;  %v34181_v28 = vld [vmem:[#allocation50_spill] sm:$0xff] }
 0x2d2   : > { %34175 = vst [vmem:[#allocation24_spill] sm:$0xff] %v31755_v41  ;;  %v31758_v18 = vadd.f32 %v27608_v42, %v16454_v14  ;;  %v14202_v35 = vcombine.high %v14194_v25, %v14194_v25  ;;  %v14218_v16 = vrot.slane %v26693_v21, %v29027_v39  ;;  %v14235_v50 = vcombine.high %v26694_v32, %v26694_v32  ;;  %v34179_v17 = vld [vmem:[#allocation51_spill] sm:$0xff]  ;;  %v34180_v42 = vld [vmem:[#allocation48_spill] sm:$0xff] }
 0x2d3   : > { %v14225_v57 = vrot.slane %v14211_v11, %v29027_v39  ;;  %v14242_v59 = vrot.slane %v26694_v32, %v29027_v39  ;;  %v14796_v12 = vcombine.low %v14788_v9, %v14795_v0  ;;  %26722 = vst.sshfl [vmem:[#allocation2 + $0x218] sm:$0x33 pattern:$0x75316420] %v14772_v36  ;;  %v27517_v26 = vadd.f32 %v34178_v10, %v34177_v43 }
 0x2d4   : > { %34176 = vst [vmem:[#allocation26_spill] sm:$0xff] %v31758_v18  ;;  %v27520_v13 = vadd.f32 %v31253_v1, %v34179_v17  ;;  %v27611_v27 = vadd.f32 %v34181_v28, %v34180_v42  ;;  %v14226_v14 = vcombine.high %v14218_v16, %v14218_v16  ;;  %v14249_v21 = vrot.slane %v14235_v50, %v29027_v39  ;;  %v26695_v18 = vld.sshfl [vmem:[%s28996_s14 + $0x64] sm:$0x33 pattern:$0x75316420] }
 0x2d5   : > { %28182 = vmatmul.mubr.bf16.gmra.mrb[124].mxu0 %v28579_v23  ;;  %v14804_v25 = vcombine.low %v14202_v35, %v14218_v16  ;;  %v14805_v11 = vcombine.low %v14203_v15, %v14225_v57  ;;  %26723 = vst.sshfl [vmem:[#allocation2 + $0x23c] sm:$0x33 pattern:$0x75316420] %v14796_v12  ;;  %v26706_v32 = vcombine.high %v14225_v57, %v14242_v59  ;;  %v34182_v1 = vld [vmem:[#allocation52_spill] sm:$0xff] }
 0x2d6   : > { %28185 = vmatprep.mubr.msk.bf16.mxu0 %vm28801_vm15, %v34126_v46  ;;  %v16459_v9 = vadd.f32 %v27517_v26, %v31484_v8  ;;  %v16462_v36 = vadd.f32 %v27520_v13, %v31484_v8  ;;  %v27614_v0 = vadd.f32 %v31255_v48, %v34182_v1  ;;  %v26696_v43 = vld.sshfl [vmem:[%s28996_s14 + $0x68] sm:$0x32 pattern:$0x75316420]  ;;  %v14828_v15 = vcombine.low %v14226_v14, %v14249_v21  ;;  %v28580_v59 = vld [vmem:[#allocation2 + $0x1d0] ss:$36 sps:$4 sm:$0xff]  }
 0x2d7   : > { %v14812_v23 = vrot.slane %v14804_v25, %v29042_v51  ;;  %v14819_v50 = vrot.slane %v14805_v11, %v29042_v51  ;;  %v14251_v35 = vcombine.high %v14249_v21, %v14249_v21  ;;  %v14843_v16 = vrot.slane %v26706_v32, %v29042_v51  ;;  %v34185_v14 = vld [vmem:[#allocation53_spill] sm:$0xff]  ;;  %v34186_v21 = vld [vmem:[#allocation54_spill] sm:$0xff]  ;;  %v34187_v25 = vld [vmem:[#allocation56_spill] sm:$0xff] }
 0x2d8   : > { %v31781_v10 = vadd.f32 %v27611_v27, %v16459_v9  ;;  %v31783_v12 = vadd.f32 %v27614_v0, %v16462_v36  ;;  %v14259_v57 = vcombine.high %v26695_v18, %v26695_v18  ;;  %v14836_v48 = vrot.slane %v14828_v15, %v29042_v51  ;;  %v34188_v11 = vld [vmem:[#allocation58_spill] sm:$0xff]  ;;  %v26697_v9 = vld.sshfl [vmem:[%s28996_s14 + $0x6c] sm:$0x33 pattern:$0x75316420] }
 0x2d9   : > { %v14820_v26 = vcombine.low %v14812_v23, %v14819_v50  ;;  %v14266_v17 = vrot.slane %v26695_v18, %v29027_v39  ;;  %v14283_v13 = vcombine.high %v26696_v43, %v26696_v43  ;;  %v14290_v28 = vrot.slane %v26696_v43, %v29027_v39  ;;  %v34189_v23 = vld [vmem:[#allocation55_spill] sm:$0xff]  ;;  %v34190_v18 = vld [vmem:[#allocation57_spill] sm:$0xff]  ;;  %v26698_v15 = vld.sshfl [vmem:[%s28996_s14 + $0x70] sm:$0x32 pattern:$0x75316420] }
 0x2da   : > { %34183 = vst [vmem:[#allocation28_spill] sm:$0xff] %v31781_v10  ;;  %34184 = vst [vmem:[#allocation30_spill] sm:$0xff] %v31783_v12  ;;  %v14273_v42 = vrot.slane %v14259_v57, %v29027_v39  ;;  %v27523_v27 = vadd.f32 %v34186_v21, %v34185_v14  ;;  %v27526_v32 = vadd.f32 %v34188_v11, %v34187_v25  ;;  %v31801_v14 = vld.sshfl [vmem:[%s28996_s14 + $0x74] sm:$0x33 pattern:$0x75316420] }
 0x2db   : > { %v14844_v36 = vcombine.low %v14836_v48, %v14843_v16  ;;  %26724 = vst.sshfl [vmem:[#allocation2 + $0x260] sm:$0x33 pattern:$0x75316420] %v14820_v26  ;;  %v14274_v1 = vcombine.high %v14266_v17, %v14266_v17  ;;  %v14297_v0 = vrot.slane %v14283_v13, %v29027_v39  ;;  %v27617_v50 = vadd.f32 %v34190_v18, %v34189_v23  ;;  %v31803_v21 = vpop.f32.mrb[72].mxu1  ;;  %v34192_v48 = vld [vmem:[#allocation59_spill] sm:$0xff] }
 0x2dc   : > { %v14852_v12 = vcombine.low %v14251_v35, %v14273_v42  ;;  %v26707_v57 = vcombine.high %v14273_v42, %v14290_v28  ;;  %v16467_v43 = vadd.f32 %v27523_v27, %v31484_v8  ;;  %v16470_v10 = vadd.f32 %v27526_v32, %v31484_v8  ;;  %34191 = vst [vmem:[#allocation31_spill] sm:$0xff] %v31803_v21  ;;  %v34193_v13 = vld [vmem:[#allocation60_spill] sm:$0xff]  ;;  %v31807_v23 = vpop.f32.mrb[73].mxu1  ;;  %v28591_v35 = vld [vmem:[#allocation9 + $0x50] sm:$0xff]  }
 0x2dd   : > { %28186 = vmatmul.mubr.bf16.gmra.mrb[128].mxu0 %v28580_v59  ;;  %26725 = vst.sshfl [vmem:[#allocation2 + $0x284] sm:$0x33 pattern:$0x75316420] %v14844_v36  ;;  %v14299_v16 = vcombine.high %v14297_v0, %v14297_v0  ;;  %v14853_v26 = vcombine.low %v14266_v17, %v14274_v1  ;;  %v27620_v25 = vadd.f32 %v34193_v13, %v34192_v48  ;;  %34194 = vst [vmem:[#allocation33_spill] sm:$0xff] %v31807_v23  ;;  %v31816_v32 = vpop.f32.mrb[74].mxu1 }
 0x2de   : > { %v14307_v11 = vcombine.high %v26697_v9, %v26697_v9  ;;  %28189 = vmatprep.mubr.msk.bf16.mxu0 %vm28801_vm15, %v34126_v46  ;;  %v14860_v42 = vrot.slane %v14852_v12, %v29042_v51  ;;  %v14884_v28 = vrot.slane %v26707_v57, %v29042_v51  ;;  %v31813_v27 = vadd.f32 %v27617_v50, %v16467_v43  ;;  %v28592_v17 = vld [vmem:[#allocation9 + $0x10] sm:$0xff]   ;;  %v31822_v13 = vpop.f32.mrb[75].mxu1  ;;  %v28581_v57 = vld [vmem:[#allocation2 + $0x218] ss:$36 sps:$4 sm:$0xff]  }
 0x2df   : > { %v14314_v59 = vrot.slane %v26697_v9, %v29027_v39  ;;  %34196 = vst [vmem:[#allocation37_spill] sm:$0xff] %v31816_v32  ;;  %v14867_v36 = vrot.slane %v14853_v26, %v29042_v51  ;;  %v14877_v1 = vcombine.low %v14297_v0, %v14299_v16  ;;  %v31819_v18 = vadd.f32 %v27620_v25, %v16470_v10  ;;  %v34199_v16 = vld [vmem:[#allocation61_spill] sm:$0xff]  ;;  %v34200_v26 = vld [vmem:[#allocation63_spill] sm:$0xff] }
 0x2e0   : > { %34195 = vst [vmem:[#allocation35_spill] sm:$0xff] %v31813_v27  ;;  %v14321_v48 = vrot.slane %v14307_v11, %v29027_v39  ;;  %34198 = vst [vmem:[#allocation34_spill] sm:$0xff] %v31822_v13  ;;  %27852 = vmatprep.subr.bf16.mxu1 %v28591_v35  ;;  %v14331_v41 = vcombine.high %v26698_v15, %v26698_v15  ;;  %v14338_v50 = vrot.slane %v26698_v15, %v29027_v39  ;;  %v34201_v27 = vld [vmem:[#allocation65_spill] sm:$0xff]  ;;  %v34202_v13 = vld [vmem:[#allocation67_spill] sm:$0xff] }
 0x2e1   : > { %34197 = vst [vmem:[#allocation32_spill] sm:$0xff] %v31819_v18  ;;  %v14322_v12 = vcombine.high %v14314_v59, %v14314_v59  ;;  %v14362_v9 = vrot.slane %v31801_v14, %v29027_v39  ;;  %27853 = vmatpush3.bf16.msra.mxu1 %v28592_v17  ;;  %v14868_v43 = vcombine.low %v14860_v42, %v14867_v36  ;;  %v34203_v42 = vld [vmem:[#allocation62_spill] sm:$0xff]  ;;  %v34204_v36 = vld [vmem:[#allocation64_spill] sm:$0xff] }
 0x2e2   : > { %v14891_v0 = vrot.slane %v14877_v1, %v29042_v51  ;;  %v14323_v10 = vcombine.high %v14321_v48, %v14321_v48  ;;  %v27529_v25 = vadd.f32 %v34200_v26, %v34199_v16  ;;  %v14345_v11 = vrot.slane %v14331_v41, %v29027_v39  ;;  %v26700_v21 = vld.sshfl [vmem:[%s28996_s14 + $0x78] sm:$0x32 pattern:$0x75316420] }
 0x2e3   : > { %v14346_v35 = vcombine.high %v14338_v50, %v14338_v50  ;;  %v14900_v18 = vcombine.low %v14314_v59, %v14322_v12  ;;  %v27532_v15 = vadd.f32 %v34202_v13, %v34201_v27  ;;  %26726 = vst.sshfl [vmem:[#allocation2 + $0x2a8] sm:$0x33 pattern:$0x75316420] %v14868_v43  ;;  %v27623_v1 = vadd.f32 %v34204_v36, %v34203_v42 }
 0x2e4   : > { %v14892_v32 = vcombine.low %v14884_v28, %v14891_v0  ;;  %v14901_v23 = vcombine.low %v14321_v48, %v14323_v10  ;;  %v16475_v17 = vadd.f32 %v27529_v25, %v31484_v8  ;;  %v14347_v20 = vcombine.high %v14345_v11, %v14345_v11  ;;  %v34206_v28 = vld [vmem:[#allocation66_spill] sm:$0xff]  ;;  %v34207_v48 = vld [vmem:[#allocation68_spill] sm:$0xff]  ;;  %v26701_v12 = vld.sshfl [vmem:[%s28996_s14 + $0x7c] sm:$0x33 pattern:$0x75316420] }
 0x2e5   : > { %v14908_v16 = vrot.slane %v14900_v18, %v29042_v51  ;;  %v14925_v26 = vcombine.low %v14346_v35, %v14362_v9  ;;  %v16478_v41 = vadd.f32 %v27532_v15, %v31484_v8  ;;  %28190 = vmatmul.mubr.bf16.gmra.mrb[132].mxu0 %v28581_v57  ;;  %v27626_v13 = vadd.f32 %v34207_v48, %v34206_v28  ;;  %v28582_v42 = vld [vmem:[#allocation2 + $0x260] ss:$36 sps:$4 sm:$0xff]  }
 0x2e6   : > { %26727 = vst.sshfl [vmem:[#allocation2 + $0x2cc] sm:$0x33 pattern:$0x75316420] %v14892_v32  ;;  %v14915_v27 = vrot.slane %v14901_v23, %v29042_v51  ;;  %v31840_v59 = vadd.f32 %v27623_v1, %v16475_v17  ;;  %v14355_v50 = vcombine.high %v31801_v14, %v31801_v14  ;;  %28193 = vmatprep.mubr.msk.bf16.mxu0 %vm28801_vm15, %v34126_v46  ;;  %v31850_v32 = vpop.f32.mrb[76].mxu0 }
 0x2e7   : > { %v14924_v18 = vcombine.low %v14345_v11, %v14347_v20  ;;  %v14939_v43 = vrot.slane %v14925_v26, %v29042_v51  ;;  %v14370_v0 = vcombine.high %v14362_v9, %v14362_v9  ;;  %v14379_v57 = vcombine.high %v26700_v21, %v26700_v21  ;;  %v31856_v15 = vpop.f32.mrb[77].mxu0  ;;  %v34211_v26 = vld [vmem:[#allocation71_spill] sm:$0xff] }
 0x2e8   : > { %34205 = vst [vmem:[#allocation36_spill] sm:$0xff] %v31840_v59  ;;  %v14916_v23 = vcombine.low %v14908_v16, %v14915_v27  ;;  %v31852_v10 = vadd.f32 %v27626_v13, %v16478_v41  ;;  %v14369_v25 = vrot.slane %v14355_v50, %v29027_v39  ;;  %v14386_v35 = vrot.slane %v26700_v21, %v29027_v39  ;;  %v31861_v9 = vpop.f32.mrb[78].mxu0  ;;  %v34210_v16 = vld [vmem:[#allocation69_spill] sm:$0xff]  ;;  %v34213_v21 = vld [vmem:[#allocation75_spill] sm:$0xff] }
 0x2e9   : > { %v14932_v14 = vrot.slane %v14924_v18, %v29042_v51  ;;  %v14393_v17 = vrot.slane %v14379_v57, %v29027_v39  ;;  %v14403_v20 = vcombine.high %v26701_v12, %v26701_v12  ;;  %v14410_v11 = vrot.slane %v26701_v12, %v29027_v39  ;;  %34209 = vst [vmem:[#allocation39_spill] sm:$0xff] %v31861_v9  ;;  %v34212_v27 = vld [vmem:[#allocation73_spill] sm:$0xff]  ;;  %v31867_v48 = vpop.f32.mrb[79].mxu0  ;;  %v34216_v9 = vld [vmem:[#allocation72_spill] sm:$0xff] }
 0x2ea   : > { %34208 = vst [vmem:[#allocation38_spill] sm:$0xff] %v31852_v10  ;;  %26728 = vst.sshfl [vmem:[#allocation2 + $0x2f0] sm:$0x33 pattern:$0x75316420] %v14916_v23  ;;  %v14371_v36 = vcombine.high %v14369_v25, %v14369_v25  ;;  %v14394_v1 = vcombine.high %v14386_v35, %v14386_v35  ;;  %v27535_v41 = vadd.f32 %v34211_v26, %v34210_v16  ;;  %v34215_v26 = vld [vmem:[#allocation70_spill] sm:$0xff] }
 0x2eb   : > { %v27538_v28 = vadd.f32 %v34213_v21, %v34212_v27  ;;  %34214 = vst [vmem:[#allocation41_spill] sm:$0xff] %v31867_v48  ;;  %v14940_v13 = vcombine.low %v14932_v14, %v14939_v43  ;;  %v14395_v50 = vcombine.high %v14393_v17, %v14393_v17  ;;  %v14417_v18 = vrot.slane %v14403_v20, %v29027_v39  ;;  %v34217_v21 = vld [vmem:[#allocation74_spill] sm:$0xff]  ;;  %v34218_v48 = vld [vmem:[#allocation76_spill] sm:$0xff] }
 0x2ec   : > { %v14949_v57 = vcombine.low %v14370_v0, %v14393_v17  ;;  %v14948_v12 = vcombine.low %v14369_v25, %v14371_v36  ;;  %v14972_v10 = vcombine.low %v14394_v1, %v14410_v11  ;;  %v16483_v59 = vadd.f32 %v27535_v41, %v31484_v8 }
 0x2ed   : > { %v16486_v23 = vadd.f32 %v27538_v28, %v31484_v8  ;;  %26729 = vst.sshfl [vmem:[#allocation2 + $0x314] sm:$0x33 pattern:$0x75316420] %v14940_v13  ;;  %v14973_v16 = vcombine.low %v14395_v50, %v14417_v18  ;;  %v27629_v27 = vadd.f32 %v34216_v9, %v34215_v26  ;;  %v27632_v43 = vadd.f32 %v34218_v48, %v34217_v21  ;;  %v34219_v9 = vld [vmem:[#allocation78_spill] sm:$0xff]  ;;  %v34225_v26 = vld [vmem:[#allocation84_spill] sm:$0xff] }
 0x2ee   : > { %v14963_v35 = vrot.slane %v14949_v57, %v29042_v51  ;;  %28194 = vmatmul.mubr.bf16.gmra.mrb[136].mxu0 %v28582_v42  ;;  %v14956_v39 = vrot.slane %v14948_v12, %v29042_v51  ;;  %v14980_v0 = vrot.slane %v14972_v10, %v29042_v51  ;;  %v14418_v25 = vcombine.high %v14410_v11, %v14410_v11  ;;  %v34220_v10 = vld [vmem:[#allocation77_spill] sm:$0xff]  ;;  %v34221_v11 = vld [vmem:[#allocation79_spill] sm:$0xff]  ;;  %v34222_v12 = vld [vmem:[#allocation80_spill] sm:$0xff] }
 0x2ef   : > { %v14419_v14 = vcombine.high %v14417_v18, %v14417_v18  ;;  %28197 = vmatprep.mubr.msk.bf16.mxu0 %vm28801_vm15, %v34126_v46  ;;  %v14987_v17 = vrot.slane %v14973_v16, %v29042_v51  ;;  %v31882_v20 = vadd.f32 %v27629_v27, %v16483_v59  ;;  %v31884_v36 = vadd.f32 %v27632_v43, %v16486_v23  ;;  %v28583_v57 = vld [vmem:[#allocation2 + $0x2a8] ss:$36 sps:$4 sm:$0xff]  }
 0x2f0   : > { %v27541_v1 = vadd.f32 %v34219_v9, %v31398_v24  ;;  %v14964_v41 = vcombine.low %v14956_v39, %v14963_v35  ;;  %v15002_v42 = vrot.slane %v14418_v25, %v29042_v51  ;;  %v27635_v48 = vadd.f32 %v34221_v11, %v34220_v10  ;;  %v34223_v35 = vld [vmem:[#allocation81_spill] sm:$0xff]  ;;  %v34224_v16 = vld [vmem:[#allocation82_spill] sm:$0xff] }
 0x2f1   : > { %v15009_v28 = vrot.slane %v14419_v14, %v29042_v51  ;;  %v14988_v13 = vcombine.low %v14980_v0, %v14987_v17  ;;  %v27657_v59 = vadd.f32 %v31435_v47, %v31426_v2  ;;  %v27660_v18 = vadd.f32 %v31453_v54, %v31444_v60  ;;  %v34226_v60 = vld [vmem:[#allocation86_spill] sm:$0xff]  ;;  %v34227_v54 = vld [vmem:[#allocation88_spill] sm:$0xff]  ;;  %v34229_v39 = vld [vmem:[#allocation85_spill] sm:$0xff] }
 0x2f2   : > { %v16491_v50 = vadd.f32 %v27541_v1, %v31484_v8  ;;  %26730 = vst.sshfl [vmem:[#allocation2 + $0x338] sm:$0x33 pattern:$0x75316420] %v14964_v41  ;;  %v27751_v23 = vadd.f32 %v34222_v12, %v31428_v63  ;;  %v27754_v51 = vadd.f32 %v31455_v6, %v34223_v35  ;;  %v27663_v27 = vadd.f32 %v34225_v26, %v34224_v16  ;;  %v34228_v63 = vld [vmem:[#allocation83_spill] sm:$0xff]  ;;  %v34231_v25 = vld [vmem:[#allocation89_spill] sm:$0xff] }
 0x2f3   : > { %v15010_v24 = vcombine.low %v15002_v42, %v15009_v28  ;;  %26731 = vst.sshfl [vmem:[#allocation2 + $0x35c] sm:$0x33 pattern:$0x75316420] %v14988_v13  ;;  %v16667_v2 = vadd.f32 %v27657_v59, %v31523_v52  ;;  %v16670_v47 = vadd.f32 %v27660_v18, %v31532_v33  ;;  %v27666_v21 = vadd.f32 %v34227_v54, %v34226_v60  ;;  %v34230_v6 = vld [vmem:[#allocation87_spill] sm:$0xff]  ;;  %v34232_v33 = vld [vmem:[#allocation90_spill] sm:$0xff] }
 0x2f4   : > { %v31903_v8 = vadd.f32 %v27635_v48, %v16491_v50  ;;  %v16675_v43 = vadd.f32 %v27663_v27, %v31563_v4  ;;  %v27757_v0 = vadd.f32 %v34229_v39, %v34228_v63  ;;  %v27760_v14 = vadd.f32 %v34231_v25, %v34230_v6  ;;  %v34233_v1 = vld [vmem:[#allocation91_spill] sm:$0xff]  ;;  %v34234_v42 = vld [vmem:[#allocation92_spill] sm:$0xff]  ;;  %v34235_v10 = vld [vmem:[#allocation93_spill] sm:$0xff] }
 0x2f5   : > { %26732 = vst.sshfl [vmem:[#allocation2 + $0x380] sm:$0x11 pattern:$0x75316420] %v15010_v24  ;;  %v27669_v17 = vadd.f32 %v31502_v40, %v31495_v62  ;;  %v16678_v9 = vadd.f32 %v27666_v21, %v31565_v61  ;;  %v27672_v52 = vadd.f32 %v31519_v31, %v31511_v58  ;;  %v27763_v41 = vadd.f32 %v34233_v1, %v34232_v33  ;;  %v27785_v61 = vpop.f32.mrb[76].mxu1  ;;  %v34238_v48 = vld [vmem:[#allocation19_spill] sm:$0xff] }
 0x2f6   : > { %v27766_v4 = vadd.f32 %v31527_v56, %v34234_v42  ;;  %28198 = vmatmul.mubr.bf16.gmra.mrb[140].mxu0 %v28583_v57  ;;  %v27675_v11 = vadd.f32 %v31534_v37, %v34235_v10  ;;  %v27678_v40 = vadd.f32 %v31542_v29, %v31538_v38  ;;  %v27769_v62 = vadd.f32 %v31575_v49, %v31569_v34  ;;  %v34236_v29 = vld [vmem:[#allocation13_spill] sm:$0xff]  ;;  %v34239_v50 = vld [vmem:[#allocation18_spill] sm:$0xff]  ;;  %v34240_v59 = vld [vmem:[#allocation20_spill] sm:$0xff] }
 0x2f7   : > { %v16683_v28 = vadd.f32 %v27669_v17, %v31592_v7  ;;  %28201 = vmatprep.mubr.msk.bf16.mxu0 %vm28801_vm15, %v34126_v46  ;;  %v16686_v58 = vadd.f32 %v27672_v52, %v31601_v44  ;;  %v27772_v56 = vadd.f32 %v31588_v30, %v31580_v19  ;;  %v27681_v31 = vadd.f32 %v31626_v5, %v31623_v45  ;;  %v27786_v7 = vpop.f32.mrb[77].mxu1  ;;  %v34237_v49 = vld [vmem:[#allocation17_spill] sm:$0xff]  ;;  %v34241_v57 = vld [vmem:[#allocation14_spill] sm:$0xff]  ;;  %v34242_v30 = vld [vmem:[#allocation15_spill] sm:$0xff] }
 0x2f8   : > { %v27684_v37 = vadd.f32 %v31638_v55, %v31634_v22  ;;  %v16691_v38 = vadd.f32 %v27675_v11, %v31618_v53  ;;  %v16694_v34 = vadd.f32 %v27678_v40, %v34236_v29  ;;  %v27775_v13 = vadd.f32 %v34238_v48, %v34237_v49  ;;  %v27788_v18 = vpop.f32.mrb[78].mxu1  ;;  %v34243_v45 = vld [vmem:[#allocation25_spill] sm:$0xff]  ;;  %v34244_v22 = vld [vmem:[#allocation27_spill] sm:$0xff]  ;;  %v34249_v54 = vld [vmem:[#allocation34_spill] sm:$0xff] }
 0x2f9   : > { %v27778_v44 = vadd.f32 %v34240_v59, %v34239_v50  ;;  %v16699_v19 = vadd.f32 %v27681_v31, %v34241_v57  ;;  %v27687_v5 = vadd.f32 %v34243_v45, %v31730_v3  ;;  %v34245_v55 = vld [vmem:[#allocation29_spill] sm:$0xff]  ;;  %v27789_v53 = vpop.f32.mrb[79].mxu1  ;;  %v28584_v35 = vld [vmem:[#allocation2 + $0x2f0] ss:$36 sps:$4 sm:$0xff]   ;;  %v27693_v63 = vadd.f32 %v31856_v15, %v31850_v32  ;;  %v34254_v10 = vld [vmem:[#allocation22_spill] sm:$0xff] }
 0x2fa   : > { %v16702_v24 = vadd.f32 %v27684_v37, %v34242_v30  ;;  %v27690_v12 = vadd.f32 %v34245_v55, %v34244_v22  ;;  %v34246_v16 = vld [vmem:[#allocation31_spill] sm:$0xff]  ;;  %v34247_v26 = vld [vmem:[#allocation33_spill] sm:$0xff]  ;;  %v34253_v3 = vld [vmem:[#allocation16_spill] sm:$0xff]  ;;  %v27787_v1 = vadd.f32 %v27786_v7, %v27785_v61  ;;  %v27790_v42 = vadd.f32 %v27789_v53, %v27788_v18 }
 0x2fb   : > { %v27781_v27 = vadd.f32 %v34247_v26, %v34246_v16  ;;  %v34248_v60 = vld [vmem:[#allocation37_spill] sm:$0xff]  ;;  %v34250_v39 = vld [vmem:[#allocation39_spill] sm:$0xff]  ;;  %v16715_v11 = vadd.f32 %v27693_v63, %v34254_v10  ;;  %v31963_v29 = vadd.f32 %v27751_v23, %v16667_v2  ;;  %v31965_v49 = vadd.f32 %v27754_v51, %v16670_v47  ;;  %v28596_v26 = vld [vmem:[#allocation9 + $0x20] sm:$0xff]  }
 0x2fc   : > { %v27784_v21 = vadd.f32 %v34249_v54, %v34248_v60  ;;  %v34251_v6 = vld [vmem:[#allocation41_spill] sm:$0xff]  ;;  %v16710_v33 = vadd.f32 %v27690_v12, %v34253_v3  ;;  %v34255_v40 = vld [vmem:[#allocation23_spill] sm:$0xff]  ;;  %v31967_v48 = vadd.f32 %v27757_v0, %v16675_v43  ;;  %v31969_v32 = vadd.f32 %v27760_v14, %v16678_v9  ;;  %v27697_v43 = vpop.f32.mrb[80].mxu0  ;;  %v28599_v12 = vld [vmem:[#allocation9 + $0x140] sm:$0xff]  }
 0x2fd   : > { %v27696_v25 = vadd.f32 %v34251_v6, %v34250_v39  ;;  %v34252_v17 = vld [vmem:[#allocation21_spill] sm:$0xff]  ;;  %v28593_v37 = vld [vmem:[#allocation9 + $0x58] sm:$0xff]   ;;  %v31971_v15 = vadd.f32 %v27763_v41, %v16683_v28  ;;  %v31973_v50 = vadd.f32 %v27766_v4, %v16686_v58  ;;  %v31975_v7 = vadd.f32 %v27769_v62, %v16691_v38  ;;  %v27698_v14 = vpop.f32.mrb[81].mxu0  ;;  %v34256_v62 = vld [vmem:[#allocation24_spill] sm:$0xff]  ;;  %27988 = vmatprep.subr.bf16.mxu0 %v28599_v12 }
 0x2fe   : > { %v16707_v52 = vadd.f32 %v27687_v5, %v34252_v17  ;;  %28202 = vmatmul.mubr.bf16.gmra.mrb[144].mxu0 %v28584_v35  ;;  %27854 = vmatprep.subr.bf16.mxu1 %v28593_v37  ;;  %v28594_v61 = vld [vmem:[#allocation9 + $0x18] sm:$0xff]   ;;  %v31977_v59 = vadd.f32 %v27772_v56, %v16694_v34  ;;  %v31979_v18 = vadd.f32 %v27775_v13, %v16699_v19  ;;  %v28585_v9 = vld [vmem:[#allocation2 + $0x338] ss:$36 sps:$4 sm:$0xff]   ;;  %v27700_v4 = vpop.f32.mrb[82].mxu0  ;;  %v34257_v38 = vld [vmem:[#allocation26_spill] sm:$0xff] }
 0x2ff   : > { %v16718_v31 = vadd.f32 %v27696_v25, %v34255_v40  ;;  %28205 = vmatprep.mubr.msk.bf16.mxu0 %vm28801_vm15, %v34126_v46  ;;  %v31983_v23 = vadd.f32 %v27778_v44, %v16702_v24  ;;  %v31987_v2 = vadd.f32 %v27784_v21, %v16710_v33  ;;  %v31989_v47 = vadd.f32 %v27787_v1, %v16715_v11  ;;  %v27701_v28 = vpop.f32.mrb[83].mxu0  ;;  %v28586_v13 = vld [vmem:[#allocation2 + $0x380] ss:$0 sps:$4 sm:$0x33]   ;;  %v28595_v5 = vld [vmem:[#allocation9 + $0x60] sm:$0xff]   ;;  %v34259_v17 = vld [vmem:[#allocation30_spill] sm:$0xff] }
 0x300   : > { %v31985_v51 = vadd.f32 %v27781_v27, %v16707_v52  ;;  %27855 = vmatpush3.bf16.msra.mxu1 %v28594_v61  ;;  %v27699_v41 = vadd.f32 %v27698_v14, %v27697_v43  ;;  %v27702_v56 = vadd.f32 %v27701_v28, %v27700_v4  ;;  %v28600_v35 = vld [vmem:[#allocation9 + $0x100] sm:$0xff]   ;;  %v28601_v21 = vld [vmem:[#allocation9 + $0x148] sm:$0xff]   ;;  %v28603_v3 = vld [vmem:[#allocation9 + $0x150] sm:$0xff]  }
 0x301   : > { %v31991_v0 = vadd.f32 %v27790_v42, %v16718_v31  ;;  %v27791_v44 = vpop.f32.mrb[80].mxu1  ;;  %27856 = vmatprep.subr.bf16.mxu1 %v28595_v5  ;;  %27989 = vmatpush3.bf16.msra.mxu0 %v28600_v35  ;;  %v34258_v63 = vld [vmem:[#allocation28_spill] sm:$0xff]  ;;  %v28602_v25 = vld [vmem:[#allocation9 + $0x108] sm:$0xff]   ;;  %v28605_v33 = vld [vmem:[#allocation9 + $0x110] sm:$0xff]  }
 0x302   : > { %v16723_v58 = vadd.f32 %v27699_v41, %v34256_v62  ;;  %v16726_v34 = vadd.f32 %v27702_v56, %v34257_v38  ;;  %v27792_v57 = vpop.f32.mrb[81].mxu1  ;;  %27990 = vmatprep.subr.bf16.mxu0 %v28601_v21  ;;  %v28597_v1 = vld [vmem:[#allocation9 + $0x68] sm:$0xff]   ;;  %v28607_v10 = vld [vmem:[#allocation9 + $0x158] sm:$0xff]   ;;  %v28604_v37 = vld [vmem:[#allocation9 + $0x70] sm:$0xff]  }
 0x303   : > { %v27793_v19 = vadd.f32 %v27792_v57, %v27791_v44  ;;  %v27794_v30 = vpop.f32.mrb[82].mxu1  ;;  %v28598_v42 = vld [vmem:[#allocation9 + $0x28] sm:$0xff]   ;;  %v28608_v11 = vld [vmem:[#allocation9 + $0x118] sm:$0xff]   ;;  %v28609_v61 = vld [vmem:[#allocation9 + $0x160] sm:$0xff]  }
 0x304   : > { %v27795_v24 = vpop.f32.mrb[83].mxu1  ;;  %27857 = vmatpush3.bf16.msra.mxu1 %v28596_v26  ;;  %v28606_v4 = vld [vmem:[#allocation9 + $0x30] sm:$0xff]   ;;  %v28612_v56 = vld [vmem:[#allocation9 + $0x78] sm:$0xff]   ;;  %v28613_v38 = vld [vmem:[#allocation9 + $0x128] sm:$0xff]  }
 0x305   : > { %v27796_v45 = vadd.f32 %v27795_v24, %v27794_v30  ;;  %v31997_v22 = vadd.f32 %v27793_v19, %v16723_v58  ;;  %27991 = vmatpush3.bf16.msra.mxu0 %v28602_v25  ;;  %27858 = vmatprep.subr.bf16.mxu1 %v28597_v1  ;;  %v28611_v58 = vld [vmem:[#allocation9 + $0x168] sm:$0xff]   ;;  %v28616_v25 = vld [vmem:[#allocation9 + $0x130] sm:$0xff]  }
 0x306   : > { %28206 = vmatmul.mubr.bf16.gmra.mrb[148].mxu0 %v28585_v9  ;;  %27992 = vmatprep.subr.bf16.mxu0 %v28603_v3  ;;  %v28610_v9 = vld [vmem:[#allocation9 + $0x120] sm:$0xff]  }
 0x307   : > { %28209 = vmatprep.mubr.msk.bf16.mxu0 %vm28801_vm15, %v34126_v46  ;;  %v31999_v55 = vadd.f32 %v27796_v45, %v16726_v34  ;;  %v27703_v53 = vpop.f32.mrb[84].mxu0  ;;  %v34260_v45 = vld [vmem:[#allocation35_spill] sm:$0xff] }
 0x308   : > { %v27704_v16 = vpop.f32.mrb[85].mxu0  ;;  %27859 = vmatpush3.bf16.msra.mxu1 %v28598_v42  ;;  %v28617_v42 = vld [vmem:[#allocation9 + $0x178] sm:$0xff]  }
 0x309   : > { %v27705_v27 = vadd.f32 %v27704_v16, %v27703_v53  ;;  %v27706_v60 = vpop.f32.mrb[86].mxu0  ;;  %27993 = vmatpush3.bf16.msra.mxu0 %v28605_v33  ;;  %27860 = vmatprep.subr.bf16.mxu1 %v28604_v37  ;;  %v34261_v53 = vld [vmem:[#allocation32_spill] sm:$0xff]  ;;  %v34263_v37 = vld [vmem:[#allocation38_spill] sm:$0xff] }
 0x30a   : > { %v27707_v54 = vpop.f32.mrb[87].mxu0  ;;  %27994 = vmatprep.subr.bf16.mxu0 %v28607_v10  ;;  %v28618_v10 = vld [vmem:[#allocation9 + $0x138] sm:$0xff]  }
 0x30b   : > { %v16731_v39 = vadd.f32 %v27705_v27, %v34258_v63  ;;  %v27708_v6 = vadd.f32 %v27707_v54, %v27706_v60 }
 0x30c   : > { %27861 = vmatpush3.bf16.msra.mxu1 %v28606_v4 }
 0x30d   : > { %v16734_v52 = vadd.f32 %v27708_v6, %v34259_v17  ;;  %27995 = vmatpush3.bf16.msra.mxu0 %v28608_v11  ;;  %27862 = vmatprep.subr.bf16.mxu1 %v28612_v56  ;;  %v34262_v11 = vld [vmem:[#allocation36_spill] sm:$0xff] }
 0x30e   : > { %28210 = vmatmul.mubr.bf16.gmra.mrb[152].mxu0 %v28586_v13  ;;  %27996 = vmatprep.subr.bf16.mxu0 %v28609_v61  ;;  %v28614_v13 = vld [vmem:[#allocation9 + $0x38] sm:$0xff]  }
 0x310   : > { %27863 = vmatpush3.bf16.msra.mxu1 %v28614_v13 }
 0x311   : > { %27997 = vmatpush3.bf16.msra.mxu0 %v28610_v9 }
 0x312   : > { %27998 = vmatprep.subr.bf16.mxu0 %v28611_v58 }
 0x315   : > { %27999 = vmatpush3.bf16.msra.mxu0 %v28613_v38  ;;  %v28619_v38 = vld [vmem:[#allocation9 + $0xc0] sm:$0xff]  }
 0x316   : > { %v27797_v40 = vpop.f32.mrb[84].mxu1  ;;  %27918 = vmatprep.subr.bf16.mxu1 %v28619_v38 }
 0x317   : > { %v27798_v31 = vpop.f32.mrb[85].mxu1 }
 0x318   : > { %v27799_v43 = vadd.f32 %v27798_v31, %v27797_v40  ;;  %v27800_v14 = vpop.f32.mrb[86].mxu1 }
 0x319   : > { %v27801_v41 = vpop.f32.mrb[87].mxu1 }
 0x31a   : > { %v27802_v28 = vadd.f32 %v27801_v41, %v27800_v14  ;;  %v32003_v62 = vadd.f32 %v27799_v43, %v16731_v39  ;;  %v28615_v39 = vld [vmem:[#allocation9 + $0x170] sm:$0xff]  }
 0x31b   : > { %28000 = vmatprep.subr.bf16.mxu0 %v28615_v39 }
 0x31c   : > { %v32005_v34 = vadd.f32 %v27802_v28, %v16734_v52  ;;  %28001 = vmatpush3.bf16.msra.mxu0 %v28616_v25 }
 0x31d   : > { %28002 = vmatprep.subr.bf16.mxu0 %v28617_v42 }
 0x31e   : > { %v27709_v44 = vpop.f32.mrb[88].mxu0 }
 0x31f   : > { %v27710_v57 = vpop.f32.mrb[89].mxu0 }
 0x320   : > { %v27711_v19 = vadd.f32 %v27710_v57, %v27709_v44  ;;  %v27712_v30 = vpop.f32.mrb[90].mxu0  ;;  %28003 = vmatpush3.bf16.msra.mxu0 %v28618_v10 }
 0x321   : > { %v27713_v24 = vpop.f32.mrb[91].mxu0  ;;  %28213 = vmatprep.subr.bf16.mxu0 %v34126_v46 }
 0x322   : > { %v16739_v5 = vadd.f32 %v27711_v19, %v34260_v45  ;;  %v27714_v12 = vadd.f32 %v27713_v24, %v27712_v30 }
 0x324   : > { %v16742_v35 = vadd.f32 %v27714_v12, %v34261_v53 }
 0x32c   : > { %v27803_v16 = vpop.f32.mrb[88].mxu1 }
 0x32d   : > { %v27804_v26 = vpop.f32.mrb[89].mxu1 }
 0x32e   : > { %v27805_v27 = vadd.f32 %v27804_v26, %v27803_v16  ;;  %v27806_v60 = vpop.f32.mrb[90].mxu1 }
 0x32f   : > { %v27807_v54 = vpop.f32.mrb[91].mxu1 }
 0x330   : > { %v27808_v21 = vadd.f32 %v27807_v54, %v27806_v60  ;;  %v32009_v63 = vadd.f32 %v27805_v27, %v16739_v5 }
 0x332   : > { %v32011_v6 = vadd.f32 %v27808_v21, %v16742_v35 }
 0x335   : > { %v27715_v17 = vpop.f32.mrb[92].mxu0 }
 0x336   : > { %v27716_v52 = vpop.f32.mrb[93].mxu0 }
 0x337   : > { %v27717_v3 = vadd.f32 %v27716_v52, %v27715_v17  ;;  %v27718_v33 = vpop.f32.mrb[94].mxu0  ;;  %v28802_v52 = vmov 1983009808  }
 0x338   : > { %v27719_v1 = vpop.f32.mrb[95].mxu0 }
 0x339   : > { %v16747_v40 = vadd.f32 %v27717_v3, %v34262_v11  ;;  %v27720_v31 = vadd.f32 %v27719_v1, %v27718_v33  ;;  %v17092_v3 = vunpack.c.l.s4 %v28802_v52 }
 0x33b   : > { %v16750_v61 = vadd.f32 %v27720_v31, %v34263_v37  ;;  %v17093_v42 = vunpack.c.0.s8 %v17092_v3 }
 0x343   : > { %v27809_v43 = vpop.f32.mrb[92].mxu1 }
 0x344   : > { %v27810_v14 = vpop.f32.mrb[93].mxu1 }
 0x345   : > { %v27811_v9 = vadd.f32 %v27810_v14, %v27809_v43  ;;  %v27812_v41 = vpop.f32.mrb[94].mxu1  ;;  %v34264_v43 = vld [vmem:[#allocation12_spill] sm:$0xff] }
 0x346   : > { %v27813_v4 = vpop.f32.mrb[95].mxu1  ;;  %v32031_v14 = vsub.s32 %v17093_v42, %v34264_v43 }
 0x347   : > { %v27814_v28 = vadd.f32 %v27813_v4, %v27812_v41  ;;  %v32016_v58 = vadd.f32 %v27811_v9, %v16747_v40 }
 0x349   : > { %v32018_v56 = vadd.f32 %v27814_v28, %v16750_v61 }
 0x34d   : > { %v27721_v13 = vpop.f32.mrb[96].mxu0 }
 0x34e   : > { %v27722_v44 = vpop.f32.mrb[97].mxu0 }
 0x34f   : > { %v27723_v57 = vadd.f32 %v27722_v44, %v27721_v13  ;;  %v27724_v19 = vpop.f32.mrb[98].mxu0 }
 0x350   : > { %v27725_v30 = vpop.f32.mrb[99].mxu0 }
 0x351   : > { %v16755_v24 = vadd.f32 %v27723_v57, %v31882_v20  ;;  %v27726_v45 = vadd.f32 %v27725_v30, %v27724_v19 }
 0x353   : > { %v16758_v5 = vadd.f32 %v27726_v45, %v31884_v36 }
 0x362   : > { %v27815_v12 = vpop.f32.mrb[96].mxu1 }
 0x363   : > { %v27816_v53 = vpop.f32.mrb[97].mxu1 }
 0x364   : > { %v27817_v35 = vadd.f32 %v27816_v53, %v27815_v12  ;;  %v27818_v16 = vpop.f32.mrb[98].mxu1 }
 0x365   : > { %v27727_v26 = vpop.f32.mrb[100].mxu0  ;;  %v27819_v27 = vpop.f32.mrb[99].mxu1 }
 0x366   : > { %v27728_v60 = vpop.f32.mrb[101].mxu0  ;;  %v27820_v54 = vadd.f32 %v27819_v27, %v27818_v16  ;;  %v32022_v25 = vadd.f32 %v27817_v35, %v16755_v24 }
 0x367   : > { %v27729_v21 = vadd.f32 %v27728_v60, %v27727_v26  ;;  %v27730_v39 = vpop.f32.mrb[102].mxu0 }
 0x368   : > { %v27731_v17 = vpop.f32.mrb[103].mxu0  ;;  %v32025_v33 = vadd.f32 %v27820_v54, %v16758_v5 }
 0x369   : > { %v16763_v20 = vadd.f32 %v27729_v21, %v31903_v8 }
 0x377   : > { %v27821_v36 = vpop.f32.mrb[100].mxu1 }
 0x378   : > { %v27822_v1 = vpop.f32.mrb[101].mxu1 }
 0x379   : > { %v27823_v10 = vadd.f32 %v27822_v1, %v27821_v36  ;;  %v27824_v11 = vpop.f32.mrb[102].mxu1 }
 0x37a   : > { %v27825_v40 = vpop.f32.mrb[103].mxu1 }
 0x37b   : > { %v32027_v37 = vadd.f32 %v27823_v10, %v16763_v20 }
 0x380   : > { %v16938_v31 = vpop.f32.mrb[104].mxu0 }
 0x381   : > { %v16939_v61 = vadd.f32 %v16938_v31, %v31963_v29  ;;  %v28163_v9 = vpop.f32.mrb[105].mxu0 }
 0x382   : > { %v16941_v41 = vpop.f32.mrb[106].mxu0 }
 0x383   : > { %v17040_v4 = vmax.f32 %v16939_v61, 0.0  ;;  %v16942_v8 = vadd.f32 %v16941_v41, %v31965_v49  ;;  %v28164_v28 = vpop.f32.mrb[107].mxu0 }
 0x385   : > { %v17090_v38 = vcombine.high %v17040_v4, %v17040_v4  ;;  %v17097_v13 = vrot.slane %v17040_v4, %v32031_v14  ;;  %v17041_v44 = vmax.f32 %v16942_v8, 0.0 }
 0x387   : > { %v17104_v57 = vrot.slane %v17090_v38, %v32031_v14  ;;  %v17105_v19 = vcombine.high %v17097_v13, %v17097_v13  ;;  %v17107_v30 = vcombine.high %v17041_v44, %v17041_v44  ;;  %v17114_v24 = vrot.slane %v17041_v44, %v32031_v14 }
 0x388   : > { %v16946_v29 = vpop.f32.mrb[108].mxu0 }
 0x389   : > { %v17106_v45 = vcombine.high %v17104_v57, %v17104_v57  ;;  %v17506_v5 = vcombine.low %v17097_v13, %v17105_v19  ;;  %v17121_v12 = vrot.slane %v17107_v30, %v32031_v14  ;;  %v17122_v53 = vcombine.high %v17114_v24, %v17114_v24  ;;  %v28167_v35 = vpop.f32.mrb[109].mxu0 }
 0x38a   : > { %v16947_v49 = vadd.f32 %v16946_v29, %v31967_v48  ;;  %v16949_v16 = vpop.f32.mrb[110].mxu0 }
 0x38b   : > { %v17507_v26 = vcombine.low %v17104_v57, %v17106_v45  ;;  %v17523_v27 = vcombine.low %v17114_v24, %v17122_v53  ;;  %v28168_v60 = vpop.f32.mrb[111].mxu0  ;;  %v16950_v21 = vadd.f32 %v16949_v16, %v31969_v32  ;;  %v17514_v39 = vrot.slane %v17506_v5, %v32031_v14 }
 0x38c   : > { %v17042_v54 = vmax.f32 %v16947_v49, 0.0  ;;  %v17537_v3 = vrot.slane %v17121_v12, %v32031_v14  ;;  %v17123_v20 = vcombine.high %v17121_v12, %v17121_v12 }
 0x38d   : > { %v17521_v17 = vrot.slane %v17507_v26, %v32031_v14  ;;  %v17530_v52 = vrot.slane %v17523_v27, %v32031_v14  ;;  %v17043_v48 = vmax.f32 %v16950_v21, 0.0 }
 0x38e   : > { %v17124_v36 = vcombine.high %v17042_v54, %v17042_v54  ;;  %v17131_v1 = vrot.slane %v17042_v54, %v32031_v14 }
 0x38f   : > { %v17522_v42 = vcombine.low %v17514_v39, %v17521_v17  ;;  %v17538_v10 = vcombine.low %v17530_v52, %v17537_v3  ;;  %v17141_v32 = vcombine.high %v17043_v48, %v17043_v48  ;;  %v17148_v9 = vrot.slane %v17043_v48, %v32031_v14 }
 0x390   : > { %v17138_v11 = vrot.slane %v17124_v36, %v32031_v14  ;;  %v17139_v40 = vcombine.high %v17131_v1, %v17131_v1  ;;  %v17539_v31 = vcombine.low %v17123_v20, %v17131_v1  ;;  %v16954_v41 = vpop.f32.mrb[112].mxu0 }
 0x391   : > { %v27387_v61 = vpack.c.bf16 %v17522_v42, %v17522_v42  ;;  %v27388_v43 = vpack.c.bf16 %v17538_v10, %v17538_v10  ;;  %v17155_v28 = vrot.slane %v17141_v32, %v32031_v14  ;;  %v28171_v38 = vpop.f32.mrb[113].mxu0  ;;  %v17156_v44 = vcombine.high %v17148_v9, %v17148_v9 }
 0x392   : > { %v17540_v4 = vcombine.low %v17139_v40, %v17138_v11  ;;  %v17140_v8 = vcombine.high %v17138_v11, %v17138_v11  ;;  %v17547_v13 = vrot.slane %v17539_v31, %v32031_v14  ;;  %v16955_v57 = vadd.f32 %v16954_v41, %v31971_v15  ;;  %v16957_v19 = vpop.f32.mrb[114].mxu0 }
 0x393   : > { %18108 = vst [vmem:[#allocation3] sm:$0xf] %v27387_v61  ;;  %18109 = vst [vmem:[#allocation3 + $0x4] sm:$0x7] %v27388_v43  ;;  %v17157_v24 = vcombine.high %v17155_v28, %v17155_v28  ;;  %v16958_v45 = vadd.f32 %v16957_v19, %v31973_v50  ;;  %v28172_v5 = vpop.f32.mrb[115].mxu0  ;;  %v17570_v12 = vrot.slane %v17156_v44, %v32031_v14 }
 0x394   : > { %v17554_v30 = vrot.slane %v17540_v4, %v32031_v14  ;;  %v17556_v29 = vcombine.low %v17140_v8, %v17148_v9  ;;  %v17044_v53 = vmax.f32 %v16955_v57, 0.0 }
 0x395   : > { %v17572_v16 = vcombine.low %v17155_v28, %v17157_v24  ;;  %v17045_v26 = vmax.f32 %v16958_v45, 0.0 }
 0x396   : > { %v17555_v35 = vcombine.low %v17547_v13, %v17554_v30  ;;  %v17563_v49 = vrot.slane %v17556_v29, %v32031_v14  ;;  %v17158_v27 = vcombine.high %v17044_v53, %v17044_v53  ;;  %v17165_v60 = vrot.slane %v17044_v53, %v32031_v14 }
 0x397   : > { %v17175_v21 = vcombine.high %v17045_v26, %v17045_v26  ;;  %v17182_v50 = vrot.slane %v17045_v26, %v32031_v14  ;;  %v17580_v3 = vrot.slane %v17572_v16, %v32031_v14 }
 0x398   : > { %v27389_v15 = vpack.c.bf16 %v17555_v35, %v17555_v35  ;;  %v17571_v54 = vcombine.low %v17563_v49, %v17570_v12  ;;  %v17172_v39 = vrot.slane %v17158_v27, %v32031_v14  ;;  %v17173_v17 = vcombine.high %v17165_v60, %v17165_v60  ;;  %v16962_v52 = vpop.f32.mrb[116].mxu0 }
 0x399   : > { %v17189_v36 = vrot.slane %v17175_v21, %v32031_v14  ;;  %v16963_v1 = vadd.f32 %v16962_v52, %v31975_v7  ;;  %v28175_v48 = vpop.f32.mrb[117].mxu0  ;;  %v17190_v40 = vcombine.high %v17182_v50, %v17182_v50  ;;  %v17603_v31 = vrot.slane %v17182_v50, %v32031_v14 }
 0x39a   : > { %18110 = vst [vmem:[#allocation3 + $0x8] sm:$0xf] %v27389_v15  ;;  %v27390_v20 = vpack.c.bf16 %v17571_v54, %v17571_v54  ;;  %v32060_v42 = vld.sshfl [vmem:[#allocation3] sm:$0x33 pattern:$0x76325410]  ;;  %v17174_v10 = vcombine.high %v17172_v39, %v17172_v39  ;;  %v17573_v11 = vcombine.low %v17165_v60, %v17173_v17 }
 0x39b   : > { %v16965_v32 = vpop.f32.mrb[118].mxu0  ;;  %v32063_v61 = vld.sshfl [vmem:[#allocation3 + $0x4] sm:$0x13 pattern:$0x76325410]  ;;  %v17046_v43 = vmax.f32 %v16963_v1, 0.0  ;;  %v17191_v9 = vcombine.high %v17189_v36, %v17189_v36  ;;  %v32068_v7 = vcombine.high %v32060_v42, %v32060_v42  ;;  %v17605_v38 = vcombine.low %v17190_v40, %v17189_v36 }
 0x39c   : > { %18111 = vst [vmem:[#allocation3 + $0xc] sm:$0x7] %v27390_v20  ;;  %v16966_v41 = vadd.f32 %v16965_v32, %v31977_v59  ;;  %v28176_v4 = vpop.f32.mrb[119].mxu0  ;;  %v17587_v8 = vrot.slane %v17573_v11, %v32031_v14  ;;  %v17589_v28 = vcombine.low %v17172_v39, %v17174_v10  ;;  %v18598_v13 = vcombine.high %v32063_v61, %v32063_v61 }
 0x39d   : > { %v17192_v44 = vcombine.high %v17046_v43, %v17046_v43  ;;  %v17199_v57 = vrot.slane %v17046_v43, %v32031_v14  ;;  %v18783_v30 = vshrl.u32 %v32060_v42, 16  ;;  %v17613_v29 = vrot.slane %v17605_v38, %v32031_v14 }
 0x39e   : > { %v17047_v19 = vmax.f32 %v16966_v41, 0.0  ;;  %v17588_v59 = vcombine.low %v17580_v3, %v17587_v8  ;;  %v17596_v24 = vrot.slane %v17589_v28, %v32031_v14  ;;  %v18786_v45 = vshll.u32 %v32060_v42, 16 }
 0x39f   : > { %v17206_v5 = vrot.slane %v17192_v44, %v32031_v14  ;;  %v17207_v12 = vcombine.high %v17199_v57, %v17199_v57  ;;  %v17606_v53 = vcombine.low %v17191_v9, %v17199_v57  ;;  %v18785_v15 = vrot.slane %v18783_v30, 6 }
 0x3a0   : > { %v17209_v35 = vcombine.high %v17047_v19, %v17047_v19  ;;  %v27391_v49 = vpack.c.bf16 %v17588_v59, %v17588_v59  ;;  %v17604_v16 = vcombine.low %v17596_v24, %v17603_v31  ;;  %v17216_v26 = vrot.slane %v17047_v19, %v32031_v14  ;;  %v16970_v27 = vpop.f32.mrb[120].mxu0 }
 0x3a1   : > { %v32080_v60 = vld.sshfl [vmem:[#allocation3 + $0x8] sm:$0x33 pattern:$0x76325410]  ;;  %v17208_v54 = vcombine.high %v17206_v5, %v17206_v5  ;;  %v17620_v21 = vrot.slane %v17606_v53, %v32031_v14  ;;  %v17622_v39 = vcombine.low %v17207_v12, %v17206_v5  ;;  %v28179_v50 = vpop.f32.mrb[121].mxu0  ;;  %v16971_v20 = vadd.f32 %v16970_v27, %v31979_v18 }
 0x3a2   : > { %v17223_v17 = vrot.slane %v17209_v35, %v32031_v14  ;;  %18112 = vst [vmem:[#allocation3 + $0x10] sm:$0xf] %v27391_v49  ;;  %v27392_v52 = vpack.c.bf16 %v17604_v16, %v17604_v16  ;;  %v17224_v3 = vcombine.high %v17216_v26, %v17216_v26  ;;  %v16973_v36 = vpop.f32.mrb[122].mxu0  ;;  %v32087_v1 = vcombine.high %v32080_v60, %v32080_v60 }
 0x3a3   : > { %v17621_v48 = vcombine.low %v17613_v29, %v17620_v21  ;;  %v17629_v10 = vrot.slane %v17622_v39, %v32031_v14  ;;  %v17636_v11 = vrot.slane %v17208_v54, %v32031_v14  ;;  %v28180_v31 = vpop.f32.mrb[123].mxu0  ;;  %v17048_v43 = vmax.f32 %v16971_v20, 0.0 }
 0x3a4   : > { %v17225_v40 = vcombine.high %v17223_v17, %v17223_v17  ;;  %18113 = vst [vmem:[#allocation3 + $0x14] sm:$0x7] %v27392_v52  ;;  %v17638_v32 = vcombine.low %v17216_v26, %v17224_v3  ;;  %v16974_v18 = vadd.f32 %v16973_v36, %v31983_v23  ;;  %v18788_v9 = vrot.slane %v18786_v45, 7 }
 0x3a5   : > { %v17637_v41 = vcombine.low %v17629_v10, %v17636_v11  ;;  %v27393_v4 = vpack.c.bf16 %v17621_v48, %v17621_v48  ;;  %v18792_v28 = vshll.u32 %v32068_v7, 16  ;;  %v17226_v44 = vcombine.high %v17048_v43, %v17048_v43 }
 0x3a6   : > { %v17639_v8 = vcombine.low %v17223_v17, %v17225_v40  ;;  %v17646_v38 = vrot.slane %v17638_v32, %v32031_v14  ;;  %v17233_v57 = vrot.slane %v17048_v43, %v32031_v14  ;;  %v17049_v19 = vmax.f32 %v16974_v18, 0.0 }
 0x3a7   : > { %v27394_v59 = vpack.c.bf16 %v17637_v41, %v17637_v41  ;;  %18114 = vst [vmem:[#allocation3 + $0x18] sm:$0xf] %v27393_v4  ;;  %v18789_v24 = vor.u32 %v18788_v9, %v18785_v15  ;;  %v32103_v29 = vrot.slane %v18792_v28, 7  ;;  %v17240_v45 = vrot.slane %v17226_v44, %v32031_v14 }
 0x3a8   : > { %v17653_v23 = vrot.slane %v17639_v8, %v32031_v14  ;;  %v17241_v5 = vcombine.high %v17233_v57, %v17233_v57  ;;  %v17243_v12 = vcombine.high %v17049_v19, %v17049_v19  ;;  %v17250_v53 = vrot.slane %v17049_v19, %v32031_v14  ;;  %v16978_v35 = vpop.f32.mrb[124].mxu0 }
 0x3a9   : > { %18115 = vst [vmem:[#allocation3 + $0x1c] sm:$0x7] %v27394_v59  ;;  %v16979_v16 = vadd.f32 %v16978_v35, %v31985_v51  ;;  %v28183_v26 = vpop.f32.mrb[125].mxu0  ;;  %v32115_v15 = vrot.slane %v18789_v24, 2  ;;  %v18796_v54 = vshrl.u32 %v32068_v7, 16  ;;  %v17669_v39 = vrot.slane %v17240_v45, %v32031_v14 }
 0x3aa   : > { %v17654_v49 = vcombine.low %v17646_v38, %v17653_v23  ;;  %v17655_v21 = vcombine.low %v17233_v57, %v17241_v5  ;;  %v17242_v17 = vcombine.high %v17240_v45, %v17240_v45  ;;  %v17257_v50 = vrot.slane %v17243_v12, %v32031_v14  ;;  %v16981_v52 = vpop.f32.mrb[126].mxu0 }
 0x3ab   : > { %v17258_v3 = vcombine.high %v17250_v53, %v17250_v53  ;;  %v17050_v20 = vmax.f32 %v16979_v16, 0.0  ;;  %v16982_v36 = vadd.f32 %v16981_v52, %v31987_v2  ;;  %v28184_v48 = vpop.f32.mrb[127].mxu0  ;;  %v18795_v31 = vsel %vm32111_vm6, %v32115_v15, %v32103_v29 }
 0x3ac   : > { %v27395_v51 = vpack.c.bf16 %v17654_v49, %v17654_v49  ;;  %v17662_v10 = vrot.slane %v17655_v21, %v32031_v14  ;;  %v17671_v11 = vcombine.low %v17242_v17, %v17250_v53  ;;  %v17259_v40 = vcombine.high %v17257_v50, %v17257_v50 }
 0x3ad   : > { %v17672_v32 = vcombine.low %v17258_v3, %v17257_v50  ;;  %v17260_v43 = vcombine.high %v17050_v20, %v17050_v20  ;;  %v17267_v18 = vrot.slane %v17050_v20, %v32031_v14  ;;  %v17051_v9 = vmax.f32 %v16982_v36, 0.0 }
 0x3ae   : > { %18116 = vst [vmem:[#allocation3 + $0x20] sm:$0xf] %v27395_v51  ;;  %v17670_v41 = vcombine.low %v17662_v10, %v17669_v39  ;;  %v17679_v4 = vrot.slane %v17671_v11, %v32031_v14  ;;  %v18798_v2 = vrot.slane %v18796_v54, 6  ;;  %v18802_v8 = vshll.u32 %v32063_v61, 16 }
 0x3af   : > { %v17686_v28 = vrot.slane %v17672_v32, %v32031_v14  ;;  %v17274_v38 = vrot.slane %v17260_v43, %v32031_v14  ;;  %v17275_v44 = vcombine.high %v17267_v18, %v17267_v18  ;;  %v17688_v57 = vcombine.low %v17259_v40, %v17267_v18 }
 0x3b0   : > { %v27396_v19 = vpack.c.bf16 %v17670_v41, %v17670_v41  ;;  %v17277_v30 = vcombine.high %v17051_v9, %v17051_v9  ;;  %v17284_v59 = vrot.slane %v17051_v9, %v32031_v14  ;;  %v16986_v23 = vpop.f32.mrb[128].mxu0  ;;  %v18799_v24 = vor.u32 %v18798_v2, %v32103_v29 }
 0x3b1   : > { %v17687_v45 = vcombine.low %v17679_v4, %v17686_v28  ;;  %v17276_v5 = vcombine.high %v17274_v38, %v17274_v38  ;;  %v17695_v12 = vrot.slane %v17688_v57, %v32031_v14  ;;  %v17702_v53 = vrot.slane %v17275_v44, %v32031_v14  ;;  %v28187_v35 = vpop.f32.mrb[129].mxu0 }
 0x3b2   : > { %18117 = vst [vmem:[#allocation3 + $0x24] sm:$0x7] %v27396_v19  ;;  %v17291_v49 = vrot.slane %v17277_v30, %v32031_v14  ;;  %v17292_v16 = vcombine.high %v17284_v59, %v17284_v59  ;;  %v16987_v26 = vadd.f32 %v16986_v23, %v31989_v47  ;;  %v18800_v54 = vrot.slane %v18799_v24, 2  ;;  %v16989_v21 = vpop.f32.mrb[130].mxu0 }
 0x3b3   : > { %v27397_v39 = vpack.c.bf16 %v17687_v45, %v17687_v45  ;;  %v17703_v17 = vcombine.low %v17695_v12, %v17702_v53  ;;  %v17704_v50 = vcombine.low %v17274_v38, %v17276_v5  ;;  %v18804_v52 = vrot.slane %v18802_v8, 7  ;;  %v28188_v51 = vpop.f32.mrb[131].mxu0  ;;  %v26952_v23 = vld.sshfl [vmem:[#allocation3 + $0x4] sm:$0x3 pattern:$0x76325410] }
 0x3b4   : > { %v17293_v3 = vcombine.high %v17291_v49, %v17291_v49  ;;  %v17705_v20 = vcombine.low %v17284_v59, %v17292_v16  ;;  %v17052_v36 = vmax.f32 %v16987_v26, 0.0  ;;  %v18806_v48 = vshrl.u32 %v32063_v61, 16  ;;  %v27083_v35 = vld.sshfl [vmem:[#allocation3 + $0x8] sm:$0x32 pattern:$0x76325410] }
 0x3b5   : > { %18118 = vst [vmem:[#allocation3 + $0x28] sm:$0xf] %v27397_v39  ;;  %v17712_v10 = vrot.slane %v17704_v50, %v32031_v14  ;;  %v27398_v11 = vpack.c.bf16 %v17703_v17, %v17703_v17  ;;  %v18805_v47 = vsel %vm32111_vm6, %v18800_v54, %v18804_v52  ;;  %v18812_v40 = vshll.u32 %v18598_v13, 16 }
 0x3b6   : > { %v17719_v32 = vrot.slane %v17705_v20, %v32031_v14  ;;  %v17721_v43 = vcombine.low %v17291_v49, %v17293_v3  ;;  %v17294_v18 = vcombine.high %v17052_v36, %v17052_v36  ;;  %v17301_v9 = vrot.slane %v17052_v36, %v32031_v14  ;;  %v32172_v50 = vld.sshfl [vmem:[#allocation3 + $0xc] sm:$0x13 pattern:$0x76325410] }
 0x3b7   : > { %18119 = vst [vmem:[#allocation3 + $0x2c] sm:$0x7] %v27398_v11  ;;  %v18808_v41 = vrot.slane %v18806_v48, 6  ;;  %v18814_v4 = vrot.slane %v18812_v40, 7  ;;  %v18817_v2 = vshrl.u32 %v32080_v60, 16  ;;  %v18820_v8 = vshll.u32 %v32080_v60, 16 }
 0x3b8   : > { %v17720_v28 = vcombine.low %v17712_v10, %v17719_v32  ;;  %v32149_v38 = vrot.slane %v17294_v18, %v32031_v14  ;;  %v17309_v61 = vcombine.high %v17301_v9, %v17301_v9  ;;  %v17728_v13 = vrot.slane %v17721_v43, %v32031_v14  ;;  %v16994_v44 = vpop.f32.mrb[132].mxu0 }
 0x3b9   : > { %v17735_v57 = vrot.slane %v17301_v9, %v32031_v14  ;;  %v18809_v19 = vor.u32 %v18808_v41, %v18804_v52  ;;  %v18819_v30 = vrot.slane %v18817_v2, 6  ;;  %v18822_v59 = vrot.slane %v18820_v8, 7  ;;  %v28191_v24 = vpop.f32.mrb[133].mxu0 }
 0x3ba   : > { %v27399_v45 = vpack.c.bf16 %v17720_v28, %v17720_v28  ;;  %v32154_v5 = vcombine.low %v17309_v61, %v32149_v38  ;;  %v18826_v12 = vshll.u32 %v32087_v1, 16  ;;  %v19190_v53 = vcombine.low %v18795_v31, %v18805_v47  ;;  %v32162_v49 = vpop.f32.mrb[134].mxu0 }
 0x3bb   : > { %v17736_v16 = vcombine.low %v17728_v13, %v17735_v57  ;;  %v18810_v26 = vrot.slane %v18809_v19, 2  ;;  %v18823_v54 = vor.u32 %v18822_v59, %v18819_v30  ;;  %v18364_v39 = vcombine.low %v32060_v42, %v32068_v7  ;;  %v28192_v52 = vpop.f32.mrb[135].mxu0  ;;  %v27085_v42 = vld.sshfl [vmem:[#allocation3 + $0x10] sm:$0x32 pattern:$0x76325410] }
 0x3bc   : > { %18120 = vst [vmem:[#allocation3 + $0x30] sm:$0xf] %v27399_v45  ;;  %v17745_v29 = vrot.slane %v32154_v5, %v32031_v14  ;;  %v32176_v15 = vrot.slane %v18826_v12, 7  ;;  %v19198_v31 = vrot.slane %v19190_v53, %v32031_v14  ;;  %v18365_v51 = vcombine.low %v26952_v23, %v32080_v60 }
 0x3bd   : > { %v27400_v7 = vpack.c.bf16 %v17736_v16, %v17736_v16  ;;  %v18815_v3 = vsel %vm32111_vm6, %v18810_v26, %v18814_v4  ;;  %v18824_v20 = vrot.slane %v18823_v54, 2  ;;  %v18372_v36 = vrot.slane %v18364_v39, %v32031_v14  ;;  %v32215_v59 = vld.sshfl [vmem:[#allocation3 + $0x10] sm:$0x33 pattern:$0x76325410] }
 0x3be   : > { %v18379_v48 = vrot.slane %v18365_v51, %v32031_v14  ;;  %v16990_v10 = vadd.f32 %v16989_v21, %v31991_v0  ;;  %v17310_v11 = vcombine.high %v32149_v38, %v32149_v38  ;;  %v21173_v60 = vcombine.high %v27083_v35, %v27083_v35  ;;  %v28620_v39 = vld [vmem:[#allocation9 + $0x80] sm:$0xff]  }
 0x3bf   : > { %18121 = vst [vmem:[#allocation3 + $0x34] sm:$0x7] %v27400_v7  ;;  %v32193_v47 = vsel %vm32111_vm6, %v18824_v20, %v32176_v15  ;;  %v32197_v40 = vcombine.high %v32172_v50, %v32172_v50  ;;  %v21189_v32 = vcombine.high %v27085_v42, %v27085_v42  ;;  %v27107_v0 = vrot.slane %v27083_v35, 9  ;;  %v28621_v7 = vld [vmem:[#allocation9 + $0xc8] sm:$0xff]  }
 0x3c0   : > { %v19191_v21 = vcombine.low %v18815_v3, %v32193_v47  ;;  %v18380_v43 = vcombine.low %v18372_v36, %v18379_v48  ;;  %v17053_v18 = vmax.f32 %v16990_v10, 0.0  ;;  %v21360_v9 = vrot.slane %v21173_v60, 7 }
 0x3c1   : > { %v32200_v41 = vpop.f32.mrb[136].mxu0  ;;  %v34271_v4 = vmov 0  ;;  %v21363_v2 = vrot.slane %v32172_v50, 7  ;;  %v21366_v8 = vrot.slane %v32197_v40, 7  ;;  %v27108_v28 = vrot.slane %v27085_v42, 9 }
 0x3c2   : > { %v34272_v4 = vsel %vm32203_vm13, 4294967295, %v34271_v4  ;;  %v32209_v38 = vrot.slane %v21189_v32, 7  ;;  %v28195_v61 = vpop.f32.mrb[137].mxu0  ;;  %v19205_v13 = vrot.slane %v19191_v21, %v32031_v14  ;;  %v17311_v57 = vcombine.high %v17053_v18, %v17053_v18  ;;  %v28622_v21 = vld [vmem:[#allocation9 + $0x88] sm:$0xff]  }
 0x3c3   : > { %34273 = vst [vmem:[#allocation43_spill] sm:$0xff] %v34272_v4  ;;  %v17318_v19 = vrot.slane %v17053_v18, %v32031_v14  ;;  %v21361_v30 = vsel %vm32203_vm13, %v27107_v0, %v21360_v9  ;;  %v32217_v23 = vpop.f32.mrb[138].mxu0  ;;  %v21362_v24 = vrot.slane %v21360_v9, 2  ;;  %v21365_v45 = vrot.slane %v21363_v2, 2  ;;  %v28623_v61 = vld [vmem:[#allocation9 + $0xd0] sm:$0xff]  }
 0x3c4   : > { %v21371_v5 = vsel %vm32203_vm13, %v27108_v28, %v32209_v38  ;;  %v16995_v12 = vadd.f32 %v16994_v44, %v31997_v22  ;;  %v28196_v53 = vpop.f32.mrb[139].mxu0  ;;  %v19206_v35 = vcombine.low %v19198_v31, %v19205_v13  ;;  %v17325_v16 = vrot.slane %v17311_v57, %v32031_v14 }
 0x3c5   : > { %v17326_v26 = vcombine.high %v17318_v19, %v17318_v19  ;;  %v17738_v54 = vcombine.low %v17310_v11, %v17318_v19  ;;  %v21364_v17 = vsel %vm32203_vm13, %v21362_v24, %v21363_v2  ;;  %v21367_v52 = vsel %vm32203_vm13, %v21365_v45, %v21366_v8 }
 0x3c6   : > { %v17054_v51 = vmax.f32 %v16995_v12, 0.0  ;;  %v32230_v42 = vcombine.high %v32215_v59, %v32215_v59  ;;  %24095 = vmatprep.mubr.bf16.mxu1 %v19206_v35  ;;  %v17327_v22 = vcombine.high %v17325_v16, %v17325_v16  ;;  %v21478_v3 = vcombine.low %v21361_v30, %v21364_v17 }
 0x3c7   : > { %v17752_v44 = vrot.slane %v17738_v54, %v32031_v14  ;;  %v17754_v31 = vcombine.low %v17326_v26, %v17325_v16  ;;  %24096 = vmatmul.mubr.bf16.vlgmr.msra.gmra.mrb[104].mxu1 %v18380_v43  ;;  %v21479_v20 = vcombine.low %v21367_v52, %v21371_v5  ;;  %v20553_v10 = vshrl.u32 %v32087_v1, 16 }
 0x3c8   : > { %v17328_v36 = vcombine.high %v17054_v51, %v17054_v51  ;;  %v17335_v48 = vrot.slane %v17054_v51, %v32031_v14  ;;  %v17768_v32 = vrot.slane %v17327_v22, %v32031_v14  ;;  %v21486_v0 = vrot.slane %v21478_v3, %v32031_v14  ;;  %27919 = vmatpush3.bf16.msra.mxu1 %v28620_v39  ;;  %v28624_v39 = vld [vmem:[#allocation9 + $0x90] sm:$0xff]  }
 0x3c9   : > { %v17753_v11 = vcombine.low %v17745_v29, %v17752_v44  ;;  %v17761_v60 = vrot.slane %v17754_v31, %v32031_v14  ;;  %v32238_v18 = vpop.f32.mrb[140].mxu0  ;;  %v21493_v9 = vrot.slane %v21479_v20, %v32031_v14  ;;  %v20555_v8 = vrot.slane %v20553_v10, 6  ;;  %27920 = vmatprep.subr.bf16.mxu1 %v28621_v7  ;;  %v28625_v7 = vld [vmem:[#allocation9 + $0xd8] sm:$0xff]  }
 0x3ca   : > { %v17342_v43 = vrot.slane %v17328_v36, %v32031_v14  ;;  %v17343_v2 = vcombine.high %v17335_v48, %v17335_v48  ;;  %v28199_v28 = vpop.f32.mrb[141].mxu0  ;;  %v20559_v57 = vshll.u32 %v32172_v50, 16  ;;  %v20563_v19 = vshrl.u32 %v32172_v50, 16 }
 0x3cb   : > { %v17769_v29 = vcombine.low %v17761_v60, %v17768_v32  ;;  %v27401_v13 = vpack.c.bf16 %v17753_v11, %v17753_v11  ;;  %v32244_v30 = vpop.f32.mrb[142].mxu0  ;;  %v21494_v24 = vcombine.low %v21486_v0, %v21493_v9  ;;  %v20556_v12 = vor.u32 %v20555_v8, %v32176_v15  ;;  %v28627_v8 = vld [vmem:[#allocation9 + $0xe0] sm:$0xff]  }
 0x3cc   : > { %v17344_v45 = vcombine.high %v17342_v43, %v17342_v43  ;;  %v17770_v5 = vcombine.low %v17335_v48, %v17343_v2  ;;  %v28200_v53 = vpop.f32.mrb[143].mxu0  ;;  %v20561_v16 = vrot.slane %v20559_v57, 7  ;;  %v20565_v26 = vrot.slane %v20563_v19, 6  ;;  %27921 = vmatpush3.bf16.msra.mxu1 %v28622_v21  ;;  %v28626_v21 = vld [vmem:[#allocation9 + $0x98] sm:$0xff]  }
 0x3cd   : > { %v27402_v35 = vpack.c.bf16 %v17769_v29, %v17769_v29  ;;  %18122 = vst [vmem:[#allocation3 + $0x38] sm:$0xf] %v27401_v13  ;;  %v20569_v54 = vshll.u32 %v32197_v40, 16  ;;  %24305 = vmatprep.mubr.bf16.mxu0 %v21494_v24  ;;  %v20557_v52 = vrot.slane %v20556_v12, 2  ;;  %v20574_v51 = vshrl.u32 %v32215_v59, 16  ;;  %27922 = vmatprep.subr.bf16.mxu1 %v28623_v61  ;;  %v28628_v53 = vld [vmem:[#allocation9 + $0xa0] sm:$0xff]  }
 0x3ce   : > { %v17771_v17 = vcombine.low %v17342_v43, %v17344_v45  ;;  %v17778_v50 = vrot.slane %v17770_v5, %v32031_v14  ;;  %v20566_v15 = vor.u32 %v20565_v26, %v20561_v16  ;;  %v20577_v44 = vshll.u32 %v32215_v59, 16  ;;  %v32259_v48 = vld.sshfl [vmem:[#allocation3 + $0x14] sm:$0x13 pattern:$0x76325410] }
 0x3cf   : > { %18123 = vst [vmem:[#allocation3 + $0x3c] sm:$0x7] %v27402_v35  ;;  %v20571_v22 = vrot.slane %v20569_v54, 7  ;;  %v20583_v31 = vshll.u32 %v32230_v42, 16  ;;  %v32255_v3 = vsel %vm32111_vm6, %v20557_v52, %v20561_v16  ;;  %v20576_v20 = vrot.slane %v20574_v51, 6 }
 0x3d0   : > { %v17785_v40 = vrot.slane %v17771_v17, %v32031_v14  ;;  %v16998_v36 = vadd.f32 %v32162_v49, %v31999_v55  ;;  %v20567_v10 = vrot.slane %v20566_v15, 2  ;;  %v20579_v11 = vrot.slane %v20577_v44, 7  ;;  %27923 = vmatpush3.bf16.msra.mxu1 %v28624_v39  ;;  %v26954_v29 = vld.sshfl [vmem:[#allocation3 + $0xc] sm:$0x3 pattern:$0x76325410] }
 0x3d1   : > { %v20585_v60 = vrot.slane %v20583_v31, 7  ;;  %v20947_v32 = vcombine.low %v32193_v47, %v32255_v3  ;;  %v32263_v0 = vpop.f32.mrb[144].mxu0  ;;  %27924 = vmatprep.subr.bf16.mxu1 %v28625_v7  ;;  %v18864_v61 = vshrl.u32 %v32230_v42, 16  ;;  %v18870_v12 = vshll.u32 %v32259_v48, 16 }
 0x3d2   : > { %v17786_v9 = vcombine.low %v17778_v50, %v17785_v40  ;;  %v17055_v43 = vmax.f32 %v16998_v36, 0.0  ;;  %v28203_v2 = vpop.f32.mrb[145].mxu0  ;;  %v20572_v55 = vsel %vm32111_vm6, %v20567_v10, %v20571_v22  ;;  %v20580_v49 = vor.u32 %v20579_v11, %v20576_v20  ;;  %v27087_v50 = vld.sshfl [vmem:[#allocation3 + $0x18] sm:$0x32 pattern:$0x76325410] }
 0x3d3   : > { %v20955_v28 = vrot.slane %v20947_v32, %v32031_v14  ;;  %v32269_v13 = vpop.f32.mrb[146].mxu0  ;;  %v18866_v5 = vrot.slane %v18864_v61, 6  ;;  %v18381_v26 = vcombine.low %v32087_v1, %v26954_v29  ;;  %v32279_v17 = vrot.slane %v18870_v12, 7  ;;  %v28629_v61 = vld [vmem:[#allocation9 + $0xe8] sm:$0xff]  }
 0x3d4   : > { %v27403_v47 = vpack.c.bf16 %v17786_v9, %v17786_v9  ;;  %v17345_v57 = vcombine.high %v17055_v43, %v17055_v43  ;;  %v17352_v19 = vrot.slane %v17055_v43, %v32031_v14  ;;  %v28204_v24 = vpop.f32.mrb[147].mxu0  ;;  %v20581_v45 = vrot.slane %v20580_v49, 2  ;;  %27925 = vmatpush3.bf16.msra.mxu1 %v28626_v21 }
 0x3d5   : > { %27926 = vmatprep.subr.bf16.mxu1 %v28627_v8  ;;  %v18867_v39 = vor.u32 %v20585_v60, %v18866_v5  ;;  %v18382_v22 = vcombine.low %v32215_v59, %v32230_v42  ;;  %v18389_v44 = vrot.slane %v18381_v26, %v32031_v14  ;;  %v32288_v1 = vcombine.high %v32259_v48, %v32259_v48  ;;  %v28631_v26 = vld [vmem:[#allocation9 + $0x200] sm:$0xff]  }
 0x3d6   : > { %18124 = vst [vmem:[#allocation3 + $0x40] sm:$0xf] %v27403_v47  ;;  %v32274_v35 = vrot.slane %v17345_v57, %v32031_v14  ;;  %v17360_v16 = vcombine.high %v17352_v19, %v17352_v19  ;;  %v20586_v54 = vsel %vm32111_vm6, %v20581_v45, %v20585_v60  ;;  %v21205_v36 = vcombine.high %v27087_v50, %v27087_v50  ;;  %v32301_v60 = vld.sshfl [vmem:[#allocation3 + $0x1c] sm:$0x13 pattern:$0x76325410] }
 0x3d7   : > { %v20948_v52 = vcombine.low %v20572_v55, %v20586_v54  ;;  %v18868_v15 = vrot.slane %v18867_v39, 2  ;;  %v19207_v59 = vcombine.low %v32255_v3, %v20572_v55  ;;  %v18396_v42 = vrot.slane %v18382_v22, %v32031_v14  ;;  %v32310_v57 = vld.sshfl [vmem:[#allocation3 + $0x18] sm:$0x33 pattern:$0x76325410] }
 0x3d8   : > { %v17787_v51 = vcombine.low %v17352_v19, %v17360_v16  ;;  %v17801_v7 = vrot.slane %v32274_v35, %v32031_v14  ;;  %27927 = vmatpush3.bf16.msra.mxu1 %v28628_v53  ;;  %v21372_v32 = vrot.slane %v32209_v38, 2  ;;  %v21373_v8 = vrot.slane %v32259_v48, 7  ;;  %v28630_v45 = vld [vmem:[#allocation9 + $0xa8] sm:$0xff]  }
 0x3d9   : > { %v32290_v31 = vpop.f32.mrb[148].mxu0  ;;  %v20962_v40 = vrot.slane %v20948_v52, %v32031_v14  ;;  %v32297_v11 = vsel %vm32111_vm6, %v18868_v15, %v32279_v17  ;;  %v19215_v29 = vrot.slane %v19207_v59, %v32031_v14  ;;  %v18397_v47 = vcombine.low %v18389_v44, %v18396_v42  ;;  %27928 = vmatprep.subr.bf16.mxu1 %v28629_v61  ;;  %v28632_v15 = vld [vmem:[#allocation9 + $0x208] sm:$0xff]  }
 0x3da   : > { %v17794_v20 = vrot.slane %v17787_v51, %v32031_v14  ;;  %v28207_v10 = vpop.f32.mrb[149].mxu0  ;;  %v19208_v2 = vcombine.low %v20586_v54, %v32297_v11  ;;  %v21376_v3 = vrot.slane %v32288_v1, 7  ;;  %v27109_v55 = vrot.slane %v27087_v50, 9 }
 0x3db   : > { %v32304_v21 = vpop.f32.mrb[150].mxu0  ;;  %v20963_v9 = vcombine.low %v20955_v28, %v20962_v40  ;;  %v21374_v28 = vsel %vm32203_vm13, %v21372_v32, %v21373_v8  ;;  %v21375_v24 = vrot.slane %v21373_v8, 2  ;;  %v21380_v5 = vrot.slane %v21205_v36, 7 }
 0x3dc   : > { %v17802_v43 = vcombine.low %v17794_v20, %v17801_v7  ;;  %v28208_v49 = vpop.f32.mrb[151].mxu0  ;;  %v19222_v19 = vrot.slane %v19208_v2, %v32031_v14  ;;  %v21383_v12 = vrot.slane %v32301_v60, 7  ;;  %v17003_v53 = vadd.f32 %v32200_v41, %v32003_v62  ;;  %27929 = vmatpush3.bf16.msra.mxu1 %v28630_v45 }
 0x3dd   : > { %24306 = vmatmul.mubr.bf16.vlgmr.msra.gmra.mrb[156].mxu0 %v20963_v9  ;;  %v17361_v16 = vcombine.high %v32274_v35, %v32274_v35  ;;  %v21377_v39 = vsel %vm32203_vm13, %v21375_v24, %v21376_v3  ;;  %v32324_v50 = vcombine.high %v32310_v57, %v32310_v57  ;;  %v32328_v52 = vcombine.high %v32301_v60, %v32301_v60 }
 0x3de   : > { %v27404_v38 = vpack.c.bf16 %v17802_v43, %v17802_v43  ;;  %v19223_v54 = vcombine.low %v19215_v29, %v19222_v19  ;;  %v21381_v62 = vsel %vm32203_vm13, %v27109_v55, %v21380_v5  ;;  %v21382_v41 = vrot.slane %v21380_v5, 2  ;;  %28214 = vmatpush3.bf16.msra.mxu0 %v28631_v26 }
 0x3df   : > { %v21495_v35 = vcombine.low %v21374_v28, %v21377_v39  ;;  %v17056_v51 = vmax.f32 %v17003_v53, 0.0  ;;  %v18874_v22 = vshrl.u32 %v32259_v48, 16  ;;  %v18880_v44 = vshll.u32 %v32288_v1, 16  ;;  %28215 = vmatprep.subr.bf16.mxu0 %v34126_v46 }
 0x3e0   : > { %18125 = vst [vmem:[#allocation3 + $0x44] sm:$0x7] %v27404_v38  ;;  %24103 = vmatprep.mubr.bf16.mxu1 %v19223_v54  ;;  %v18885_v40 = vshrl.u32 %v32310_v57, 16  ;;  %v18888_v20 = vshll.u32 %v32310_v57, 16  ;;  %v21384_v10 = vsel %vm32203_vm13, %v21382_v41, %v21383_v12  ;;  %v18894_v38 = vshll.u32 %v32324_v50, 16 }
 0x3e1   : > { %v32332_v7 = vpop.f32.mrb[152].mxu0  ;;  %24104 = vmatmul.mubr.bf16.gmra.mrb[108].mxu1 %v18397_v47  ;;  %v21503_v59 = vrot.slane %v21495_v35, %v32031_v14  ;;  %v17362_v42 = vcombine.high %v17056_v51, %v17056_v51  ;;  %v17369_v48 = vrot.slane %v17056_v51, %v32031_v14  ;;  %v21496_v1 = vcombine.low %v21381_v62, %v21384_v10  ;;  %v28634_v10 = vld [vmem:[#allocation9 + $0x210] sm:$0xff]  }
 0x3e2   : > { %v28211_v36 = vpop.f32.mrb[153].mxu0  ;;  %v18876_v9 = vrot.slane %v18874_v22, 6  ;;  %v18882_v43 = vrot.slane %v18880_v44, 7  ;;  %v18887_v2 = vrot.slane %v18885_v40, 6  ;;  %v18890_v47 = vrot.slane %v18888_v20, 7  ;;  %28216 = vmatpush3.bf16.msra.mxu0 %v28632_v15 }
 0x3e3   : > { %v17037_v32 = vpop.f32.mrb[154].mxu0  ;;  %v32346_v49 = vrot.slane %v17362_v42, %v32031_v14  ;;  %v17377_v61 = vcombine.high %v17369_v48, %v17369_v48  ;;  %v17803_v29 = vcombine.low %v17361_v16, %v17369_v48  ;;  %v21510_v3 = vrot.slane %v21496_v1, %v32031_v14  ;;  %28217 = vmatprep.subr.bf16.mxu0 %v34126_v46  ;;  %v26958_v20 = vld.sshfl [vmem:[#allocation3 + $0x1c] sm:$0x3 pattern:$0x76325410]  ;;  %v28633_v36 = vld [vmem:[#allocation9 + $0xf0] sm:$0xff]  }
 0x3e4   : > { %v28212_v8 = vpop.f32.mrb[155].mxu0  ;;  %v18877_v55 = vor.u32 %v18876_v9, %v32279_v17  ;;  %v18898_v19 = vshrl.u32 %v32324_v50, 16  ;;  %v18891_v45 = vor.u32 %v18890_v47, %v18887_v2  ;;  %v18904_v5 = vshll.u32 %v32301_v60, 16  ;;  %27930 = vmatprep.subr.bf16.mxu1 %v28633_v36 }
 0x3e5   : > { %v17804_v28 = vcombine.low %v17377_v61, %v32346_v49  ;;  %v17811_v24 = vrot.slane %v17803_v29, %v32031_v14  ;;  %v21511_v53 = vcombine.low %v21503_v59, %v21510_v3  ;;  %v18896_v26 = vrot.slane %v18894_v38, 7  ;;  %v26956_v29 = vld.sshfl [vmem:[#allocation3 + $0x14] sm:$0x3 pattern:$0x76325410]  ;;  %v28635_v38 = vld [vmem:[#allocation9 + $0xb0] sm:$0xff]  }
 0x3e6   : > { %v18878_v16 = vrot.slane %v18877_v55, 2  ;;  %v18900_v54 = vrot.slane %v18898_v19, 6  ;;  %v18892_v17 = vrot.slane %v18891_v45, 2  ;;  %v18906_v62 = vrot.slane %v18904_v5, 7  ;;  %28218 = vmatpush3.bf16.msra.mxu0 %v28634_v10  ;;  %27931 = vmatpush3.bf16.msra.mxu1 %v28635_v38 }
 0x3e7   : > { %v17818_v39 = vrot.slane %v17804_v28, %v32031_v14  ;;  %v18908_v41 = vshrl.u32 %v32301_v60, 16  ;;  %24313 = vmatprep.mubr.bf16.mxu0 %v21511_v53  ;;  %v18914_v15 = vshll.u32 %v32328_v52, 16  ;;  %v17006_v9 = vadd.f32 %v32217_v23, %v32005_v34  ;;  %28219 = vmatprep.subr.bf16.mxu0 %v34126_v46  ;;  %v32379_v5 = vld.sshfl [vmem:[#allocation3 + $0x24] sm:$0x13 pattern:$0x76325410] }
 0x3e8   : > { %v18883_v35 = vsel %vm32111_vm6, %v18878_v16, %v18882_v43  ;;  %v18901_v51 = vor.u32 %v18900_v54, %v18896_v26  ;;  %v18897_v44 = vsel %vm32111_vm6, %v18892_v17, %v18896_v26  ;;  %v27089_v43 = vld.sshfl [vmem:[#allocation3 + $0x20] sm:$0x32 pattern:$0x76325410]  ;;  %v17378_v61 = vcombine.high %v32346_v49, %v32346_v49  ;;  %v28636_v17 = vld [vmem:[#allocation9 + $0x218] sm:$0xff]  }
 0x3e9   : > { %v17819_v22 = vcombine.low %v17811_v24, %v17818_v39  ;;  %v18910_v40 = vrot.slane %v18908_v41, 6  ;;  %v18916_v42 = vrot.slane %v18914_v15, 7  ;;  %v19224_v48 = vcombine.low %v18883_v35, %v18897_v44 }
 0x3ea   : > { %v18902_v59 = vrot.slane %v18901_v51, 2  ;;  %v17057_v55 = vmax.f32 %v17006_v9, 0.0  ;;  %v18398_v34 = vcombine.low %v26956_v29, %v32310_v57  ;;  %v18399_v23 = vcombine.low %v32324_v50, %v26958_v20  ;;  %28220 = vmatpush3.bf16.msra.mxu0 %v28636_v17  ;;  %v32429_v17 = vld.sshfl [vmem:[#allocation3 + $0x28] sm:$0x33 pattern:$0x76325410] }
 0x3eb   : > { %v27405_v32 = vpack.c.bf16 %v17819_v22, %v17819_v22  ;;  %v18911_v1 = vor.u32 %v18910_v40, %v18906_v62  ;;  %v19232_v8 = vrot.slane %v19224_v48, %v32031_v14  ;;  %v21221_v19 = vcombine.high %v27089_v43, %v27089_v43  ;;  %28221 = vmatprep.subr.bf16.mxu0 %v34126_v46 }
 0x3ec   : > { %v18907_v2 = vsel %vm32111_vm6, %v18902_v59, %v18906_v62  ;;  %v17379_v49 = vcombine.high %v17057_v55, %v17057_v55  ;;  %v17386_v45 = vrot.slane %v17057_v55, %v32031_v14  ;;  %v18406_v16 = vrot.slane %v18398_v34, %v32031_v14 }
 0x3ed   : > { %18126 = vst [vmem:[#allocation3 + $0x48] sm:$0xf] %v27405_v32  ;;  %v18912_v47 = vrot.slane %v18911_v1, 2  ;;  %v20965_v3 = vcombine.low %v18897_v44, %v18907_v2  ;;  %v18413_v57 = vrot.slane %v18399_v23, %v32031_v14  ;;  %v20964_v50 = vcombine.low %v32297_v11, %v18883_v35 }
 0x3ee   : > { %v17393_v26 = vrot.slane %v17379_v49, %v32031_v14  ;;  %v17394_v54 = vcombine.high %v17386_v45, %v17386_v45  ;;  %v17820_v39 = vcombine.low %v17378_v61, %v17386_v45  ;;  %v32389_v51 = vcombine.high %v32379_v5, %v32379_v5 }
 0x3ef   : > { %v32375_v28 = vsel %vm32111_vm6, %v18912_v47, %v18916_v42  ;;  %v20979_v24 = vrot.slane %v20965_v3, %v32031_v14  ;;  %v18414_v41 = vcombine.low %v18406_v16, %v18413_v57  ;;  %v21385_v15 = vrot.slane %v21383_v12, 2  ;;  %v32401_v12 = vld.sshfl [vmem:[#allocation3 + $0x20] sm:$0x33 pattern:$0x76325410] }
 0x3f0   : > { %v19225_v53 = vcombine.low %v18907_v2, %v32375_v28  ;;  %v20972_v22 = vrot.slane %v20964_v50, %v32031_v14  ;;  %v17395_v44 = vcombine.high %v17393_v26, %v17393_v26  ;;  %v17827_v11 = vrot.slane %v17820_v39, %v32031_v14 }
 0x3f1   : > { %v17834_v35 = vrot.slane %v17394_v54, %v32031_v14  ;;  %v21386_v20 = vrot.slane %v32328_v52, 7  ;;  %v27110_v36 = vrot.slane %v27089_v43, 9  ;;  %v21390_v10 = vrot.slane %v21221_v19, 7 }
 0x3f2   : > { %v19239_v62 = vrot.slane %v19225_v53, %v32031_v14  ;;  %v20980_v59 = vcombine.low %v20972_v22, %v20979_v24  ;;  %v32398_v48 = vcombine.low %v17393_v26, %v17395_v44  ;;  %v21393_v60 = vrot.slane %v32379_v5, 7  ;;  %v28637_v44 = vld [vmem:[#allocation9 + $0x220] sm:$0xff]  }
 0x3f3   : > { %v17835_v42 = vcombine.low %v17827_v11, %v17834_v35  ;;  %v21387_v32 = vsel %vm32203_vm13, %v21385_v15, %v21386_v20  ;;  %v21391_v1 = vsel %vm32203_vm13, %v27110_v36, %v21390_v10  ;;  %v21392_v52 = vrot.slane %v21390_v10, 2  ;;  %v28638_v11 = vld [vmem:[#allocation9 + $0xf8] sm:$0xff]   ;;  %28222 = vmatpush3.bf16.msra.mxu0 %v28637_v44  ;;  %v27093_v44 = vld.sshfl [vmem:[#allocation3 + $0x30] sm:$0x32 pattern:$0x76325410] }
 0x3f4   : > { %v19240_v40 = vcombine.low %v19232_v8, %v19239_v62  ;;  %v21396_v9 = vrot.slane %v32389_v51, 7  ;;  %24314 = vmatmul.mubr.bf16.gmra.mrb[160].mxu0 %v20980_v59  ;;  %v17844_v43 = vrot.slane %v32398_v48, %v32031_v14  ;;  %v21395_v8 = vrot.slane %v21393_v60, 2  ;;  %v28639_v36 = vld [vmem:[#allocation9 + $0xb8] sm:$0xff]   ;;  %27932 = vmatprep.subr.bf16.mxu1 %v28638_v11 }
 0x3f5   : > { %v27406_v2 = vpack.c.bf16 %v17835_v42, %v17835_v42  ;;  %v21512_v61 = vcombine.low %v21387_v32, %v21391_v1  ;;  %v21394_v29 = vsel %vm32203_vm13, %v21392_v52, %v21393_v60  ;;  %v17011_v47 = vadd.f32 %v32238_v18, %v32009_v63  ;;  %27933 = vmatpush3.bf16.msra.mxu1 %v28639_v36 }
 0x3f6   : > { %24111 = vmatprep.mubr.bf16.mxu1 %v19240_v40  ;;  %v32416_v3 = vcombine.high %v32401_v12, %v32401_v12  ;;  %v20642_v55 = vshrl.u32 %v32401_v12, 16  ;;  %v21397_v38 = vsel %vm32203_vm13, %v21395_v8, %v21396_v9  ;;  %v20645_v23 = vshll.u32 %v32401_v12, 16  ;;  %28223 = vmatprep.subr.bf16.mxu0 %v34126_v46 }
 0x3f7   : > { %24112 = vmatmul.mubr.bf16.gmra.mrb[112].mxu1 %v18414_v41  ;;  %18127 = vst [vmem:[#allocation3 + $0x4c] sm:$0x7] %v27406_v2  ;;  %v21520_v34 = vrot.slane %v21512_v61, %v32031_v14  ;;  %v20661_v19 = vshll.u32 %v32379_v5, 16  ;;  %v21513_v24 = vcombine.low %v21394_v29, %v21397_v38  ;;  %v17058_v49 = vmax.f32 %v17011_v47, 0.0 }
 0x3f8   : > { %v20644_v45 = vrot.slane %v20642_v55, 6  ;;  %v20651_v63 = vshll.u32 %v32416_v3, 16  ;;  %v20647_v18 = vrot.slane %v20645_v23, 7  ;;  %v20655_v53 = vshrl.u32 %v32416_v3, 16 }
 0x3f9   : > { %v20663_v16 = vrot.slane %v20661_v19, 7  ;;  %v20665_v57 = vshrl.u32 %v32379_v5, 16  ;;  %v21527_v50 = vrot.slane %v21513_v24, %v32031_v14  ;;  %v17396_v26 = vcombine.high %v17058_v49, %v17058_v49 }
 0x3fa   : > { %v17403_v54 = vrot.slane %v17058_v49, %v32031_v14  ;;  %v20653_v39 = vrot.slane %v20651_v63, 7  ;;  %v20648_v62 = vor.u32 %v20647_v18, %v20644_v45  ;;  %v20657_v41 = vrot.slane %v20655_v53, 6  ;;  %v28640_v45 = vld [vmem:[#allocation9 + $0x228] sm:$0xff]  }
 0x3fb   : > { %v20667_v15 = vrot.slane %v20665_v57, 6  ;;  %v20671_v22 = vshll.u32 %v32389_v51, 16  ;;  %v21528_v35 = vcombine.low %v21520_v34, %v21527_v50  ;;  %v17410_v40 = vrot.slane %v17396_v26, %v32031_v14  ;;  %28224 = vmatpush3.bf16.msra.mxu0 %v28640_v45 }
 0x3fc   : > { %v17411_v20 = vcombine.high %v17403_v54, %v17403_v54  ;;  %v17014_v5 = vadd.f32 %v32244_v30, %v32011_v6  ;;  %v20649_v10 = vrot.slane %v20648_v62, 2  ;;  %v20658_v59 = vor.u32 %v20657_v41, %v20653_v39  ;;  %28225 = vmatprep.subr.bf16.mxu0 %v34126_v46 }
 0x3fd   : > { %v20668_v42 = vor.u32 %v20667_v15, %v20663_v16  ;;  %v20673_v48 = vrot.slane %v20671_v22, 7  ;;  %24321 = vmatprep.mubr.bf16.mxu0 %v21528_v35  ;;  %v17412_v60 = vcombine.high %v17410_v40, %v17410_v40  ;;  %v32437_v1 = vcombine.high %v32429_v17, %v32429_v17 }
 0x3fe   : > { %v17837_v32 = vcombine.low %v17403_v54, %v17411_v20  ;;  %v17059_v51 = vmax.f32 %v17014_v5, 0.0  ;;  %v20654_v52 = vsel %vm32111_vm6, %v20649_v10, %v20653_v39  ;;  %v20659_v6 = vrot.slane %v20658_v59, 2  ;;  %v32465_v39 = vld.sshfl [vmem:[#allocation3 + $0x2c] sm:$0x13 pattern:$0x76325410] }
 0x3ff   : > { %v20669_v30 = vrot.slane %v20668_v42, 2  ;;  %v17853_v2 = vcombine.low %v17410_v40, %v17412_v60  ;;  %v20981_v8 = vcombine.low %v32375_v28, %v20654_v52  ;;  %v18953_v53 = vshrl.u32 %v32429_v17, 16  ;;  %v26960_v5 = vld.sshfl [vmem:[#allocation3 + $0x24] sm:$0x3 pattern:$0x76325410] }
 0x400   : > { %v17851_v9 = vrot.slane %v17837_v32, %v32031_v14  ;;  %v17413_v61 = vcombine.high %v17059_v51, %v17059_v51  ;;  %v20664_v29 = vsel %vm32111_vm6, %v20659_v6, %v20663_v16  ;;  %v17420_v55 = vrot.slane %v17059_v51, %v32031_v14  ;;  %v27091_v16 = vld.sshfl [vmem:[#allocation3 + $0x28] sm:$0x32 pattern:$0x76325410] }
 0x401   : > { %v32448_v47 = vsel %vm32111_vm6, %v20669_v30, %v20673_v48  ;;  %v20989_v23 = vrot.slane %v20981_v8, %v32031_v14  ;;  %v17860_v28 = vrot.slane %v17853_v2, %v32031_v14  ;;  %v18962_v26 = vshll.u32 %v32437_v1, 16 }
 0x402   : > { %v17852_v38 = vcombine.low %v17844_v43, %v17851_v9  ;;  %v20982_v34 = vcombine.low %v20664_v29, %v32448_v47  ;;  %v32454_v19 = vrot.slane %v17413_v61, %v32031_v14  ;;  %v17428_v24 = vcombine.high %v17420_v55, %v17420_v55 }
 0x403   : > { %v17867_v49 = vrot.slane %v17420_v55, %v32031_v14  ;;  %v18956_v43 = vshll.u32 %v32429_v17, 16  ;;  %v19241_v54 = vcombine.low %v20654_v52, %v20664_v29  ;;  %v18955_v41 = vrot.slane %v18953_v53, 6 }
 0x404   : > { %v27407_v63 = vpack.c.bf16 %v17852_v38, %v17852_v38  ;;  %v20996_v18 = vrot.slane %v20982_v34, %v32031_v14  ;;  %v32462_v50 = vcombine.low %v17428_v24, %v32454_v19  ;;  %v18415_v22 = vcombine.low %v32401_v12, %v32416_v3  ;;  %v28641_v24 = vld [vmem:[#allocation9 + $0x230] sm:$0xff]  }
 0x405   : > { %v17868_v57 = vcombine.low %v17860_v28, %v17867_v49  ;;  %v18958_v15 = vrot.slane %v18956_v43, 7  ;;  %v32472_v40 = vrot.slane %v18962_v26, 7  ;;  %v19249_v20 = vrot.slane %v19241_v54, %v32031_v14  ;;  %28226 = vmatpush3.bf16.msra.mxu0 %v28641_v24 }
 0x406   : > { %18128 = vst [vmem:[#allocation3 + $0x50] sm:$0xf] %v27407_v63  ;;  %v20997_v62 = vcombine.low %v20989_v23, %v20996_v18  ;;  %v17877_v11 = vrot.slane %v32462_v50, %v32031_v14  ;;  %v18416_v10 = vcombine.low %v26960_v5, %v32429_v17  ;;  %v18423_v59 = vrot.slane %v18415_v22, %v32031_v14  ;;  %v32502_v23 = vld.sshfl [vmem:[#allocation3 + $0x30] sm:$0x33 pattern:$0x76325410] }
 0x407   : > { %v27408_v35 = vpack.c.bf16 %v17868_v57, %v17868_v57  ;;  %v18959_v36 = vor.u32 %v18958_v15, %v18955_v41  ;;  %v21237_v42 = vcombine.high %v27091_v16, %v27091_v16  ;;  %v32479_v12 = vcombine.high %v32465_v39, %v32465_v39  ;;  %v28642_v63 = vld [vmem:[#allocation9 + $0x1c0] sm:$0xff]   ;;  %v28644_v57 = vld [vmem:[#allocation9 + $0x238] sm:$0xff]   ;;  %28227 = vmatprep.subr.bf16.mxu0 %v34126_v46 }
 0x408   : > { %24322 = vmatmul.mubr.bf16.gmra.mrb[164].mxu0 %v20997_v62  ;;  %v21253_v3 = vcombine.high %v27093_v44, %v27093_v44  ;;  %v27111_v48 = vrot.slane %v27091_v16, 9  ;;  %v21403_v60 = vrot.slane %v32465_v39, 7  ;;  %v18430_v51 = vrot.slane %v18416_v10, %v32031_v14  ;;  %28058 = vmatprep.subr.bf16.mxu1 %v28642_v63 }
 0x409   : > { %18129 = vst [vmem:[#allocation3 + $0x54] sm:$0x7] %v27408_v35  ;;  %v18960_v32 = vrot.slane %v18959_v36, 2  ;;  %v21400_v52 = vrot.slane %v21237_v42, 7  ;;  %v27112_v6 = vrot.slane %v27093_v44, 9  ;;  %v21406_v17 = vrot.slane %v32479_v12, 7  ;;  %28228 = vmatpush3.bf16.msra.mxu0 %v28644_v57 }
 0x40a   : > { %v21405_v30 = vrot.slane %v21403_v60, 2  ;;  %v32484_v9 = vrot.slane %v21253_v3, 7  ;;  %v17019_v2 = vadd.f32 %v32263_v0, %v32016_v58  ;;  %v18431_v61 = vcombine.low %v18423_v59, %v18430_v51 }
 0x40b   : > { %v32491_v8 = vsel %vm32111_vm6, %v18960_v32, %v32472_v40  ;;  %v21401_v29 = vsel %vm32203_vm13, %v27111_v48, %v21400_v52  ;;  %v21402_v55 = vrot.slane %v21400_v52, 2  ;;  %v17429_v45 = vcombine.high %v32454_v19, %v32454_v19 }
 0x40c   : > { %v19242_v38 = vcombine.low %v32448_v47, %v32491_v8  ;;  %v21407_v34 = vsel %vm32203_vm13, %v21405_v30, %v21406_v17  ;;  %v21411_v58 = vsel %vm32203_vm13, %v27112_v6, %v32484_v9  ;;  %v17060_v0 = vmax.f32 %v17019_v2, 0.0 }
 0x40d   : > { %v21404_v28 = vsel %vm32203_vm13, %v21402_v55, %v21403_v60  ;;  %v21530_v49 = vcombine.low %v21407_v34, %v21411_v58  ;;  %v17022_v47 = vadd.f32 %v32269_v13, %v32018_v56  ;;  %v32515_v62 = vcombine.high %v32502_v23, %v32502_v23 }
 0x40e   : > { %v19256_v18 = vrot.slane %v19242_v38, %v32031_v14  ;;  %v21529_v53 = vcombine.low %v21401_v29, %v21404_v28  ;;  %v17430_v43 = vcombine.high %v17060_v0, %v17060_v0  ;;  %v17437_v16 = vrot.slane %v17060_v0, %v32031_v14 }
 0x40f   : > { %v21544_v26 = vrot.slane %v21530_v49, %v32031_v14  ;;  %v17061_v54 = vmax.f32 %v17022_v47, 0.0  ;;  %v20689_v19 = vshrl.u32 %v32437_v1, 16  ;;  %v20695_v42 = vshll.u32 %v32465_v39, 16 }
 0x410   : > { %v19257_v56 = vcombine.low %v19249_v20, %v19256_v18  ;;  %v21537_v13 = vrot.slane %v21529_v53, %v32031_v14  ;;  %v17444_v41 = vrot.slane %v17430_v43, %v32031_v14  ;;  %v17445_v15 = vcombine.high %v17437_v16, %v17437_v16  ;;  %v26962_v49 = vld.sshfl [vmem:[#allocation3 + $0x2c] sm:$0x3 pattern:$0x76325410] }
 0x411   : > { %v17870_v22 = vcombine.low %v17429_v45, %v17437_v16  ;;  %v17447_v44 = vcombine.high %v17061_v54, %v17061_v54  ;;  %v17454_v35 = vrot.slane %v17061_v54, %v32031_v14  ;;  %v20691_v5 = vrot.slane %v20689_v19, 6  ;;  %v32541_v18 = vld.sshfl [vmem:[#allocation3 + $0x34] sm:$0x13 pattern:$0x76325410] }
 0x412   : > { %24119 = vmatprep.mubr.bf16.mxu1 %v19257_v56  ;;  %v21545_v36 = vcombine.low %v21537_v13, %v21544_v26  ;;  %v17446_v10 = vcombine.high %v17444_v41, %v17444_v41  ;;  %v17886_v59 = vcombine.low %v17445_v15, %v17444_v41  ;;  %v20697_v52 = vrot.slane %v20695_v42, 7 }
 0x413   : > { %24120 = vmatmul.mubr.bf16.gmra.mrb[116].mxu1 %v18431_v61  ;;  %v17884_v20 = vrot.slane %v17870_v22, %v32031_v14  ;;  %v17461_v3 = vrot.slane %v17447_v44, %v32031_v14  ;;  %v17462_v48 = vcombine.high %v17454_v35, %v17454_v35  ;;  %v20692_v60 = vor.u32 %v20691_v5, %v32472_v40 }
 0x414   : > { %24329 = vmatprep.mubr.bf16.mxu0 %v21545_v36  ;;  %v17893_v32 = vrot.slane %v17886_v59, %v32031_v14  ;;  %v17900_v51 = vrot.slane %v17446_v10, %v32031_v14  ;;  %v20699_v6 = vshrl.u32 %v32465_v39, 16  ;;  %v20705_v38 = vshll.u32 %v32479_v12, 16 }
 0x415   : > { %v17885_v30 = vcombine.low %v17877_v11, %v17884_v20  ;;  %v17463_v17 = vcombine.high %v17461_v3, %v17461_v3  ;;  %v17902_v2 = vcombine.low %v17454_v35, %v17462_v48  ;;  %v20693_v61 = vrot.slane %v20692_v60, 2  ;;  %v27095_v35 = vld.sshfl [vmem:[#allocation3 + $0x38] sm:$0x32 pattern:$0x76325410] }
 0x416   : > { %v17901_v29 = vcombine.low %v17893_v32, %v17900_v51  ;;  %v20701_v55 = vrot.slane %v20699_v6, 6  ;;  %v20710_v40 = vshrl.u32 %v32502_v23, 16  ;;  %v20707_v50 = vrot.slane %v20705_v38, 7 }
 0x417   : > { %v27409_v34 = vpack.c.bf16 %v17885_v30, %v17885_v30  ;;  %v17903_v58 = vcombine.low %v17461_v3, %v17463_v17  ;;  %v17910_v0 = vrot.slane %v17902_v2, %v32031_v14  ;;  %v20698_v39 = vsel %vm32111_vm6, %v20693_v61, %v20697_v52  ;;  %v32569_v30 = vld.sshfl [vmem:[#allocation3 + $0x3c] sm:$0x13 pattern:$0x76325410] }
 0x418   : > { %v27410_v24 = vpack.c.bf16 %v17901_v29, %v17901_v29  ;;  %v20702_v28 = vor.u32 %v20701_v55, %v20697_v52  ;;  %v20712_v11 = vrot.slane %v20710_v40, 6  ;;  %v20713_v47 = vshll.u32 %v32502_v23, 16 }
 0x419   : > { %18130 = vst [vmem:[#allocation3 + $0x58] sm:$0xf] %v27409_v34  ;;  %v17917_v45 = vrot.slane %v17903_v58, %v32031_v14  ;;  %v20719_v12 = vshll.u32 %v32515_v62, 16  ;;  %v20998_v63 = vcombine.low %v32491_v8, %v20698_v39  ;;  %v19000_v43 = vshrl.u32 %v32515_v62, 16 }
 0x41a   : > { %18131 = vst [vmem:[#allocation3 + $0x5c] sm:$0x7] %v27410_v24  ;;  %v20703_v53 = vrot.slane %v20702_v28, 2  ;;  %v20715_v57 = vrot.slane %v20713_v47, 7  ;;  %v19006_v15 = vshll.u32 %v32541_v18, 16  ;;  %v18432_v8 = vcombine.low %v32437_v1, %v26962_v49 }
 0x41b   : > { %v17918_v16 = vcombine.low %v17910_v0, %v17917_v45  ;;  %v20721_v26 = vrot.slane %v20719_v12, 7  ;;  %v21006_v54 = vrot.slane %v20998_v63, %v32031_v14  ;;  %v19002_v56 = vrot.slane %v19000_v43, 6  ;;  %v32578_v24 = vld.sshfl [vmem:[#allocation3 + $0x38] sm:$0x33 pattern:$0x76325410] }
 0x41c   : > { %v20708_v19 = vsel %vm32111_vm6, %v20703_v53, %v20707_v50  ;;  %v20716_v41 = vor.u32 %v20715_v57, %v20712_v11  ;;  %v18433_v44 = vcombine.low %v32502_v23, %v32515_v62  ;;  %v32551_v36 = vrot.slane %v19006_v15, 7 }
 0x41d   : > { %v27411_v13 = vpack.c.bf16 %v17918_v16, %v17918_v16  ;;  %v19003_v22 = vor.u32 %v20721_v26, %v19002_v56  ;;  %v18440_v10 = vrot.slane %v18432_v8, %v32031_v14  ;;  %v17027_v59 = vadd.f32 %v32290_v31, %v32022_v25 }
 0x41e   : > { %v20717_v5 = vrot.slane %v20716_v41, 2  ;;  %v18447_v20 = vrot.slane %v18433_v44, %v32031_v14  ;;  %v21261_v1 = vcombine.high %v32541_v18, %v32541_v18  ;;  %v21269_v62 = vcombine.high %v27095_v35, %v27095_v35 }
 0x41f   : > { %18132 = vst [vmem:[#allocation3 + $0x60] sm:$0xf] %v27411_v13  ;;  %v19004_v42 = vrot.slane %v19003_v22, 2  ;;  %v17062_v23 = vmax.f32 %v17027_v59, 0.0  ;;  %v21412_v48 = vrot.slane %v32484_v9, 2  ;;  %v19258_v31 = vcombine.low %v20698_v39, %v20708_v19 }
 0x420   : > { %v20722_v3 = vsel %vm32111_vm6, %v20717_v5, %v20721_v26  ;;  %v18448_v25 = vcombine.low %v18440_v10, %v18447_v20  ;;  %v21413_v2 = vrot.slane %v32541_v18, 7  ;;  %v21416_v9 = vrot.slane %v21261_v1, 7 }
 0x421   : > { %v20999_v60 = vcombine.low %v20708_v19, %v20722_v3  ;;  %v32565_v32 = vsel %vm32111_vm6, %v19004_v42, %v32551_v36  ;;  %v17464_v52 = vcombine.high %v17062_v23, %v17062_v23  ;;  %v17471_v6 = vrot.slane %v17062_v23, %v32031_v14 }
 0x422   : > { %v19259_v51 = vcombine.low %v20722_v3, %v32565_v32  ;;  %v27113_v61 = vrot.slane %v27095_v35, 9  ;;  %v19266_v29 = vrot.slane %v19258_v31, %v32031_v14  ;;  %v21414_v58 = vsel %vm32203_vm13, %v21412_v48, %v21413_v2 }
 0x423   : > { %v21013_v17 = vrot.slane %v20999_v60, %v32031_v14  ;;  %v17478_v38 = vrot.slane %v17464_v52, %v32031_v14  ;;  %v17479_v40 = vcombine.high %v17471_v6, %v17471_v6  ;;  %v21415_v0 = vrot.slane %v21413_v2, 2 }
 0x424   : > { %v19273_v55 = vrot.slane %v19259_v51, %v32031_v14  ;;  %v21420_v39 = vrot.slane %v21269_v62, 7  ;;  %v21423_v49 = vrot.slane %v32569_v30, 7  ;;  %v17030_v63 = vadd.f32 %v32304_v21, %v32025_v33 }
 0x425   : > { %v21014_v34 = vcombine.low %v21006_v54, %v21013_v17  ;;  %v17919_v50 = vcombine.low %v17471_v6, %v17479_v40  ;;  %v17933_v11 = vrot.slane %v17478_v38, %v32031_v14  ;;  %v21417_v45 = vsel %vm32203_vm13, %v21415_v0, %v21416_v9 }
 0x426   : > { %v19274_v28 = vcombine.low %v19266_v29, %v19273_v55  ;;  %v21421_v47 = vsel %vm32203_vm13, %v27113_v61, %v21420_v39  ;;  %v21422_v12 = vrot.slane %v21420_v39, 2  ;;  %v21546_v43 = vcombine.low %v21414_v58, %v21417_v45  ;;  %v26964_v39 = vld.sshfl [vmem:[#allocation3 + $0x34] sm:$0x3 pattern:$0x76325410] }
 0x427   : > { %24330 = vmatmul.mubr.bf16.gmra.mrb[168].mxu0 %v21014_v34  ;;  %v17926_v53 = vrot.slane %v17919_v50, %v32031_v14  ;;  %v17480_v16 = vcombine.high %v17478_v38, %v17478_v38  ;;  %v32591_v57 = vcombine.high %v32578_v24, %v32578_v24  ;;  %v17063_v54 = vmax.f32 %v17030_v63, 0.0  ;;  %v26966_v63 = vld.sshfl [vmem:[#allocation3 + $0x3c] sm:$0x3 pattern:$0x76325410] }
 0x428   : > { %24127 = vmatprep.mubr.bf16.mxu1 %v19274_v28  ;;  %v21424_v26 = vsel %vm32203_vm13, %v21422_v12, %v21423_v49  ;;  %v32599_v19 = vcombine.high %v32569_v30, %v32569_v30  ;;  %v19010_v33 = vshrl.u32 %v32541_v18, 16  ;;  %v21554_v13 = vrot.slane %v21546_v43, %v32031_v14 }
 0x429   : > { %24128 = vmatmul.mubr.bf16.gmra.mrb[120].mxu1 %v18448_v25  ;;  %v17934_v21 = vcombine.low %v17926_v53, %v17933_v11  ;;  %v21547_v56 = vcombine.low %v21421_v47, %v21424_v26  ;;  %v19016_v41 = vshll.u32 %v21261_v1, 16  ;;  %v17481_v15 = vcombine.high %v17063_v54, %v17063_v54  ;;  %v27097_v26 = vld.sshfl [vmem:[#allocation3 + $0x40] sm:$0x32 pattern:$0x76325410] }
 0x42a   : > { %v17488_v8 = vrot.slane %v17063_v54, %v32031_v14  ;;  %v19012_v22 = vrot.slane %v19010_v33, 6  ;;  %v19021_v44 = vshrl.u32 %v32578_v24, 16  ;;  %v19024_v59 = vshll.u32 %v32578_v24, 16 }
 0x42b   : > { %v27412_v35 = vpack.c.bf16 %v17934_v21, %v17934_v21  ;;  %v21561_v5 = vrot.slane %v21547_v56, %v32031_v14  ;;  %v19018_v10 = vrot.slane %v19016_v41, 7  ;;  %v32608_v42 = vrot.slane %v17481_v15, %v32031_v14 }
 0x42c   : > { %v17496_v18 = vcombine.high %v17488_v8, %v17488_v8  ;;  %v17935_v20 = vcombine.low %v17480_v16, %v17488_v8  ;;  %v19013_v3 = vor.u32 %v19012_v22, %v32551_v36  ;;  %v19023_v23 = vrot.slane %v19021_v44, 6 }
 0x42d   : > { %18133 = vst [vmem:[#allocation3 + $0x64] sm:$0x7] %v27412_v35  ;;  %v21562_v1 = vcombine.low %v21554_v13, %v21561_v5  ;;  %v19026_v62 = vrot.slane %v19024_v59, 7  ;;  %v19030_v48 = vshll.u32 %v32591_v57, 16  ;;  %v19034_v51 = vshrl.u32 %v32591_v57, 16 }
 0x42e   : > { %v17936_v60 = vcombine.low %v17496_v18, %v32608_v42  ;;  %v17943_v25 = vrot.slane %v17935_v20, %v32031_v14  ;;  %v19014_v31 = vrot.slane %v19013_v3, 2  ;;  %v19040_v17 = vshll.u32 %v32569_v30, 16 }
 0x42f   : > { %24337 = vmatprep.mubr.bf16.mxu0 %v21562_v1  ;;  %v19027_v52 = vor.u32 %v19026_v62, %v19023_v23  ;;  %v19032_v6 = vrot.slane %v19030_v48, 7  ;;  %v19044_v36 = vshrl.u32 %v32569_v30, 16  ;;  %v19036_v61 = vrot.slane %v19034_v51, 6 }
 0x430   : > { %v17950_v2 = vrot.slane %v17936_v60, %v32031_v14  ;;  %v19019_v9 = vsel %vm32111_vm6, %v19014_v31, %v19018_v10  ;;  %v19050_v29 = vshll.u32 %v32599_v19, 16  ;;  %v19042_v38 = vrot.slane %v19040_v17, 7  ;;  %v27073_v60 = vld.sshfl [vmem:[#allocation3 + $0x40] sm:$0x33 pattern:$0x76325410] }
 0x431   : > { %v19028_v55 = vrot.slane %v19027_v52, 2  ;;  %v19046_v40 = vrot.slane %v19044_v36, 6  ;;  %v19037_v58 = vor.u32 %v19036_v61, %v19032_v6  ;;  %v18449_v11 = vcombine.low %v26964_v39, %v32578_v24  ;;  %v27098_v24 = vld.sshfl [vmem:[#allocation3 + $0x44] sm:$0x13 pattern:$0x76325410] }
 0x432   : > { %v17951_v34 = vcombine.low %v17943_v25, %v17950_v2  ;;  %v19052_v0 = vrot.slane %v19050_v29, 7  ;;  %v18450_v43 = vcombine.low %v32591_v57, %v26966_v63  ;;  %v17035_v21 = vadd.f32 %v32332_v7, %v32027_v37 }
 0x433   : > { %v19033_v28 = vsel %vm32111_vm6, %v19028_v55, %v19032_v6  ;;  %v19047_v50 = vor.u32 %v19046_v40, %v19042_v38  ;;  %v19038_v47 = vrot.slane %v19037_v58, 2  ;;  %v18457_v16 = vrot.slane %v18449_v11, %v32031_v14 }
 0x434   : > { %v27413_v45 = vpack.c.bf16 %v17951_v34, %v17951_v34  ;;  %v19275_v12 = vcombine.low %v19019_v9, %v19033_v28  ;;  %v18464_v57 = vrot.slane %v18450_v43, %v32031_v14  ;;  %v17064_v15 = vmax.f32 %v17035_v21, 0.0 }
 0x435   : > { %v19048_v53 = vrot.slane %v19047_v50, 2  ;;  %v19043_v54 = vsel %vm32111_vm6, %v19038_v47, %v19042_v38  ;;  %v17497_v8 = vcombine.high %v32608_v42, %v32608_v42  ;;  %v21285_v22 = vcombine.high %v27097_v26, %v27097_v26 }
 0x436   : > { %18134 = vst [vmem:[#allocation3 + $0x68] sm:$0xf] %v27413_v45  ;;  %v19283_v33 = vrot.slane %v19275_v12, %v32031_v14  ;;  %v21016_v13 = vcombine.low %v19033_v28, %v19043_v54  ;;  %v18465_v35 = vcombine.low %v18457_v16, %v18464_v57  ;;  %v21293_v5 = vcombine.high %v27098_v24, %v27098_v24 }
 0x437   : > { %v32633_v56 = vsel %vm32111_vm6, %v19048_v53, %v19052_v0  ;;  %v21015_v7 = vcombine.low %v32565_v32, %v19019_v9  ;;  %v17504_v10 = vrot.slane %v17064_v15, %v32031_v14  ;;  %v21425_v59 = vrot.slane %v21423_v49, 2  ;;  %v26993_v0 = vld.sshfl [vmem:[#allocation3 + $0x48] sm:$0x33 pattern:$0x76325410] }
 0x438   : > { %v19276_v41 = vcombine.low %v19043_v54, %v32633_v56  ;;  %v21030_v44 = vrot.slane %v21016_v13, %v32031_v14  ;;  %v21426_v18 = vrot.slane %v32599_v19, 7  ;;  %v27114_v20 = vrot.slane %v27097_v26, 9  ;;  %v26968_v13 = vld.sshfl [vmem:[#allocation3 + $0x44] sm:$0x3 pattern:$0x76325410] }
 0x439   : > { %v21430_v3 = vrot.slane %v21285_v22, 7  ;;  %v21433_v1 = vrot.slane %v27098_v24, 7  ;;  %v21023_v23 = vrot.slane %v21015_v7, %v32031_v14  ;;  %v17505_v62 = vcombine.high %v17504_v10, %v17504_v10 }
 0x43a   : > { %v19290_v37 = vrot.slane %v19276_v41, %v32031_v14  ;;  %v17952_v48 = vcombine.low %v17497_v8, %v17504_v10  ;;  %v21427_v25 = vsel %vm32203_vm13, %v21425_v59, %v21426_v18  ;;  %v21436_v52 = vrot.slane %v21293_v5, 7 }
 0x43b   : > { %v21431_v32 = vsel %vm32203_vm13, %v27114_v20, %v21430_v3  ;;  %v21432_v31 = vrot.slane %v21430_v3, 2  ;;  %v21435_v30 = vrot.slane %v21433_v1, 2  ;;  %v21031_v49 = vcombine.low %v21023_v23, %v21030_v44 }
 0x43c   : > { %v19291_v42 = vcombine.low %v19283_v33, %v19290_v37  ;;  %v17959_v19 = vrot.slane %v17952_v48, %v32031_v14  ;;  %v17966_v51 = vrot.slane %v17505_v62, %v32031_v14  ;;  %v21563_v17 = vcombine.low %v21427_v25, %v21431_v32  ;;  %v27101_v48 = vld.sshfl [vmem:[#allocation3 + $0x50] sm:$0x32 pattern:$0x76325410] }
 0x43d   : > { %v21434_v6 = vsel %vm32203_vm13, %v21432_v31, %v21433_v1  ;;  %v20466_v36 = vcombine.high %v27073_v60, %v27073_v60  ;;  %v20778_v2 = vshrl.u32 %v27073_v60, 16  ;;  %24338 = vmatmul.mubr.bf16.gmra.mrb[172].mxu0 %v21031_v49  ;;  %v21437_v61 = vsel %vm32203_vm13, %v21435_v30, %v21436_v52  ;;  %v27100_v1 = vld.sshfl [vmem:[#allocation3 + $0x4c] sm:$0x13 pattern:$0x76325410] }
 0x43e   : > { %24135 = vmatprep.mubr.bf16.mxu1 %v19291_v42  ;;  %v17967_v9 = vcombine.low %v17959_v19, %v17966_v51  ;;  %v20781_v29 = vshll.u32 %v27073_v60, 16  ;;  %v20797_v55 = vshll.u32 %v27098_v24, 16  ;;  %v21564_v38 = vcombine.low %v21434_v6, %v21437_v61 }
 0x43f   : > { %24136 = vmatmul.mubr.bf16.gmra.mrb[124].mxu1 %v18465_v35  ;;  %v21571_v40 = vrot.slane %v21563_v17, %v32031_v14  ;;  %v20780_v34 = vrot.slane %v20778_v2, 6  ;;  %v20787_v58 = vshll.u32 %v20466_v36, 16  ;;  %v20791_v50 = vshrl.u32 %v20466_v36, 16 }
 0x440   : > { %v27414_v39 = vpack.c.bf16 %v17967_v9, %v17967_v9  ;;  %v20783_v28 = vrot.slane %v20781_v29, 7  ;;  %v20799_v11 = vrot.slane %v20797_v55, 7  ;;  %v21578_v45 = vrot.slane %v21564_v38, %v32031_v14  ;;  %v27099_v35 = vld.sshfl [vmem:[#allocation3 + $0x48] sm:$0x32 pattern:$0x76325410] }
 0x441   : > { %v20789_v47 = vrot.slane %v20787_v58, 7  ;;  %v20801_v12 = vshrl.u32 %v27098_v24, 16  ;;  %v20807_v63 = vshll.u32 %v21293_v5, 16  ;;  %v20793_v43 = vrot.slane %v20791_v50, 6 }
 0x442   : > { %18135 = vst [vmem:[#allocation3 + $0x6c] sm:$0x7] %v27414_v39  ;;  %v20784_v53 = vor.u32 %v20783_v28, %v20780_v34  ;;  %v32659_v16 = vcombine.high %v26993_v0, %v26993_v0  ;;  %v21579_v26 = vcombine.low %v21571_v40, %v21578_v45  ;;  %v19089_v21 = vshrl.u32 %v26993_v0, 16 }
 0x443   : > { %v20803_v54 = vrot.slane %v20801_v12, 6  ;;  %v20809_v33 = vrot.slane %v20807_v63, 7  ;;  %v20794_v41 = vor.u32 %v20793_v43, %v20789_v47  ;;  %v19092_v15 = vshll.u32 %v26993_v0, 16 }
 0x444   : > { %v20785_v57 = vrot.slane %v20784_v53, 2  ;;  %24345 = vmatprep.mubr.bf16.mxu0 %v21579_v26  ;;  %v19091_v22 = vrot.slane %v19089_v21, 6  ;;  %v19098_v44 = vshll.u32 %v32659_v16, 16  ;;  %v18466_v24 = vcombine.low %v27073_v60, %v20466_v36 }
 0x445   : > { %v20804_v8 = vor.u32 %v20803_v54, %v20799_v11  ;;  %v20795_v37 = vrot.slane %v20794_v41, 2  ;;  %v19094_v7 = vrot.slane %v19092_v15, 7  ;;  %v18467_v10 = vcombine.low %v26968_v13, %v26993_v0  ;;  %v32673_v36 = vld.sshfl [vmem:[#allocation3 + $0x50] sm:$0x33 pattern:$0x76325410] }
 0x446   : > { %v20790_v5 = vsel %vm32111_vm6, %v20785_v57, %v20789_v47  ;;  %v19100_v20 = vrot.slane %v19098_v44, 7  ;;  %v18474_v3 = vrot.slane %v18466_v24, %v32031_v14  ;;  %v21301_v60 = vcombine.high %v27099_v35, %v27099_v35 }
 0x447   : > { %v20805_v59 = vrot.slane %v20804_v8, 2  ;;  %v21032_v18 = vcombine.low %v32633_v56, %v20790_v5  ;;  %v20800_v42 = vsel %vm32111_vm6, %v20795_v37, %v20799_v11  ;;  %v19095_v23 = vor.u32 %v19094_v7, %v19091_v22  ;;  %v26970_v8 = vld.sshfl [vmem:[#allocation3 + $0x4c] sm:$0x3 pattern:$0x76325410] }
 0x448   : > { %v18481_v62 = vrot.slane %v18467_v10, %v32031_v14  ;;  %v19292_v31 = vcombine.low %v20790_v5, %v20800_v42  ;;  %v21309_v19 = vcombine.high %v27100_v1, %v27100_v1  ;;  %v21317_v52 = vcombine.high %v27101_v48, %v27101_v48  ;;  %v32697_v5 = vld.sshfl [vmem:[#allocation3 + $0x54] sm:$0x13 pattern:$0x76325410] }
 0x449   : > { %v20810_v25 = vsel %vm32111_vm6, %v20805_v59, %v20809_v33  ;;  %v21040_v32 = vrot.slane %v21032_v18, %v32031_v14  ;;  %v19096_v56 = vrot.slane %v19095_v23, 2  ;;  %v27115_v6 = vrot.slane %v27099_v35, 9 }
 0x44a   : > { %v21033_v30 = vcombine.low %v20800_v42, %v20810_v25  ;;  %v18482_v49 = vcombine.low %v18474_v3, %v18481_v62  ;;  %v19300_v51 = vrot.slane %v19292_v31, %v32031_v14  ;;  %v21440_v17 = vrot.slane %v21301_v60, 7  ;;  %v27103_v31 = vld.sshfl [vmem:[#allocation3 + $0x58] sm:$0x32 pattern:$0x76325410] }
 0x44b   : > { %v19101_v9 = vsel %vm32111_vm6, %v19096_v56, %v19100_v20  ;;  %v21443_v61 = vrot.slane %v27100_v1, 7  ;;  %v21446_v29 = vrot.slane %v21309_v19, 7  ;;  %v27116_v34 = vrot.slane %v27101_v48, 9 }
 0x44c   : > { %v21047_v2 = vrot.slane %v21033_v30, %v32031_v14  ;;  %v19293_v55 = vcombine.low %v20810_v25, %v19101_v9  ;;  %v21441_v38 = vsel %vm32203_vm13, %v27115_v6, %v21440_v17  ;;  %v21442_v40 = vrot.slane %v21440_v17, 2 }
 0x44d   : > { %v21445_v0 = vrot.slane %v21443_v61, 2  ;;  %v32680_v39 = vrot.slane %v21317_v52, 7  ;;  %v20498_v28 = vcombine.high %v32673_v36, %v32673_v36  ;;  %v20825_v45 = vshrl.u32 %v32659_v16, 16 }
 0x44e   : > { %v21048_v58 = vcombine.low %v21040_v32, %v21047_v2  ;;  %v19307_v50 = vrot.slane %v19293_v55, %v32031_v14  ;;  %v21444_v11 = vsel %vm32203_vm13, %v21442_v40, %v21443_v61  ;;  %v20831_v47 = vshll.u32 %v27100_v1, 16  ;;  %v32713_v61 = vld.sshfl [vmem:[#allocation3 + $0x5c] sm:$0x13 pattern:$0x76325410] }
 0x44f   : > { %v21447_v12 = vsel %vm32203_vm13, %v21445_v0, %v21446_v29  ;;  %v21451_v63 = vsel %vm32203_vm13, %v27116_v34, %v32680_v39  ;;  %v21580_v53 = vcombine.low %v21441_v38, %v21444_v11  ;;  %v20835_v43 = vshrl.u32 %v27100_v1, 16 }
 0x450   : > { %24346 = vmatmul.mubr.bf16.gmra.mrb[176].mxu0 %v21048_v58  ;;  %v19308_v26 = vcombine.low %v19300_v51, %v19307_v50  ;;  %v21581_v54 = vcombine.low %v21447_v12, %v21451_v63  ;;  %v20827_v33 = vrot.slane %v20825_v45, 6  ;;  %v20833_v21 = vrot.slane %v20831_v47, 7  ;;  %v32717_v58 = vld.sshfl [vmem:[#allocation3 + $0x58] sm:$0x33 pattern:$0x76325410] }
 0x451   : > { %v21588_v13 = vrot.slane %v21580_v53, %v32031_v14  ;;  %v20837_v57 = vrot.slane %v20835_v43, 6  ;;  %v20841_v41 = vshll.u32 %v21309_v19, 16  ;;  %v20846_v15 = vshrl.u32 %v32673_v36, 16 }
 0x452   : > { %24143 = vmatprep.mubr.bf16.mxu1 %v19308_v26  ;;  %v21595_v22 = vrot.slane %v21581_v54, %v32031_v14  ;;  %v20828_v44 = vor.u32 %v20827_v33, %v19100_v20  ;;  %v20849_v24 = vshll.u32 %v32673_v36, 16  ;;  %v20855_v35 = vshll.u32 %v20498_v28, 16 }
 0x453   : > { %24144 = vmatmul.mubr.bf16.gmra.mrb[128].mxu1 %v18482_v49  ;;  %v20838_v37 = vor.u32 %v20837_v57, %v20833_v21  ;;  %v20843_v7 = vrot.slane %v20841_v41, 7  ;;  %v20848_v10 = vrot.slane %v20846_v15, 6  ;;  %v19136_v23 = vshrl.u32 %v20498_v28, 16 }
 0x454   : > { %v21596_v59 = vcombine.low %v21588_v13, %v21595_v22  ;;  %v20829_v18 = vrot.slane %v20828_v44, 2  ;;  %v20851_v3 = vrot.slane %v20849_v24, 7  ;;  %v20857_v1 = vrot.slane %v20855_v35, 7 }
 0x455   : > { %v20839_v42 = vrot.slane %v20838_v37, 2  ;;  %v19142_v48 = vshll.u32 %v32697_v5, 16  ;;  %v18483_v60 = vcombine.low %v32659_v16, %v26970_v8  ;;  %v19138_v56 = vrot.slane %v19136_v23, 6 }
 0x456   : > { %24353 = vmatprep.mubr.bf16.mxu0 %v21596_v59  ;;  %v20834_v62 = vsel %vm32111_vm6, %v20829_v18, %v20833_v21  ;;  %v20852_v20 = vor.u32 %v20851_v3, %v20848_v10  ;;  %v18484_v19 = vcombine.low %v32673_v36, %v20498_v28  ;;  %v21325_v2 = vcombine.high %v32697_v5, %v32697_v5 }
 0x457   : > { %v20844_v25 = vsel %vm32111_vm6, %v20839_v42, %v20843_v7  ;;  %v21049_v32 = vcombine.low %v19101_v9, %v20834_v62  ;;  %v19144_v49 = vrot.slane %v19142_v48, 7  ;;  %v18491_v52 = vrot.slane %v18483_v60, %v32031_v14  ;;  %v26974_v48 = vld.sshfl [vmem:[#allocation3 + $0x5c] sm:$0x3 pattern:$0x76325410] }
 0x458   : > { %v20853_v30 = vrot.slane %v20852_v20, 2  ;;  %v19139_v17 = vor.u32 %v20857_v1, %v19138_v56  ;;  %v18498_v16 = vrot.slane %v18484_v19, %v32031_v14  ;;  %v21333_v29 = vcombine.high %v27103_v31, %v27103_v31 }
 0x459   : > { %v21057_v51 = vrot.slane %v21049_v32, %v32031_v14  ;;  %v21452_v55 = vrot.slane %v32680_v39, 2  ;;  %v19309_v38 = vcombine.low %v20834_v62, %v20844_v25  ;;  %v21453_v34 = vrot.slane %v32697_v5, 7 }
 0x45a   : > { %v20858_v6 = vsel %vm32111_vm6, %v20853_v30, %v20857_v1  ;;  %v19140_v36 = vrot.slane %v19139_v17, 2  ;;  %v18499_v40 = vcombine.low %v18491_v52, %v18498_v16  ;;  %v21456_v28 = vrot.slane %v21325_v2, 7 }
 0x45b   : > { %v21050_v9 = vcombine.low %v20844_v25, %v20858_v6  ;;  %v27117_v50 = vrot.slane %v27103_v31, 9  ;;  %v21460_v11 = vrot.slane %v21333_v29, 7  ;;  %v19317_v47 = vrot.slane %v19309_v38, %v32031_v14  ;;  %v26972_v31 = vld.sshfl [vmem:[#allocation3 + $0x54] sm:$0x3 pattern:$0x76325410] }
 0x45c   : > { %v32722_v45 = vsel %vm32111_vm6, %v19140_v36, %v19144_v49  ;;  %v21454_v39 = vsel %vm32203_vm13, %v21452_v55, %v21453_v34  ;;  %v21455_v12 = vrot.slane %v21453_v34, 2  ;;  %v21463_v33 = vrot.slane %v32713_v61, 7  ;;  %v32757_v38 = vld.sshfl [vmem:[#allocation3 + $0x10] sm:$0x33 pattern:$0x76325410] }
 0x45d   : > { %v21064_v0 = vrot.slane %v21050_v9, %v32031_v14  ;;  %v19310_v53 = vcombine.low %v20858_v6, %v32722_v45  ;;  %v21461_v43 = vsel %vm32203_vm13, %v27117_v50, %v21460_v11  ;;  %v21462_v26 = vrot.slane %v21460_v11, 2  ;;  %v27035_v9 = vld.sshfl [vmem:[#allocation3 + $0x8] sm:$0x33 pattern:$0x76325410] }
 0x45e   : > { %v21457_v54 = vsel %vm32203_vm13, %v21455_v12, %v21456_v28  ;;  %v18766_v21 = vcombine.high %v32717_v58, %v32717_v58  ;;  %v32737_v13 = vcombine.high %v32713_v61, %v32713_v61  ;;  %v19146_v15 = vshrl.u32 %v32697_v5, 16  ;;  %v27036_v28 = vld.sshfl [vmem:[#allocation3 + $0xc] sm:$0x3 pattern:$0x76325410] }
 0x45f   : > { %v21065_v63 = vcombine.low %v21057_v51, %v21064_v0  ;;  %v19324_v57 = vrot.slane %v19310_v53, %v32031_v14  ;;  %v21597_v41 = vcombine.low %v21454_v39, %v21457_v54  ;;  %v19152_v8 = vshll.u32 %v21325_v2, 16  ;;  %v27105_v39 = vld.sshfl [vmem:[#allocation3 + $0x60] sm:$0x32 pattern:$0x76325410] }
 0x460   : > { %v21464_v22 = vsel %vm32203_vm13, %v21462_v26, %v21463_v33  ;;  %v19157_v44 = vshrl.u32 %v32717_v58, 16  ;;  %v19160_v24 = vshll.u32 %v32717_v58, 16  ;;  %v19166_v35 = vshll.u32 %v18766_v21, 16 }
 0x461   : > { %24354 = vmatmul.mubr.bf16.gmra.mrb[180].mxu0 %v21065_v63  ;;  %v19325_v37 = vcombine.low %v19317_v47, %v19324_v57  ;;  %v21598_v7 = vcombine.low %v21461_v43, %v21464_v22  ;;  %v21605_v10 = vrot.slane %v21597_v41, %v32031_v14  ;;  %v19148_v59 = vrot.slane %v19146_v15, 6  ;;  %v27106_v53 = vld.sshfl [vmem:[#allocation3 + $0x64] sm:$0x13 pattern:$0x76325410] }
 0x462   : > { %v19154_v18 = vrot.slane %v19152_v8, 7  ;;  %v19159_v3 = vrot.slane %v19157_v44, 6  ;;  %v19162_v1 = vrot.slane %v19160_v24, 7  ;;  %v19168_v5 = vrot.slane %v19166_v35, 7 }
 0x463   : > { %24151 = vmatprep.mubr.bf16.mxu1 %v19325_v37  ;;  %v21612_v42 = vrot.slane %v21598_v7, %v32031_v14  ;;  %v19149_v23 = vor.u32 %v19148_v59, %v19144_v49  ;;  %v19170_v62 = vshrl.u32 %v18766_v21, 16  ;;  %v19176_v20 = vshll.u32 %v32713_v61, 16  ;;  %v27081_v59 = vld.sshfl [vmem:[#allocation3 + $0x60] sm:$0x33 pattern:$0x76325410] }
 0x464   : > { %24152 = vmatmul.mubr.bf16.gmra.mrb[132].mxu1 %v18499_v40  ;;  %v19163_v60 = vor.u32 %v19162_v1, %v19159_v3  ;;  %v19180_v25 = vshrl.u32 %v32713_v61, 16  ;;  %v19186_v32 = vshll.u32 %v32737_v13, 16  ;;  %v18500_v2 = vcombine.low %v26972_v31, %v32717_v58 }
 0x465   : > { %v21613_v30 = vcombine.low %v21605_v10, %v21612_v42  ;;  %v19150_v56 = vrot.slane %v19149_v23, 2  ;;  %v19172_v19 = vrot.slane %v19170_v62, 6  ;;  %v19178_v51 = vrot.slane %v19176_v20, 7 }
 0x466   : > { %v19164_v52 = vrot.slane %v19163_v60, 2  ;;  %v19182_v6 = vrot.slane %v19180_v25, 6  ;;  %v19188_v17 = vrot.slane %v19186_v32, 7  ;;  %v18501_v36 = vcombine.low %v18766_v21, %v26974_v48 }
 0x467   : > { %24361 = vmatprep.mubr.bf16.mxu0 %v21613_v30  ;;  %v19155_v49 = vsel %vm32111_vm6, %v19150_v56, %v19154_v18  ;;  %v19173_v16 = vor.u32 %v19172_v19, %v19168_v5  ;;  %v18508_v0 = vrot.slane %v18500_v2, %v32031_v14  ;;  %v19955_v47 = vcombine.high %v27035_v9, %v27035_v9  ;;  %v26999_v60 = vld.sshfl [vmem:[#allocation3] sm:$0x32 pattern:$0x76325410] }
 0x468   : > { %v19169_v29 = vsel %vm32111_vm6, %v19164_v52, %v19168_v5  ;;  %v19183_v55 = vor.u32 %v19182_v6, %v19178_v51  ;;  %v18515_v11 = vrot.slane %v18501_v36, %v32031_v14  ;;  %v20129_v63 = vcombine.low %v27036_v28, %v32757_v38  ;;  %v27000_v52 = vld.sshfl [vmem:[#allocation3 + $0x4] sm:$0x13 pattern:$0x76325410] }
 0x469   : > { %v19174_v40 = vrot.slane %v19173_v16, 2  ;;  %v19326_v34 = vcombine.low %v19155_v49, %v19169_v29  ;;  %v21066_v57 = vcombine.low %v32722_v45, %v19155_v49  ;;  %v20128_v41 = vcombine.low %v27035_v9, %v19955_v47  ;;  %v27001_v2 = vld.sshfl [vmem:[#allocation3 + $0x8] sm:$0x32 pattern:$0x76325410] }
 0x46a   : > { %v19184_v50 = vrot.slane %v19183_v55, 2  ;;  %v18516_v54 = vcombine.low %v18508_v0, %v18515_v11  ;;  %v20143_v15 = vrot.slane %v20129_v63, %v32031_v14  ;;  %v21349_v22 = vcombine.high %v27105_v39, %v27105_v39 }
 0x46b   : > { %v19179_v58 = vsel %vm32111_vm6, %v19174_v40, %v19178_v51  ;;  %v19334_v12 = vrot.slane %v19326_v34, %v32031_v14  ;;  %v21357_v44 = vcombine.high %v27106_v53, %v27106_v53  ;;  %v21465_v24 = vrot.slane %v21463_v33, 2 }
 0x46c   : > { %v32767_v43 = vsel %vm32111_vm6, %v19184_v50, %v19188_v17  ;;  %v21067_v26 = vcombine.low %v19169_v29, %v19179_v58  ;;  %v21074_v37 = vrot.slane %v21066_v57, %v32031_v14  ;;  %v20136_v7 = vrot.slane %v20128_v41, %v32031_v14 }
 0x46d   : > { %v19327_v21 = vcombine.low %v19179_v58, %v32767_v43  ;;  %v21466_v10 = vrot.slane %v32737_v13, 7  ;;  %v27118_v45 = vrot.slane %v27105_v39, 9  ;;  %v21470_v18 = vrot.slane %v21349_v22, 7 }
 0x46e   : > { %v21081_v8 = vrot.slane %v21067_v26, %v32031_v14  ;;  %v21473_v3 = vrot.slane %v27106_v53, 7  ;;  %v21476_v1 = vrot.slane %v21357_v44, 7  ;;  %v20144_v23 = vcombine.low %v20136_v7, %v20143_v15 }
 0x46f   : > { %v19341_v35 = vrot.slane %v19327_v21, %v32031_v14  ;;  %v21467_v61 = vsel %vm32203_vm13, %v21465_v24, %v21466_v10  ;;  %v21471_v33 = vsel %vm32203_vm13, %v27118_v45, %v21470_v18  ;;  %v21472_v62 = vrot.slane %v21470_v18, 2  ;;  %v27167_v21 = vld.sshfl [vmem:[#allocation3 + $0x10] sm:$0x32 pattern:$0x76325410] }
 0x470   : > { %v21082_v42 = vcombine.low %v21074_v37, %v21081_v8  ;;  %v21475_v20 = vrot.slane %v21473_v3, 2  ;;  %v20530_v48 = vcombine.high %v27081_v59, %v27081_v59  ;;  %v21614_v13 = vcombine.low %v21467_v61, %v21471_v33  ;;  %v27169_v61 = vld.sshfl [vmem:[#allocation3 + $0x18] sm:$0x32 pattern:$0x76325410] }
 0x471   : > { %v19342_v5 = vcombine.low %v19334_v12, %v19341_v35  ;;  %v20914_v25 = vshrl.u32 %v27081_v59, 16  ;;  %v20917_v32 = vshll.u32 %v27081_v59, 16  ;;  %v20933_v31 = vshll.u32 %v27106_v53, 16 }
 0x472   : > { %24362 = vmatmul.mubr.bf16.gmra.mrb[184].mxu0 %v21082_v42  ;;  %v21474_v30 = vsel %vm32203_vm13, %v21472_v62, %v21473_v3  ;;  %v21477_v56 = vsel %vm32203_vm13, %v21475_v20, %v21476_v1  ;;  %v20923_v19 = vshll.u32 %v20530_v48, 16  ;;  %v20927_v51 = vshrl.u32 %v20530_v48, 16  ;;  %v27038_v59 = vld.sshfl [vmem:[#allocation3 + $0x14] sm:$0x3 pattern:$0x76325410] }
 0x473   : > { %24159 = vmatprep.mubr.bf16.mxu1 %v19342_v5  ;;  %v21615_v6 = vcombine.low %v21474_v30, %v21477_v56  ;;  %v21622_v17 = vrot.slane %v21614_v13, %v32031_v14  ;;  %v20916_v49 = vrot.slane %v20914_v25, 6  ;;  %v20919_v16 = vrot.slane %v20917_v32, 7  ;;  %v32805_v5 = vld.sshfl [vmem:[#allocation3 + $0x14] sm:$0x13 pattern:$0x76325410] }
 0x474   : > { %24160 = vmatmul.mubr.bf16.gmra.mrb[136].mxu1 %v18516_v54  ;;  %v20925_v9 = vrot.slane %v20923_v19, 7  ;;  %v20929_v29 = vrot.slane %v20927_v51, 6  ;;  %v20935_v55 = vrot.slane %v20933_v31, 7  ;;  %v20937_v36 = vshrl.u32 %v27106_v53, 16 }
 0x475   : > { %24200 = vmatprep.mubr.bf16.mxu1 %v20144_v23  ;;  %v21629_v40 = vrot.slane %v21615_v6, %v32031_v14  ;;  %v20920_v34 = vor.u32 %v20919_v16, %v20916_v49  ;;  %v20943_v0 = vshll.u32 %v21357_v44, 16  ;;  %v19416_v28 = vcombine.high %v26999_v60, %v26999_v60  ;;  %v32789_v54 = vld.sshfl [vmem:[#allocation3 + $0x18] sm:$0x33 pattern:$0x76325410] }
 0x476   : > { %v20930_v50 = vor.u32 %v20929_v29, %v20925_v9  ;;  %v20939_v11 = vrot.slane %v20937_v36, 6  ;;  %v19424_v47 = vcombine.high %v27000_v52, %v27000_v52  ;;  %v19432_v39 = vcombine.high %v27001_v2, %v27001_v2  ;;  %v27002_v51 = vld.sshfl [vmem:[#allocation3 + $0xc] sm:$0x13 pattern:$0x76325410] }
 0x477   : > { %v21630_v58 = vcombine.low %v21622_v17, %v21629_v40  ;;  %v20921_v12 = vrot.slane %v20920_v34, 2  ;;  %v20945_v63 = vrot.slane %v20943_v0, 7  ;;  %v27023_v26 = vrot.slane %v26999_v60, 9 }
 0x478   : > { %v20931_v57 = vrot.slane %v20930_v50, 2  ;;  %v20940_v41 = vor.u32 %v20939_v11, %v20935_v55  ;;  %v19610_v15 = vrot.slane %v19416_v28, 7  ;;  %v19613_v53 = vrot.slane %v27000_v52, 7 }
 0x479   : > { %24369 = vmatprep.mubr.bf16.mxu0 %v21630_v58  ;;  %v20926_v8 = vsel %vm32111_vm6, %v20921_v12, %v20925_v9  ;;  %v19616_v22 = vrot.slane %v19424_v47, 7  ;;  %v27024_v44 = vrot.slane %v27001_v2, 9  ;;  %v32793_v24 = vrot.slane %v19432_v39, 7  ;;  %v28643_v9 = vld [vmem:[#allocation9 + $0x180] sm:$0xff]   ;;  %v28645_v47 = vld [vmem:[#allocation9 + $0x1c8] sm:$0xff]  }
 0x47a   : > { %v20936_v35 = vsel %vm32111_vm6, %v20931_v57, %v20935_v55  ;;  %v20941_v37 = vrot.slane %v20940_v41, 2  ;;  %v21083_v7 = vcombine.low %v32767_v43, %v20926_v8  ;;  %v19611_v10 = vsel %vm32203_vm13, %v27023_v26, %v19610_v15  ;;  %v32829_v16 = vld.sshfl [vmem:[#allocation3 + $0x20] sm:$0x33 pattern:$0x76325410] }
 0x47b   : > { %v19612_v45 = vrot.slane %v19610_v15, 2  ;;  %v19615_v18 = vrot.slane %v19613_v53, 2  ;;  %v19621_v3 = vsel %vm32203_vm13, %v27024_v44, %v32793_v24  ;;  %v19970_v1 = vcombine.high %v32757_v38, %v32757_v38  ;;  %v27040_v40 = vld.sshfl [vmem:[#allocation3 + $0x1c] sm:$0x3 pattern:$0x76325410] }
 0x47c   : > { %v20946_v42 = vsel %vm32111_vm6, %v20941_v37, %v20945_v63  ;;  %v21091_v43 = vrot.slane %v21083_v7, %v32031_v14  ;;  %v32812_v23 = vcombine.high %v32789_v54, %v32789_v54  ;;  %v22923_v33 = vcombine.high %v27167_v21, %v27167_v21  ;;  %v27042_v34 = vld.sshfl [vmem:[#allocation3 + $0x24] sm:$0x3 pattern:$0x76325410] }
 0x47d   : > { %v21084_v62 = vcombine.low %v20936_v35, %v20946_v42  ;;  %v19614_v20 = vsel %vm32203_vm13, %v19612_v45, %v19613_v53  ;;  %v19617_v38 = vsel %vm32203_vm13, %v19615_v18, %v19616_v22  ;;  %v20145_v48 = vcombine.low %v19970_v1, %v27038_v59  ;;  %v32835_v39 = vld.sshfl [vmem:[#allocation3 + $0x1c] sm:$0x13 pattern:$0x76325410]  ;;  %v28647_v18 = vld [vmem:[#allocation9 + $0x1d0] sm:$0xff]  }
 0x47e   : > { %v19728_v60 = vcombine.low %v19611_v10, %v19614_v20  ;;  %v19729_v13 = vcombine.low %v19617_v38, %v19621_v3  ;;  %v20146_v25 = vcombine.low %v32789_v54, %v32812_v23  ;;  %v32822_v32 = vcombine.high %v32805_v5, %v32805_v5  ;;  %v27171_v53 = vld.sshfl [vmem:[#allocation3 + $0x20] sm:$0x32 pattern:$0x76325410]  ;;  %v28646_v35 = vld [vmem:[#allocation9 + $0x188] sm:$0xff]  }
 0x47f   : > { %v21098_v31 = vrot.slane %v21084_v62, %v32031_v14  ;;  %v20153_v30 = vrot.slane %v20145_v48, %v32031_v14  ;;  %v22939_v56 = vcombine.high %v27169_v61, %v27169_v61  ;;  %v27191_v19 = vrot.slane %v27167_v21, 9  ;;  %v32854_v45 = vld.sshfl [vmem:[#allocation3 + $0x24] sm:$0x13 pattern:$0x76325410] }
 0x480   : > { %v19736_v52 = vrot.slane %v19728_v60, %v32031_v14  ;;  %v19743_v6 = vrot.slane %v19729_v13, %v32031_v14  ;;  %v20160_v17 = vrot.slane %v20146_v25, %v32031_v14  ;;  %v23110_v49 = vrot.slane %v22923_v33, 7  ;;  %v32870_v48 = vld.sshfl [vmem:[#allocation3 + $0x30] sm:$0x33 pattern:$0x76325410] }
 0x481   : > { %v21099_v2 = vcombine.low %v21091_v43, %v21098_v31  ;;  %v23113_v29 = vrot.slane %v32805_v5, 7  ;;  %v23116_v55 = vrot.slane %v32822_v32, 7  ;;  %v27192_v36 = vrot.slane %v27169_v61, 9 }
 0x482   : > { %v19744_v0 = vcombine.low %v19736_v52, %v19743_v6  ;;  %v20161_v28 = vcombine.low %v20153_v30, %v20160_v17  ;;  %v23111_v50 = vsel %vm32203_vm13, %v27191_v19, %v23110_v49  ;;  %v23112_v11 = vrot.slane %v23110_v49, 2  ;;  %v32862_v61 = vld.sshfl [vmem:[#allocation3 + $0x28] sm:$0x33 pattern:$0x76325410] }
 0x483   : > { %24370 = vmatmul.mubr.bf16.gmra.mrb[188].mxu0 %v21099_v2  ;;  %v23115_v58 = vrot.slane %v23113_v29, 2  ;;  %v23120_v12 = vrot.slane %v22939_v56, 7  ;;  %v19440_v63 = vcombine.high %v27002_v51, %v27002_v51  ;;  %v19622_v26 = vrot.slane %v32793_v24, 2  ;;  %v28648_v56 = vld [vmem:[#allocation9 + $0x190] sm:$0xff]   ;;  %v28649_v17 = vld [vmem:[#allocation9 + $0x1d8] sm:$0xff]  }
 0x484   : > { %24201 = vmatmul.mubr.bf16.vlgmr.msra.gmra.mrb[140].mxu1 %v19744_v0  ;;  %28229 = vmatprep.mubr.msk.bf16.mxu0 %vm28801_vm15, %v34126_v46  ;;  %v23114_v21 = vsel %vm32203_vm13, %v23112_v11, %v23113_v29  ;;  %v19623_v57 = vrot.slane %v27002_v51, 7  ;;  %v32844_v41 = vcombine.high %v32829_v16, %v32829_v16  ;;  %v20162_v15 = vcombine.low %v27040_v40, %v32829_v16  ;;  %v27044_v30 = vld.sshfl [vmem:[#allocation3 + $0x2c] sm:$0x3 pattern:$0x76325410] }
 0x485   : > { %24208 = vmatprep.mubr.bf16.mxu1 %v20161_v28  ;;  %28059 = vmatpush3.bf16.msra.mxu1 %v28643_v9  ;;  %v23117_v8 = vsel %vm32203_vm13, %v23115_v58, %v23116_v55  ;;  %v23121_v22 = vsel %vm32203_vm13, %v27192_v36, %v23120_v12  ;;  %v23228_v44 = vcombine.low %v23111_v50, %v23114_v21  ;;  %v19626_v24 = vrot.slane %v19440_v63, 7  ;;  %v27173_v55 = vld.sshfl [vmem:[#allocation3 + $0x28] sm:$0x32 pattern:$0x76325410] }
 0x486   : > { %v23229_v37 = vcombine.low %v23117_v8, %v23121_v22  ;;  %v19624_v7 = vsel %vm32203_vm13, %v19622_v26, %v19623_v57  ;;  %v19625_v10 = vrot.slane %v19623_v57, 2  ;;  %v20163_v59 = vcombine.low %v32844_v41, %v27042_v34  ;;  %28060 = vmatprep.subr.bf16.mxu1 %v28645_v47  ;;  %v32886_v0 = vld.sshfl [vmem:[#allocation3 + $0x2c] sm:$0x13 pattern:$0x76325410] }
 0x487   : > { %v23236_v3 = vrot.slane %v23228_v44, %v32031_v14  ;;  %v20170_v1 = vrot.slane %v20162_v15, %v32031_v14  ;;  %v32860_v42 = vcombine.high %v32835_v39, %v32835_v39  ;;  %v22955_v43 = vcombine.high %v27171_v53, %v27171_v53  ;;  %v32901_v15 = vld.sshfl [vmem:[#allocation3 + $0x38] sm:$0x33 pattern:$0x76325410] }
 0x488   : > { %v32865_v33 = vrot.slane %v23229_v37, %v32031_v14  ;;  %v19627_v62 = vsel %vm32203_vm13, %v19625_v10, %v19626_v24  ;;  %v20177_v20 = vrot.slane %v20163_v59, %v32031_v14  ;;  %v23122_v38 = vrot.slane %v23120_v12, 2  ;;  %v28650_v12 = vld [vmem:[#allocation9 + $0x198] sm:$0xff]  }
 0x489   : > { %v19745_v60 = vcombine.low %v19624_v7, %v19627_v62  ;;  %28061 = vmatpush3.bf16.msra.mxu1 %v28646_v35  ;;  %v23123_v13 = vrot.slane %v32835_v39, 7  ;;  %v23126_v25 = vrot.slane %v32860_v42, 7  ;;  %v27193_v31 = vrot.slane %v27171_v53, 9  ;;  %v28651_v53 = vld [vmem:[#allocation9 + $0x1e0] sm:$0xff]  }
 0x48a   : > { %v23244_v19 = vcombine.low %v23236_v3, %v32865_v33  ;;  %v20178_v51 = vcombine.low %v20170_v1, %v20177_v20  ;;  %v23130_v52 = vrot.slane %v22955_v43, 7  ;;  %v23133_v6 = vrot.slane %v32854_v45, 7  ;;  %28062 = vmatprep.subr.bf16.mxu1 %v28647_v18  ;;  %v27175_v35 = vld.sshfl [vmem:[#allocation3 + $0x30] sm:$0x32 pattern:$0x76325410] }
 0x48b   : > { %v19753_v49 = vrot.slane %v19745_v60, %v32031_v14  ;;  %v23124_v2 = vsel %vm32203_vm13, %v23122_v38, %v23123_v13  ;;  %v23125_v9 = vrot.slane %v23123_v13, 2  ;;  %v32881_v29 = vcombine.high %v32862_v61, %v32862_v61  ;;  %v27046_v18 = vld.sshfl [vmem:[#allocation3 + $0x34] sm:$0x3 pattern:$0x76325410] }
 0x48c   : > { %28230 = vmatmul.mubr.bf16.vlgmr.msra.gmra.mrb[192].mxu0 %v23244_v19  ;;  %v23131_v36 = vsel %vm32203_vm13, %v27193_v31, %v23130_v52  ;;  %v23132_v40 = vrot.slane %v23130_v52, 2  ;;  %v20180_v34 = vcombine.low %v27044_v30, %v32870_v48  ;;  %v32890_v28 = vcombine.high %v32854_v45, %v32854_v45  ;;  %v32917_v20 = vld.sshfl [vmem:[#allocation3 + $0x34] sm:$0x13 pattern:$0x76325410] }
 0x48d   : > { %v19761_v50 = vcombine.low %v19753_v49, %v23236_v3  ;;  %28233 = vmatprep.mubr.msk.bf16.mxu0 %vm28801_vm15, %v34126_v46  ;;  %v23127_v11 = vsel %vm32203_vm13, %v23125_v9, %v23126_v25  ;;  %v20179_v47 = vcombine.low %v32862_v61, %v32881_v29  ;;  %28063 = vmatpush3.bf16.msra.mxu1 %v28648_v56  ;;  %v23135_v58 = vrot.slane %v23133_v6, 2  ;;  %v28652_v30 = vld [vmem:[#allocation9 + $0x1a0] sm:$0xff]   ;;  %v28653_v9 = vld [vmem:[#allocation9 + $0x1e8] sm:$0xff]  }
 0x48e   : > { %v23134_v63 = vsel %vm32203_vm13, %v23132_v40, %v23133_v6  ;;  %v23245_v26 = vcombine.low %v23124_v2, %v23127_v11  ;;  %v20194_v21 = vrot.slane %v20180_v34, %v32031_v14  ;;  %v22971_v57 = vcombine.high %v27173_v55, %v27173_v55  ;;  %28064 = vmatprep.subr.bf16.mxu1 %v28649_v17  ;;  %v27177_v6 = vld.sshfl [vmem:[#allocation3 + $0x38] sm:$0x32 pattern:$0x76325410] }
 0x48f   : > { %24209 = vmatmul.mubr.bf16.gmra.mrb[144].mxu1 %v19761_v50  ;;  %v23246_v8 = vcombine.low %v23131_v36, %v23134_v63  ;;  %v20187_v22 = vrot.slane %v20179_v47, %v32031_v14  ;;  %v32906_v44 = vcombine.high %v32886_v0, %v32886_v0  ;;  %v23136_v24 = vrot.slane %v32890_v28, 7  ;;  %v32944_v34 = vld.sshfl [vmem:[#allocation3 + $0x40] sm:$0x33 pattern:$0x76325410]  ;;  %v28654_v63 = vld [vmem:[#allocation9 + $0x1a8] sm:$0xff]  }
 0x490   : > { %24216 = vmatprep.mubr.bf16.mxu1 %v20178_v51  ;;  %v23253_v37 = vrot.slane %v23245_v26, %v32031_v14  ;;  %v27194_v7 = vrot.slane %v27173_v55, 9  ;;  %v23140_v10 = vrot.slane %v22971_v57, 7  ;;  %v23143_v59 = vrot.slane %v32886_v0, 7 }
 0x491   : > { %v32912_v3 = vrot.slane %v23246_v8, %v32031_v14  ;;  %v20195_v1 = vcombine.low %v20187_v22, %v20194_v21  ;;  %v23137_v43 = vsel %vm32203_vm13, %v23135_v58, %v23136_v24  ;;  %v23146_v62 = vrot.slane %v32906_v44, 7  ;;  %28065 = vmatpush3.bf16.msra.mxu1 %v28650_v12  ;;  %v32949_v12 = vld.sshfl [vmem:[#allocation3 + $0x3c] sm:$0x13 pattern:$0x76325410]  ;;  %v28655_v24 = vld [vmem:[#allocation9 + $0x1f0] sm:$0xff]  }
 0x492   : > { %v19778_v60 = vcombine.low %v32865_v33, %v23253_v37  ;;  %v23141_v13 = vsel %vm32203_vm13, %v27194_v7, %v23140_v10  ;;  %v23142_v25 = vrot.slane %v23140_v10, 2  ;;  %v23145_v31 = vrot.slane %v23143_v59, 2  ;;  %28066 = vmatprep.subr.bf16.mxu1 %v28651_v53  ;;  %v32958_v8 = vld.sshfl [vmem:[#allocation3 + $0x3c] sm:$0x3 pattern:$0x76325410] }
 0x493   : > { %v23261_v56 = vcombine.low %v23253_v37, %v32912_v3  ;;  %v23262_v19 = vcombine.low %v23137_v43, %v23141_v13  ;;  %v20030_v51 = vcombine.high %v32870_v48, %v32870_v48  ;;  %v32929_v52 = vcombine.high %v32901_v15, %v32901_v15  ;;  %v27179_v22 = vld.sshfl [vmem:[#allocation3 + $0x40] sm:$0x32 pattern:$0x76325410] }
 0x494   : > { %v23144_v33 = vsel %vm32203_vm13, %v23142_v25, %v23143_v59  ;;  %v23147_v17 = vsel %vm32203_vm13, %v23145_v31, %v23146_v62  ;;  %v22987_v49 = vcombine.high %v27175_v35, %v27175_v35  ;;  %v32937_v2 = vcombine.high %v32917_v20, %v32917_v20  ;;  %v27050_v62 = vld.sshfl [vmem:[#allocation3 + $0x44] sm:$0x3 pattern:$0x76325410] }
 0x495   : > { %28234 = vmatmul.mubr.bf16.gmra.mrb[196].mxu0 %v23261_v56  ;;  %v23263_v55 = vcombine.low %v23144_v33, %v23147_v17  ;;  %v32940_v48 = vrot.slane %v23262_v19, %v32031_v14  ;;  %v20196_v36 = vcombine.low %v20030_v51, %v27046_v18  ;;  %v20197_v40 = vcombine.low %v32901_v15, %v32929_v52  ;;  %v32975_v31 = vld.sshfl [vmem:[#allocation3 + $0x44] sm:$0x13 pattern:$0x76325410] }
 0x496   : > { %28237 = vmatprep.mubr.msk.bf16.mxu0 %vm28801_vm15, %v34126_v46  ;;  %v23003_v50 = vcombine.high %v27177_v6, %v27177_v6  ;;  %v27195_v11 = vrot.slane %v27175_v35, 9  ;;  %v23150_v47 = vrot.slane %v22987_v49, 7  ;;  %v23153_v58 = vrot.slane %v32917_v20, 7  ;;  %28067 = vmatpush3.bf16.msra.mxu1 %v28652_v30  ;;  %v28656_v30 = vld [vmem:[#allocation9 + $0x1b0] sm:$0xff]   ;;  %v28657_v49 = vld [vmem:[#allocation9 + $0x1f8] sm:$0xff]  }
 0x497   : > { %24217 = vmatmul.mubr.bf16.gmra.mrb[148].mxu1 %v19778_v60  ;;  %v32952_v26 = vrot.slane %v23263_v55, %v32031_v14  ;;  %v19795_v21 = vcombine.low %v32912_v3, %v32940_v48  ;;  %v20204_v57 = vrot.slane %v20196_v36, %v32031_v14  ;;  %v20211_v53 = vrot.slane %v20197_v40, %v32031_v14  ;;  %v32985_v17 = vld.sshfl [vmem:[#allocation3 + $0x48] sm:$0x33 pattern:$0x76325410] }
 0x498   : > { %24224 = vmatprep.mubr.bf16.mxu1 %v20195_v1  ;;  %v23151_v35 = vsel %vm32203_vm13, %v27195_v11, %v23150_v47  ;;  %v23152_v37 = vrot.slane %v23150_v47, 2  ;;  %v23155_v7 = vrot.slane %v23153_v58, 2  ;;  %v23156_v10 = vrot.slane %v32937_v2, 7  ;;  %28068 = vmatprep.subr.bf16.mxu1 %v28653_v9 }
 0x499   : > { %v23278_v59 = vcombine.low %v32940_v48, %v32952_v26  ;;  %v20212_v18 = vcombine.low %v20204_v57, %v20211_v53  ;;  %v27196_v3 = vrot.slane %v27177_v6, 9  ;;  %v23160_v43 = vrot.slane %v23003_v50, 7  ;;  %v32993_v50 = vld.sshfl [vmem:[#allocation3 + $0x50] sm:$0x33 pattern:$0x76325410] }
 0x49a   : > { %v32919_v38 = vpop.f32.mrb[104].mxu1  ;;  %v23154_v60 = vsel %vm32203_vm13, %v23152_v37, %v23153_v58  ;;  %v23157_v1 = vsel %vm32203_vm13, %v23155_v7, %v23156_v10  ;;  %v32971_v13 = vcombine.high %v32944_v34, %v32944_v34  ;;  %v20213_v25 = vcombine.low %v32958_v8, %v32944_v34  ;;  %28069 = vmatpush3.bf16.msra.mxu1 %v28654_v63  ;;  %v27181_v53 = vld.sshfl [vmem:[#allocation3 + $0x48] sm:$0x32 pattern:$0x76325410] }
 0x49b   : > { %34274 = vst [vmem:[#allocation45_spill] sm:$0xff] %v32919_v38  ;;  %v32977_v56 = vpop.f32.mrb[105].mxu1  ;;  %v23161_v19 = vsel %vm32203_vm13, %v27196_v3, %v23160_v43  ;;  %v23279_v51 = vcombine.low %v23151_v35, %v23154_v60  ;;  %v32983_v6 = vcombine.high %v32949_v12, %v32949_v12  ;;  %v23019_v33 = vcombine.high %v27179_v22, %v27179_v22  ;;  %v28658_v10 = vld [vmem:[#allocation9 + $0x1b8] sm:$0xff]  }
 0x49c   : > { %34275 = vst [vmem:[#allocation40_spill] sm:$0xff] %v32977_v56  ;;  %28070 = vmatprep.subr.bf16.mxu1 %v28655_v24  ;;  %v32987_v9 = vpop.f32.mrb[106].mxu1  ;;  %v23280_v55 = vcombine.low %v23157_v1, %v23161_v19  ;;  %v20214_v48 = vcombine.low %v32971_v13, %v27050_v62  ;;  %v32991_v36 = vrot.slane %v20213_v25, %v32031_v14  ;;  %v23162_v40 = vrot.slane %v23160_v43, 2 }
 0x49d   : > { %34276 = vst [vmem:[#allocation42_spill] sm:$0xff] %v32987_v9  ;;  %v32995_v11 = vpop.f32.mrb[107].mxu1  ;;  %28238 = vmatmul.mubr.bf16.gmra.mrb[200].mxu0 %v23278_v59  ;;  %v23287_v47 = vrot.slane %v23279_v51, %v32031_v14  ;;  %v23163_v58 = vrot.slane %v32949_v12, 7  ;;  %v23166_v63 = vrot.slane %v32983_v6, 7  ;;  %v27197_v57 = vrot.slane %v27179_v22, 9 }
 0x49e   : > { %34277 = vst [vmem:[#allocation44_spill] sm:$0xff] %v32995_v11  ;;  %28241 = vmatprep.mubr.msk.bf16.mxu0 %vm28801_vm15, %v34126_v46  ;;  %v33003_v24 = vrot.slane %v23280_v55, %v32031_v14  ;;  %v20228_v35 = vrot.slane %v20214_v48, %v32031_v14  ;;  %v23170_v37 = vrot.slane %v23019_v33, 7  ;;  %v23173_v7 = vrot.slane %v32975_v31, 7  ;;  %28071 = vmatpush3.bf16.msra.mxu1 %v28656_v30 }
 0x49f   : > { %24225 = vmatmul.mubr.bf16.gmra.mrb[152].mxu1 %v19795_v21  ;;  %v19812_v59 = vcombine.low %v32952_v26, %v23287_v47  ;;  %v23164_v22 = vsel %vm32203_vm13, %v23162_v40, %v23163_v58  ;;  %v23165_v3 = vrot.slane %v23163_v58, 2  ;;  %v33012_v43 = vcombine.high %v32985_v17, %v32985_v17  ;;  %v33014_v62 = vld.sshfl [vmem:[#allocation3 + $0x4c] sm:$0x13 pattern:$0x76325410]  ;;  %28072 = vmatprep.subr.bf16.mxu1 %v28657_v49 }
 0x4a0   : > { %24232 = vmatprep.mubr.bf16.mxu1 %v20212_v18  ;;  %v23295_v60 = vcombine.low %v23287_v47, %v33003_v24  ;;  %v20229_v1 = vcombine.low %v32991_v36, %v20228_v35  ;;  %v23171_v21 = vsel %vm32203_vm13, %v27197_v57, %v23170_v37  ;;  %v23172_v26 = vrot.slane %v23170_v37, 2  ;;  %v33020_v25 = vld.sshfl [vmem:[#allocation3 + $0x4c] sm:$0x3 pattern:$0x76325410] }
 0x4a1   : > { %v23167_v30 = vsel %vm32203_vm13, %v23165_v3, %v23166_v63  ;;  %v20230_v19 = vcombine.low %v32985_v17, %v33012_v43  ;;  %v20231_v51 = vcombine.low %v33020_v25, %v32993_v50  ;;  %v33030_v18 = vcombine.high %v32975_v31, %v32975_v31  ;;  %v33044_v63 = vld.sshfl [vmem:[#allocation3 + $0x58] sm:$0x33 pattern:$0x76325410] }
 0x4a2   : > { %v23174_v33 = vsel %vm32203_vm13, %v23172_v26, %v23173_v7  ;;  %v23296_v49 = vcombine.low %v23164_v22, %v23167_v30  ;;  %v23035_v55 = vcombine.high %v27181_v53, %v27181_v53  ;;  %v33036_v48 = vcombine.high %v33014_v62, %v33014_v62  ;;  %28073 = vmatpush3.bf16.msra.mxu1 %v28658_v10  ;;  %v27183_v57 = vld.sshfl [vmem:[#allocation3 + $0x50] sm:$0x32 pattern:$0x76325410] }
 0x4a3   : > { %v23297_v36 = vcombine.low %v23171_v21, %v23174_v33  ;;  %v33039_v40 = vrot.slane %v20230_v19, %v32031_v14  ;;  %v33042_v47 = vrot.slane %v20231_v51, %v32031_v14  ;;  %v23175_v58 = vrot.slane %v23173_v7, 2  ;;  %34278 = vst [vmem:[#allocation46_spill] sm:$0xff] %v33044_v63  ;;  %v33046_v35 = vld.sshfl [vmem:[#allocation3 + $0x54] sm:$0x13 pattern:$0x76325410]  ;;  %28265 = vmatprep.subr.bf16.mxu1 %v34126_v46 }
 0x4a4   : > { %v33052_v22 = vrot.slane %v23296_v49, %v32031_v14  ;;  %v23176_v10 = vrot.slane %v33030_v18, 7  ;;  %v27198_v3 = vrot.slane %v27181_v53, 9  ;;  %v23180_v21 = vrot.slane %v23035_v55, 7 }
 0x4a5   : > { %v33055_v26 = vld.sshfl [vmem:[#allocation3 + $0x54] sm:$0x3 pattern:$0x76325410]  ;;  %28242 = vmatmul.mubr.bf16.gmra.mrb[204].mxu0 %v23295_v60  ;;  %v33060_v7 = vrot.slane %v23297_v36, %v32031_v14  ;;  %v20246_v19 = vcombine.low %v33039_v40, %v33042_v47  ;;  %v23183_v51 = vrot.slane %v33014_v62, 7  ;;  %v23186_v33 = vrot.slane %v33036_v48, 7 }
 0x4a6   : > { %34280 = vst [vmem:[#allocation49_spill] sm:$0xff] %v33055_v26  ;;  %28245 = vmatprep.mubr.msk.bf16.mxu0 %vm28801_vm15, %v34126_v46  ;;  %v19829_v53 = vcombine.low %v33003_v24, %v33052_v22  ;;  %v23177_v60 = vsel %vm32203_vm13, %v23175_v58, %v23176_v10  ;;  %v23181_v55 = vsel %vm32203_vm13, %v27198_v3, %v23180_v21  ;;  %v23182_v36 = vrot.slane %v23180_v21, 2  ;;  %v27185_v40 = vld.sshfl [vmem:[#allocation3 + $0x58] sm:$0x32 pattern:$0x76325410] }
 0x4a7   : > { %24233 = vmatmul.mubr.bf16.gmra.mrb[156].mxu1 %v19812_v59  ;;  %v33082_v11 = vcombine.high %v32993_v50, %v32993_v50  ;;  %v33088_v58 = vcombine.high %v33044_v63, %v33044_v63  ;;  %v23051_v10 = vcombine.high %v27183_v57, %v27183_v57  ;;  %v33092_v59 = vcombine.high %v33046_v35, %v33046_v35 }
 0x4a8   : > { %24240 = vmatprep.mubr.bf16.mxu1 %v20229_v1  ;;  %v23184_v24 = vsel %vm32203_vm13, %v23182_v36, %v23183_v51  ;;  %v27199_v9 = vrot.slane %v27183_v57, 9 }
 0x4a9   : > { %34284 = vst [vmem:[#allocation52_spill] sm:$0xff] %v33088_v58  ;;  %34285 = vst [vmem:[#allocation53_spill] sm:$0xff] %v33092_v59  ;;  %v20247_v1 = vcombine.low %v33082_v11, %v33055_v26  ;;  %v23196_v38 = vrot.slane %v33092_v59, 7 }
 0x4aa   : > { %v33118_v26 = vld.sshfl [vmem:[#allocation3 + $0x5c] sm:$0x3 pattern:$0x76325410] }
 0x4ab   : > { %34290 = vst [vmem:[#allocation57_spill] sm:$0xff] %v33118_v26 }
 0x4af   : > { %24241 = vmatmul.mubr.bf16.gmra.mrb[160].mxu1 %v19829_v53 }
 0x4b0   : > { %v33049_v37 = vpop.f32.mrb[156].mxu0  ;;  %24248 = vmatprep.mubr.bf16.mxu1 %v20246_v19 }
 0x4b1   : > { %34279 = vst [vmem:[#allocation47_spill] sm:$0xff] %v33049_v37  ;;  %v33057_v30 = vpop.f32.mrb[157].mxu0  ;;  %v23313_v37 = vcombine.low %v23177_v60, %v23181_v55  ;;  %v33103_v60 = vld.sshfl [vmem:[#allocation3 + $0x60] sm:$0x33 pattern:$0x76325410] }
 0x4b2   : > { %34281 = vst [vmem:[#allocation51_spill] sm:$0xff] %v33057_v30  ;;  %v33066_v49 = vpop.f32.mrb[158].mxu0  ;;  %v23185_v30 = vrot.slane %v23183_v51, 2  ;;  %v23067_v51 = vcombine.high %v27185_v40, %v27185_v40  ;;  %34287 = vst [vmem:[#allocation56_spill] sm:$0xff] %v33103_v60 }
 0x4b3   : > { %34282 = vst [vmem:[#allocation48_spill] sm:$0xff] %v33066_v49  ;;  %v33076_v47 = vpop.f32.mrb[159].mxu0  ;;  %v23312_v49 = vcombine.low %v33052_v22, %v33060_v7  ;;  %v33099_v21 = vrot.slane %v23313_v37, %v32031_v14 }
 0x4b4   : > { %34283 = vst [vmem:[#allocation50_spill] sm:$0xff] %v33076_v47  ;;  %v33094_v22 = vpop.f32.mrb[108].mxu1  ;;  %v23187_v3 = vsel %vm32203_vm13, %v23185_v30, %v23186_v33  ;;  %v20248_v47 = vcombine.low %v33044_v63, %v33088_v58  ;;  %v33114_v30 = vrot.slane %v20247_v1, %v32031_v14  ;;  %v23193_v33 = vrot.slane %v33046_v35, 7 }
 0x4b5   : > { %34286 = vst [vmem:[#allocation54_spill] sm:$0xff] %v33094_v22  ;;  %v33105_v55 = vpop.f32.mrb[109].mxu1  ;;  %v23314_v36 = vcombine.low %v23184_v24, %v23187_v3  ;;  %v23190_v22 = vrot.slane %v23051_v10, 7  ;;  %v19846_v37 = vcombine.low %v33060_v7, %v33099_v21  ;;  %28246 = vmatmul.mubr.bf16.gmra.mrb[208].mxu0 %v23312_v49  ;;  %v27200_v58 = vrot.slane %v27185_v40, 9 }
 0x4b6   : > { %34288 = vst [vmem:[#allocation58_spill] sm:$0xff] %v33105_v55  ;;  %v33109_v56 = vpop.f32.mrb[110].mxu1  ;;  %v27058_v24 = vld.sshfl [vmem:[#allocation3 + $0x64] sm:$0x3 pattern:$0x76325410]  ;;  %v20262_v10 = vrot.slane %v20248_v47, %v32031_v14  ;;  %v33134_v63 = vcombine.high %v33103_v60, %v33103_v60  ;;  %28249 = vmatprep.mubr.msk.bf16.mxu0 %vm28801_vm15, %v34126_v46  ;;  %v20264_v49 = vcombine.low %v33118_v26, %v33103_v60 }
 0x4b7   : > { %34289 = vst [vmem:[#allocation55_spill] sm:$0xff] %v33109_v56  ;;  %v33120_v3 = vpop.f32.mrb[111].mxu1  ;;  %v33123_v57 = vrot.slane %v23314_v36, %v32031_v14  ;;  %v23191_v7 = vsel %vm32203_vm13, %v27199_v9, %v23190_v22  ;;  %v23192_v56 = vrot.slane %v23190_v22, 2  ;;  %v23195_v55 = vrot.slane %v23193_v33, 2  ;;  %24249 = vmatmul.mubr.bf16.gmra.mrb[164].mxu1 %v19846_v37 }
 0x4b8   : > { %34291 = vst [vmem:[#allocation59_spill] sm:$0xff] %v33120_v3  ;;  %v33128_v1 = vld.sshfl [vmem:[#allocation3 + $0x5c] sm:$0x13 pattern:$0x76325410]  ;;  %v33130_v59 = vrot.slane %v23067_v51, 7  ;;  %v20263_v9 = vcombine.low %v33114_v30, %v20262_v10 }
 0x4b9   : > { %34293 = vst [vmem:[#allocation61_spill] sm:$0xff] %v33134_v63  ;;  %v23329_v47 = vcombine.low %v33099_v21, %v33123_v57  ;;  %v23194_v22 = vsel %vm32203_vm13, %v23192_v56, %v23193_v33  ;;  %v33145_v40 = vld.sshfl [vmem:[#allocation3 + $0x10] sm:$0x33 pattern:$0x76325410]  ;;  %v23197_v51 = vsel %vm32203_vm13, %v23195_v55, %v23196_v38  ;;  %v20265_v56 = vcombine.low %v33134_v63, %v27058_v24 }
 0x4ba   : > { %34292 = vst [vmem:[#allocation60_spill] sm:$0xff] %v33130_v59  ;;  %v23201_v36 = vsel %vm32203_vm13, %v27200_v58, %v33130_v59  ;;  %v34021_v21 = vrot.slane %v33130_v59, 2  ;;  %v23330_v3 = vcombine.low %v23191_v7, %v23194_v22  ;;  %v33155_v33 = vrot.slane %v20264_v49, %v32031_v14  ;;  %24256 = vmatprep.mubr.bf16.mxu1 %v20263_v9  ;;  %v27120_v9 = vld.sshfl [vmem:[#allocation3 + $0x14] sm:$0x3 pattern:$0x76325410] }
 0x4bb   : > { %v23331_v30 = vcombine.low %v23197_v51, %v23201_v36  ;;  %v33159_v53 = vcombine.high %v33128_v1, %v33128_v1  ;;  %v19723_v55 = vrot.slane %v33128_v1, 7  ;;  %v22104_v58 = vcombine.high %v33145_v40, %v33145_v40 }
 0x4bc   : > { %v33162_v38 = vrot.slane %v23330_v3, %v32031_v14  ;;  %v22290_v19 = vshrl.u32 %v33145_v40, 16  ;;  %v33172_v24 = vrot.slane %v20265_v56, %v32031_v14  ;;  %v22293_v22 = vshll.u32 %v33145_v40, 16 }
 0x4bd   : > { %34294 = vst [vmem:[#allocation63_spill] sm:$0xff] %v33159_v53  ;;  %v33169_v10 = vrot.slane %v23331_v30, %v32031_v14  ;;  %v19726_v7 = vrot.slane %v33159_v53, 7  ;;  %v19724_v49 = vsel %vm32203_vm13, %v34021_v21, %v19723_v55  ;;  %v19725_v51 = vrot.slane %v19723_v55, 2  ;;  %28250 = vmatmul.mubr.bf16.gmra.mrb[212].mxu0 %v23329_v47 }
 0x4be   : > { %v19863_v3 = vcombine.low %v33123_v57, %v33162_v38  ;;  %v22292_v36 = vrot.slane %v22290_v19, 6  ;;  %v20280_v56 = vcombine.low %v33155_v33, %v33172_v24  ;;  %v22295_v26 = vrot.slane %v22293_v22, 7  ;;  %28253 = vmatprep.mubr.msk.bf16.mxu0 %vm28801_vm15, %v34126_v46  ;;  %v33193_v33 = vld.sshfl [vmem:[#allocation3 + $0x18] sm:$0x33 pattern:$0x76325410] }
 0x4bf   : > { %v23346_v30 = vcombine.low %v33162_v38, %v33169_v10  ;;  %v22299_v63 = vshll.u32 %v22104_v58, 16  ;;  %v19727_v60 = vsel %vm32203_vm13, %v19725_v51, %v19726_v7  ;;  %v22303_v57 = vshrl.u32 %v22104_v58, 16 }
 0x4c0   : > { %v22309_v59 = vshll.u32 %v32805_v5, 16  ;;  %v22313_v53 = vshrl.u32 %v32805_v5, 16  ;;  %v19865_v55 = vcombine.low %v19724_v49, %v19727_v60  ;;  %v22296_v19 = vor.u32 %v22295_v26, %v22292_v36  ;;  %24257 = vmatmul.mubr.bf16.gmra.mrb[168].mxu1 %v19863_v3 }
 0x4c1   : > { %v22301_v38 = vrot.slane %v22299_v63, 7  ;;  %v22319_v21 = vshll.u32 %v32822_v32, 16  ;;  %v22305_v47 = vrot.slane %v22303_v57, 6  ;;  %v22324_v7 = vshrl.u32 %v32789_v54, 16  ;;  %24264 = vmatprep.mubr.bf16.mxu1 %v20280_v56 }
 0x4c2   : > { %v22311_v24 = vrot.slane %v22309_v59, 7  ;;  %v22315_v22 = vrot.slane %v22313_v53, 6  ;;  %v33197_v51 = vrot.slane %v19865_v55, %v32031_v14  ;;  %v22297_v5 = vrot.slane %v22296_v19, 2 }
 0x4c3   : > { %v22321_v4 = vrot.slane %v22319_v21, 7  ;;  %v22327_v60 = vshll.u32 %v32789_v54, 16  ;;  %v22306_v26 = vor.u32 %v22305_v47, %v22301_v38  ;;  %v22326_v49 = vrot.slane %v22324_v7, 6 }
 0x4c4   : > { %v22316_v63 = vor.u32 %v22315_v22, %v22311_v24  ;;  %v22333_v32 = vshll.u32 %v32812_v23, 16  ;;  %v22302_v59 = vsel %vm32111_vm6, %v22297_v5, %v22301_v38  ;;  %v21878_v36 = vcombine.low %v33145_v40, %v22104_v58 }
 0x4c5   : > { %v22329_v53 = vrot.slane %v22327_v60, 7  ;;  %v22307_v57 = vrot.slane %v22306_v26, 2  ;;  %v21879_v54 = vcombine.low %v27120_v9, %v33193_v33  ;;  %v22337_v22 = vshrl.u32 %v32812_v23, 16  ;;  %28254 = vmatmul.mubr.bf16.gmra.mrb[216].mxu0 %v23346_v30 }
 0x4c6   : > { %v22317_v55 = vrot.slane %v22316_v63, 2  ;;  %v22335_v21 = vrot.slane %v22333_v32, 7  ;;  %v33208_v47 = vrot.slane %v21878_v36, %v32031_v14  ;;  %v22343_v7 = vshll.u32 %v32835_v39, 16 }
 0x4c7   : > { %v22330_v19 = vor.u32 %v22329_v53, %v22326_v49  ;;  %v22312_v38 = vsel %vm32111_vm6, %v22307_v57, %v22311_v24  ;;  %v33217_v58 = vrot.slane %v21879_v54, %v32031_v14  ;;  %v22347_v5 = vshrl.u32 %v32835_v39, 16  ;;  %v33220_v32 = vpop.f32.mrb[160].mxu0 }
 0x4c8   : > { %v22322_v40 = vsel %vm32111_vm6, %v22317_v55, %v22321_v4  ;;  %v22697_v26 = vcombine.low %v22302_v59, %v22312_v38  ;;  %v22339_v63 = vrot.slane %v22337_v22, 6  ;;  %v22345_v49 = vrot.slane %v22343_v7, 7  ;;  %v33228_v9 = vpop.f32.mrb[161].mxu0 }
 0x4c9   : > { %v22331_v60 = vrot.slane %v22330_v19, 2  ;;  %v22349_v24 = vrot.slane %v22347_v5, 6  ;;  %v22353_v4 = vshll.u32 %v32860_v42, 16  ;;  %v22358_v53 = vshrl.u32 %v32829_v16, 16  ;;  %v33236_v54 = vpop.f32.mrb[162].mxu0 }
 0x4ca   : > { %v33222_v23 = vpop.f32.mrb[112].mxu1  ;;  %v22705_v36 = vrot.slane %v22697_v26, %v32031_v14  ;;  %v22340_v57 = vor.u32 %v22339_v63, %v22335_v21  ;;  %v22361_v3 = vshll.u32 %v32829_v16, 16  ;;  %v27123_v55 = vld.sshfl [vmem:[#allocation3 + $0x20] sm:$0x33 pattern:$0x76325410] }
 0x4cb   : > { %34295 = vst [vmem:[#allocation65_spill] sm:$0xff] %v33222_v23  ;;  %v33230_v39 = vpop.f32.mrb[113].mxu1  ;;  %v22336_v59 = vsel %vm32111_vm6, %v22331_v60, %v22335_v21  ;;  %v22350_v22 = vor.u32 %v22349_v24, %v22345_v49  ;;  %v22355_v7 = vrot.slane %v22353_v4, 7  ;;  %v22360_v38 = vrot.slane %v22358_v53, 6  ;;  %v33240_v5 = vpop.f32.mrb[163].mxu0 }
 0x4cc   : > { %34296 = vst [vmem:[#allocation67_spill] sm:$0xff] %v33230_v39  ;;  %v33238_v19 = vpop.f32.mrb[114].mxu1  ;;  %v22698_v42 = vcombine.low %v22322_v40, %v22336_v59  ;;  %34298 = vst [vmem:[#allocation64_spill] sm:$0xff] %v33240_v5  ;;  %v22341_v30 = vrot.slane %v22340_v57, 2  ;;  %v22363_v60 = vrot.slane %v22361_v3, 7  ;;  %v22367_v26 = vshll.u32 %v32844_v41, 16 }
 0x4cd   : > { %34297 = vst [vmem:[#allocation62_spill] sm:$0xff] %v33238_v19  ;;  %v33242_v56 = vpop.f32.mrb[115].mxu1  ;;  %v22371_v21 = vshrl.u32 %v32844_v41, 16  ;;  %v22351_v63 = vrot.slane %v22350_v22, 2  ;;  %v22377_v37 = vshll.u32 %v32854_v45, 16  ;;  %v21720_v40 = vcombine.high %v33193_v33, %v33193_v33 }
 0x4ce   : > { %34299 = vst [vmem:[#allocation66_spill] sm:$0xff] %v33242_v56  ;;  %v22712_v16 = vrot.slane %v22698_v42, %v32031_v14  ;;  %v27122_v19 = vld.sshfl [vmem:[#allocation3 + $0x1c] sm:$0x3 pattern:$0x76325410]  ;;  %v22346_v24 = vsel %vm32111_vm6, %v22341_v30, %v22345_v49  ;;  %v22364_v4 = vor.u32 %v22363_v60, %v22360_v38  ;;  %v22369_v53 = vrot.slane %v22367_v26, 7 }
 0x4cf   : > { %v22373_v59 = vrot.slane %v22371_v21, 6  ;;  %v22356_v3 = vsel %vm32111_vm6, %v22351_v63, %v22355_v7  ;;  %v22379_v41 = vrot.slane %v22377_v37, 7  ;;  %v21735_v56 = vcombine.high %v27123_v55, %v27123_v55  ;;  %v27126_v63 = vld.sshfl [vmem:[#allocation3 + $0x2c] sm:$0x3 pattern:$0x76325410] }
 0x4d0   : > { %v22713_v57 = vcombine.low %v22705_v36, %v22712_v16  ;;  %v22365_v42 = vrot.slane %v22364_v4, 2  ;;  %v22714_v39 = vcombine.low %v22346_v24, %v22356_v3  ;;  %v21895_v23 = vcombine.low %v21720_v40, %v27122_v19 }
 0x4d1   : > { %v22374_v22 = vor.u32 %v22373_v59, %v22369_v53  ;;  %v34300_v5 = vcombine.low %v33169_v10, %v33197_v51  ;;  %v21896_v33 = vcombine.low %v27123_v55, %v21735_v56  ;;  %v22381_v49 = vshrl.u32 %v32854_v45, 16  ;;  %v27124_v59 = vld.sshfl [vmem:[#allocation3 + $0x24] sm:$0x3 pattern:$0x76325410] }
 0x4d2   : > { %v22387_v30 = vshll.u32 %v32890_v28, 16  ;;  %v22392_v36 = vshrl.u32 %v32862_v61, 16  ;;  %v22370_v37 = vsel %vm32111_vm6, %v22365_v42, %v22369_v53  ;;  %v22722_v38 = vrot.slane %v22714_v39, %v32031_v14 }
 0x4d3   : > { %24265 = vmatmul.mubr.bf16.gmra.mrb[172].mxu1 %v34300_v5  ;;  %v22375_v7 = vrot.slane %v22374_v22, 2  ;;  %v21903_v19 = vrot.slane %v21895_v23, %v32031_v14  ;;  %v21910_v60 = vrot.slane %v21896_v33, %v32031_v14  ;;  %v22383_v10 = vrot.slane %v22381_v49, 6  ;;  %v27125_v5 = vld.sshfl [vmem:[#allocation3 + $0x28] sm:$0x33 pattern:$0x76325410] }
 0x4d4   : > { %24410 = vmatprep.mubr.bf16.mxu1 %v22713_v57  ;;  %v22389_v51 = vrot.slane %v22387_v30, 7  ;;  %v22394_v55 = vrot.slane %v22392_v36, 6  ;;  %v22395_v28 = vshll.u32 %v32862_v61, 16  ;;  %v22401_v56 = vshll.u32 %v32881_v29, 16 }
 0x4d5   : > { %v22380_v45 = vsel %vm32111_vm6, %v22375_v7, %v22379_v41  ;;  %v22405_v26 = vshrl.u32 %v32881_v29, 16  ;;  %v21911_v16 = vcombine.low %v21903_v19, %v21910_v60  ;;  %v22384_v39 = vor.u32 %v22383_v10, %v22379_v41  ;;  %v33274_v41 = vld.sshfl [vmem:[#allocation3 + $0x30] sm:$0x33 pattern:$0x76325410] }
 0x4d6   : > { %v22715_v21 = vcombine.low %v22370_v37, %v22380_v45  ;;  %v22411_v23 = vshll.u32 %v32886_v0, 16  ;;  %v22397_v40 = vrot.slane %v22395_v28, 7  ;;  %v22403_v24 = vrot.slane %v22401_v56, 7  ;;  %v28659_v19 = vld [vmem:[#allocation9 + $0x200] sm:$0xff]  }
 0x4d7   : > { %v22407_v4 = vrot.slane %v22405_v26, 6  ;;  %v22415_v53 = vshrl.u32 %v32886_v0, 16  ;;  %v22385_v3 = vrot.slane %v22384_v39, 2  ;;  %v22421_v42 = vshll.u32 %v32906_v44, 16 }
 0x4d8   : > { %v22729_v57 = vrot.slane %v22715_v21, %v32031_v14  ;;  %v22413_v61 = vrot.slane %v22411_v23, 7  ;;  %v22398_v22 = vor.u32 %v22397_v40, %v22394_v55  ;;  %v21750_v49 = vcombine.high %v27125_v5, %v27125_v5 }
 0x4d9   : > { %v22408_v29 = vor.u32 %v22407_v4, %v22403_v24  ;;  %v22417_v33 = vrot.slane %v22415_v53, 6  ;;  %v34301_v30 = vcombine.low %v33208_v47, %v33217_v58  ;;  %v22390_v0 = vsel %vm32111_vm6, %v22385_v3, %v22389_v51 }
 0x4da   : > { %v22730_v36 = vcombine.low %v22722_v38, %v22729_v57  ;;  %v22423_v37 = vrot.slane %v22421_v42, 7  ;;  %v21912_v7 = vcombine.low %v27124_v59, %v27125_v5  ;;  %v22399_v60 = vrot.slane %v22398_v22, 2  ;;  %v28660_v59 = vld [vmem:[#allocation9 + $0x208] sm:$0xff]  }
 0x4db   : > { %24411 = vmatmul.mubr.bf16.vlgmr.msra.gmra.mrb[176].mxu1 %v34301_v30  ;;  %v22409_v44 = vrot.slane %v22408_v29, 2  ;;  %v22418_v10 = vor.u32 %v22417_v33, %v22413_v61  ;;  %v21913_v55 = vcombine.low %v21750_v49, %v27126_v63  ;;  %v22168_v47 = vcombine.high %v33274_v41, %v33274_v41  ;;  %v33287_v51 = vpop.f32.mrb[164].mxu0 }
 0x4dc   : > { %28273 = vmatpush3.bf16.msra.mxu1 %v28659_v19  ;;  %24418 = vmatprep.mubr.bf16.mxu1 %v22730_v36  ;;  %v21920_v45 = vrot.slane %v21912_v7, %v32031_v14  ;;  %v22426_v58 = vshrl.u32 %v33274_v41, 16  ;;  %v22429_v38 = vshll.u32 %v33274_v41, 16  ;;  %v22404_v5 = vsel %vm32111_vm6, %v22399_v60, %v22403_v24  ;;  %v33294_v21 = vpop.f32.mrb[165].mxu0 }
 0x4dd   : > { %28266 = vmatprep.subr.bf16.mxu1 %v34126_v46  ;;  %v22414_v28 = vsel %vm32111_vm6, %v22409_v44, %v22413_v61  ;;  %v22419_v56 = vrot.slane %v22418_v10, 2  ;;  %v21927_v26 = vrot.slane %v21913_v55, %v32031_v14  ;;  %v22731_v39 = vcombine.low %v22390_v0, %v22404_v5  ;;  %v33296_v4 = vpop.f32.mrb[166].mxu0 }
 0x4de   : > { %v22428_v23 = vrot.slane %v22426_v58, 6  ;;  %v22431_v63 = vrot.slane %v22429_v38, 7  ;;  %v22435_v40 = vshll.u32 %v22168_v47, 16  ;;  %v22439_v57 = vshrl.u32 %v22168_v47, 16  ;;  %v33301_v61 = vpop.f32.mrb[167].mxu0  ;;  %v28661_v38 = vld [vmem:[#allocation9 + $0x210] sm:$0xff]  }
 0x4df   : > { %v22424_v53 = vsel %vm32111_vm6, %v22419_v56, %v22423_v37  ;;  %v21928_v24 = vcombine.low %v21920_v45, %v21927_v26  ;;  %v22445_v3 = vshll.u32 %v32917_v20, 16  ;;  %v22739_v22 = vrot.slane %v22731_v39, %v32031_v14  ;;  %v33307_v37 = vld.sshfl [vmem:[#allocation3 + $0x38] sm:$0x33 pattern:$0x76325410] }
 0x4e0   : > { %28274 = vmatpush3.bf16.msra.mxu1 %v28660_v59  ;;  %v22732_v42 = vcombine.low %v22414_v28, %v22424_v53  ;;  %v22432_v29 = vor.u32 %v22431_v63, %v22428_v23  ;;  %v22437_v33 = vrot.slane %v22435_v40, 7  ;;  %v22441_v49 = vrot.slane %v22439_v57, 6  ;;  %v27128_v39 = vld.sshfl [vmem:[#allocation3 + $0x34] sm:$0x3 pattern:$0x76325410] }
 0x4e1   : > { %28267 = vmatprep.subr.bf16.mxu1 %v34126_v46  ;;  %v22447_v30 = vrot.slane %v22445_v3, 7  ;;  %v22449_v36 = vshrl.u32 %v32917_v20, 16  ;;  %v22455_v0 = vshll.u32 %v32937_v2, 16  ;;  %v22460_v60 = vshrl.u32 %v32901_v15, 16 }
 0x4e2   : > { %v22746_v7 = vrot.slane %v22732_v42, %v32031_v14  ;;  %v22433_v19 = vrot.slane %v22432_v29, 2  ;;  %v22463_v44 = vshll.u32 %v32901_v15, 16  ;;  %v22442_v10 = vor.u32 %v22441_v49, %v22437_v33 }
 0x4e3   : > { %24419 = vmatmul.mubr.bf16.gmra.mrb[180].mxu1 %v21911_v16  ;;  %v22451_v55 = vrot.slane %v22449_v36, 6  ;;  %v22457_v45 = vrot.slane %v22455_v0, 7  ;;  %v22469_v58 = vshll.u32 %v32929_v52, 16  ;;  %v22462_v5 = vrot.slane %v22460_v60, 6 }
 0x4e4   : > { %28275 = vmatpush3.bf16.msra.mxu1 %v28661_v38  ;;  %v22747_v20 = vcombine.low %v22739_v22, %v22746_v7  ;;  %v22438_v2 = vsel %vm32111_vm6, %v22433_v19, %v22437_v33  ;;  %v22465_v16 = vrot.slane %v22463_v44, 7  ;;  %v22443_v28 = vrot.slane %v22442_v10, 2  ;;  %v28662_v22 = vld [vmem:[#allocation9 + $0x218] sm:$0xff]  }
 0x4e5   : > { %28268 = vmatprep.subr.bf16.mxu1 %v34126_v46  ;;  %v22452_v56 = vor.u32 %v22451_v55, %v22447_v30  ;;  %v22471_v26 = vrot.slane %v22469_v58, 7  ;;  %v21929_v15 = vcombine.low %v33274_v41, %v22168_v47  ;;  %v21930_v63 = vcombine.low %v27128_v39, %v33307_v37 }
 0x4e6   : > { %24426 = vmatprep.mubr.bf16.mxu1 %v22747_v20  ;;  %v22466_v23 = vor.u32 %v22465_v16, %v22462_v5  ;;  %v22473_v40 = vshrl.u32 %v32929_v52, 16  ;;  %v22479_v53 = vshll.u32 %v32949_v12, 16  ;;  %v22448_v59 = vsel %vm32111_vm6, %v22443_v28, %v22447_v30  ;;  %v33326_v52 = vpop.f32.mrb[116].mxu1  ;;  %v28663_v20 = vld [vmem:[#allocation9 + $0x220] sm:$0xff]  }
 0x4e7   : > { %v22453_v57 = vrot.slane %v22452_v56, 2  ;;  %v21937_v3 = vrot.slane %v21929_v15, %v32031_v14  ;;  %v22483_v42 = vshrl.u32 %v32949_v12, 16  ;;  %v22748_v41 = vcombine.low %v22438_v2, %v22448_v59  ;;  %v33331_v7 = vpop.f32.mrb[117].mxu1 }
 0x4e8   : > { %28276 = vmatpush3.bf16.msra.mxu1 %v28662_v22  ;;  %v22467_v29 = vrot.slane %v22466_v23, 2  ;;  %v21944_v47 = vrot.slane %v21930_v63, %v32031_v14  ;;  %v22475_v33 = vrot.slane %v22473_v40, 6  ;;  %v22481_v30 = vrot.slane %v22479_v53, 7  ;;  %v33336_v10 = vpop.f32.mrb[118].mxu1 }
 0x4e9   : > { %28269 = vmatprep.subr.bf16.mxu1 %v34126_v46  ;;  %v22458_v49 = vsel %vm32111_vm6, %v22453_v57, %v22457_v45  ;;  %v22485_v36 = vrot.slane %v22483_v42, 6  ;;  %v22489_v0 = vshll.u32 %v32983_v6, 16  ;;  %v22756_v19 = vrot.slane %v22748_v41, %v32031_v14  ;;  %v33339_v6 = vpop.f32.mrb[119].mxu1  ;;  %v28664_v42 = vld [vmem:[#allocation9 + $0x228] sm:$0xff]  }
 0x4ea   : > { %v22472_v12 = vsel %vm32111_vm6, %v22467_v29, %v22471_v26  ;;  %v21945_v60 = vcombine.low %v21937_v3, %v21944_v47  ;;  %v22476_v44 = vor.u32 %v22475_v33, %v22471_v26  ;;  %v22494_v45 = vshrl.u32 %v32944_v34, 16 }
 0x4eb   : > { %24427 = vmatmul.mubr.bf16.gmra.mrb[184].mxu1 %v21928_v24  ;;  %v22749_v55 = vcombine.low %v22458_v49, %v22472_v12  ;;  %v22486_v58 = vor.u32 %v22485_v36, %v22481_v30  ;;  %v22491_v38 = vrot.slane %v22489_v0, 7  ;;  %v22497_v24 = vshll.u32 %v32944_v34, 16 }
 0x4ec   : > { %28277 = vmatpush3.bf16.msra.mxu1 %v28663_v20  ;;  %v22477_v2 = vrot.slane %v22476_v44, 2  ;;  %v22503_v5 = vshll.u32 %v32971_v13, 16  ;;  %v22507_v16 = vshrl.u32 %v32971_v13, 16  ;;  %v22496_v26 = vrot.slane %v22494_v45, 6 }
 0x4ed   : > { %28270 = vmatprep.subr.bf16.mxu1 %v34126_v46  ;;  %v22763_v28 = vrot.slane %v22749_v55, %v32031_v14  ;;  %v22487_v56 = vrot.slane %v22486_v58, 2  ;;  %v22513_v39 = vshll.u32 %v32975_v31, 16  ;;  %v22499_v23 = vrot.slane %v22497_v24, 7  ;;  %v28665_v58 = vld [vmem:[#allocation9 + $0x230] sm:$0xff]  }
 0x4ee   : > { %v22482_v15 = vsel %vm32111_vm6, %v22477_v2, %v22481_v30  ;;  %v22505_v63 = vrot.slane %v22503_v5, 7  ;;  %v22509_v40 = vrot.slane %v22507_v16, 6  ;;  %v21780_v3 = vcombine.high %v33307_v37, %v33307_v37  ;;  %v27132_v24 = vld.sshfl [vmem:[#allocation3 + $0x44] sm:$0x3 pattern:$0x76325410] }
 0x4ef   : > { %v22764_v53 = vcombine.low %v22756_v19, %v22763_v28  ;;  %v22492_v59 = vsel %vm32111_vm6, %v22487_v56, %v22491_v38  ;;  %v22515_v57 = vrot.slane %v22513_v39, 7  ;;  %v22500_v22 = vor.u32 %v22499_v23, %v22496_v26 }
 0x4f0   : > { %28278 = vmatpush3.bf16.msra.mxu1 %v28664_v42  ;;  %v22510_v29 = vor.u32 %v22509_v40, %v22505_v63  ;;  %v22765_v41 = vcombine.low %v22482_v15, %v22492_v59  ;;  %v21947_v47 = vcombine.low %v32944_v34, %v32971_v13  ;;  %v21946_v33 = vcombine.low %v21780_v3, %v32958_v8 }
 0x4f1   : > { %28271 = vmatprep.subr.bf16.mxu1 %v34126_v46  ;;  %24434 = vmatprep.mubr.bf16.mxu1 %v22764_v53  ;;  %v22517_v49 = vshrl.u32 %v32975_v31, 16  ;;  %v22523_v30 = vshll.u32 %v33030_v18, 16  ;;  %v22528_v36 = vshrl.u32 %v32985_v17, 16  ;;  %v22501_v37 = vrot.slane %v22500_v22, 2 }
 0x4f2   : > { %v22511_v0 = vrot.slane %v22510_v29, 2  ;;  %v22773_v12 = vrot.slane %v22765_v41, %v32031_v14  ;;  %v21961_v19 = vrot.slane %v21947_v47, %v32031_v14  ;;  %v21954_v34 = vrot.slane %v21946_v33, %v32031_v14 }
 0x4f3   : > { %24435 = vmatmul.mubr.bf16.gmra.mrb[188].mxu1 %v21945_v60  ;;  %v22519_v13 = vrot.slane %v22517_v49, 6  ;;  %v22525_v44 = vrot.slane %v22523_v30, 7  ;;  %v22530_v55 = vrot.slane %v22528_v36, 6  ;;  %v22506_v8 = vsel %vm32111_vm6, %v22501_v37, %v22505_v63  ;;  %v28666_v63 = vld [vmem:[#allocation9 + $0x238] sm:$0xff]  }
 0x4f4   : > { %28279 = vmatpush3.bf16.msra.mxu1 %v28665_v58  ;;  %v22516_v31 = vsel %vm32111_vm6, %v22511_v0, %v22515_v57  ;;  %v22531_v18 = vshll.u32 %v32985_v17, 16  ;;  %v22537_v60 = vshll.u32 %v33012_v43, 16  ;;  %v21962_v45 = vcombine.low %v21954_v34, %v21961_v19 }
 0x4f5   : > { %28272 = vmatprep.subr.bf16.mxu1 %v34126_v46  ;;  %v22766_v38 = vcombine.low %v22506_v8, %v22516_v31  ;;  %v22520_v20 = vor.u32 %v22519_v13, %v22515_v57  ;;  %v22541_v2 = vshrl.u32 %v33012_v43, 16  ;;  %v22547_v28 = vshll.u32 %v33014_v62, 16 }
 0x4f6   : > { %v22533_v5 = vrot.slane %v22531_v18, 7  ;;  %v22539_v16 = vrot.slane %v22537_v60, 7  ;;  %v22551_v56 = vshrl.u32 %v33014_v62, 16  ;;  %v22557_v23 = vshll.u32 %v33036_v48, 16 }
 0x4f7   : > { %v22780_v26 = vrot.slane %v22766_v38, %v32031_v14  ;;  %v22521_v39 = vrot.slane %v22520_v20, 2  ;;  %v22543_v15 = vrot.slane %v22541_v2, 6  ;;  %v22549_v53 = vrot.slane %v22547_v28, 7 }
 0x4f8   : > { %28280 = vmatpush3.bf16.msra.mxu1 %v28666_v63  ;;  %v22534_v40 = vor.u32 %v22533_v5, %v22530_v55  ;;  %v22553_v59 = vrot.slane %v22551_v56, 6  ;;  %v21963_v57 = vcombine.low %v27132_v24, %v32985_v17  ;;  %v22559_v29 = vrot.slane %v22557_v23, 7  ;;  %v27135_v60 = vld.sshfl [vmem:[#allocation3 + $0x50] sm:$0x33 pattern:$0x76325410] }
 0x4f9   : > { %v22781_v3 = vcombine.low %v22773_v12, %v22780_v26  ;;  %v22526_v42 = vsel %vm32111_vm6, %v22521_v39, %v22525_v44  ;;  %v22544_v22 = vor.u32 %v22543_v15, %v22539_v16  ;;  %v21964_v47 = vcombine.low %v33012_v43, %v33020_v25  ;;  %v34302_v5 = vld [vmem:[#allocation46_spill] sm:$0xff] }
 0x4fa   : > { %v22535_v62 = vrot.slane %v22534_v40, 2  ;;  %v22554_v41 = vor.u32 %v22553_v59, %v22549_v53  ;;  %v21971_v48 = vrot.slane %v21963_v57, %v32031_v14  ;;  %v22562_v49 = vshrl.u32 %v32993_v50, 16  ;;  %v33390_v13 = vpop.f32.mrb[168].mxu0  ;;  %v34303_v59 = vld [vmem:[#allocation53_spill] sm:$0xff] }
 0x4fb   : > { %24442 = vmatprep.mubr.bf16.mxu1 %v22781_v3  ;;  %v22545_v33 = vrot.slane %v22544_v22, 2  ;;  %v22565_v30 = vshll.u32 %v32993_v50, 16  ;;  %v22571_v17 = vshll.u32 %v33082_v11, 16  ;;  %v21978_v0 = vrot.slane %v21964_v47, %v32031_v14  ;;  %v33394_v58 = vpop.f32.mrb[169].mxu0 }
 0x4fc   : > { %24443 = vmatmul.mubr.bf16.gmra.mrb[192].mxu1 %v21962_v45  ;;  %v22540_v36 = vsel %vm32111_vm6, %v22535_v62, %v22539_v16  ;;  %v22555_v37 = vrot.slane %v22554_v41, 2  ;;  %v22575_v12 = vshrl.u32 %v33082_v11, 16  ;;  %v22564_v19 = vrot.slane %v22562_v49, 6  ;;  %v33397_v38 = vpop.f32.mrb[170].mxu0  ;;  %v33399_v45 = vpop.f32.mrb[120].mxu1  ;;  %v34304_v62 = vld [vmem:[#allocation52_spill] sm:$0xff] }
 0x4fd   : > { %v22550_v43 = vsel %vm32111_vm6, %v22545_v33, %v22549_v53  ;;  %v22782_v25 = vcombine.low %v22526_v42, %v22540_v36  ;;  %v22567_v34 = vrot.slane %v22565_v30, 7  ;;  %v22573_v44 = vrot.slane %v22571_v17, 7  ;;  %v33404_v28 = vpop.f32.mrb[171].mxu0  ;;  %v33406_v56 = vpop.f32.mrb[121].mxu1  ;;  %v34305_v49 = vld [vmem:[#allocation49_spill] sm:$0xff] }
 0x4fe   : > { %v22560_v50 = vsel %vm32111_vm6, %v22555_v37, %v22559_v29  ;;  %v22577_v55 = vrot.slane %v22575_v12, 6  ;;  %v21979_v31 = vcombine.low %v21971_v48, %v21978_v0  ;;  %v22581_v11 = vshll.u32 %v33046_v35, 16  ;;  %v33410_v63 = vpop.f32.mrb[122].mxu1 }
 0x4ff   : > { %v22783_v8 = vcombine.low %v22550_v43, %v22560_v50  ;;  %v22568_v18 = vor.u32 %v22567_v34, %v22564_v19  ;;  %v22790_v20 = vrot.slane %v22782_v25, %v32031_v14  ;;  %v22585_v24 = vshrl.u32 %v33046_v35, 16  ;;  %v33413_v35 = vpop.f32.mrb[123].mxu1 }
 0x500   : > { %v22578_v2 = vor.u32 %v22577_v55, %v22573_v44  ;;  %v22596_v16 = vshrl.u32 %v34302_v5, 16  ;;  %v22583_v15 = vrot.slane %v22581_v11, 7  ;;  %v22599_v23 = vshll.u32 %v34302_v5, 16 }
 0x501   : > { %v22797_v26 = vrot.slane %v22783_v8, %v32031_v14  ;;  %v22569_v39 = vrot.slane %v22568_v18, 2  ;;  %v22587_v53 = vrot.slane %v22585_v24, 6  ;;  %v22591_v57 = vshll.u32 %v34303_v59, 16 }
 0x502   : > { %v22579_v40 = vrot.slane %v22578_v2, 2  ;;  %v22598_v3 = vrot.slane %v22596_v16, 6  ;;  %v22601_v29 = vrot.slane %v22599_v23, 7  ;;  %v22605_v41 = vshll.u32 %v34304_v62, 16  ;;  %v34307_v16 = vld [vmem:[#allocation56_spill] sm:$0xff] }
 0x503   : > { %v22798_v42 = vcombine.low %v22790_v20, %v22797_v26  ;;  %v22574_v22 = vsel %vm32111_vm6, %v22569_v39, %v22573_v44  ;;  %v22588_v48 = vor.u32 %v22587_v53, %v22583_v15  ;;  %v21825_v33 = vcombine.high %v27135_v60, %v27135_v60  ;;  %v34306_v20 = vld [vmem:[#allocation63_spill] sm:$0xff] }
 0x504   : > { %v22584_v47 = vsel %vm32111_vm6, %v22579_v40, %v22583_v15  ;;  %v21981_v30 = vcombine.low %v34305_v49, %v34302_v5  ;;  %v22602_v17 = vor.u32 %v22601_v29, %v22598_v3  ;;  %v22607_v36 = vrot.slane %v22605_v41, 7  ;;  %v33443_v49 = vld.sshfl [vmem:[#allocation3 + $0x68] sm:$0x33 pattern:$0x76325410] }
 0x505   : > { %24450 = vmatprep.mubr.bf16.mxu1 %v22798_v42  ;;  %v22799_v37 = vcombine.low %v22574_v22, %v22584_v47  ;;  %v22609_v0 = vshrl.u32 %v34304_v62, 16  ;;  %v22589_v12 = vrot.slane %v22588_v48, 2  ;;  %v22593_v43 = vrot.slane %v22591_v57, 7  ;;  %v34308_v57 = vld [vmem:[#allocation61_spill] sm:$0xff] }
 0x506   : > { %24451 = vmatmul.mubr.bf16.gmra.mrb[196].mxu1 %v21979_v31  ;;  %v21980_v25 = vcombine.low %v27135_v60, %v21825_v33  ;;  %v22615_v19 = vshll.u32 %v33128_v1, 16  ;;  %v22603_v34 = vrot.slane %v22602_v17, 2  ;;  %v21995_v50 = vrot.slane %v21981_v30, %v32031_v14  ;;  %v33432_v60 = vld.sshfl [vmem:[#allocation3 + $0x64] sm:$0x13 pattern:$0x76325410] }
 0x507   : > { %v22611_v44 = vrot.slane %v22609_v0, 6  ;;  %v22619_v55 = vshrl.u32 %v33128_v1, 16  ;;  %v22594_v8 = vsel %vm32111_vm6, %v22589_v12, %v22593_v43  ;;  %v22807_v18 = vrot.slane %v22799_v37, %v32031_v14  ;;  %v34309_v12 = vld [vmem:[#allocation57_spill] sm:$0xff] }
 0x508   : > { %v22617_v11 = vrot.slane %v22615_v19, 7  ;;  %v22625_v2 = vshll.u32 %v34306_v20, 16  ;;  %v22608_v31 = vsel %vm32111_vm6, %v22603_v34, %v22607_v36  ;;  %v22630_v26 = vshrl.u32 %v34307_v16, 16 }
 0x509   : > { %v22612_v24 = vor.u32 %v22611_v44, %v22607_v36  ;;  %v22621_v5 = vrot.slane %v22619_v55, 6  ;;  %v22800_v39 = vcombine.low %v22594_v8, %v22608_v31  ;;  %v21988_v1 = vrot.slane %v21980_v25, %v32031_v14  ;;  %v33451_v19 = vld.sshfl [vmem:[#allocation3 + $0x6c] sm:$0x13 pattern:$0x76325410] }
 0x50a   : > { %v22627_v15 = vrot.slane %v22625_v2, 7  ;;  %v22633_v23 = vshll.u32 %v34307_v16, 16  ;;  %v22632_v59 = vrot.slane %v22630_v26, 6  ;;  %v22639_v3 = vshll.u32 %v34308_v57, 16 }
 0x50b   : > { %v22613_v40 = vrot.slane %v22612_v24, 2  ;;  %v22622_v53 = vor.u32 %v22621_v5, %v22617_v11  ;;  %v22814_v42 = vrot.slane %v22800_v39, %v32031_v14  ;;  %v22643_v29 = vshrl.u32 %v34308_v57, 16 }
 0x50c   : > { %v22635_v22 = vrot.slane %v22633_v23, 7  ;;  %v22649_v41 = vshll.u32 %v33432_v60, 16  ;;  %v22641_v33 = vrot.slane %v22639_v3, 7  ;;  %v21996_v17 = vcombine.low %v21988_v1, %v21995_v50 }
 0x50d   : > { %v22618_v47 = vsel %vm32111_vm6, %v22613_v40, %v22617_v11  ;;  %v22623_v48 = vrot.slane %v22622_v53, 2  ;;  %v22815_v30 = vcombine.low %v22807_v18, %v22814_v42  ;;  %v22645_v37 = vrot.slane %v22643_v29, 6 }
 0x50e   : > { %v22636_v36 = vor.u32 %v22635_v22, %v22632_v59  ;;  %v21997_v43 = vcombine.low %v34304_v62, %v34309_v12  ;;  %v21998_v25 = vcombine.low %v34307_v16, %v34308_v57  ;;  %v33455_v34 = vcombine.high %v33432_v60, %v33432_v60 }
 0x50f   : > { %v22628_v0 = vsel %vm32111_vm6, %v22623_v48, %v22627_v15  ;;  %24458 = vmatprep.mubr.bf16.mxu1 %v22815_v30  ;;  %v22646_v50 = vor.u32 %v22645_v37, %v22641_v33  ;;  %v33459_v8 = vcombine.high %v33443_v49, %v33443_v49  ;;  %v22651_v18 = vrot.slane %v22649_v41, 7 }
 0x510   : > { %v22637_v44 = vrot.slane %v22636_v36, 2  ;;  %v22816_v55 = vcombine.low %v22618_v47, %v22628_v0  ;;  %24459 = vmatmul.mubr.bf16.gmra.mrb[200].mxu1 %v21996_v17  ;;  %v22005_v62 = vrot.slane %v21997_v43, %v32031_v14  ;;  %v22653_v11 = vshrl.u32 %v33432_v60, 16  ;;  %v27142_v36 = vld.sshfl [vmem:[#allocation3 + $0x6c] sm:$0x3 pattern:$0x76325410] }
 0x511   : > { %v22647_v2 = vrot.slane %v22646_v50, 2  ;;  %v22012_v31 = vrot.slane %v21998_v25, %v32031_v14  ;;  %v33468_v24 = vcombine.high %v33451_v19, %v33451_v19  ;;  %v22664_v26 = vshrl.u32 %v33443_v49, 16  ;;  %v33484_v37 = vpop.f32.mrb[172].mxu0  ;;  %v34311_v50 = vld [vmem:[#allocation40_spill] sm:$0xff] }
 0x512   : > { %v22642_v20 = vsel %vm32111_vm6, %v22637_v44, %v22641_v33  ;;  %v22824_v5 = vrot.slane %v22816_v55, %v32031_v14  ;;  %v22655_v16 = vrot.slane %v22653_v11, 6  ;;  %v22667_v39 = vshll.u32 %v33443_v49, 16  ;;  %v33480_v47 = vpop.f32.mrb[124].mxu1  ;;  %v34310_v44 = vld [vmem:[#allocation45_spill] sm:$0xff] }
 0x513   : > { %v22652_v1 = vsel %vm32111_vm6, %v22647_v2, %v22651_v18  ;;  %v22659_v15 = vshll.u32 %v33455_v34, 16  ;;  %v22673_v23 = vshll.u32 %v33459_v8, 16  ;;  %v22677_v40 = vshrl.u32 %v33459_v8, 16  ;;  %v33486_v0 = vpop.f32.mrb[125].mxu1 }
 0x514   : > { %v22817_v53 = vcombine.low %v22642_v20, %v22652_v1  ;;  %v22656_v59 = vor.u32 %v22655_v16, %v22651_v18  ;;  %v22666_v57 = vrot.slane %v22664_v26, 6  ;;  %v22669_v3 = vrot.slane %v22667_v39, 7  ;;  %v33492_v18 = vpop.f32.mrb[173].mxu0  ;;  %v33494_v11 = vpop.f32.mrb[126].mxu1 }
 0x515   : > { %v22675_v42 = vrot.slane %v22673_v23, 7  ;;  %v22679_v22 = vrot.slane %v22677_v40, 6  ;;  %v22683_v29 = vshll.u32 %v33451_v19, 16  ;;  %v22687_v41 = vshrl.u32 %v33451_v19, 16  ;;  %v33496_v26 = vpop.f32.mrb[174].mxu0  ;;  %v33498_v39 = vpop.f32.mrb[127].mxu1 }
 0x516   : > { %v22831_v48 = vrot.slane %v22817_v53, %v32031_v14  ;;  %v22657_v33 = vrot.slane %v22656_v59, 2  ;;  %v22670_v30 = vor.u32 %v22669_v3, %v22666_v57  ;;  %v22693_v17 = vshll.u32 %v33468_v24, 16  ;;  %v34312_v53 = vld [vmem:[#allocation42_spill] sm:$0xff]  ;;  %v34313_v59 = vld [vmem:[#allocation44_spill] sm:$0xff] }
 0x517   : > { %v22680_v12 = vor.u32 %v22679_v22, %v22675_v42  ;;  %v22685_v43 = vrot.slane %v22683_v29, 7  ;;  %v22689_v25 = vrot.slane %v22687_v41, 6  ;;  %v33490_v55 = vadd.f32 %v34311_v50, %v34310_v44  ;;  %v27140_v3 = vld.sshfl [vmem:[#allocation3 + $0x64] sm:$0x3 pattern:$0x76325410] }
 0x518   : > { %v22832_v20 = vcombine.low %v22824_v5, %v22831_v48  ;;  %v22661_v2 = vrot.slane %v22659_v15, 7  ;;  %v22671_v16 = vrot.slane %v22670_v30, 2  ;;  %v22013_v1 = vcombine.low %v22005_v62, %v22012_v31  ;;  %v33504_v22 = vpop.f32.mrb[175].mxu0  ;;  %v34314_v41 = vld [vmem:[#allocation47_spill] sm:$0xff] }
 0x519   : > { %v22681_v23 = vrot.slane %v22680_v12, 2  ;;  %v22690_v40 = vor.u32 %v22689_v25, %v22685_v43  ;;  %v33502_v57 = vadd.f32 %v34313_v59, %v34312_v53  ;;  %v22014_v29 = vcombine.low %v27140_v3, %v33443_v49  ;;  %v34315_v62 = vld [vmem:[#allocation51_spill] sm:$0xff]  ;;  %v27186_v48 = vld.sshfl [vmem:[#allocation3 + $0x5c] sm:$0x13 pattern:$0x76325410] }
 0x51a   : > { %24466 = vmatprep.mubr.bf16.mxu1 %v22832_v20  ;;  %v22662_v5 = vsel %vm32111_vm6, %v22657_v33, %v22661_v2  ;;  %v22676_v15 = vsel %vm32111_vm6, %v22671_v16, %v22675_v42  ;;  %v33513_v31 = vadd.f32 %v34315_v62, %v34314_v41  ;;  %v22695_v12 = vrot.slane %v22693_v17, 7  ;;  %v27187_v50 = vld.sshfl [vmem:[#allocation3 + $0x60] sm:$0x32 pattern:$0x76325410]  ;;  %v34316_v20 = vld [vmem:[#allocation48_spill] sm:$0xff] }
 0x51b   : > { %24467 = vmatmul.mubr.bf16.gmra.mrb[204].mxu1 %v22013_v1  ;;  %v22691_v30 = vrot.slane %v22690_v40, 2  ;;  %v22833_v25 = vcombine.low %v22662_v5, %v22676_v15  ;;  %v22015_v44 = vcombine.low %v33459_v8, %v27142_v36  ;;  %v34317_v53 = vld [vmem:[#allocation50_spill] sm:$0xff]  ;;  %v22686_v49 = vsel %vm32111_vm6, %v22681_v23, %v22685_v43  ;;  %v34320_v40 = vld [vmem:[#allocation55_spill] sm:$0xff] }
 0x51c   : > { %v33518_v33 = vadd.f32 %v34317_v53, %v34316_v20  ;;  %v34318_v2 = vld [vmem:[#allocation54_spill] sm:$0xff]  ;;  %v34321_v17 = vld [vmem:[#allocation59_spill] sm:$0xff]  ;;  %v23075_v8 = vcombine.high %v27186_v48, %v27186_v48  ;;  %v22022_v3 = vrot.slane %v22014_v29, %v32031_v14  ;;  %v23083_v5 = vcombine.high %v27187_v50, %v27187_v50  ;;  %v34322_v53 = vld [vmem:[#allocation60_spill] sm:$0xff] }
 0x51d   : > { %v34319_v42 = vld [vmem:[#allocation58_spill] sm:$0xff]  ;;  %v22696_v1 = vsel %vm32111_vm6, %v22691_v30, %v22695_v12  ;;  %v33530_v59 = vadd.f32 %v34321_v17, %v34320_v40  ;;  %v22841_v15 = vrot.slane %v22833_v25, %v32031_v14  ;;  %v22029_v41 = vrot.slane %v22015_v44, %v32031_v14  ;;  %v27189_v12 = vld.sshfl [vmem:[#allocation3 + $0x68] sm:$0x32 pattern:$0x76325410]  ;;  %v34325_v44 = vld [vmem:[#allocation64_spill] sm:$0xff] }
 0x51e   : > { %v33522_v16 = vadd.f32 %v34319_v42, %v34318_v2  ;;  %v22834_v36 = vcombine.low %v22686_v49, %v22696_v1  ;;  %v23203_v62 = vrot.slane %v27186_v48, 7  ;;  %v23206_v20 = vrot.slane %v23075_v8, 7  ;;  %v34326_v49 = vld [vmem:[#allocation65_spill] sm:$0xff]  ;;  %v34327_v1 = vld [vmem:[#allocation67_spill] sm:$0xff] }
 0x51f   : > { %v23210_v23 = vrot.slane %v23083_v5, 7  ;;  %v23213_v27 = vrot.slane %v33432_v60, 7  ;;  %v33539_v30 = vadd.f32 %v33228_v9, %v33220_v32  ;;  %v34323_v2 = vrot.slane %v34322_v53, 2  ;;  %v34328_v32 = vld [vmem:[#allocation62_spill] sm:$0xff] }
 0x520   : > { %v22848_v43 = vrot.slane %v22834_v36, %v32031_v14  ;;  %v23205_v25 = vrot.slane %v23203_v62, 2  ;;  %v33547_v48 = vadd.f32 %v34325_v44, %v33236_v54  ;;  %v33551_v40 = vadd.f32 %v34327_v1, %v34326_v49  ;;  %v34329_v9 = vld [vmem:[#allocation66_spill] sm:$0xff] }
 0x521   : > { %v23204_v42 = vsel %vm32203_vm13, %v34323_v2, %v23203_v62  ;;  %v27201_v17 = vrot.slane %v27187_v50, 9  ;;  %v23212_v8 = vrot.slane %v23210_v23, 2  ;;  %v33555_v36 = vadd.f32 %v34329_v9, %v34328_v32 }
 0x522   : > { %v22849_v60 = vcombine.low %v22841_v15, %v22848_v43  ;;  %v22030_v5 = vcombine.low %v22022_v3, %v22029_v41  ;;  %v23207_v53 = vsel %vm32203_vm13, %v23205_v25, %v23206_v20  ;;  %v23099_v62 = vcombine.high %v27189_v12, %v27189_v12 }
 0x523   : > { %v23211_v54 = vsel %vm32203_vm13, %v27201_v17, %v23210_v23  ;;  %v23214_v2 = vsel %vm32203_vm13, %v23212_v8, %v23213_v27  ;;  %v23347_v44 = vcombine.low %v23204_v42, %v23207_v53  ;;  %v23223_v43 = vrot.slane %v33451_v19, 7 }
 0x524   : > { %24474 = vmatprep.mubr.bf16.mxu1 %v22849_v60  ;;  %v23348_v50 = vcombine.low %v23211_v54, %v23214_v2  ;;  %v23220_v15 = vrot.slane %v23099_v62, 7  ;;  %v23215_v3 = vrot.slane %v23213_v27, 2  ;;  %v23216_v41 = vrot.slane %v33455_v34, 7 }
 0x525   : > { %24475 = vmatmul.mubr.bf16.gmra.mrb[208].mxu1 %v22030_v5  ;;  %v23226_v20 = vrot.slane %v33468_v24, 7  ;;  %v33570_v23 = vadd.f32 %v33294_v21, %v33287_v51  ;;  %v27202_v42 = vrot.slane %v27189_v12, 9  ;;  %v23225_v1 = vrot.slane %v23223_v43, 2  ;;  %v28034_v51 = vpop.f32.mrb[176].mxu0 }
 0x526   : > { %28257 = vmatprep.mubr.msk.bf16.mxu1 %vm28801_vm15, %v34126_v46  ;;  %v23362_v25 = vrot.slane %v23348_v50, %v32031_v14  ;;  %v23222_v49 = vrot.slane %v23220_v15, 2  ;;  %v23355_v60 = vrot.slane %v23347_v44, %v32031_v14  ;;  %v33576_v19 = vadd.f32 %v33301_v61, %v33296_v4  ;;  %v28035_v4 = vpop.f32.mrb[177].mxu0 }
 0x527   : > { %v33580_v34 = vadd.f32 %v33331_v7, %v33326_v52  ;;  %v33584_v24 = vadd.f32 %v33339_v6, %v33336_v10  ;;  %v23227_v27 = vsel %vm32203_vm13, %v23225_v1, %v23226_v20  ;;  %v33592_v12 = vadd.f32 %v33394_v58, %v33390_v13  ;;  %v28037_v17 = vpop.f32.mrb[178].mxu0 }
 0x528   : > { %v23224_v21 = vsel %vm32203_vm13, %v23222_v49, %v23223_v43  ;;  %v23363_v61 = vcombine.low %v23355_v60, %v23362_v25  ;;  %v23221_v52 = vsel %vm32203_vm13, %v27202_v42, %v23220_v15  ;;  %v33598_v10 = vadd.f32 %v33404_v28, %v33397_v38  ;;  %v28038_v58 = vpop.f32.mrb[179].mxu0 }
 0x529   : > { %v23365_v7 = vcombine.low %v23224_v21, %v23227_v27  ;;  %v33602_v6 = vadd.f32 %v33406_v56, %v33399_v45  ;;  %v33606_v8 = vadd.f32 %v33413_v35, %v33410_v63  ;;  %v33610_v13 = vadd.f32 %v33492_v18, %v33484_v37  ;;  %v27900_v56 = vpop.f32.mrb[128].mxu1  ;;  %v33625_v63 = vld [vmem:[%s33999_s4] ss:$0 sm:$0xff] }
 0x52a   : > { %v23217_v32 = vsel %vm32203_vm13, %v23215_v3, %v23216_v41  ;;  %v27896_v38 = vadd.f32 %v33486_v0, %v33480_v47  ;;  %v33618_v28 = vadd.f32 %v33504_v22, %v33496_v26  ;;  %v27899_v45 = vadd.f32 %v33498_v39, %v33494_v11  ;;  %v27901_v47 = vpop.f32.mrb[129].mxu1 }
 0x52b   : > { %v23364_v35 = vcombine.low %v23217_v32, %v23221_v52  ;;  %v33627_v37 = vadd.f32 %v28035_v4, %v28034_v51  ;;  %v33629_v18 = vadd.f32 %v28038_v58, %v28037_v17  ;;  %v27902_v26 = vadd.f32 %v27901_v47, %v27900_v56  ;;  %v27903_v39 = vpop.f32.mrb[130].mxu1 }
 0x52c   : > { %v33634_v0 = vadd.f32 %v27896_v38, %v33625_v63  ;;  %v33637_v11 = vadd.f32 %v27899_v45, %v33625_v63  ;;  %v23379_v22 = vrot.slane %v23365_v7, %v32031_v14  ;;  %v27904_v29 = vpop.f32.mrb[131].mxu1 }
 0x52d   : > { %28258 = vmatmul.mubr.bf16.vlgmr.msra.gmra.mrb[212].mxu1 %v23363_v61  ;;  %v33641_v9 = vadd.f32 %v27902_v26, %v33625_v63  ;;  %v27905_v5 = vadd.f32 %v27904_v29, %v27903_v39  ;;  %v23372_v53 = vrot.slane %v23364_v35, %v32031_v14 }
 0x52e   : > { %28261 = vmatprep.mubr.msk.bf16.mxu1 %vm28801_vm15, %v34126_v46  ;;  %vm25567_vm15 = vcmask 1043459  }
 0x52f   : > { %v33645_v62 = vadd.f32 %v27905_v5, %v33625_v63  ;;  %v23380_v46 = vcombine.low %v23372_v53, %v23379_v22  ;;  %v24098_v53 = vadd.f32 %v33490_v55, %v33625_v63 }
 0x534   : > { %v28040_v54 = vpop.f32.mrb[180].mxu0 }
 0x535   : > { %28262 = vmatmul.mubr.bf16.gmra.mrb[216].mxu1 %v23380_v46  ;;  %v28041_v2 = vpop.f32.mrb[181].mxu0 }
 0x536   : > { %v33647_v44 = vadd.f32 %v28041_v2, %v28040_v54  ;;  %v28043_v50 = vpop.f32.mrb[182].mxu0 }
 0x537   : > { %v28044_v15 = vpop.f32.mrb[183].mxu0  ;;  %v27906_v3 = vpop.f32.mrb[132].mxu1 }
 0x538   : > { %v33649_v43 = vadd.f32 %v28044_v15, %v28043_v50  ;;  %v27907_v41 = vpop.f32.mrb[133].mxu1 }
 0x539   : > { %v27908_v20 = vadd.f32 %v27907_v41, %v27906_v3  ;;  %v27909_v25 = vpop.f32.mrb[134].mxu1  ;;  %v24101_v3 = vadd.f32 %v33502_v57, %v33625_v63  ;;  %v24106_v57 = vadd.f32 %v33522_v16, %v33625_v63 }
 0x53a   : > { %v27910_v42 = vpop.f32.mrb[135].mxu1 }
 0x53b   : > { %v33652_v49 = vadd.f32 %v27908_v20, %v33625_v63  ;;  %v27911_v1 = vadd.f32 %v27910_v42, %v27909_v25 }
 0x53d   : > { %v33655_v60 = vadd.f32 %v27911_v1, %v33625_v63 }
 0x545   : > { %v28046_v51 = vpop.f32.mrb[184].mxu0 }
 0x546   : > { %v28047_v21 = vpop.f32.mrb[185].mxu0 }
 0x547   : > { %v27912_v27 = vpop.f32.mrb[136].mxu1  ;;  %v33657_v4 = vadd.f32 %v28047_v21, %v28046_v51  ;;  %v28049_v61 = vpop.f32.mrb[186].mxu0 }
 0x548   : > { %v27913_v52 = vpop.f32.mrb[137].mxu1  ;;  %v28050_v7 = vpop.f32.mrb[187].mxu0 }
 0x549   : > { %v27914_v17 = vadd.f32 %v27913_v52, %v27912_v27  ;;  %v27915_v58 = vpop.f32.mrb[138].mxu1  ;;  %v33659_v32 = vadd.f32 %v28050_v7, %v28049_v61 }
 0x54a   : > { %v27916_v38 = vpop.f32.mrb[139].mxu1 }
 0x54b   : > { %v33662_v45 = vadd.f32 %v27914_v17, %v33625_v63  ;;  %v27917_v56 = vadd.f32 %v27916_v38, %v27915_v58 }
 0x54d   : > { %v33665_v35 = vadd.f32 %v27917_v56, %v33625_v63 }
 0x556   : > { %v28052_v47 = vpop.f32.mrb[188].mxu0 }
 0x557   : > { %v28053_v26 = vpop.f32.mrb[189].mxu0  ;;  %v27934_v39 = vpop.f32.mrb[140].mxu1 }
 0x558   : > { %v33667_v22 = vadd.f32 %v28053_v26, %v28052_v47  ;;  %v28055_v29 = vpop.f32.mrb[190].mxu0  ;;  %v27935_v5 = vpop.f32.mrb[141].mxu1 }
 0x559   : > { %v28056_v46 = vpop.f32.mrb[191].mxu0  ;;  %v27936_v54 = vadd.f32 %v27935_v5, %v27934_v39  ;;  %v27937_v2 = vpop.f32.mrb[142].mxu1 }
 0x55a   : > { %v33671_v50 = vadd.f32 %v28056_v46, %v28055_v29  ;;  %v27938_v15 = vpop.f32.mrb[143].mxu1 }
 0x55b   : > { %v24203_v41 = vadd.f32 %v27936_v54, %v24098_v53  ;;  %v27939_v20 = vadd.f32 %v27938_v15, %v27937_v2 }
 0x55d   : > { %v24206_v25 = vadd.f32 %v27939_v20, %v24101_v3  ;;  %v33676_v42 = vadd.f32 %v33513_v31, %v24203_v41  ;;  %v24109_v31 = vadd.f32 %v33530_v59, %v33625_v63  ;;  %v24114_v59 = vadd.f32 %v33551_v40, %v33625_v63 }
 0x55e   : > { %v24117_v3 = vadd.f32 %v33555_v36, %v33625_v63  ;;  %v24122_v36 = vadd.f32 %v33580_v34, %v33625_v63 }
 0x55f   : > { %v33678_v1 = vpop.f32.mrb[192].mxu0  ;;  %v33681_v51 = vadd.f32 %v33518_v33, %v24206_v25 }
 0x560   : > { %v28231_v55 = vpop.f32.mrb[193].mxu0 }
 0x561   : > { %v33683_v21 = vpop.f32.mrb[194].mxu0 }
 0x562   : > { %v27940_v27 = vpop.f32.mrb[144].mxu1  ;;  %v28232_v61 = vpop.f32.mrb[195].mxu0 }
 0x563   : > { %v27941_v52 = vpop.f32.mrb[145].mxu1 }
 0x564   : > { %v27942_v7 = vadd.f32 %v27941_v52, %v27940_v27  ;;  %v27943_v17 = vpop.f32.mrb[146].mxu1 }
 0x565   : > { %v27944_v58 = vpop.f32.mrb[147].mxu1 }
 0x566   : > { %v24211_v38 = vadd.f32 %v27942_v7, %v24106_v57  ;;  %v27945_v56 = vadd.f32 %v27944_v58, %v27943_v17 }
 0x568   : > { %v24214_v47 = vadd.f32 %v27945_v56, %v24109_v31  ;;  %v33689_v33 = vpop.f32.mrb[196].mxu0  ;;  %v33692_v26 = vadd.f32 %v33539_v30, %v24211_v38  ;;  %v24125_v31 = vadd.f32 %v33584_v24, %v33625_v63  ;;  %v24130_v24 = vadd.f32 %v33602_v6, %v33625_v63 }
 0x569   : > { %v28235_v39 = vpop.f32.mrb[197].mxu0 }
 0x56a   : > { %v33694_v29 = vpop.f32.mrb[198].mxu0  ;;  %v27946_v5 = vpop.f32.mrb[148].mxu1  ;;  %v33697_v16 = vadd.f32 %v33547_v48, %v24214_v47 }
 0x56b   : > { %v28236_v53 = vpop.f32.mrb[199].mxu0  ;;  %v27947_v46 = vpop.f32.mrb[149].mxu1 }
 0x56c   : > { %v27948_v54 = vadd.f32 %v27947_v46, %v27946_v5  ;;  %v27949_v2 = vpop.f32.mrb[150].mxu1 }
 0x56d   : > { %v27950_v15 = vpop.f32.mrb[151].mxu1 }
 0x56e   : > { %v24219_v30 = vadd.f32 %v27948_v54, %v24114_v59  ;;  %v27951_v41 = vadd.f32 %v27950_v15, %v27949_v2 }
 0x570   : > { %v24222_v20 = vadd.f32 %v27951_v41, %v24117_v3  ;;  %v33703_v25 = vpop.f32.mrb[200].mxu0  ;;  %v33706_v55 = vadd.f32 %v33570_v23, %v24219_v30  ;;  %v24133_v3 = vadd.f32 %v33606_v8, %v33625_v63 }
 0x571   : > { %v28239_v48 = vpop.f32.mrb[201].mxu0 }
 0x572   : > { %v33708_v27 = vpop.f32.mrb[202].mxu0  ;;  %v27952_v61 = vpop.f32.mrb[152].mxu1  ;;  %v33711_v40 = vadd.f32 %v33576_v19, %v24222_v20 }
 0x573   : > { %v28240_v52 = vpop.f32.mrb[203].mxu0  ;;  %v27953_v57 = vpop.f32.mrb[153].mxu1 }
 0x574   : > { %v27954_v7 = vadd.f32 %v27953_v57, %v27952_v61  ;;  %v27955_v17 = vpop.f32.mrb[154].mxu1 }
 0x575   : > { %v27956_v58 = vpop.f32.mrb[155].mxu1 }
 0x576   : > { %v24227_v23 = vadd.f32 %v27954_v7, %v24122_v36  ;;  %v27957_v38 = vadd.f32 %v27956_v58, %v27955_v17 }
 0x578   : > { %v24230_v56 = vadd.f32 %v27957_v38, %v24125_v31  ;;  %v33717_v47 = vpop.f32.mrb[204].mxu0  ;;  %v33720_v39 = vadd.f32 %v33592_v12, %v24227_v23 }
 0x579   : > { %v28243_v19 = vpop.f32.mrb[205].mxu0 }
 0x57a   : > { %v33722_v5 = vpop.f32.mrb[206].mxu0  ;;  %v27958_v53 = vpop.f32.mrb[156].mxu1  ;;  %v33725_v34 = vadd.f32 %v33598_v10, %v24230_v56 }
 0x57b   : > { %v28244_v46 = vpop.f32.mrb[207].mxu0  ;;  %v27959_v59 = vpop.f32.mrb[157].mxu1 }
 0x57c   : > { %v27960_v54 = vadd.f32 %v27959_v59, %v27958_v53  ;;  %v27961_v2 = vpop.f32.mrb[158].mxu1 }
 0x57d   : > { %v27962_v15 = vpop.f32.mrb[159].mxu1 }
 0x57e   : > { %v24235_v12 = vadd.f32 %v27960_v54, %v24130_v24  ;;  %v27963_v30 = vadd.f32 %v27962_v15, %v27961_v2 }
 0x580   : > { %v24238_v41 = vadd.f32 %v27963_v30, %v24133_v3  ;;  %v33734_v48 = vadd.f32 %v33610_v13, %v24235_v12 }
 0x582   : > { %v27964_v52 = vpop.f32.mrb[160].mxu1  ;;  %v33739_v6 = vadd.f32 %v33618_v28, %v24238_v41 }
 0x583   : > { %v27965_v36 = vpop.f32.mrb[161].mxu1 }
 0x584   : > { %v27966_v7 = vadd.f32 %v27965_v36, %v27964_v52  ;;  %v27967_v17 = vpop.f32.mrb[162].mxu1 }
 0x585   : > { %v27968_v8 = vpop.f32.mrb[163].mxu1 }
 0x586   : > { %v24243_v63 = vadd.f32 %v27966_v7, %v33634_v0  ;;  %v27969_v58 = vadd.f32 %v27968_v8, %v27967_v17 }
 0x588   : > { %v33731_v20 = vpop.f32.mrb[208].mxu0  ;;  %v24246_v31 = vadd.f32 %v27969_v58, %v33637_v11  ;;  %v33746_v13 = vadd.f32 %v33627_v37, %v24243_v63 }
 0x589   : > { %v28247_v10 = vpop.f32.mrb[209].mxu0 }
 0x58a   : > { %v33736_v61 = vpop.f32.mrb[210].mxu0  ;;  %v27970_v28 = vpop.f32.mrb[164].mxu1  ;;  %v33751_v19 = vadd.f32 %v33629_v18, %v24246_v31 }
 0x58b   : > { %v28248_v57 = vpop.f32.mrb[211].mxu0  ;;  %v27971_v46 = vpop.f32.mrb[165].mxu1 }
 0x58c   : > { %v27972_v59 = vadd.f32 %v27971_v46, %v27970_v28  ;;  %v27973_v24 = vpop.f32.mrb[166].mxu1 }
 0x58d   : > { %v27974_v0 = vpop.f32.mrb[167].mxu1 }
 0x58e   : > { %v24251_v54 = vadd.f32 %v27972_v59, %v33641_v9  ;;  %v27975_v11 = vadd.f32 %v27974_v0, %v27973_v24 }
 0x590   : > { %v33743_v23 = vpop.f32.mrb[212].mxu0  ;;  %v24254_v2 = vadd.f32 %v27975_v11, %v33645_v62  ;;  %v33758_v37 = vadd.f32 %v33647_v44, %v24251_v54 }
 0x591   : > { %v28251_v38 = vpop.f32.mrb[213].mxu0 }
 0x592   : > { %v33748_v56 = vpop.f32.mrb[214].mxu0  ;;  %v33763_v30 = vadd.f32 %v33649_v43, %v24254_v2 }
 0x593   : > { %v28252_v53 = vpop.f32.mrb[215].mxu0  ;;  %v27976_v18 = vpop.f32.mrb[168].mxu1 }
 0x594   : > { %v27977_v10 = vpop.f32.mrb[169].mxu1 }
 0x595   : > { %v27978_v52 = vadd.f32 %v27977_v10, %v27976_v18  ;;  %v27979_v9 = vpop.f32.mrb[170].mxu1 }
 0x596   : > { %v27980_v57 = vpop.f32.mrb[171].mxu1 }
 0x597   : > { %v24259_v62 = vadd.f32 %v27978_v52, %v33652_v49  ;;  %v27981_v36 = vadd.f32 %v27980_v57, %v27979_v9 }
 0x598   : > { %v33755_v15 = vpop.f32.mrb[216].mxu0 }
 0x599   : > { %v28255_v3 = vpop.f32.mrb[217].mxu0  ;;  %v24262_v44 = vadd.f32 %v27981_v36, %v33655_v60  ;;  %v33768_v7 = vadd.f32 %v33657_v4, %v24259_v62 }
 0x59a   : > { %v33760_v12 = vpop.f32.mrb[218].mxu0 }
 0x59b   : > { %v28256_v41 = vpop.f32.mrb[219].mxu0  ;;  %v33772_v28 = vadd.f32 %v33659_v32, %v24262_v44 }
 0x5a6   : > { %v27982_v17 = vpop.f32.mrb[172].mxu1 }
 0x5a7   : > { %v27983_v8 = vpop.f32.mrb[173].mxu1 }
 0x5a8   : > { %v27984_v63 = vadd.f32 %v27983_v8, %v27982_v17  ;;  %v27985_v43 = vpop.f32.mrb[174].mxu1 }
 0x5a9   : > { %v27986_v58 = vpop.f32.mrb[175].mxu1 }
 0x5aa   : > { %v24267_v31 = vadd.f32 %v27984_v63, %v33662_v45  ;;  %v27987_v38 = vadd.f32 %v27986_v58, %v27985_v43 }
 0x5ac   : > { %v24270_v49 = vadd.f32 %v27987_v38, %v33665_v35  ;;  %v33777_v53 = vadd.f32 %v33667_v22, %v24267_v31 }
 0x5ae   : > { %v28074_v60 = vpop.f32.mrb[176].mxu1  ;;  %v33787_v35 = vadd.f32 %v33671_v50, %v24270_v49 }
 0x5af   : > { %v28075_v4 = vpop.f32.mrb[177].mxu1 }
 0x5b0   : > { %v28076_v46 = vadd.f32 %v28075_v4, %v28074_v60  ;;  %v28077_v59 = vpop.f32.mrb[178].mxu1 }
 0x5b1   : > { %v28078_v24 = vpop.f32.mrb[179].mxu1 }
 0x5b2   : > { %v24413_v45 = vadd.f32 %v28076_v46, %v33676_v42  ;;  %v28079_v0 = vadd.f32 %v28078_v24, %v28077_v59 }
 0x5b4   : > { %v24518_v32 = vadd.f32 %v33678_v1, %v24413_v45  ;;  %v24416_v54 = vadd.f32 %v28079_v0, %v33681_v51 }
 0x5b6   : > { %v24588_v22 = vmax.f32 %v24518_v32, 0.0  ;;  %v24521_v11 = vadd.f32 %v33683_v21, %v24416_v54  ;;  %v28080_v2 = vpop.f32.mrb[180].mxu1 }
 0x5b7   : > { %v28081_v42 = vpop.f32.mrb[181].mxu1 }
 0x5b8   : > { %v24624_v3 = vcombine.high %v24588_v22, %v24588_v22  ;;  %v24702_v1 = vrot.slane %v24588_v22, %v32031_v14  ;;  %v24589_v18 = vmax.f32 %v24521_v11, 0.0  ;;  %v28082_v51 = vadd.f32 %v28081_v42, %v28080_v2  ;;  %v28083_v41 = vpop.f32.mrb[182].mxu1 }
 0x5b9   : > { %v28084_v50 = vpop.f32.mrb[183].mxu1 }
 0x5ba   : > { %v24648_v10 = vcombine.low %v24588_v22, %v24624_v3  ;;  %v24709_v52 = vrot.slane %v24624_v3, %v32031_v14  ;;  %v24710_v21 = vcombine.high %v24702_v1, %v24702_v1  ;;  %v27276_v9 = vrot.slane %v24702_v1, 9  ;;  %24673 = vst [vmem:[%s33793_s24 + $0x8] sm:$0xf] %v24589_v18 }
 0x5bb   : > { %v24625_v57 = vcombine.high %v24589_v18, %v24589_v18  ;;  %v24718_v62 = vrot.slane %v24589_v18, %v32031_v14  ;;  %v24421_v36 = vadd.f32 %v28082_v51, %v33692_v26  ;;  %v28085_v44 = vadd.f32 %v28084_v50, %v28083_v41 }
 0x5bc   : > { %24672 = vst [vmem:[%s33793_s24] sm:$0xff] %v24648_v10  ;;  %v24711_v17 = vcombine.high %v24709_v52, %v24709_v52  ;;  %v27277_v8 = vrot.slane %v24710_v21, 9  ;;  %v27278_v63 = vrot.slane %v24709_v52, 9  ;;  %v25164_v60 = vmax.f32 %v24702_v1, %v27276_v9 }
 0x5bd   : > { %v24725_v43 = vrot.slane %v24625_v57, %v32031_v14  ;;  %v24726_v58 = vcombine.high %v24718_v62, %v24718_v62  ;;  %v27280_v31 = vrot.slane %v24718_v62, 9  ;;  %v24526_v38 = vadd.f32 %v33689_v33, %v24421_v36 }
 0x5be   : > { %v27279_v49 = vrot.slane %v24711_v17, 9  ;;  %v24424_v4 = vadd.f32 %v28085_v44, %v33697_v16  ;;  %v28086_v46 = vpop.f32.mrb[184].mxu1  ;;  %v25165_v59 = vmax.f32 %v24710_v21, %v27277_v8  ;;  %v25166_v24 = vmax.f32 %v24709_v52, %v27278_v63 }
 0x5bf   : > { %v24727_v45 = vcombine.high %v24725_v43, %v24725_v43  ;;  %v27312_v26 = vrot.slane %v24725_v43, 9  ;;  %v28087_v0 = vpop.f32.mrb[185].mxu1  ;;  %v27281_v32 = vrot.slane %v24726_v58, 9  ;;  %v24590_v54 = vmax.f32 %v24526_v38, 0.0 }
 0x5c0   : > { %v24529_v22 = vadd.f32 %v33694_v29, %v24424_v4  ;;  %v28088_v11 = vadd.f32 %v28087_v0, %v28086_v46  ;;  %v28089_v2 = vpop.f32.mrb[186].mxu1  ;;  %v25167_v42 = vmax.f32 %v24711_v17, %v27279_v49  ;;  %v25168_v33 = vmax.f32 %v24718_v62, %v27280_v31 }
 0x5c1   : > { %v27313_v3 = vrot.slane %v24727_v45, 9  ;;  %v25308_v1 = vmax.f32 %v24725_v43, %v27312_v26  ;;  %v28090_v18 = vpop.f32.mrb[187].mxu1  ;;  %v24626_v16 = vcombine.high %v24590_v54, %v24590_v54  ;;  %v24649_v51 = vcombine.low %v24625_v57, %v24590_v54 }
 0x5c2   : > { %v24734_v41 = vrot.slane %v24590_v54, %v32031_v14  ;;  %v24591_v50 = vmax.f32 %v24529_v22, 0.0  ;;  %v24429_v21 = vadd.f32 %v28088_v11, %v33706_v55  ;;  %v28091_v29 = vadd.f32 %v28090_v18, %v28089_v2 }
 0x5c3   : > { %v25309_v10 = vmax.f32 %v24727_v45, %v27313_v3  ;;  %v25344_v52 = vmax.f32 %v25164_v60, %v25308_v1  ;;  %24674 = vst [vmem:[%s33793_s24 + $0x10] sm:$0xff] %v24649_v51  ;;  %24675 = vst [vmem:[%s33793_s24 + $0x18] sm:$0xf] %v24626_v16  ;;  %v24741_v9 = vrot.slane %v24626_v16, %v32031_v14 }
 0x5c4   : > { %v24742_v36 = vcombine.high %v24734_v41, %v24734_v41  ;;  %v27314_v62 = vrot.slane %v24734_v41, 9  ;;  %v24627_v44 = vcombine.high %v24591_v50, %v24591_v50  ;;  %v25169_v17 = vmax.f32 %v24726_v58, %v27281_v32 }
 0x5c5   : > { %v25345_v8 = vmax.f32 %v25165_v59, %v25309_v10  ;;  %v24750_v63 = vrot.slane %v24591_v50, %v32031_v14  ;;  %v24534_v57 = vadd.f32 %v33703_v25, %v24429_v21  ;;  %v24743_v43 = vcombine.high %v24741_v9, %v24741_v9 }
 0x5c6   : > { %v27315_v31 = vrot.slane %v24742_v36, 9  ;;  %v27316_v38 = vrot.slane %v24741_v9, 9  ;;  %v25310_v49 = vmax.f32 %v24734_v41, %v27314_v62  ;;  %v28092_v55 = vpop.f32.mrb[188].mxu1  ;;  %v27415_v60 = vpack.c.bf16 %v25344_v52, %v25344_v52 }
 0x5c7   : > { %v27416_v4 = vpack.c.bf16 %v25345_v8, %v25345_v8  ;;  %v24650_v46 = vcombine.low %v24591_v50, %v24627_v44  ;;  %v24757_v45 = vrot.slane %v24627_v44, %v32031_v14  ;;  %v28093_v26 = vpop.f32.mrb[189].mxu1  ;;  %v27317_v0 = vrot.slane %v24743_v43, 9 }
 0x5c8   : > { %v25311_v58 = vmax.f32 %v24742_v36, %v27315_v31  ;;  %v25312_v59 = vmax.f32 %v24741_v9, %v27316_v38  ;;  %v25346_v32 = vmax.f32 %v25166_v24, %v25310_v49  ;;  %v28095_v54 = vpop.f32.mrb[190].mxu1  ;;  %v24758_v25 = vcombine.high %v24750_v63, %v24750_v63 }
 0x5c9   : > { %v25525_v22 = vunpack.c.l.b16 %v27416_v4  ;;  %24676 = vst [vmem:[%s33793_s24 + $0x20] sm:$0xff] %v24650_v46  ;;  %v24759_v11 = vcombine.high %v24757_v45, %v24757_v45  ;;  %v27282_v2 = vrot.slane %v24750_v63, 9  ;;  %v28096_v3 = vpop.f32.mrb[191].mxu1  ;;  %v25313_v1 = vmax.f32 %v24743_v43, %v27317_v0 }
 0x5ca   : > { %v25347_v18 = vmax.f32 %v25167_v42, %v25311_v58  ;;  %v25348_v16 = vmax.f32 %v25168_v33, %v25312_v59  ;;  %v27417_v51 = vpack.c.bf16 %v25346_v32, %v25346_v32  ;;  %v25524_v41 = vunpack.c.l.b16 %v27415_v60 }
 0x5cb   : > { %v25560_v50 = vrot.slane %v25525_v22, 7  ;;  %v27283_v10 = vrot.slane %v24758_v25, 9  ;;  %v27284_v52 = vrot.slane %v24757_v45, 9  ;;  %v25349_v21 = vmax.f32 %v25169_v17, %v25313_v1 }
 0x5cc   : > { %v27418_v9 = vpack.c.bf16 %v25347_v18, %v25347_v18  ;;  %v27419_v24 = vpack.c.bf16 %v25348_v16, %v25348_v16  ;;  %v25526_v36 = vunpack.c.l.b16 %v27417_v51  ;;  %v27285_v44 = vrot.slane %v24759_v11, 9 }
 0x5cd   : > { %v25562_v62 = vsel %vm25561_vm14, %v25560_v50, %v25524_v41  ;;  %v25170_v8 = vmax.f32 %v24750_v63, %v27282_v2  ;;  %v33815_v31 = vmax.f32 %v24758_v25, %v27283_v10  ;;  %v27420_v43 = vpack.c.bf16 %v25349_v21, %v25349_v21 }
 0x5ce   : > { %v25527_v42 = vunpack.c.l.b16 %v27418_v9  ;;  %v25528_v33 = vunpack.c.l.b16 %v27419_v24  ;;  %v25563_v38 = vrot.slane %v25526_v36, 6  ;;  %v33817_v49 = vmax.f32 %v24757_v45, %v27284_v52 }
 0x5cf   : > { %v24592_v60 = vmax.f32 %v24534_v57, 0.0  ;;  %v24432_v17 = vadd.f32 %v28091_v29, %v33711_v40  ;;  %v28094_v4 = vadd.f32 %v28093_v26, %v28092_v55  ;;  %v25529_v46 = vunpack.c.l.b16 %v27420_v43  ;;  %v28098_v63 = vpop.f32.mrb[192].mxu1 }
 0x5d0   : > { %v25565_v0 = vsel %vm19602_vm8, %v25563_v38, %v25562_v62  ;;  %v25566_v58 = vrot.slane %v25527_v42, 5  ;;  %v25569_v59 = vrot.slane %v25528_v33, 4  ;;  %v28099_v2 = vpop.f32.mrb[193].mxu1  ;;  %v28097_v29 = vadd.f32 %v28096_v3, %v28095_v54 }
 0x5d1   : > { %v24628_v32 = vcombine.high %v24592_v60, %v24592_v60  ;;  %24677 = vst [vmem:[%s33793_s24 + $0x28] sm:$0xf] %v24592_v60  ;;  %v24766_v22 = vrot.slane %v24592_v60, %v32031_v14  ;;  %v24537_v25 = vadd.f32 %v33708_v27, %v24432_v17  ;;  %v24437_v45 = vadd.f32 %v28094_v4, %v33720_v39  ;;  %v33829_v26 = vpop.f32.mrb[194].mxu1 }
 0x5d2   : > { %v25568_v57 = vsel %vm25567_vm15, %v25566_v58, %v25565_v0  ;;  %v25572_v40 = vrot.slane %v25529_v46, 3  ;;  %v33827_v55 = vadd.f32 %v28099_v2, %v28098_v63  ;;  %v33833_v41 = vpop.f32.mrb[195].mxu1  ;;  %v24440_v3 = vadd.f32 %v28097_v29, %v33725_v34 }
 0x5d3   : > { %v25571_v1 = vsel %vm19604_vm9, %v25569_v59, %v25568_v57  ;;  %v24773_v18 = vrot.slane %v24628_v32, %v32031_v14  ;;  %v24774_v16 = vcombine.high %v24766_v22, %v24766_v22  ;;  %v27286_v51 = vrot.slane %v24766_v22, 9 }
 0x5d4   : > { %v25574_v27 = vsel %vm25573_vm0, %v25572_v40, %v25571_v1  ;;  %v24593_v39 = vmax.f32 %v24537_v25, 0.0  ;;  %v24542_v54 = vadd.f32 %v33717_v47, %v24437_v45  ;;  %v25173_v10 = vmax.f32 %v24759_v11, %v27285_v44 }
 0x5d5   : > { %v25625_v50 = vpack.c.b16 %v25574_v27, %v25574_v27  ;;  %v24775_v52 = vcombine.high %v24773_v18, %v24773_v18  ;;  %v27287_v21 = vrot.slane %v24774_v16, 9  ;;  %v27318_v9 = vrot.slane %v24773_v18, 9 }
 0x5d6   : > { %v24629_v24 = vcombine.high %v24593_v39, %v24593_v39  ;;  %v24651_v36 = vcombine.low %v24628_v32, %v24593_v39  ;;  %v24782_v62 = vrot.slane %v24593_v39, %v32031_v14  ;;  %v25174_v43 = vmax.f32 %v24766_v22, %v27286_v51 }
 0x5d7   : > { %25637 = vst [vmem:[%s33838_s21] sm:$0x7] %v25625_v50  ;;  %v27319_v42 = vrot.slane %v24775_v52, 9  ;;  %v24594_v33 = vmax.f32 %v24542_v54, 0.0  ;;  %v24545_v38 = vadd.f32 %v33722_v5, %v24440_v3  ;;  %v25314_v47 = vmax.f32 %v24773_v18, %v27318_v9 }
 0x5d8   : > { %24678 = vst [vmem:[%s33793_s24 + $0x30] sm:$0xff] %v24651_v36  ;;  %24679 = vst [vmem:[%s33793_s24 + $0x38] sm:$0xf] %v24629_v24  ;;  %v24789_v34 = vrot.slane %v24629_v24, %v32031_v14  ;;  %v24790_v11 = vcombine.high %v24782_v62, %v24782_v62  ;;  %v27320_v44 = vrot.slane %v24782_v62, 9  ;;  %v25175_v57 = vmax.f32 %v24774_v16, %v27287_v21 }
 0x5d9   : > { %v25315_v60 = vmax.f32 %v24775_v52, %v27319_v42  ;;  %v24630_v17 = vcombine.high %v24594_v33, %v24594_v33  ;;  %v24798_v4 = vrot.slane %v24594_v33, %v32031_v14  ;;  %v24595_v46 = vmax.f32 %v24545_v38, 0.0  ;;  %v28104_v32 = vpop.f32.mrb[196].mxu1 }
 0x5da   : > { %v25350_v0 = vmax.f32 %v25170_v8, %v25314_v47  ;;  %v24791_v58 = vcombine.high %v24789_v34, %v24789_v34  ;;  %v27321_v59 = vrot.slane %v24790_v11, 9  ;;  %v27322_v63 = vrot.slane %v24789_v34, 9  ;;  %v28105_v2 = vpop.f32.mrb[197].mxu1 }
 0x5db   : > { %v25351_v5 = vmax.f32 %v33815_v31, %v25315_v60  ;;  %v25316_v22 = vmax.f32 %v24782_v62, %v27320_v44  ;;  %v24652_v25 = vcombine.low %v24594_v33, %v24630_v17  ;;  %v24805_v45 = vrot.slane %v24630_v17, %v32031_v14  ;;  %24681 = vst [vmem:[%s33793_s24 + $0x48] sm:$0xf] %v24595_v46  ;;  %v33853_v18 = vpop.f32.mrb[198].mxu1 }
 0x5dc   : > { %v27323_v40 = vrot.slane %v24791_v58, 9  ;;  %v25317_v29 = vmax.f32 %v24790_v11, %v27321_v59  ;;  %v25318_v1 = vmax.f32 %v24789_v34, %v27322_v63  ;;  %v27421_v8 = vpack.c.bf16 %v25350_v0, %v25350_v0  ;;  %v33857_v54 = vpop.f32.mrb[199].mxu1 }
 0x5dd   : > { %v27422_v51 = vpack.c.bf16 %v25351_v5, %v25351_v5  ;;  %v25352_v27 = vmax.f32 %v33817_v49, %v25316_v22  ;;  %24680 = vst [vmem:[%s33793_s24 + $0x40] sm:$0xff] %v24652_v25  ;;  %v24806_v39 = vcombine.high %v24798_v4, %v24798_v4  ;;  %v24807_v52 = vcombine.high %v24805_v45, %v24805_v45 }
 0x5de   : > { %v25319_v31 = vmax.f32 %v24791_v58, %v27323_v40  ;;  %v25353_v3 = vmax.f32 %v25173_v10, %v25317_v29  ;;  %v25354_v50 = vmax.f32 %v25174_v43, %v25318_v1  ;;  %v27288_v16 = vrot.slane %v24798_v4, 9 }
 0x5df   : > { %v25531_v9 = vunpack.c.l.b16 %v27422_v51  ;;  %v27423_v24 = vpack.c.bf16 %v25352_v27, %v25352_v27  ;;  %v27289_v21 = vrot.slane %v24806_v39, 9  ;;  %v25530_v33 = vunpack.c.l.b16 %v27421_v8 }
 0x5e0   : > { %v25355_v36 = vmax.f32 %v25175_v57, %v25319_v31  ;;  %v27424_v62 = vpack.c.bf16 %v25353_v3, %v25353_v3  ;;  %v27425_v42 = vpack.c.bf16 %v25354_v50, %v25354_v50  ;;  %v27290_v34 = vrot.slane %v24805_v45, 9 }
 0x5e1   : > { %v25575_v38 = vrot.slane %v25531_v9, 7  ;;  %v25532_v47 = vunpack.c.l.b16 %v27423_v24  ;;  %v27291_v60 = vrot.slane %v24807_v52, 9  ;;  %v25176_v43 = vmax.f32 %v24798_v4, %v27288_v16 }
 0x5e2   : > { %v27426_v49 = vpack.c.bf16 %v25355_v36, %v25355_v36  ;;  %v25533_v11 = vunpack.c.l.b16 %v27424_v62  ;;  %v25534_v44 = vunpack.c.l.b16 %v27425_v42  ;;  %v25177_v0 = vmax.f32 %v24806_v39, %v27289_v21 }
 0x5e3   : > { %v25576_v17 = vsel %vm25561_vm14, %v25575_v38, %v25530_v33  ;;  %v25577_v10 = vrot.slane %v25532_v47, 6  ;;  %v24631_v5 = vcombine.high %v24595_v46, %v24595_v46  ;;  %v24814_v25 = vrot.slane %v24595_v46, %v32031_v14  ;;  %v33866_v29 = vpop.f32.mrb[200].mxu1 }
 0x5e4   : > { %v25535_v58 = vunpack.c.l.b16 %v27426_v49  ;;  %v25579_v59 = vrot.slane %v25533_v11, 5  ;;  %v25581_v63 = vrot.slane %v25534_v44, 4  ;;  %v24445_v57 = vadd.f32 %v33827_v55, %v33734_v48  ;;  %v33870_v27 = vpop.f32.mrb[201].mxu1 }
 0x5e5   : > { %v25578_v22 = vsel %vm19602_vm8, %v25577_v10, %v25576_v17  ;;  %v28103_v40 = vadd.f32 %v33833_v41, %v33829_v26  ;;  %v24821_v8 = vrot.slane %v24631_v5, %v32031_v14  ;;  %v28106_v51 = vadd.f32 %v28105_v2, %v28104_v32  ;;  %v33874_v55 = vpop.f32.mrb[202].mxu1 }
 0x5e6   : > { %v25580_v1 = vsel %vm25567_vm15, %v25579_v59, %v25578_v22  ;;  %v25583_v4 = vrot.slane %v25535_v58, 3  ;;  %v25178_v31 = vmax.f32 %v24805_v45, %v27290_v34  ;;  %v24822_v46 = vcombine.high %v24814_v25, %v24814_v25  ;;  %v33878_v9 = vpop.f32.mrb[203].mxu1 }
 0x5e7   : > { %v25582_v39 = vsel %vm19604_vm9, %v25581_v63, %v25580_v1  ;;  %v24550_v48 = vadd.f32 %v33731_v20, %v24445_v57  ;;  %v24823_v41 = vcombine.high %v24821_v8, %v24821_v8  ;;  %v27324_v3 = vrot.slane %v24821_v8, 9 }
 0x5e8   : > { %v25584_v26 = vsel %vm25573_vm0, %v25583_v4, %v25582_v39  ;;  %v24448_v50 = vadd.f32 %v28103_v40, %v33739_v6  ;;  %v25179_v2 = vmax.f32 %v24807_v52, %v27291_v60  ;;  %v27292_v24 = vrot.slane %v24814_v25, 9 }
 0x5e9   : > { %v25626_v32 = vpack.c.b16 %v25584_v26, %v25584_v26  ;;  %v24596_v45 = vmax.f32 %v24550_v48, 0.0  ;;  %v27325_v16 = vrot.slane %v24823_v41, 9  ;;  %v25320_v21 = vmax.f32 %v24821_v8, %v27324_v3 }
 0x5ea   : > { %v24553_v20 = vadd.f32 %v33736_v61, %v24448_v50  ;;  %v24453_v36 = vadd.f32 %v28106_v51, %v33746_v13  ;;  %v27293_v62 = vrot.slane %v24822_v46, 9  ;;  %v28109_v61 = vadd.f32 %v33857_v54, %v33853_v18 }
 0x5eb   : > { %25638 = vst [vmem:[%s33838_s21 + $0x4] sm:$0x7] %v25626_v32  ;;  %v24632_v42 = vcombine.high %v24596_v45, %v24596_v45  ;;  %v24653_v33 = vcombine.low %v24631_v5, %v24596_v45  ;;  %v24830_v6 = vrot.slane %v24596_v45, %v32031_v14  ;;  %v25321_v38 = vmax.f32 %v24823_v41, %v27325_v16 }
 0x5ec   : > { %v25356_v47 = vmax.f32 %v25176_v43, %v25320_v21  ;;  %v24597_v34 = vmax.f32 %v24553_v20, 0.0  ;;  %v24558_v52 = vadd.f32 %v33743_v23, %v24453_v36  ;;  %v25180_v13 = vmax.f32 %v24814_v25, %v27292_v24 }
 0x5ed   : > { %24682 = vst [vmem:[%s33793_s24 + $0x50] sm:$0xff] %v24653_v33  ;;  %24683 = vst [vmem:[%s33793_s24 + $0x58] sm:$0xf] %v24632_v42  ;;  %v24837_v49 = vrot.slane %v24632_v42, %v32031_v14  ;;  %v24838_v11 = vcombine.high %v24830_v6, %v24830_v6  ;;  %v27326_v44 = vrot.slane %v24830_v6, 9  ;;  %v25357_v60 = vmax.f32 %v25177_v0, %v25321_v38 }
 0x5ee   : > { %v24633_v17 = vcombine.high %v24597_v34, %v24597_v34  ;;  %v24846_v10 = vrot.slane %v24597_v34, %v32031_v14  ;;  %v27427_v23 = vpack.c.bf16 %v25356_v47, %v25356_v47  ;;  %v28116_v40 = vpop.f32.mrb[204].mxu1  ;;  %v25181_v0 = vmax.f32 %v24822_v46, %v27293_v62 }
 0x5ef   : > { %v24839_v58 = vcombine.high %v24837_v49, %v24837_v49  ;;  %v27327_v43 = vrot.slane %v24838_v11, 9  ;;  %v27328_v59 = vrot.slane %v24837_v49, 9  ;;  %v25322_v63 = vmax.f32 %v24830_v6, %v27326_v44  ;;  %v28117_v54 = vpop.f32.mrb[205].mxu1 }
 0x5f0   : > { %v27428_v5 = vpack.c.bf16 %v25357_v60, %v25357_v60  ;;  %v24654_v22 = vcombine.low %v24597_v34, %v24633_v17  ;;  %v24853_v57 = vrot.slane %v24633_v17, %v32031_v14  ;;  %v24854_v51 = vcombine.high %v24846_v10, %v24846_v10  ;;  %v33893_v48 = vpop.f32.mrb[206].mxu1 }
 0x5f1   : > { %v27329_v1 = vrot.slane %v24839_v58, 9  ;;  %v25323_v4 = vmax.f32 %v24838_v11, %v27327_v43  ;;  %v25324_v8 = vmax.f32 %v24837_v49, %v27328_v59  ;;  %v25358_v18 = vmax.f32 %v25178_v31, %v25322_v63  ;;  %v33895_v32 = vpop.f32.mrb[207].mxu1 }
 0x5f2   : > { %v25537_v25 = vunpack.c.l.b16 %v27428_v5  ;;  %24684 = vst [vmem:[%s33793_s24 + $0x60] sm:$0xff] %v24654_v22  ;;  %v24855_v39 = vcombine.high %v24853_v57, %v24853_v57  ;;  %v25536_v24 = vunpack.c.l.b16 %v27427_v23  ;;  %v27294_v16 = vrot.slane %v24846_v10, 9 }
 0x5f3   : > { %v25325_v26 = vmax.f32 %v24839_v58, %v27329_v1  ;;  %v25359_v41 = vmax.f32 %v25179_v2, %v25323_v4  ;;  %v25360_v3 = vmax.f32 %v25180_v13, %v25324_v8  ;;  %v27429_v50 = vpack.c.bf16 %v25358_v18, %v25358_v18 }
 0x5f4   : > { %v25585_v45 = vrot.slane %v25537_v25, 7  ;;  %v27295_v62 = vrot.slane %v24854_v51, 9  ;;  %v27296_v42 = vrot.slane %v24853_v57, 9  ;;  %v27297_v33 = vrot.slane %v24855_v39, 9 }
 0x5f5   : > { %v25361_v21 = vmax.f32 %v25181_v0, %v25325_v26  ;;  %v27430_v20 = vpack.c.bf16 %v25359_v41, %v25359_v41  ;;  %v27431_v31 = vpack.c.bf16 %v25360_v3, %v25360_v3  ;;  %v25538_v36 = vunpack.c.l.b16 %v27429_v50 }
 0x5f6   : > { %v25586_v46 = vsel %vm25561_vm14, %v25585_v45, %v25536_v24  ;;  %v25182_v34 = vmax.f32 %v24846_v10, %v27294_v16  ;;  %v24598_v49 = vmax.f32 %v24558_v52, 0.0  ;;  %v24456_v11 = vadd.f32 %v28109_v61, %v33751_v19 }
 0x5f7   : > { %v27432_v6 = vpack.c.bf16 %v25361_v21, %v25361_v21  ;;  %v25539_v38 = vunpack.c.l.b16 %v27430_v20  ;;  %v25540_v2 = vunpack.c.l.b16 %v27431_v31  ;;  %v25587_v47 = vrot.slane %v25538_v36, 6 }
 0x5f8   : > { %v28112_v44 = vadd.f32 %v33870_v27, %v33866_v29  ;;  %v24634_v43 = vcombine.high %v24598_v49, %v24598_v49  ;;  %24685 = vst [vmem:[%s33793_s24 + $0x68] sm:$0xf] %v24598_v49  ;;  %v24862_v59 = vrot.slane %v24598_v49, %v32031_v14  ;;  %v24561_v63 = vadd.f32 %v33748_v56, %v24456_v11  ;;  %v33906_v10 = vpop.f32.mrb[208].mxu1 }
 0x5f9   : > { %v25541_v13 = vunpack.c.l.b16 %v27432_v6  ;;  %v25588_v60 = vsel %vm19602_vm8, %v25587_v47, %v25586_v46  ;;  %v25589_v17 = vrot.slane %v25539_v38, 5  ;;  %v25591_v58 = vrot.slane %v25540_v2, 4  ;;  %v33913_v61 = vpop.f32.mrb[209].mxu1 }
 0x5fa   : > { %v24461_v23 = vadd.f32 %v28112_v44, %v33758_v37  ;;  %v28115_v29 = vadd.f32 %v33878_v9, %v33874_v55  ;;  %v33911_v27 = vadd.f32 %v28117_v54, %v28116_v40  ;;  %v25183_v22 = vmax.f32 %v24854_v51, %v27295_v62  ;;  %v33917_v37 = vpop.f32.mrb[210].mxu1 }
 0x5fb   : > { %v25590_v19 = vsel %vm25567_vm15, %v25589_v17, %v25588_v60  ;;  %v25593_v52 = vrot.slane %v25541_v13, 3  ;;  %v25184_v1 = vmax.f32 %v24853_v57, %v27296_v42  ;;  %v24869_v56 = vrot.slane %v24634_v43, %v32031_v14  ;;  %v33922_v9 = vpop.f32.mrb[211].mxu1 }
 0x5fc   : > { %v25592_v5 = vsel %vm19604_vm9, %v25591_v58, %v25590_v19  ;;  %v24599_v8 = vmax.f32 %v24561_v63, 0.0  ;;  %v24566_v18 = vadd.f32 %v33755_v15, %v24461_v23  ;;  %v24464_v55 = vadd.f32 %v28115_v29, %v33763_v30 }
 0x5fd   : > { %v25594_v4 = vsel %vm25573_vm0, %v25593_v52, %v25592_v5  ;;  %v25185_v54 = vmax.f32 %v24855_v39, %v27297_v33  ;;  %v24870_v0 = vcombine.high %v24862_v59, %v24862_v59  ;;  %v24871_v57 = vcombine.high %v24869_v56, %v24869_v56 }
 0x5fe   : > { %v25627_v40 = vpack.c.b16 %v25594_v4, %v25594_v4  ;;  %v27330_v25 = vrot.slane %v24869_v56, 9  ;;  %v24635_v51 = vcombine.high %v24599_v8, %v24599_v8  ;;  %v24655_v26 = vcombine.low %v24634_v43, %v24599_v8 }
 0x5ff   : > { %v24878_v41 = vrot.slane %v24599_v8, %v32031_v14  ;;  %v27298_v3 = vrot.slane %v24862_v59, 9  ;;  %v27331_v50 = vrot.slane %v24871_v57, 9  ;;  %v24600_v24 = vmax.f32 %v24566_v18, 0.0 }
 0x600   : > { %25639 = vst [vmem:[%s33838_s21 + $0x8] sm:$0x7] %v25627_v40  ;;  %v24569_v15 = vadd.f32 %v33760_v12, %v24464_v55  ;;  %v25326_v30 = vmax.f32 %v24869_v56, %v27330_v25  ;;  %24686 = vst [vmem:[%s33793_s24 + $0x70] sm:$0xff] %v24655_v26  ;;  %v24885_v45 = vrot.slane %v24635_v51, %v32031_v14  ;;  %v27299_v21 = vrot.slane %v24870_v0, 9  ;;  %v33930_v46 = vpop.f32.mrb[212].mxu1 }
 0x601   : > { %24687 = vst [vmem:[%s33793_s24 + $0x78] sm:$0xf] %v24635_v51  ;;  %v24886_v16 = vcombine.high %v24878_v41, %v24878_v41  ;;  %v27332_v39 = vrot.slane %v24878_v41, 9  ;;  %v25327_v20 = vmax.f32 %v24871_v57, %v27331_v50  ;;  %v24636_v31 = vcombine.high %v24600_v24, %v24600_v24  ;;  %v28259_v12 = vpop.f32.mrb[213].mxu1 }
 0x602   : > { %v24601_v36 = vmax.f32 %v24569_v15, 0.0  ;;  %v25362_v62 = vmax.f32 %v25182_v34, %v25326_v30  ;;  %v24887_v42 = vcombine.high %v24885_v45, %v24885_v45  ;;  %v27334_v6 = vrot.slane %v24885_v45, 9  ;;  %v24576_v11 = vpop.f32.mrb[214].mxu1 }
 0x603   : > { %v27333_v33 = vrot.slane %v24886_v16, 9  ;;  %v25363_v38 = vmax.f32 %v25183_v22, %v25327_v20  ;;  %v25328_v2 = vmax.f32 %v24878_v41, %v27332_v39  ;;  %v24656_v47 = vcombine.low %v24600_v24, %v24636_v31  ;;  %v28260_v58 = vpop.f32.mrb[215].mxu1 }
 0x604   : > { %v24894_v49 = vrot.slane %v24600_v24, %v32031_v14  ;;  %24689 = vst [vmem:[%s33793_s24 + $0x88] sm:$0xf] %v24601_v36  ;;  %v25186_v44 = vmax.f32 %v24862_v59, %v27298_v3  ;;  %v27335_v13 = vrot.slane %v24887_v42, 9  ;;  %v25330_v17 = vmax.f32 %v24885_v45, %v27334_v6 }
 0x605   : > { %v25329_v60 = vmax.f32 %v24886_v16, %v27333_v33  ;;  %v27433_v43 = vpack.c.bf16 %v25362_v62, %v25362_v62  ;;  %v27434_v63 = vpack.c.bf16 %v25363_v38, %v25363_v38  ;;  %v25364_v34 = vmax.f32 %v25184_v1, %v25328_v2  ;;  %24688 = vst [vmem:[%s33793_s24 + $0x80] sm:$0xff] %v24656_v47 }
 0x606   : > { %v25187_v23 = vmax.f32 %v24870_v0, %v27299_v21  ;;  %v25331_v19 = vmax.f32 %v24887_v42, %v27335_v13  ;;  %v25366_v29 = vmax.f32 %v25186_v44, %v25330_v17  ;;  %v24902_v56 = vcombine.high %v24894_v49, %v24894_v49 }
 0x607   : > { %v25365_v52 = vmax.f32 %v25185_v54, %v25329_v60  ;;  %v25543_v5 = vunpack.c.l.b16 %v27434_v63  ;;  %v27435_v22 = vpack.c.bf16 %v25364_v34, %v25364_v34  ;;  %v25542_v55 = vunpack.c.l.b16 %v27433_v43 }
 0x608   : > { %v25367_v4 = vmax.f32 %v25187_v23, %v25331_v19  ;;  %v27437_v18 = vpack.c.bf16 %v25366_v29, %v25366_v29  ;;  %v24901_v57 = vrot.slane %v24636_v31, %v32031_v14  ;;  %v24581_v25 = vpop.f32.mrb[216].mxu1  ;;  %v27300_v41 = vrot.slane %v24894_v49, 9 }
 0x609   : > { %v27436_v8 = vpack.c.bf16 %v25365_v52, %v25365_v52  ;;  %v25595_v59 = vrot.slane %v25543_v5, 7  ;;  %v25544_v40 = vunpack.c.l.b16 %v27435_v22  ;;  %v28263_v0 = vpop.f32.mrb[217].mxu1  ;;  %v27301_v50 = vrot.slane %v24902_v56, 9 }
 0x60a   : > { %v27438_v51 = vpack.c.bf16 %v25367_v4, %v25367_v4  ;;  %v25546_v1 = vunpack.c.l.b16 %v27437_v18  ;;  %v28121_v24 = vadd.f32 %v33895_v32, %v33893_v48  ;;  %v24584_v15 = vpop.f32.mrb[218].mxu1  ;;  %v24910_v16 = vrot.slane %v24601_v36, %v32031_v14 }
 0x60b   : > { %v25545_v26 = vunpack.c.l.b16 %v27436_v8  ;;  %v25596_v54 = vsel %vm25561_vm14, %v25595_v59, %v25542_v55  ;;  %v25597_v3 = vrot.slane %v25544_v40, 6  ;;  %v28264_v39 = vpop.f32.mrb[219].mxu1  ;;  %v28124_v31 = vadd.f32 %v33913_v61, %v33906_v10 }
 0x60c   : > { %v25547_v30 = vunpack.c.l.b16 %v27438_v51  ;;  %v25601_v20 = vrot.slane %v25546_v1, 4  ;;  %v28127_v62 = vadd.f32 %v33922_v9, %v33917_v37  ;;  %v24903_v6 = vcombine.high %v24901_v57, %v24901_v57 }
 0x60d   : > { %v25599_v45 = vrot.slane %v25545_v26, 5  ;;  %v25598_v21 = vsel %vm19602_vm8, %v25597_v3, %v25596_v54  ;;  %v24469_v48 = vadd.f32 %v33911_v27, %v33768_v7  ;;  %v25188_v12 = vmax.f32 %v24894_v49, %v27300_v41 }
 0x60e   : > { %v25603_v33 = vrot.slane %v25547_v30, 3  ;;  %v25189_v38 = vmax.f32 %v24902_v56, %v27301_v50  ;;  %v24637_v2 = vcombine.high %v24601_v36, %v24601_v36  ;;  %v24472_v61 = vadd.f32 %v28121_v24, %v33772_v28 }
 0x60f   : > { %v25600_v42 = vsel %vm25567_vm15, %v25599_v45, %v25598_v21  ;;  %v24574_v10 = vadd.f32 %v33930_v46, %v24469_v48  ;;  %v24477_v37 = vadd.f32 %v28124_v31, %v33777_v53  ;;  %v24918_v44 = vcombine.high %v24910_v16, %v24910_v16 }
 0x610   : > { %v25602_v32 = vsel %vm19604_vm9, %v25601_v20, %v25600_v42  ;;  %v27304_v13 = vrot.slane %v24910_v16, 9  ;;  %v24917_v60 = vrot.slane %v24637_v2, %v32031_v14  ;;  %v24577_v27 = vadd.f32 %v24576_v11, %v24472_v61 }
 0x611   : > { %v25604_v47 = vsel %vm25573_vm0, %v25603_v33, %v25602_v32  ;;  %v24602_v7 = vmax.f32 %v24574_v10, 0.0  ;;  %v24582_v17 = vadd.f32 %v24581_v25, %v24477_v37  ;;  %v24480_v36 = vadd.f32 %v28127_v62, %v33787_v35 }
 0x612   : > { %v25628_v9 = vpack.c.b16 %v25604_v47, %v25604_v47  ;;  %v24919_v49 = vcombine.high %v24917_v60, %v24917_v60  ;;  %v27302_v58 = vrot.slane %v24901_v57, 9  ;;  %v27303_v46 = vrot.slane %v24903_v6, 9 }
 0x613   : > { %v27336_v43 = vrot.slane %v24917_v60, 9  ;;  %v24638_v28 = vcombine.high %v24602_v7, %v24602_v7  ;;  %v24657_v63 = vcombine.low %v24637_v2, %v24602_v7  ;;  %v24926_v53 = vrot.slane %v24602_v7, %v32031_v14 }
 0x614   : > { %25640 = vst [vmem:[%s33838_s21 + $0xc] sm:$0x7] %v25628_v9  ;;  %v24603_v34 = vmax.f32 %v24577_v27, 0.0  ;;  %v27337_v23 = vrot.slane %v24919_v49, 9  ;;  %v24604_v52 = vmax.f32 %v24582_v17, 0.0  ;;  %v24585_v11 = vadd.f32 %v24584_v15, %v24480_v36 }
 0x615   : > { %v25332_v19 = vmax.f32 %v24917_v60, %v27336_v43  ;;  %24690 = vst [vmem:[%s33793_s24 + $0x90] sm:$0xff] %v24657_v63  ;;  %24691 = vst [vmem:[%s33793_s24 + $0x98] sm:$0xf] %v24638_v28  ;;  %v24933_v29 = vrot.slane %v24638_v28, %v32031_v14  ;;  %v24934_v35 = vcombine.high %v24926_v53, %v24926_v53  ;;  %v27338_v5 = vrot.slane %v24926_v53, 9 }
 0x616   : > { %v24639_v22 = vcombine.high %v24603_v34, %v24603_v34  ;;  %v27305_v56 = vrot.slane %v24918_v44, 9  ;;  %v25190_v4 = vmax.f32 %v24901_v57, %v27302_v58  ;;  %v25333_v8 = vmax.f32 %v24919_v49, %v27337_v23  ;;  %24693 = vst [vmem:[%s33793_s24 + $0xa8] sm:$0xf] %v24604_v52 }
 0x617   : > { %v25368_v18 = vmax.f32 %v25188_v12, %v25332_v19  ;;  %v24935_v55 = vcombine.high %v24933_v29, %v24933_v29  ;;  %v27339_v59 = vrot.slane %v24934_v35, 9  ;;  %v27340_v40 = vrot.slane %v24933_v29, 9 }
 0x618   : > { %v25334_v25 = vmax.f32 %v24926_v53, %v27338_v5  ;;  %v25192_v51 = vmax.f32 %v24910_v16, %v27304_v13  ;;  %v25191_v26 = vmax.f32 %v24903_v6, %v27303_v46  ;;  %v25369_v1 = vmax.f32 %v25189_v38, %v25333_v8 }
 0x619   : > { %v24658_v41 = vcombine.low %v24603_v34, %v24639_v22  ;;  %v27341_v0 = vrot.slane %v24935_v55, 9  ;;  %v25335_v54 = vmax.f32 %v24934_v35, %v27339_v59  ;;  %v25336_v3 = vmax.f32 %v24933_v29, %v27340_v40 }
 0x61a   : > { %v25370_v50 = vmax.f32 %v25190_v4, %v25334_v25  ;;  %v25193_v24 = vmax.f32 %v24918_v44, %v27305_v56  ;;  %v27439_v15 = vpack.c.bf16 %v25368_v18, %v25368_v18  ;;  %v27440_v30 = vpack.c.bf16 %v25369_v1, %v25369_v1 }
 0x61b   : > { %24692 = vst [vmem:[%s33793_s24 + $0xa0] sm:$0xff] %v24658_v41  ;;  %v24942_v57 = vrot.slane %v24603_v34, %v32031_v14  ;;  %v25337_v45 = vmax.f32 %v24935_v55, %v27341_v0  ;;  %v25371_v39 = vmax.f32 %v25191_v26, %v25335_v54  ;;  %v25372_v21 = vmax.f32 %v25192_v51, %v25336_v3 }
 0x61c   : > { %v27441_v20 = vpack.c.bf16 %v25370_v50, %v25370_v50  ;;  %v25549_v31 = vunpack.c.l.b16 %v27440_v30  ;;  %v24640_v62 = vcombine.high %v24604_v52, %v24604_v52  ;;  %v25548_v48 = vunpack.c.l.b16 %v27439_v15 }
 0x61d   : > { %v25373_v16 = vmax.f32 %v25193_v24, %v25337_v45  ;;  %v27442_v42 = vpack.c.bf16 %v25371_v39, %v25371_v39  ;;  %v27443_v33 = vpack.c.bf16 %v25372_v21, %v25372_v21  ;;  %v24949_v12 = vrot.slane %v24639_v22, %v32031_v14 }
 0x61e   : > { %v25550_v6 = vunpack.c.l.b16 %v27441_v20  ;;  %v25605_v32 = vrot.slane %v25549_v31, 7  ;;  %v24950_v38 = vcombine.high %v24942_v57, %v24942_v57  ;;  %v24958_v9 = vrot.slane %v24604_v52, %v32031_v14 }
 0x61f   : > { %v27444_v2 = vpack.c.bf16 %v25373_v16, %v25373_v16  ;;  %v25551_v47 = vunpack.c.l.b16 %v27442_v42  ;;  %v25552_v10 = vunpack.c.l.b16 %v27443_v33  ;;  %v24951_v27 = vcombine.high %v24949_v12, %v24949_v12 }
 0x620   : > { %v25607_v61 = vrot.slane %v25550_v6, 6  ;;  %v25606_v37 = vsel %vm25561_vm14, %v25605_v32, %v25548_v48  ;;  %v24965_v17 = vrot.slane %v24640_v62, %v32031_v14  ;;  %v24605_v36 = vmax.f32 %v24585_v11, 0.0 }
 0x621   : > { %v25553_v44 = vunpack.c.l.b16 %v27444_v2  ;;  %v25609_v60 = vrot.slane %v25551_v47, 5  ;;  %v25611_v7 = vrot.slane %v25552_v10, 4  ;;  %v27306_v46 = vrot.slane %v24942_v57, 9 }
 0x622   : > { %v25608_v13 = vsel %vm19602_vm8, %v25607_v61, %v25606_v37  ;;  %v27307_v43 = vrot.slane %v24950_v38, 9  ;;  %v27308_v63 = vrot.slane %v24949_v12, 9  ;;  %v24966_v53 = vcombine.high %v24958_v9, %v24958_v9 }
 0x623   : > { %v25610_v49 = vsel %vm25567_vm15, %v25609_v60, %v25608_v13  ;;  %v25613_v58 = vrot.slane %v25553_v44, 3  ;;  %v24967_v34 = vcombine.high %v24965_v17, %v24965_v17  ;;  %v27342_v19 = vrot.slane %v24965_v17, 9 }
 0x624   : > { %v25612_v28 = vsel %vm19604_vm9, %v25611_v7, %v25610_v49  ;;  %v24641_v52 = vcombine.high %v24605_v36, %v24605_v36  ;;  %v24659_v29 = vcombine.low %v24640_v62, %v24605_v36  ;;  %v27309_v11 = vrot.slane %v24951_v27, 9 }
 0x625   : > { %v25614_v23 = vsel %vm25573_vm0, %v25613_v58, %v25612_v28  ;;  %v27343_v5 = vrot.slane %v24967_v34, 9  ;;  %v24974_v22 = vrot.slane %v24605_v36, %v32031_v14  ;;  %v25194_v56 = vmax.f32 %v24942_v57, %v27306_v46 }
 0x626   : > { %v25629_v35 = vpack.c.b16 %v25614_v23, %v25614_v23  ;;  %v27310_v4 = vrot.slane %v24958_v9, 9  ;;  %v25338_v8 = vmax.f32 %v24965_v17, %v27342_v19  ;;  %24694 = vst [vmem:[%s33793_s24 + $0xb0] sm:$0xff] %v24659_v29  ;;  %24695 = vst [vmem:[%s33793_s24 + $0xb8] sm:$0xf] %v24641_v52  ;;  %v24981_v18 = vrot.slane %v24641_v52, %v32031_v14 }
 0x627   : > { %v25195_v55 = vmax.f32 %v24950_v38, %v27307_v43  ;;  %v25339_v59 = vmax.f32 %v24967_v34, %v27343_v5  ;;  %v24982_v40 = vcombine.high %v24974_v22, %v24974_v22  ;;  %v27344_v25 = vrot.slane %v24974_v22, 9 }
 0x628   : > { %25641 = vst [vmem:[%s33838_s21 + $0x10] sm:$0x7] %v25629_v35  ;;  %v27311_v51 = vrot.slane %v24966_v53, 9  ;;  %v25374_v26 = vmax.f32 %v25194_v56, %v25338_v8  ;;  %v24983_v1 = vcombine.high %v24981_v18, %v24981_v18  ;;  %v27346_v41 = vrot.slane %v24981_v18, 9 }
 0x629   : > { %v25196_v0 = vmax.f32 %v24949_v12, %v27308_v63  ;;  %v25375_v54 = vmax.f32 %v25195_v55, %v25339_v59  ;;  %v27345_v3 = vrot.slane %v24982_v40, 9  ;;  %v25340_v50 = vmax.f32 %v24974_v22, %v27344_v25 }
 0x62a   : > { %v25197_v24 = vmax.f32 %v24951_v27, %v27309_v11  ;;  %v25198_v15 = vmax.f32 %v24958_v9, %v27310_v4  ;;  %v27347_v30 = vrot.slane %v24983_v1, 9  ;;  %v25342_v57 = vmax.f32 %v24981_v18, %v27346_v41 }
 0x62b   : > { %v27445_v45 = vpack.c.bf16 %v25374_v26, %v25374_v26  ;;  %v27446_v39 = vpack.c.bf16 %v25375_v54, %v25375_v54  ;;  %v25341_v14 = vmax.f32 %v24982_v40, %v27345_v3  ;;  %v25376_v21 = vmax.f32 %v25196_v0, %v25340_v50 }
 0x62c   : > { %v25199_v20 = vmax.f32 %v24966_v53, %v27311_v51  ;;  %v25343_v31 = vmax.f32 %v24983_v1, %v27347_v30  ;;  %v25378_v62 = vmax.f32 %v25198_v15, %v25342_v57 }
 0x62d   : > { %v25555_v16 = vunpack.c.l.b16 %v27446_v39  ;;  %v25377_v42 = vmax.f32 %v25197_v24, %v25341_v14  ;;  %v27447_v33 = vpack.c.bf16 %v25376_v21, %v25376_v21  ;;  %v25554_v32 = vunpack.c.l.b16 %v27445_v45 }
 0x62e   : > { %v25379_v6 = vmax.f32 %v25199_v20, %v25343_v31  ;;  %v27449_v48 = vpack.c.bf16 %v25378_v62, %v25378_v62 }
 0x62f   : > { %v25615_v12 = vrot.slane %v25555_v16, 7  ;;  %v27448_v38 = vpack.c.bf16 %v25377_v42, %v25377_v42  ;;  %v25556_v2 = vunpack.c.l.b16 %v27447_v33 }
 0x630   : > { %v27450_v47 = vpack.c.bf16 %v25379_v6, %v25379_v6  ;;  %v25558_v10 = vunpack.c.l.b16 %v27449_v48 }
 0x631   : > { %v25616_v61 = vsel %vm25561_vm14, %v25615_v12, %v25554_v32  ;;  %v25557_v37 = vunpack.c.l.b16 %v27448_v38  ;;  %v25617_v9 = vrot.slane %v25556_v2, 6 }
 0x632   : > { %v25559_v44 = vunpack.c.l.b16 %v27450_v47  ;;  %v25621_v7 = vrot.slane %v25558_v10, 4 }
 0x633   : > { %v25618_v13 = vsel %vm19602_vm8, %v25617_v9, %v25616_v61  ;;  %v25619_v60 = vrot.slane %v25557_v37, 5 }
 0x634   : > { %v25623_v17 = vrot.slane %v25559_v44, 3 }
 0x635   : > { %v25620_v27 = vsel %vm25567_vm15, %v25619_v60, %v25618_v13 }
 0x636   : > { %v25622_v36 = vsel %vm19604_vm9, %v25621_v7, %v25620_v27 }
 0x637   : > { %v25624_v49 = vsel %vm25573_vm0, %v25623_v17, %v25622_v36 }
 0x638   : > { %v25630_v58 = vpack.c.b16 %v25624_v49, %v25624_v49 }
 0x63a   : > { %25642 = vst [vmem:[%s33838_s21 + $0x14] sm:$0x7] %v25630_v58 }
 0x63b PF: > { %p18_p9 = scmp.ge.s32.totalorder %s28937_s15, 4   ;;  %s34330_s21 = smov %s28783_s22 }
 0x63c   : > { %s34331_s22 = smov %s28787_s23  ;;  %s34332_s23 = smov %s28948_s20 }
 0x63d   : > { %s34333_s24 = smov %s28937_s15  ;;  %20 = sbr.rel (!%p18_p9) target bundleno = 4 (0x4), region = 104 }
 0x644   :  { %25680 = vsyncpa [#allocation6], 1 }
 0x645   :  { %25682 = vsyncpa [#allocation6 + $0x1], 1 }
 0x646   :  { %25683 = vsyncpa [#allocation8], 1 }

</bundles_post_ra>
